<compile_context>
chip_gen: v5e
topology: v5e:2x2
jax: 0.10.0
libtpu: 0.0.40
codegen_flags: <defaults>
</compile_context>

<pallas_src>
import functools

import numpy as np
import jax
import jax.numpy as jnp
from jax.experimental import pallas as pl
from jax.experimental.pallas import tpu as pltpu


# MXU input dtype (accumulation is always f32).
MATMUL_DTYPE = jnp.bfloat16
# dtype for weights, inter-layer activations, masks and returned attn probs.
ACT_DTYPE = jnp.bfloat16

_NEG_INF = -1e9
_INV_SQRT2 = 0.7071067811865476


# ----------------------------------------------------------------------------
# Hardware-aware knobs (probed once, safe fallbacks everywhere)
# ----------------------------------------------------------------------------

_VMEM_LIMIT_CACHE = None
_NUM_CORES_CACHE = None
_BUFFERED1_CACHE = None


def _vmem_limit_bytes():
    """Scoped-VMEM budget scaled to the chip's physical VMEM."""
    global _VMEM_LIMIT_CACHE
    if _VMEM_LIMIT_CACHE is not None:
        return _VMEM_LIMIT_CACHE
    cap = None
    try:
        info = pltpu.get_tpu_info()
        cap = getattr(info, "vmem_capacity_bytes", None)
    except Exception:
        cap = None
    if not cap:
        limit = 48 * 1024 * 1024          # safe on every generation (v7x = 64 MiB)
    else:
        limit = int(min(100 * 1024 * 1024,
                        max(32 * 1024 * 1024, int(cap) * 3 // 4)))
    _VMEM_LIMIT_CACHE = limit
    return limit


def _num_tensorcores():
    """Best-effort TensorCore count per chip (v5e/v6e = 1, v7x = 2)."""
    global _NUM_CORES_CACHE
    if _NUM_CORES_CACHE is not None:
        return _NUM_CORES_CACHE
    cores = 1
    try:
        d = jax.devices()[0]
        for name in ("num_cores", "core_count"):
            v = getattr(d, name, None)
            if isinstance(v, int) and v > 1:
                cores = v
                break
        else:
            kind = str(getattr(d, "device_kind", "")).lower()
            if "v7" in kind:
                cores = 2
    except Exception:
        cores = 1
    _NUM_CORES_CACHE = cores
    return cores


def _buffered1_probe_kernel(x_ref, o_ref):
    o_ref[...] = x_ref[...] + 1.0


def _buffered1_supported():
    """Probe once whether pipeline_mode=pl.Buffered(1) is accepted."""
    global _BUFFERED1_CACHE
    if _BUFFERED1_CACHE is not None:
        return _BUFFERED1_CACHE
    try:
        spec = pl.BlockSpec((8, 128), lambda i: (0, 0),
                            pipeline_mode=pl.Buffered(1))
        f = pl.pallas_call(
            _buffered1_probe_kernel,
            grid=(2,),
            in_specs=[spec],
            out_specs=pl.BlockSpec((8, 128), lambda i: (i, 0)),
            out_shape=jax.ShapeDtypeStruct((16, 128), jnp.float32))
        jax.block_until_ready(f(jnp.zeros((8, 128), jnp.float32)))
        _BUFFERED1_CACHE = True
    except Exception:
        _BUFFERED1_CACHE = False
    return _BUFFERED1_CACHE


def _compiler_params():
    return pltpu.CompilerParams(dimension_semantics=("parallel",),
                                vmem_limit_bytes=_vmem_limit_bytes())


def _wspec(shape):
    """Constant-index (weight/bias) BlockSpec, single-buffered when supported."""
    ndim = len(shape)
    idx = lambda b, _n=ndim: (0,) * _n
    if _buffered1_supported():
        return pl.BlockSpec(shape, idx, pipeline_mode=pl.Buffered(1))
    return pl.BlockSpec(shape, idx)


def pick_batch_block(B):
    """Split batch across grid steps only when >=2 TensorCores exist (v7x)."""
    if _num_tensorcores() >= 2 and B >= 2 and B % 2 == 0:
        return B // 2
    return B


# ----------------------------------------------------------------------------
# In-kernel helpers
# ----------------------------------------------------------------------------

def _dot(a, b):
    """2-D matmul on the MXU: bf16 inputs, f32 accumulation."""
    return jnp.dot(a.astype(MATMUL_DTYPE), b.astype(MATMUL_DTYPE),
                   preferred_element_type=jnp.float32)


def _bmm(eq, a, b):
    """Batched (single leading batch dim) einsum on the MXU, f32 accumulation."""
    return jnp.einsum(eq, a.astype(MATMUL_DTYPE), b.astype(MATMUL_DTYPE),
                      preferred_element_type=jnp.float32)


def _layernorm(x, g, b, eps):
    """torch nn.LayerNorm over the last axis (f32)."""
    mean = jnp.mean(x, axis=-1, keepdims=True)
    var = jnp.mean((x - mean) ** 2, axis=-1, keepdims=True)
    return (x - mean) * jax.lax.rsqrt(var + eps) * g + b


def _gelu(x):
    """Exact (erf) GELU, matching F.gelu."""
    return 0.5 * x * (1.0 + jax.lax.erf(x * _INV_SQRT2))


def _mha(q_lin, k_lin, v_lin, mask_bias, prob_ref, wo_ref, n_head, d_head):
    """Scaled-dot attention over a (Bt, Sq/Sk, H*Dh) batch block.

    Stores per-head probs into prob_ref (layout (Bt, H, Sq, Sk), bf16) and
    returns the output-projected context sum_h ctx_h @ wo[h*Dh:(h+1)*Dh, :]
    with shape (Bt*Sq, D) in f32 (identical to concat(ctx_h) @ wo but without
    the lane-shuffle concatenate).
    """
    bt, Sq, _ = q_lin.shape
    D = wo_ref.shape[1]
    scale = 1.0 / (d_head ** 0.5)
    out = jnp.zeros((bt * Sq, D), jnp.float32)
    for h in range(n_head):                      # static python loop over heads
        sl = slice(h * d_head, (h + 1) * d_head)
        s = _bmm('bqd,bkd->bqk', q_lin[:, :, sl], k_lin[:, :, sl]) * scale
        s = s + mask_bias                        # additive 0 / -1e9 bias (bf16)
        s = s - jnp.max(s, axis=-1, keepdims=True)
        e = jnp.exp(s)
        p = e * pl.reciprocal(jnp.sum(e, axis=-1, keepdims=True), approx=True)
        prob_ref[:, h:h + 1, :, :] = p.reshape((bt, 1) + p.shape[1:]).astype(
            prob_ref.dtype)
        ctx = _bmm('bqk,bkd->bqd', p, v_lin[:, :, sl])      # (Bt, Sq, Dh)
        out = out + _dot(ctx.reshape(bt * Sq, d_head), wo_ref[sl, :])
    return out


# ----------------------------------------------------------------------------
# Fused layer kernels
# ----------------------------------------------------------------------------

def _enc_layer_kernel(x_ref, mb_ref,
                      wqkv_ref, bqkv_ref, wo_ref, bo_ref,
                      g1_ref, b1_ref,
                      w1_ref, fb1_ref, w2_ref, fb2_ref,
                      g2_ref, b2_ref,
                      y_ref, prob_ref, *, n_head, d_head, eps):
    """One full encoder layer on a (Bt, S, D) batch block kept in VMEM."""
    bt, S, D = x_ref.shape
    HD = n_head * d_head

    x2 = x_ref[...].reshape(bt * S, D)                 # bf16, MXU operand
    x2f = x2.astype(jnp.float32)                       # f32 residual path

    # Fused QKV projection: one (D, 3*HD) matmul instead of three.
    qkv = (_dot(x2, wqkv_ref[...]) + bqkv_ref[...]).reshape(bt, S, 3 * HD)
    att = _mha(qkv[:, :, :HD], qkv[:, :, HD:2 * HD], qkv[:, :, 2 * HD:],
               mb_ref[...], prob_ref, wo_ref, n_head, d_head) + bo_ref[...]

    # Add & LayerNorm 1
    h1 = _layernorm(x2f + att, g1_ref[...], b1_ref[...], eps)

    # Position-wise FFN (conv1d k=1 == dense) with exact GELU
    f = _gelu(_dot(h1, w1_ref[...]) + fb1_ref[...])
    f = _dot(f, w2_ref[...]) + fb2_ref[...]

    # Add & LayerNorm 2
    y = _layernorm(h1 + f, g2_ref[...], b2_ref[...], eps)
    y_ref[...] = y.reshape(bt, S, D).astype(y_ref.dtype)


def _dec_layer_kernel(x_ref, enc_ref, smb_ref, cmb_ref,
                      wqkv_ref, bqkv_ref, wo_ref, bo_ref,
                      g1_ref, b1_ref,
                      wq_ref, bq_ref, wkv_ref, bkv_ref, wo2_ref, bo2_ref,
                      g2_ref, b2_ref,
                      w1_ref, fb1_ref, w2_ref, fb2_ref,
                      g3_ref, b3_ref,
                      *rest, n_head, d_head, eps, with_head):
    """One full decoder layer (self-attn + cross-attn + FFN) on a batch block.

    When with_head=True (last layer) the kernel also fuses the classification
    head: max over the sequence dim + bias-free projection (lane-padded).
    """
    if with_head:
        wp_ref, y_ref, sprob_ref, cprob_ref, logits_ref = rest
    else:
        y_ref, sprob_ref, cprob_ref = rest
        wp_ref = logits_ref = None

    bt, S, D = x_ref.shape
    Se = enc_ref.shape[1]
    HD = n_head * d_head

    x2 = x_ref[...].reshape(bt * S, D)
    x2f = x2.astype(jnp.float32)

    # ---- masked self-attention (fused QKV) + add & LN1
    qkv = (_dot(x2, wqkv_ref[...]) + bqkv_ref[...]).reshape(bt, S, 3 * HD)
    att = _mha(qkv[:, :, :HD], qkv[:, :, HD:2 * HD], qkv[:, :, 2 * HD:],
               smb_ref[...], sprob_ref, wo_ref, n_head, d_head) + bo_ref[...]
    h1 = _layernorm(x2f + att, g1_ref[...], b1_ref[...], eps)

    # ---- encoder-decoder cross-attention (fused KV) + add & LN2
    q = (_dot(h1, wq_ref[...]) + bq_ref[...]).reshape(bt, S, HD)
    enc2 = enc_ref[...].reshape(bt * Se, D)
    kv = (_dot(enc2, wkv_ref[...]) + bkv_ref[...]).reshape(bt, Se, 2 * HD)
    att2 = _mha(q, kv[:, :, :HD], kv[:, :, HD:],
                cmb_ref[...], cprob_ref, wo2_ref, n_head, d_head) + bo2_ref[...]
    h2 = _layernorm(h1 + att2, g2_ref[...], b2_ref[...], eps)

    # ---- FFN + add & LN3
    f = _gelu(_dot(h2, w1_ref[...]) + fb1_ref[...])
    f = _dot(f, w2_ref[...]) + fb2_ref[...]
    y = _layernorm(h2 + f, g3_ref[...], b3_ref[...], eps)
    y3 = y.reshape(bt, S, D)
    y_ref[...] = y3.astype(y_ref.dtype)

    if with_head:
        # fused classification head: torch.max over seq + bias-free projection
        pooled = jnp.max(y3, axis=1)                         # (bt, D), f32
        logits = _dot(pooled, wp_ref[...])                   # (bt, n_pad), f32
        logits_ref[...] = logits.reshape(bt, 1, logits.shape[-1])


# ----------------------------------------------------------------------------
# pallas_call wrappers
# ----------------------------------------------------------------------------

def encoder_layer(x, mask_bias, lp, cfg, bt):
    B, S, D = x.shape
    H, Dh = cfg['n_head'], cfg['d_head']
    HD = H * Dh
    Dff = cfg['d_ff']
    kernel = functools.partial(_enc_layer_kernel, n_head=H, d_head=Dh,
                               eps=cfg['layer_norm_epsilon'])
    y, probs = pl.pallas_call(
        kernel,
        grid=(B // bt,),
        in_specs=[
            pl.BlockSpec((bt, S, D), lambda b: (b, 0, 0)),
            pl.BlockSpec((bt, S, S), lambda b: (b, 0, 0)),
            _wspec((D, 3 * HD)), _wspec((1, 3 * HD)),
            _wspec((HD, D)), _wspec((1, D)),
            _wspec((1, D)), _wspec((1, D)),
            _wspec((D, Dff)), _wspec((1, Dff)),
            _wspec((Dff, D)), _wspec((1, D)),
            _wspec((1, D)), _wspec((1, D)),
        ],
        out_specs=(
            pl.BlockSpec((bt, S, D), lambda b: (b, 0, 0)),
            pl.BlockSpec((bt, H, S, S), lambda b: (b, 0, 0, 0)),
        ),
        out_shape=(
            jax.ShapeDtypeStruct((B, S, D), ACT_DTYPE),
            jax.ShapeDtypeStruct((B, H, S, S), ACT_DTYPE),
        ),
        compiler_params=_compiler_params(),
    )(x, mask_bias,
      lp['self_attn']['wqkv'], lp['self_attn']['bqkv'],
      lp['self_attn']['wo'], lp['self_attn']['bo'],
      lp['ln1']['g'], lp['ln1']['b'],
      lp['ffn']['w1'], lp['ffn']['b1'], lp['ffn']['w2'], lp['ffn']['b2'],
      lp['ln2']['g'], lp['ln2']['b'])
    return y, probs                                   # probs already (B,H,S,S)


def decoder_layer(x, enc_out, self_bias, cross_bias, lp, cfg, bt, wp_pad=None):
    B, S, D = x.shape
    Se = enc_out.shape[1]
    H, Dh = cfg['n_head'], cfg['d_head']
    HD = H * Dh
    Dff = cfg['d_ff']
    with_head = wp_pad is not None
    kernel = functools.partial(_dec_layer_kernel, n_head=H, d_head=Dh,
                               eps=cfg['layer_norm_epsilon'],
                               with_head=with_head)
    sa, ca = lp['self_attn'], lp['dec_enc_attn']

    in_specs = [
        pl.BlockSpec((bt, S, D), lambda b: (b, 0, 0)),
        pl.BlockSpec((bt, Se, D), lambda b: (b, 0, 0)),
        pl.BlockSpec((bt, S, S), lambda b: (b, 0, 0)),
        pl.BlockSpec((bt, S, Se), lambda b: (b, 0, 0)),
        _wspec((D, 3 * HD)), _wspec((1, 3 * HD)),
        _wspec((HD, D)), _wspec((1, D)),
        _wspec((1, D)), _wspec((1, D)),
        _wspec((D, HD)), _wspec((1, HD)),
        _wspec((D, 2 * HD)), _wspec((1, 2 * HD)),
        _wspec((HD, D)), _wspec((1, D)),
        _wspec((1, D)), _wspec((1, D)),
        _wspec((D, Dff)), _wspec((1, Dff)),
        _wspec((Dff, D)), _wspec((1, D)),
        _wspec((1, D)), _wspec((1, D)),
    ]
    out_specs = [
        pl.BlockSpec((bt, S, D), lambda b: (b, 0, 0)),
        pl.BlockSpec((bt, H, S, S), lambda b: (b, 0, 0, 0)),
        pl.BlockSpec((bt, H, S, Se), lambda b: (b, 0, 0, 0)),
    ]
    out_shape = [
        jax.ShapeDtypeStruct((B, S, D), ACT_DTYPE),
        jax.ShapeDtypeStruct((B, H, S, S), ACT_DTYPE),
        jax.ShapeDtypeStruct((B, H, S, Se), ACT_DTYPE),
    ]
    args = [x, enc_out, self_bias, cross_bias,
            sa['wqkv'], sa['bqkv'], sa['wo'], sa['bo'],
            lp['ln1']['g'], lp['ln1']['b'],
            ca['wq'], ca['bq'], ca['wkv'], ca['bkv'], ca['wo'], ca['bo'],
            lp['ln2']['g'], lp['ln2']['b'],
            lp['ffn']['w1'], lp['ffn']['b1'], lp['ffn']['w2'], lp['ffn']['b2'],
            lp['ln3']['g'], lp['ln3']['b']]
    if with_head:
        n_pad = wp_pad.shape[1]
        in_specs.append(_wspec((D, n_pad)))
        out_specs.append(pl.BlockSpec((bt, 1, n_pad), lambda b: (b, 0, 0)))
        out_shape.append(jax.ShapeDtypeStruct((B, 1, n_pad), jnp.float32))
        args.append(wp_pad)

    outs = pl.pallas_call(
        kernel,
        grid=(B // bt,),
        in_specs=in_specs,
        out_specs=tuple(out_specs),
        out_shape=tuple(out_shape),
        compiler_params=_compiler_params(),
    )(*args)

    if with_head:
        y, sprob, cprob, logits = outs
        return y, sprob, cprob, logits[:, 0, :]
    y, sprob, cprob = outs
    return y, sprob, cprob, None


# ----------------------------------------------------------------------------
# Glue: masks, positional table, encoder / decoder orchestration
# ----------------------------------------------------------------------------

def get_sinusoid_encoding_table(n_seq, d_hidn):
    pos = np.arange(n_seq)[:, None]
    i = np.arange(d_hidn)[None, :]
    angle = pos / np.power(10000, 2 * (i // 2) / d_hidn)
    table = np.zeros((n_seq, d_hidn), dtype=np.float64)
    table[:, 0::2] = np.sin(angle[:, 0::2])
    table[:, 1::2] = np.cos(angle[:, 1::2])
    return jnp.asarray(table, dtype=jnp.float32)


def get_attn_pad_mask(seq_q, seq_k, i_pad):
    B, Lq = seq_q.shape
    Lk = seq_k.shape[1]
    m = (seq_k == i_pad)[:, None, :]
    return jnp.broadcast_to(m, (B, Lq, Lk)).astype(jnp.int32)


def get_attn_decoder_mask(seq):
    B, L = seq.shape
    m = jnp.triu(jnp.ones((L, L), jnp.int32), k=1)
    return jnp.broadcast_to(m[None], (B, L, L))


def _mask_bias(mask):
    """Additive attention bias (bf16): 0 where visible, -1e9 where masked."""
    return (mask.astype(jnp.float32) * jnp.float32(_NEG_INF)).astype(ACT_DTYPE)


def encoder_forward(params, enc_inputs, cfg, bt):
    B, S = enc_inputs.shape
    positions = jnp.broadcast_to(
        jnp.arange(S, dtype=enc_inputs.dtype)[None, :] + 1, (B, S))
    positions = jnp.where(enc_inputs == cfg['i_pad'], 0, positions)
    x = (jnp.take(params['enc_emb'], enc_inputs, axis=0)
         + jnp.take(params['enc_pos'], positions, axis=0)).astype(ACT_DTYPE)
    attn_bias = _mask_bias(get_attn_pad_mask(enc_inputs, enc_inputs,
                                             cfg['i_pad']))
    probs = []
    for lp in params['enc_layers']:
        x, p = encoder_layer(x, attn_bias, lp, cfg, bt)
        probs.append(p)
    return x, probs


def decoder_forward(params, dec_inputs, enc_inputs, enc_outputs, cfg, bt,
                    wp_pad):
    B, S = dec_inputs.shape
    positions = jnp.broadcast_to(
        jnp.arange(S, dtype=dec_inputs.dtype)[None, :] + 1, (B, S))
    positions = jnp.where(dec_inputs == cfg['i_pad'], 0, positions)
    x = (jnp.take(params['dec_emb'], dec_inputs, axis=0)
         + jnp.take(params['dec_pos'], positions, axis=0)).astype(ACT_DTYPE)
    pad_mask = get_attn_pad_mask(dec_inputs, dec_inputs, cfg['i_pad'])
    causal = get_attn_decoder_mask(dec_inputs)
    self_bias = _mask_bias(((pad_mask + causal) > 0).astype(jnp.int32))
    cross_bias = _mask_bias(get_attn_pad_mask(dec_inputs, enc_inputs,
                                              cfg['i_pad']))
    self_probs, cross_probs = [], []
    n_layer = len(params['dec_layers'])
    logits_pad = None
    for li, lp in enumerate(params['dec_layers']):
        last = (li == n_layer - 1)
        x, sp, cp, lg = decoder_layer(x, enc_outputs, self_bias, cross_bias,
                                      lp, cfg, bt,
                                      wp_pad if last else None)
        self_probs.append(sp)
        cross_probs.append(cp)
        if last:
            logits_pad = lg
    return x, self_probs, cross_probs, logits_pad


def movie_classification_forward(params, enc_inputs, dec_inputs, cfg):
    bt = pick_batch_block(enc_inputs.shape[0])
    n_out = cfg['n_output']
    n_pad = ((n_out + 127) // 128) * 128
    wp_pad = jnp.pad(params['wp'], ((0, 0), (0, n_pad - n_out)))

    enc_out, enc_probs = encoder_forward(params, enc_inputs, cfg, bt)
    _, dec_self_probs, dec_enc_probs, logits_pad = decoder_forward(
        params, dec_inputs, enc_inputs, enc_out, cfg, bt, wp_pad)
    logits = logits_pad[:, :n_out]
    return logits, enc_probs, dec_self_probs, dec_enc_probs


# ----------------------------------------------------------------------------
# Deterministic parameter init (synthetic; no checkpoint loading)
# ----------------------------------------------------------------------------

def init_params(key, cfg):
    D = cfg['d_hidn']
    HD = cfg['n_head'] * cfg['d_head']
    Dff = cfg['d_ff']
    keys = iter(jax.random.split(key, 512))

    def dense(shape, scale=0.02, dtype=ACT_DTYPE):
        w = scale * jax.random.normal(next(keys), shape, dtype=jnp.float32)
        return w.astype(dtype)

    def attn_self_params():     # fused Q/K/V projection (bf16 weights)
        return dict(wqkv=dense((D, 3 * HD)),
                    bqkv=dense((1, 3 * HD), dtype=jnp.float32),
                    wo=dense((HD, D)),
                    bo=dense((1, D), dtype=jnp.float32))

    def attn_cross_params():    # separate Q, fused K/V projection
        return dict(wq=dense((D, HD)), bq=dense((1, HD), dtype=jnp.float32),
                    wkv=dense((D, 2 * HD)),
                    bkv=dense((1, 2 * HD), dtype=jnp.float32),
                    wo=dense((HD, D)), bo=dense((1, D), dtype=jnp.float32))

    def ln_params():
        return dict(g=jnp.ones((1, D), jnp.float32),
                    b=jnp.zeros((1, D), jnp.float32))

    def ffn_params():
        return dict(w1=dense((D, Dff)), b1=dense((1, Dff), dtype=jnp.float32),
                    w2=dense((Dff, D)), b2=dense((1, D), dtype=jnp.float32))

    enc_layers = [dict(self_attn=attn_self_params(), ln1=ln_params(),
                       ffn=ffn_params(), ln2=ln_params())
                  for _ in range(cfg['n_layer'])]
    dec_layers = [dict(self_attn=attn_self_params(), ln1=ln_params(),
                       dec_enc_attn=attn_cross_params(), ln2=ln_params(),
                       ffn=ffn_params(), ln3=ln_params())
                  for _ in range(cfg['n_layer'])]

    return dict(
        enc_emb=dense((cfg['n_enc_vocab'], D), scale=0.1, dtype=jnp.float32),
        dec_emb=dense((cfg['n_dec_vocab'], D), scale=0.1, dtype=jnp.float32),
        enc_pos=get_sinusoid_encoding_table(cfg['n_enc_seq'] + 1, D),
        dec_pos=get_sinusoid_encoding_table(cfg['n_dec_seq'] + 1, D),
        enc_layers=enc_layers,
        dec_layers=dec_layers,
        wp=dense((D, cfg['n_output'])),
    )


# ----------------------------------------------------------------------------

if __name__ == "__main__":
    # Small, shape-consistent synthetic config (original: 256 hidden, 6 layers).
    cfg = dict(n_enc_vocab=32, n_dec_vocab=32, n_enc_seq=8, n_dec_seq=8,
               n_layer=2, d_hidn=32, i_pad=0, d_ff=64, n_head=4, d_head=8,
               layer_norm_epsilon=1e-12, n_output=4)

    key = jax.random.PRNGKey(0)
    pkey, ekey, dkey = jax.random.split(key, 3)
    params = init_params(pkey, cfg)

    B = 2
    enc_inputs = jax.random.randint(ekey, (B, cfg['n_enc_seq']), 1,
                                    cfg['n_enc_vocab'], dtype=jnp.int32)
    dec_inputs = jax.random.randint(dkey, (B, cfg['n_dec_seq']), 1,
                                    cfg['n_dec_vocab'], dtype=jnp.int32)
    # introduce some pad tokens to exercise the pad masks
    enc_inputs = enc_inputs.at[:, -2:].set(cfg['i_pad'])
    dec_inputs = dec_inputs.at[:, -1].set(cfg['i_pad'])

    # prime hardware probes outside the jit trace
    _buffered1_supported()
    _num_tensorcores()
    _vmem_limit_bytes()

    fwd = jax.jit(lambda p, e, d: movie_classification_forward(p, e, d, cfg))
    logits, enc_probs, dec_self_probs, dec_enc_probs = fwd(
        params, enc_inputs, dec_inputs)

    jax.block_until_ready((logits, enc_probs, dec_self_probs, dec_enc_probs))
    assert logits.shape == (B, cfg['n_output'])
    assert enc_probs[0].shape == (B, cfg['n_head'],
                                  cfg['n_enc_seq'], cfg['n_enc_seq'])
    assert dec_self_probs[0].shape == (B, cfg['n_head'],
                                       cfg['n_dec_seq'], cfg['n_dec_seq'])
    assert dec_enc_probs[0].shape == (B, cfg['n_head'],
                                      cfg['n_dec_seq'], cfg['n_enc_seq'])
    print("KERNEL_OK")
</pallas_src>

<mosaic_0001>
module attributes {stable_mosaic.version = 11 : i64} {
  func.func @_buffered1_probe_kernel(%arg0: i32, %arg1: memref<8x128xf32, #tpu.memory_space<vmem>>, %arg2: memref<8x128xf32, #tpu.memory_space<vmem>>) attributes {dimension_semantics = [#tpu.dimension_semantics<arbitrary>], iteration_bounds = array<i64: 2>, scalar_prefetch = 0 : i64, scratch_operands = 0 : i64, tpu.core_type = #tpu.core_type<tc>, window_params = [{pipeline_mode = #tpu.pipeline_mode<synchronous>, transform_indices = @transform_0, window_bounds = array<i64: 8, 128>}, {transform_indices = @transform_1, window_bounds = array<i64: 8, 128>}]} {
    %c0 = arith.constant 0 : index
    %c0_0 = arith.constant 0 : index
    %0 = vector.load %arg1[%c0, %c0_0] : memref<8x128xf32, #tpu.memory_space<vmem>>, vector<8x128xf32>
    %cst = arith.constant 1.000000e+00 : f32
    %1 = vector.broadcast %cst : f32 to vector<8x128xf32>
    %2 = arith.addf %0, %1 : vector<8x128xf32>
    %c0_1 = arith.constant 0 : index
    %c0_2 = arith.constant 0 : index
    %3 = vector.load %arg2[%c0_1, %c0_2] : memref<8x128xf32, #tpu.memory_space<vmem>>, vector<8x128xf32>
    tpu.vector_store %arg2[%c0_1, %c0_2], %2 {strides = array<i32>} : memref<8x128xf32, #tpu.memory_space<vmem>>, vector<8x128xf32>,
    return
  }
  func.func @transform_0(%arg0: i32) -> (i32, i32) {
    %c0_i32 = arith.constant 0 : i32
    %c0_i32_0 = arith.constant 0 : i32
    %c0_i32_1 = arith.constant 0 : i32
    return %c0_i32, %c0_i32_0 : i32, i32
  }
  func.func @transform_1(%arg0: i32) -> (i32, i32) {
    %c0_i32 = arith.constant 0 : i32
    %c0_i32_0 = arith.constant 0 : i32
    return %arg0, %c0_i32 : i32, i32
  }
}

module attributes {stable_mosaic.version = 11 : i64} {
  func.func @_enc_layer_kernel(%arg0: i32, %arg1: memref<2x8x32xbf16, #tpu.memory_space<vmem>>, %arg2: memref<2x8x8xbf16, #tpu.memory_space<vmem>>, %arg3: memref<32x96xbf16, #tpu.memory_space<vmem>>, %arg4: memref<1x96xf32, #tpu.memory_space<vmem>>, %arg5: memref<32x32xbf16, #tpu.memory_space<vmem>>, %arg6: memref<1x32xf32, #tpu.memory_space<vmem>>, %arg7: memref<1x32xf32, #tpu.memory_space<vmem>>, %arg8: memref<1x32xf32, #tpu.memory_space<vmem>>, %arg9: memref<32x64xbf16, #tpu.memory_space<vmem>>, %arg10: memref<1x64xf32, #tpu.memory_space<vmem>>, %arg11: memref<64x32xbf16, #tpu.memory_space<vmem>>, %arg12: memref<1x32xf32, #tpu.memory_space<vmem>>, %arg13: memref<1x32xf32, #tpu.memory_space<vmem>>, %arg14: memref<1x32xf32, #tpu.memory_space<vmem>>, %arg15: memref<2x8x32xbf16, #tpu.memory_space<vmem>>, %arg16: memref<2x4x8x8xbf16, #tpu.memory_space<vmem>>) attributes {dimension_semantics = [#tpu.dimension_semantics<parallel>], iteration_bounds = array<i64: 1>, scalar_prefetch = 0 : i64, scratch_operands = 0 : i64, tpu.core_type = #tpu.core_type<tc>, window_params = [{transform_indices = @transform_0, window_bounds = array<i64: 2, 8, 32>}, {transform_indices = @transform_1, window_bounds = array<i64: 2, 8, 8>}, {pipeline_mode = #tpu.pipeline_mode<synchronous>, transform_indices = @transform_2, window_bounds = array<i64: 32, 96>}, {pipeline_mode = #tpu.pipeline_mode<synchronous>, transform_indices = @transform_3, window_bounds = array<i64: 1, 96>}, {pipeline_mode = #tpu.pipeline_mode<synchronous>, transform_indices = @transform_4, window_bounds = array<i64: 32, 32>}, {pipeline_mode = #tpu.pipeline_mode<synchronous>, transform_indices = @transform_5, window_bounds = array<i64: 1, 32>}, {pipeline_mode = #tpu.pipeline_mode<synchronous>, transform_indices = @transform_6, window_bounds = array<i64: 1, 32>}, {pipeline_mode = #tpu.pipeline_mode<synchronous>, transform_indices = @transform_7, window_bounds = array<i64: 1, 32>}, {pipeline_mode = #tpu.pipeline_mode<synchronous>, transform_indices = @transform_8, window_bounds = array<i64: 32, 64>}, {pipeline_mode = #tpu.pipeline_mode<synchronous>, transform_indices = @transform_9, window_bounds = array<i64: 1, 64>}, {pipeline_mode = #tpu.pipeline_mode<synchronous>, transform_indices = @transform_10, window_bounds = array<i64: 64, 32>}, {pipeline_mode = #tpu.pipeline_mode<synchronous>, transform_indices = @transform_11, window_bounds = array<i64: 1, 32>}, {pipeline_mode = #tpu.pipeline_mode<synchronous>, transform_indices = @transform_12, window_bounds = array<i64: 1, 32>}, {pipeline_mode = #tpu.pipeline_mode<synchronous>, transform_indices = @transform_13, window_bounds = array<i64: 1, 32>}, {transform_indices = @transform_14, window_bounds = array<i64: 2, 8, 32>}, {transform_indices = @transform_15, window_bounds = array<i64: 2, 4, 8, 8>}]} {
    %c0 = arith.constant 0 : index
    %c0_0 = arith.constant 0 : index
    %c0_1 = arith.constant 0 : index
    %0 = vector.load %arg1[%c0, %c0_0, %c0_1] : memref<2x8x32xbf16, #tpu.memory_space<vmem>>, vector<2x8x32xbf16>
    %1 = vector.shape_cast %0 : vector<2x8x32xbf16> to vector<16x32xbf16>
    %2 = arith.extf %1 : vector<16x32xbf16> to vector<16x32xf32>
    %c0_2 = arith.constant 0 : index
    %c0_3 = arith.constant 0 : index
    %3 = vector.load %arg3[%c0_2, %c0_3] : memref<32x96xbf16, #tpu.memory_space<vmem>>, vector<32x96xbf16>
    %cst = arith.constant dense<0.000000e+00> : vector<16x96xf32>
    %4 = tpu.matmul %1, %3, %cst {dimension_numbers = #tpu.dot_dimension_numbers<[1], [0], [0], [1], [0, 0, 1, 1], [], []>} : vector<16x32xbf16>, vector<32x96xbf16>, vector<16x96xf32> -> vector<16x96xf32>
    %c0_4 = arith.constant 0 : index
    %c0_5 = arith.constant 0 : index
    %5 = vector.load %arg4[%c0_4, %c0_5] : memref<1x96xf32, #tpu.memory_space<vmem>>, vector<1x96xf32>
    %6 = vector.broadcast %5 : vector<1x96xf32> to vector<16x96xf32>
    %7 = arith.addf %4, %6 : vector<16x96xf32>
    %8 = vector.shape_cast %7 : vector<16x96xf32> to vector<2x8x96xf32>
    %9 = vector.extract_strided_slice %8 {offsets = [0, 0, 0], sizes = [2, 8, 32], strides = [1, 1, 1]} : vector<2x8x96xf32> to vector<2x8x32xf32>
    %10 = vector.extract_strided_slice %8 {offsets = [0, 0, 32], sizes = [2, 8, 32], strides = [1, 1, 1]} : vector<2x8x96xf32> to vector<2x8x32xf32>
    %11 = vector.extract_strided_slice %8 {offsets = [0, 0, 64], sizes = [2, 8, 32], strides = [1, 1, 1]} : vector<2x8x96xf32> to vector<2x8x32xf32>
    %c0_6 = arith.constant 0 : index
    %c0_7 = arith.constant 0 : index
    %c0_8 = arith.constant 0 : index
    %12 = vector.load %arg2[%c0_6, %c0_7, %c0_8] : memref<2x8x8xbf16, #tpu.memory_space<vmem>>, vector<2x8x8xbf16>
    %cst_9 = arith.constant 0.000000e+00 : f32
    %13 = vector.broadcast %cst_9 : f32 to vector<16x32xf32>
    %14 = vector.extract_strided_slice %9 {offsets = [0, 0, 0], sizes = [2, 8, 8], strides = [1, 1, 1]} : vector<2x8x32xf32> to vector<2x8x8xf32>
    %15 = vector.extract_strided_slice %10 {offsets = [0, 0, 0], sizes = [2, 8, 8], strides = [1, 1, 1]} : vector<2x8x32xf32> to vector<2x8x8xf32>
    %16 = arith.truncf %14 : vector<2x8x8xf32> to vector<2x8x8xbf16>
    %17 = arith.truncf %15 : vector<2x8x8xf32> to vector<2x8x8xbf16>
    "tpu.trace_start"() <{level = 10 : i32, message = "bqd,bkd->bqk"}> : () -> ()
    %cst_10 = arith.constant dense<0.000000e+00> : vector<2x8x8xf32>
    %18 = tpu.matmul %16, %17, %cst_10 {dimension_numbers = #tpu.dot_dimension_numbers<[2], [2], [1], [1], [0, 0, 0, 1, 1, 1], [0], [0]>} : vector<2x8x8xbf16>, vector<2x8x8xbf16>, vector<2x8x8xf32> -> vector<2x8x8xf32>
    "tpu.trace_stop"() : () -> ()
    %cst_11 = arith.constant 0.353553385 : f32
    %19 = vector.broadcast %cst_11 : f32 to vector<2x8x8xf32>
    %20 = arith.mulf %18, %19 : vector<2x8x8xf32>
    %21 = arith.extf %12 : vector<2x8x8xbf16> to vector<2x8x8xf32>
    %22 = arith.addf %20, %21 : vector<2x8x8xf32>
    %cst_12 = arith.constant dense<0xFF800000> : vector<2x8xf32>
    %23 = vector.multi_reduction <maximumf>, %22, %cst_12 [2] : vector<2x8x8xf32> to vector<2x8xf32>
    %24 = vector.shape_cast %23 : vector<2x8xf32> to vector<2x8x1xf32>
    %25 = vector.broadcast %24 : vector<2x8x1xf32> to vector<2x8x8xf32>
    %26 = arith.subf %22, %25 : vector<2x8x8xf32>
    %27 = math.exp %26 : vector<2x8x8xf32>
    %cst_13 = arith.constant dense<0.000000e+00> : vector<2x8xf32>
    %28 = vector.multi_reduction <add>, %27, %cst_13 [2] : vector<2x8x8xf32> to vector<2x8xf32>
    %29 = vector.shape_cast %28 : vector<2x8xf32> to vector<2x8x1xf32>
    %30 = tpu.reciprocal %29 {approx = true} : vector<2x8x1xf32> -> vector<2x8x1xf32>
    %31 = vector.broadcast %30 : vector<2x8x1xf32> to vector<2x8x8xf32>
    %32 = arith.mulf %27, %31 : vector<2x8x8xf32>
    %33 = vector.shape_cast %32 : vector<2x8x8xf32> to vector<2x1x8x8xf32>
    %34 = arith.truncf %33 : vector<2x1x8x8xf32> to vector<2x1x8x8xbf16>
    %c0_14 = arith.constant 0 : index
    %c0_15 = arith.constant 0 : index
    %c0_16 = arith.constant 0 : index
    %c0_17 = arith.constant 0 : index
    %35 = vector.load %arg16[%c0_14, %c0_15, %c0_16, %c0_17] : memref<2x4x8x8xbf16, #tpu.memory_space<vmem>>, vector<2x1x8x8xbf16>
    tpu.vector_store %arg16[%c0_14, %c0_15, %c0_16, %c0_17], %34 {strides = array<i32>} : memref<2x4x8x8xbf16, #tpu.memory_space<vmem>>, vector<2x1x8x8xbf16>,
    %36 = vector.extract_strided_slice %11 {offsets = [0, 0, 0], sizes = [2, 8, 8], strides = [1, 1, 1]} : vector<2x8x32xf32> to vector<2x8x8xf32>
    %37 = arith.truncf %32 : vector<2x8x8xf32> to vector<2x8x8xbf16>
    %38 = arith.truncf %36 : vector<2x8x8xf32> to vector<2x8x8xbf16>
    "tpu.trace_start"() <{level = 10 : i32, message = "bqk,bkd->bqd"}> : () -> ()
    %cst_18 = arith.constant dense<0.000000e+00> : vector<2x8x8xf32>
    %39 = tpu.matmul %37, %38, %cst_18 {dimension_numbers = #tpu.dot_dimension_numbers<[2], [1], [1], [2], [0, 0, 0, 1, 1, 2], [0], [0]>} : vector<2x8x8xbf16>, vector<2x8x8xbf16>, vector<2x8x8xf32> -> vector<2x8x8xf32>
    "tpu.trace_stop"() : () -> ()
    %40 = vector.shape_cast %39 : vector<2x8x8xf32> to vector<16x8xf32>
    %c0_19 = arith.constant 0 : index
    %c0_20 = arith.constant 0 : index
    %41 = vector.load %arg5[%c0_19, %c0_20] : memref<32x32xbf16, #tpu.memory_space<vmem>>, vector<8x32xbf16>
    %42 = arith.truncf %40 : vector<16x8xf32> to vector<16x8xbf16>
    %cst_21 = arith.constant dense<0.000000e+00> : vector<16x32xf32>
    %43 = tpu.matmul %42, %41, %cst_21 {dimension_numbers = #tpu.dot_dimension_numbers<[1], [0], [0], [1], [0, 0, 1, 1], [], []>} : vector<16x8xbf16>, vector<8x32xbf16>, vector<16x32xf32> -> vector<16x32xf32>
    %44 = arith.addf %13, %43 : vector<16x32xf32>
    %45 = vector.extract_strided_slice %9 {offsets = [0, 0, 8], sizes = [2, 8, 8], strides = [1, 1, 1]} : vector<2x8x32xf32> to vector<2x8x8xf32>
    %46 = vector.extract_strided_slice %10 {offsets = [0, 0, 8], sizes = [2, 8, 8], strides = [1, 1, 1]} : vector<2x8x32xf32> to vector<2x8x8xf32>
    %47 = arith.truncf %45 : vector<2x8x8xf32> to vector<2x8x8xbf16>
    %48 = arith.truncf %46 : vector<2x8x8xf32> to vector<2x8x8xbf16>
    "tpu.trace_start"() <{level = 10 : i32, message = "bqd,bkd->bqk"}> : () -> ()
    %cst_22 = arith.constant dense<0.000000e+00> : vector<2x8x8xf32>
    %49 = tpu.matmul %47, %48, %cst_22 {dimension_numbers = #tpu.dot_dimension_numbers<[2], [2], [1], [1], [0, 0, 0, 1, 1, 1], [0], [0]>} : vector<2x8x8xbf16>, vector<2x8x8xbf16>, vector<2x8x8xf32> -> vector<2x8x8xf32>
    "tpu.trace_stop"() : () -> ()
    %cst_23 = arith.constant 0.353553385 : f32
    %50 = vector.broadcast %cst_23 : f32 to vector<2x8x8xf32>
    %51 = arith.mulf %49, %50 : vector<2x8x8xf32>
    %52 = arith.extf %12 : vector<2x8x8xbf16> to vector<2x8x8xf32>
    %53 = arith.addf %51, %52 : vector<2x8x8xf32>
    %cst_24 = arith.constant dense<0xFF800000> : vector<2x8xf32>
    %54 = vector.multi_reduction <maximumf>, %53, %cst_24 [2] : vector<2x8x8xf32> to vector<2x8xf32>
    %55 = vector.shape_cast %54 : vector<2x8xf32> to vector<2x8x1xf32>
    %56 = vector.broadcast %55 : vector<2x8x1xf32> to vector<2x8x8xf32>
    %57 = arith.subf %53, %56 : vector<2x8x8xf32>
    %58 = math.exp %57 : vector<2x8x8xf32>
    %cst_25 = arith.constant dense<0.000000e+00> : vector<2x8xf32>
    %59 = vector.multi_reduction <add>, %58, %cst_25 [2] : vector<2x8x8xf32> to vector<2x8xf32>
    %60 = vector.shape_cast %59 : vector<2x8xf32> to vector<2x8x1xf32>
    %61 = tpu.reciprocal %60 {approx = true} : vector<2x8x1xf32> -> vector<2x8x1xf32>
    %62 = vector.broadcast %61 : vector<2x8x1xf32> to vector<2x8x8xf32>
    %63 = arith.mulf %58, %62 : vector<2x8x8xf32>
    %64 = vector.shape_cast %63 : vector<2x8x8xf32> to vector<2x1x8x8xf32>
    %65 = arith.truncf %64 : vector<2x1x8x8xf32> to vector<2x1x8x8xbf16>
    %c0_26 = arith.constant 0 : index
    %c1 = arith.constant 1 : index
    %c0_27 = arith.constant 0 : index
    %c0_28 = arith.constant 0 : index
    %66 = vector.load %arg16[%c0_26, %c1, %c0_27, %c0_28] : memref<2x4x8x8xbf16, #tpu.memory_space<vmem>>, vector<2x1x8x8xbf16>
    tpu.vector_store %arg16[%c0_26, %c1, %c0_27, %c0_28], %65 {strides = array<i32>} : memref<2x4x8x8xbf16, #tpu.memory_space<vmem>>, vector<2x1x8x8xbf16>,
    %67 = vector.extract_strided_slice %11 {offsets = [0, 0, 8], sizes = [2, 8, 8], strides = [1, 1, 1]} : vector<2x8x32xf32> to vector<2x8x8xf32>
    %68 = arith.truncf %63 : vector<2x8x8xf32> to vector<2x8x8xbf16>
    %69 = arith.truncf %67 : vector<2x8x8xf32> to vector<2x8x8xbf16>
    "tpu.trace_start"() <{level = 10 : i32, message = "bqk,bkd->bqd"}> : () -> ()
    %cst_29 = arith.constant dense<0.000000e+00> : vector<2x8x8xf32>
    %70 = tpu.matmul %68, %69, %cst_29 {dimension_numbers = #tpu.dot_dimension_numbers<[2], [1], [1], [2], [0, 0, 0, 1, 1, 2], [0], [0]>} : vector<2x8x8xbf16>, vector<2x8x8xbf16>, vector<2x8x8xf32> -> vector<2x8x8xf32>
    "tpu.trace_stop"() : () -> ()
    %71 = vector.shape_cast %70 : vector<2x8x8xf32> to vector<16x8xf32>
    %c8 = arith.constant 8 : index
    %c0_30 = arith.constant 0 : index
    %72 = vector.load %arg5[%c8, %c0_30] : memref<32x32xbf16, #tpu.memory_space<vmem>>, vector<8x32xbf16>
    %73 = arith.truncf %71 : vector<16x8xf32> to vector<16x8xbf16>
    %cst_31 = arith.constant dense<0.000000e+00> : vector<16x32xf32>
    %74 = tpu.matmul %73, %72, %cst_31 {dimension_numbers = #tpu.dot_dimension_numbers<[1], [0], [0], [1], [0, 0, 1, 1], [], []>} : vector<16x8xbf16>, vector<8x32xbf16>, vector<16x32xf32> -> vector<16x32xf32>
    %75 = arith.addf %44, %74 : vector<16x32xf32>
    %76 = vector.extract_strided_slice %9 {offsets = [0, 0, 16], sizes = [2, 8, 8], strides = [1, 1, 1]} : vector<2x8x32xf32> to vector<2x8x8xf32>
    %77 = vector.extract_strided_slice %10 {offsets = [0, 0, 16], sizes = [2, 8, 8], strides = [1, 1, 1]} : vector<2x8x32xf32> to vector<2x8x8xf32>
    %78 = arith.truncf %76 : vector<2x8x8xf32> to vector<2x8x8xbf16>
    %79 = arith.truncf %77 : vector<2x8x8xf32> to vector<2x8x8xbf16>
    "tpu.trace_start"() <{level = 10 : i32, message = "bqd,bkd->bqk"}> : () -> ()
    %cst_32 = arith.constant dense<0.000000e+00> : vector<2x8x8xf32>
    %80 = tpu.matmul %78, %79, %cst_32 {dimension_numbers = #tpu.dot_dimension_numbers<[2], [2], [1], [1], [0, 0, 0, 1, 1, 1], [0], [0]>} : vector<2x8x8xbf16>, vector<2x8x8xbf16>, vector<2x8x8xf32> -> vector<2x8x8xf32>
    "tpu.trace_stop"() : () -> ()
    %cst_33 = arith.constant 0.353553385 : f32
    %81 = vector.broadcast %cst_33 : f32 to vector<2x8x8xf32>
    %82 = arith.mulf %80, %81 : vector<2x8x8xf32>
    %83 = arith.extf %12 : vector<2x8x8xbf16> to vector<2x8x8xf32>
    %84 = arith.addf %82, %83 : vector<2x8x8xf32>
    %cst_34 = arith.constant dense<0xFF800000> : vector<2x8xf32>
    %85 = vector.multi_reduction <maximumf>, %84, %cst_34 [2] : vector<2x8x8xf32> to vector<2x8xf32>
    %86 = vector.shape_cast %85 : vector<2x8xf32> to vector<2x8x1xf32>
    %87 = vector.broadcast %86 : vector<2x8x1xf32> to vector<2x8x8xf32>
    %88 = arith.subf %84, %87 : vector<2x8x8xf32>
    %89 = math.exp %88 : vector<2x8x8xf32>
    %cst_35 = arith.constant dense<0.000000e+00> : vector<2x8xf32>
    %90 = vector.multi_reduction <add>, %89, %cst_35 [2] : vector<2x8x8xf32> to vector<2x8xf32>
    %91 = vector.shape_cast %90 : vector<2x8xf32> to vector<2x8x1xf32>
    %92 = tpu.reciprocal %91 {approx = true} : vector<2x8x1xf32> -> vector<2x8x1xf32>
    %93 = vector.broadcast %92 : vector<2x8x1xf32> to vector<2x8x8xf32>
    %94 = arith.mulf %89, %93 : vector<2x8x8xf32>
    %95 = vector.shape_cast %94 : vector<2x8x8xf32> to vector<2x1x8x8xf32>
    %96 = arith.truncf %95 : vector<2x1x8x8xf32> to vector<2x1x8x8xbf16>
    %c0_36 = arith.constant 0 : index
    %c2 = arith.constant 2 : index
    %c0_37 = arith.constant 0 : index
    %c0_38 = arith.constant 0 : index
    %97 = vector.load %arg16[%c0_36, %c2, %c0_37, %c0_38] : memref<2x4x8x8xbf16, #tpu.memory_space<vmem>>, vector<2x1x8x8xbf16>
    tpu.vector_store %arg16[%c0_36, %c2, %c0_37, %c0_38], %96 {strides = array<i32>} : memref<2x4x8x8xbf16, #tpu.memory_space<vmem>>, vector<2x1x8x8xbf16>,
    %98 = vector.extract_strided_slice %11 {offsets = [0, 0, 16], sizes = [2, 8, 8], strides = [1, 1, 1]} : vector<2x8x32xf32> to vector<2x8x8xf32>
    %99 = arith.truncf %94 : vector<2x8x8xf32> to vector<2x8x8xbf16>
    %100 = arith.truncf %98 : vector<2x8x8xf32> to vector<2x8x8xbf16>
    "tpu.trace_start"() <{level = 10 : i32, message = "bqk,bkd->bqd"}> : () -> ()
    %cst_39 = arith.constant dense<0.000000e+00> : vector<2x8x8xf32>
    %101 = tpu.matmul %99, %100, %cst_39 {dimension_numbers = #tpu.dot_dimension_numbers<[2], [1], [1], [2], [0, 0, 0, 1, 1, 2], [0], [0]>} : vector<2x8x8xbf16>, vector<2x8x8xbf16>, vector<2x8x8xf32> -> vector<2x8x8xf32>
    "tpu.trace_stop"() : () -> ()
    %102 = vector.shape_cast %101 : vector<2x8x8xf32> to vector<16x8xf32>
    %c16 = arith.constant 16 : index
    %c0_40 = arith.constant 0 : index
    %103 = vector.load %arg5[%c16, %c0_40] : memref<32x32xbf16, #tpu.memory_space<vmem>>, vector<8x32xbf16>
    %104 = arith.truncf %102 : vector<16x8xf32> to vector<16x8xbf16>
    %cst_41 = arith.constant dense<0.000000e+00> : vector<16x32xf32>
    %105 = tpu.matmul %104, %103, %cst_41 {dimension_numbers = #tpu.dot_dimension_numbers<[1], [0], [0], [1], [0, 0, 1, 1], [], []>} : vector<16x8xbf16>, vector<8x32xbf16>, vector<16x32xf32> -> vector<16x32xf32>
    %106 = arith.addf %75, %105 : vector<16x32xf32>
    %107 = vector.extract_strided_slice %9 {offsets = [0, 0, 24], sizes = [2, 8, 8], strides = [1, 1, 1]} : vector<2x8x32xf32> to vector<2x8x8xf32>
    %108 = vector.extract_strided_slice %10 {offsets = [0, 0, 24], sizes = [2, 8, 8], strides = [1, 1, 1]} : vector<2x8x32xf32> to vector<2x8x8xf32>
    %109 = arith.truncf %107 : vector<2x8x8xf32> to vector<2x8x8xbf16>
    %110 = arith.truncf %108 : vector<2x8x8xf32> to vector<2x8x8xbf16>
    "tpu.trace_start"() <{level = 10 : i32, message = "bqd,bkd->bqk"}> : () -> ()
    %cst_42 = arith.constant dense<0.000000e+00> : vector<2x8x8xf32>
    %111 = tpu.matmul %109, %110, %cst_42 {dimension_numbers = #tpu.dot_dimension_numbers<[2], [2], [1], [1], [0, 0, 0, 1, 1, 1], [0], [0]>} : vector<2x8x8xbf16>, vector<2x8x8xbf16>, vector<2x8x8xf32> -> vector<2x8x8xf32>
    "tpu.trace_stop"() : () -> ()
    %cst_43 = arith.constant 0.353553385 : f32
    %112 = vector.broadcast %cst_43 : f32 to vector<2x8x8xf32>
    %113 = arith.mulf %111, %112 : vector<2x8x8xf32>
    %114 = arith.extf %12 : vector<2x8x8xbf16> to vector<2x8x8xf32>
    %115 = arith.addf %113, %114 : vector<2x8x8xf32>
    %cst_44 = arith.constant dense<0xFF800000> : vector<2x8xf32>
    %116 = vector.multi_reduction <maximumf>, %115, %cst_44 [2] : vector<2x8x8xf32> to vector<2x8xf32>
    %117 = vector.shape_cast %116 : vector<2x8xf32> to vector<2x8x1xf32>
    %118 = vector.broadcast %117 : vector<2x8x1xf32> to vector<2x8x8xf32>
    %119 = arith.subf %115, %118 : vector<2x8x8xf32>
    %120 = math.exp %119 : vector<2x8x8xf32>
    %cst_45 = arith.constant dense<0.000000e+00> : vector<2x8xf32>
    %121 = vector.multi_reduction <add>, %120, %cst_45 [2] : vector<2x8x8xf32> to vector<2x8xf32>
    %122 = vector.shape_cast %121 : vector<2x8xf32> to vector<2x8x1xf32>
    %123 = tpu.reciprocal %122 {approx = true} : vector<2x8x1xf32> -> vector<2x8x1xf32>
    %124 = vector.broadcast %123 : vector<2x8x1xf32> to vector<2x8x8xf32>
    %125 = arith.mulf %120, %124 : vector<2x8x8xf32>
    %126 = vector.shape_cast %125 : vector<2x8x8xf32> to vector<2x1x8x8xf32>
    %127 = arith.truncf %126 : vector<2x1x8x8xf32> to vector<2x1x8x8xbf16>
    %c0_46 = arith.constant 0 : index
    %c3 = arith.constant 3 : index
    %c0_47 = arith.constant 0 : index
    %c0_48 = arith.constant 0 : index
    %128 = vector.load %arg16[%c0_46, %c3, %c0_47, %c0_48] : memref<2x4x8x8xbf16, #tpu.memory_space<vmem>>, vector<2x1x8x8xbf16>
    tpu.vector_store %arg16[%c0_46, %c3, %c0_47, %c0_48], %127 {strides = array<i32>} : memref<2x4x8x8xbf16, #tpu.memory_space<vmem>>, vector<2x1x8x8xbf16>,
    %129 = vector.extract_strided_slice %11 {offsets = [0, 0, 24], sizes = [2, 8, 8], strides = [1, 1, 1]} : vector<2x8x32xf32> to vector<2x8x8xf32>
    %130 = arith.truncf %125 : vector<2x8x8xf32> to vector<2x8x8xbf16>
    %131 = arith.truncf %129 : vector<2x8x8xf32> to vector<2x8x8xbf16>
    "tpu.trace_start"() <{level = 10 : i32, message = "bqk,bkd->bqd"}> : () -> ()
    %cst_49 = arith.constant dense<0.000000e+00> : vector<2x8x8xf32>
    %132 = tpu.matmul %130, %131, %cst_49 {dimension_numbers = #tpu.dot_dimension_numbers<[2], [1], [1], [2], [0, 0, 0, 1, 1, 2], [0], [0]>} : vector<2x8x8xbf16>, vector<2x8x8xbf16>, vector<2x8x8xf32> -> vector<2x8x8xf32>
    "tpu.trace_stop"() : () -> ()
    %133 = vector.shape_cast %132 : vector<2x8x8xf32> to vector<16x8xf32>
    %c24 = arith.constant 24 : index
    %c0_50 = arith.constant 0 : index
    %134 = vector.load %arg5[%c24, %c0_50] : memref<32x32xbf16, #tpu.memory_space<vmem>>, vector<8x32xbf16>
    %135 = arith.truncf %133 : vector<16x8xf32> to vector<16x8xbf16>
    %cst_51 = arith.constant dense<0.000000e+00> : vector<16x32xf32>
    %136 = tpu.matmul %135, %134, %cst_51 {dimension_numbers = #tpu.dot_dimension_numbers<[1], [0], [0], [1], [0, 0, 1, 1], [], []>} : vector<16x8xbf16>, vector<8x32xbf16>, vector<16x32xf32> -> vector<16x32xf32>
    %137 = arith.addf %106, %136 : vector<16x32xf32>
    %c0_52 = arith.constant 0 : index
    %c0_53 = arith.constant 0 : index
    %138 = vector.load %arg6[%c0_52, %c0_53] : memref<1x32xf32, #tpu.memory_space<vmem>>, vector<1x32xf32>
    %139 = vector.broadcast %138 : vector<1x32xf32> to vector<16x32xf32>
    %140 = arith.addf %137, %139 : vector<16x32xf32>
    %141 = arith.addf %2, %140 : vector<16x32xf32>
    %c0_54 = arith.constant 0 : index
    %c0_55 = arith.constant 0 : index
    %142 = vector.load %arg7[%c0_54, %c0_55] : memref<1x32xf32, #tpu.memory_space<vmem>>, vector<1x32xf32>
    %c0_56 = arith.constant 0 : index
    %c0_57 = arith.constant 0 : index
    %143 = vector.load %arg8[%c0_56, %c0_57] : memref<1x32xf32, #tpu.memory_space<vmem>>, vector<1x32xf32>
    %cst_58 = arith.constant dense<0.000000e+00> : vector<16xf32>
    %144 = vector.multi_reduction <add>, %141, %cst_58 [1] : vector<16x32xf32> to vector<16xf32>
    %145 = vector.shape_cast %144 : vector<16xf32> to vector<16x1xf32>
    %cst_59 = arith.constant 3.200000e+01 : f32
    %146 = vector.broadcast %cst_59 : f32 to vector<16x1xf32>
    %147 = arith.divf %145, %146 : vector<16x1xf32>
    %148 = vector.broadcast %147 : vector<16x1xf32> to vector<16x32xf32>
    %149 = arith.subf %141, %148 : vector<16x32xf32>
    %150 = arith.mulf %149, %149 : vector<16x32xf32>
    %cst_60 = arith.constant dense<0.000000e+00> : vector<16xf32>
    %151 = vector.multi_reduction <add>, %150, %cst_60 [1] : vector<16x32xf32> to vector<16xf32>
    %152 = vector.shape_cast %151 : vector<16xf32> to vector<16x1xf32>
    %cst_61 = arith.constant 3.200000e+01 : f32
    %153 = vector.broadcast %cst_61 : f32 to vector<16x1xf32>
    %154 = arith.divf %152, %153 : vector<16x1xf32>
    %155 = vector.broadcast %147 : vector<16x1xf32> to vector<16x32xf32>
    %156 = arith.subf %141, %155 : vector<16x32xf32>
    %cst_62 = arith.constant 9.99999996E-13 : f32
    %157 = vector.broadcast %cst_62 : f32 to vector<16x1xf32>
    %158 = arith.addf %154, %157 : vector<16x1xf32>
    %159 = math.rsqrt %158 : vector<16x1xf32>
    %160 = vector.broadcast %159 : vector<16x1xf32> to vector<16x32xf32>
    %161 = arith.mulf %156, %160 : vector<16x32xf32>
    %162 = vector.broadcast %142 : vector<1x32xf32> to vector<16x32xf32>
    %163 = arith.mulf %161, %162 : vector<16x32xf32>
    %164 = vector.broadcast %143 : vector<1x32xf32> to vector<16x32xf32>
    %165 = arith.addf %163, %164 : vector<16x32xf32>
    %c0_63 = arith.constant 0 : index
    %c0_64 = arith.constant 0 : index
    %166 = vector.load %arg9[%c0_63, %c0_64] : memref<32x64xbf16, #tpu.memory_space<vmem>>, vector<32x64xbf16>
    %167 = arith.truncf %165 : vector<16x32xf32> to vector<16x32xbf16>
    %cst_65 = arith.constant dense<0.000000e+00> : vector<16x64xf32>
    %168 = tpu.matmul %167, %166, %cst_65 {dimension_numbers = #tpu.dot_dimension_numbers<[1], [0], [0], [1], [0, 0, 1, 1], [], []>} : vector<16x32xbf16>, vector<32x64xbf16>, vector<16x64xf32> -> vector<16x64xf32>
    %c0_66 = arith.constant 0 : index
    %c0_67 = arith.constant 0 : index
    %169 = vector.load %arg10[%c0_66, %c0_67] : memref<1x64xf32, #tpu.memory_space<vmem>>, vector<1x64xf32>
    %170 = vector.broadcast %169 : vector<1x64xf32> to vector<16x64xf32>
    %171 = arith.addf %168, %170 : vector<16x64xf32>
    %cst_68 = arith.constant 5.000000e-01 : f32
    %172 = vector.broadcast %cst_68 : f32 to vector<16x64xf32>
    %173 = arith.mulf %172, %171 : vector<16x64xf32>
    %cst_69 = arith.constant 0.707106769 : f32
    %174 = vector.broadcast %cst_69 : f32 to vector<16x64xf32>
    %175 = arith.mulf %171, %174 : vector<16x64xf32>
    %176 = math.erf %175 : vector<16x64xf32>
    %cst_70 = arith.constant 1.000000e+00 : f32
    %177 = vector.broadcast %cst_70 : f32 to vector<16x64xf32>
    %178 = arith.addf %177, %176 : vector<16x64xf32>
    %179 = arith.mulf %173, %178 : vector<16x64xf32>
    %c0_71 = arith.constant 0 : index
    %c0_72 = arith.constant 0 : index
    %180 = vector.load %arg11[%c0_71, %c0_72] : memref<64x32xbf16, #tpu.memory_space<vmem>>, vector<64x32xbf16>
    %181 = arith.truncf %179 : vector<16x64xf32> to vector<16x64xbf16>
    %cst_73 = arith.constant dense<0.000000e+00> : vector<16x32xf32>
    %182 = tpu.matmul %181, %180, %cst_73 {dimension_numbers = #tpu.dot_dimension_numbers<[1], [0], [0], [1], [0, 0, 1, 1], [], []>} : vector<16x64xbf16>, vector<64x32xbf16>, vector<16x32xf32> -> vector<16x32xf32>
    %c0_74 = arith.constant 0 : index
    %c0_75 = arith.constant 0 : index
    %183 = vector.load %arg12[%c0_74, %c0_75] : memref<1x32xf32, #tpu.memory_space<vmem>>, vector<1x32xf32>
    %184 = vector.broadcast %183 : vector<1x32xf32> to vector<16x32xf32>
    %185 = arith.addf %182, %184 : vector<16x32xf32>
    %186 = arith.addf %165, %185 : vector<16x32xf32>
    %c0_76 = arith.constant 0 : index
    %c0_77 = arith.constant 0 : index
    %187 = vector.load %arg13[%c0_76, %c0_77] : memref<1x32xf32, #tpu.memory_space<vmem>>, vector<1x32xf32>
    %c0_78 = arith.constant 0 : index
    %c0_79 = arith.constant 0 : index
    %188 = vector.load %arg14[%c0_78, %c0_79] : memref<1x32xf32, #tpu.memory_space<vmem>>, vector<1x32xf32>
    %cst_80 = arith.constant dense<0.000000e+00> : vector<16xf32>
    %189 = vector.multi_reduction <add>, %186, %cst_80 [1] : vector<16x32xf32> to vector<16xf32>
    %190 = vector.shape_cast %189 : vector<16xf32> to vector<16x1xf32>
    %cst_81 = arith.constant 3.200000e+01 : f32
    %191 = vector.broadcast %cst_81 : f32 to vector<16x1xf32>
    %192 = arith.divf %190, %191 : vector<16x1xf32>
    %193 = vector.broadcast %192 : vector<16x1xf32> to vector<16x32xf32>
    %194 = arith.subf %186, %193 : vector<16x32xf32>
    %195 = arith.mulf %194, %194 : vector<16x32xf32>
    %cst_82 = arith.constant dense<0.000000e+00> : vector<16xf32>
    %196 = vector.multi_reduction <add>, %195, %cst_82 [1] : vector<16x32xf32> to vector<16xf32>
    %197 = vector.shape_cast %196 : vector<16xf32> to vector<16x1xf32>
    %cst_83 = arith.constant 3.200000e+01 : f32
    %198 = vector.broadcast %cst_83 : f32 to vector<16x1xf32>
    %199 = arith.divf %197, %198 : vector<16x1xf32>
    %200 = vector.broadcast %192 : vector<16x1xf32> to vector<16x32xf32>
    %201 = arith.subf %186, %200 : vector<16x32xf32>
    %cst_84 = arith.constant 9.99999996E-13 : f32
    %202 = vector.broadcast %cst_84 : f32 to vector<16x1xf32>
    %203 = arith.addf %199, %202 : vector<16x1xf32>
    %204 = math.rsqrt %203 : vector<16x1xf32>
    %205 = vector.broadcast %204 : vector<16x1xf32> to vector<16x32xf32>
    %206 = arith.mulf %201, %205 : vector<16x32xf32>
    %207 = vector.broadcast %187 : vector<1x32xf32> to vector<16x32xf32>
    %208 = arith.mulf %206, %207 : vector<16x32xf32>
    %209 = vector.broadcast %188 : vector<1x32xf32> to vector<16x32xf32>
    %210 = arith.addf %208, %209 : vector<16x32xf32>
    %211 = vector.shape_cast %210 : vector<16x32xf32> to vector<2x8x32xf32>
    %212 = arith.truncf %211 : vector<2x8x32xf32> to vector<2x8x32xbf16>
    %c0_85 = arith.constant 0 : index
    %c0_86 = arith.constant 0 : index
    %c0_87 = arith.constant 0 : index
    %213 = vector.load %arg15[%c0_85, %c0_86, %c0_87] : memref<2x8x32xbf16, #tpu.memory_space<vmem>>, vector<2x8x32xbf16>
    tpu.vector_store %arg15[%c0_85, %c0_86, %c0_87], %212 {strides = array<i32>} : memref<2x8x32xbf16, #tpu.memory_space<vmem>>, vector<2x8x32xbf16>,
    return
  }
  func.func @transform_0(%arg0: i32) -> (i32, i32, i32) {
    %c0_i32 = arith.constant 0 : i32
    %c0_i32_0 = arith.constant 0 : i32
    %c0_i32_1 = arith.constant 0 : i32
    return %arg0, %c0_i32, %c0_i32_0 : i32, i32, i32
  }
  func.func @transform_1(%arg0: i32) -> (i32, i32, i32) {
    %c0_i32 = arith.constant 0 : i32
    %c0_i32_0 = arith.constant 0 : i32
    %c0_i32_1 = arith.constant 0 : i32
    return %arg0, %c0_i32, %c0_i32_0 : i32, i32, i32
  }
  func.func @transform_2(%arg0: i32) -> (i32, i32) {
    %c0_i32 = arith.constant 0 : i32
    %c0_i32_0 = arith.constant 0 : i32
    %c0_i32_1 = arith.constant 0 : i32
    return %c0_i32, %c0_i32_0 : i32, i32
  }
  func.func @transform_3(%arg0: i32) -> (i32, i32) {
    %c0_i32 = arith.constant 0 : i32
    %c0_i32_0 = arith.constant 0 : i32
    %c0_i32_1 = arith.constant 0 : i32
    return %c0_i32, %c0_i32_0 : i32, i32
  }
  func.func @transform_4(%arg0: i32) -> (i32, i32) {
    %c0_i32 = arith.constant 0 : i32
    %c0_i32_0 = arith.constant 0 : i32
    %c0_i32_1 = arith.constant 0 : i32
    return %c0_i32, %c0_i32_0 : i32, i32
  }
  func.func @transform_5(%arg0: i32) -> (i32, i32) {
    %c0_i32 = arith.constant 0 : i32
    %c0_i32_0 = arith.constant 0 : i32
    %c0_i32_1 = arith.constant 0 : i32
    return %c0_i32, %c0_i32_0 : i32, i32
  }
  func.func @transform_6(%arg0: i32) -> (i32, i32) {
    %c0_i32 = arith.constant 0 : i32
    %c0_i32_0 = arith.constant 0 : i32
    %c0_i32_1 = arith.constant 0 : i32
    return %c0_i32, %c0_i32_0 : i32, i32
  }
  func.func @transform_7(%arg0: i32) -> (i32, i32) {
    %c0_i32 = arith.constant 0 : i32
    %c0_i32_0 = arith.constant 0 : i32
    %c0_i32_1 = arith.constant 0 : i32
    return %c0_i32, %c0_i32_0 : i32, i32
  }
  func.func @transform_8(%arg0: i32) -> (i32, i32) {
    %c0_i32 = arith.constant 0 : i32
    %c0_i32_0 = arith.constant 0 : i32
    %c0_i32_1 = arith.constant 0 : i32
    return %c0_i32, %c0_i32_0 : i32, i32
  }
  func.func @transform_9(%arg0: i32) -> (i32, i32) {
    %c0_i32 = arith.constant 0 : i32
    %c0_i32_0 = arith.constant 0 : i32
    %c0_i32_1 = arith.constant 0 : i32
    return %c0_i32, %c0_i32_0 : i32, i32
  }
  func.func @transform_10(%arg0: i32) -> (i32, i32) {
    %c0_i32 = arith.constant 0 : i32
    %c0_i32_0 = arith.constant 0 : i32
    %c0_i32_1 = arith.constant 0 : i32
    return %c0_i32, %c0_i32_0 : i32, i32
  }
  func.func @transform_11(%arg0: i32) -> (i32, i32) {
    %c0_i32 = arith.constant 0 : i32
    %c0_i32_0 = arith.constant 0 : i32
    %c0_i32_1 = arith.constant 0 : i32
    return %c0_i32, %c0_i32_0 : i32, i32
  }
  func.func @transform_12(%arg0: i32) -> (i32, i32) {
    %c0_i32 = arith.constant 0 : i32
    %c0_i32_0 = arith.constant 0 : i32
    %c0_i32_1 = arith.constant 0 : i32
    return %c0_i32, %c0_i32_0 : i32, i32
  }
  func.func @transform_13(%arg0: i32) -> (i32, i32) {
    %c0_i32 = arith.constant 0 : i32
    %c0_i32_0 = arith.constant 0 : i32
    %c0_i32_1 = arith.constant 0 : i32
    return %c0_i32, %c0_i32_0 : i32, i32
  }
  func.func @transform_14(%arg0: i32) -> (i32, i32, i32) {
    %c0_i32 = arith.constant 0 : i32
    %c0_i32_0 = arith.constant 0 : i32
    %c0_i32_1 = arith.constant 0 : i32
    return %arg0, %c0_i32, %c0_i32_0 : i32, i32, i32
  }
  func.func @transform_15(%arg0: i32) -> (i32, i32, i32, i32) {
    %c0_i32 = arith.constant 0 : i32
    %c0_i32_0 = arith.constant 0 : i32
    %c0_i32_1 = arith.constant 0 : i32
    %c0_i32_2 = arith.constant 0 : i32
    return %arg0, %c0_i32, %c0_i32_0, %c0_i32_1 : i32, i32, i32, i32
  }
}

module attributes {stable_mosaic.version = 11 : i64} {
  func.func @_dec_layer_kernel(%arg0: i32, %arg1: memref<2x8x32xbf16, #tpu.memory_space<vmem>>, %arg2: memref<2x8x32xbf16, #tpu.memory_space<vmem>>, %arg3: memref<2x8x8xbf16, #tpu.memory_space<vmem>>, %arg4: memref<2x8x8xbf16, #tpu.memory_space<vmem>>, %arg5: memref<32x96xbf16, #tpu.memory_space<vmem>>, %arg6: memref<1x96xf32, #tpu.memory_space<vmem>>, %arg7: memref<32x32xbf16, #tpu.memory_space<vmem>>, %arg8: memref<1x32xf32, #tpu.memory_space<vmem>>, %arg9: memref<1x32xf32, #tpu.memory_space<vmem>>, %arg10: memref<1x32xf32, #tpu.memory_space<vmem>>, %arg11: memref<32x32xbf16, #tpu.memory_space<vmem>>, %arg12: memref<1x32xf32, #tpu.memory_space<vmem>>, %arg13: memref<32x64xbf16, #tpu.memory_space<vmem>>, %arg14: memref<1x64xf32, #tpu.memory_space<vmem>>, %arg15: memref<32x32xbf16, #tpu.memory_space<vmem>>, %arg16: memref<1x32xf32, #tpu.memory_space<vmem>>, %arg17: memref<1x32xf32, #tpu.memory_space<vmem>>, %arg18: memref<1x32xf32, #tpu.memory_space<vmem>>, %arg19: memref<32x64xbf16, #tpu.memory_space<vmem>>, %arg20: memref<1x64xf32, #tpu.memory_space<vmem>>, %arg21: memref<64x32xbf16, #tpu.memory_space<vmem>>, %arg22: memref<1x32xf32, #tpu.memory_space<vmem>>, %arg23: memref<1x32xf32, #tpu.memory_space<vmem>>, %arg24: memref<1x32xf32, #tpu.memory_space<vmem>>, %arg25: memref<2x8x32xbf16, #tpu.memory_space<vmem>>, %arg26: memref<2x4x8x8xbf16, #tpu.memory_space<vmem>>, %arg27: memref<2x4x8x8xbf16, #tpu.memory_space<vmem>>) attributes {dimension_semantics = [#tpu.dimension_semantics<parallel>], iteration_bounds = array<i64: 1>, scalar_prefetch = 0 : i64, scratch_operands = 0 : i64, tpu.core_type = #tpu.core_type<tc>, window_params = [{transform_indices = @transform_0, window_bounds = array<i64: 2, 8, 32>}, {transform_indices = @transform_1, window_bounds = array<i64: 2, 8, 32>}, {transform_indices = @transform_2, window_bounds = array<i64: 2, 8, 8>}, {transform_indices = @transform_3, window_bounds = array<i64: 2, 8, 8>}, {pipeline_mode = #tpu.pipeline_mode<synchronous>, transform_indices = @transform_4, window_bounds = array<i64: 32, 96>}, {pipeline_mode = #tpu.pipeline_mode<synchronous>, transform_indices = @transform_5, window_bounds = array<i64: 1, 96>}, {pipeline_mode = #tpu.pipeline_mode<synchronous>, transform_indices = @transform_6, window_bounds = array<i64: 32, 32>}, {pipeline_mode = #tpu.pipeline_mode<synchronous>, transform_indices = @transform_7, window_bounds = array<i64: 1, 32>}, {pipeline_mode = #tpu.pipeline_mode<synchronous>, transform_indices = @transform_8, window_bounds = array<i64: 1, 32>}, {pipeline_mode = #tpu.pipeline_mode<synchronous>, transform_indices = @transform_9, window_bounds = array<i64: 1, 32>}, {pipeline_mode = #tpu.pipeline_mode<synchronous>, transform_indices = @transform_10, window_bounds = array<i64: 32, 32>}, {pipeline_mode = #tpu.pipeline_mode<synchronous>, transform_indices = @transform_11, window_bounds = array<i64: 1, 32>}, {pipeline_mode = #tpu.pipeline_mode<synchronous>, transform_indices = @transform_12, window_bounds = array<i64: 32, 64>}, {pipeline_mode = #tpu.pipeline_mode<synchronous>, transform_indices = @transform_13, window_bounds = array<i64: 1, 64>}, {pipeline_mode = #tpu.pipeline_mode<synchronous>, transform_indices = @transform_14, window_bounds = array<i64: 32, 32>}, {pipeline_mode = #tpu.pipeline_mode<synchronous>, transform_indices = @transform_15, window_bounds = array<i64: 1, 32>}, {pipeline_mode = #tpu.pipeline_mode<synchronous>, transform_indices = @transform_16, window_bounds = array<i64: 1, 32>}, {pipeline_mode = #tpu.pipeline_mode<synchronous>, transform_indices = @transform_17, window_bounds = array<i64: 1, 32>}, {pipeline_mode = #tpu.pipeline_mode<synchronous>, transform_indices = @transform_18, window_bounds = array<i64: 32, 64>}, {pipeline_mode = #tpu.pipeline_mode<synchronous>, transform_indices = @transform_19, window_bounds = array<i64: 1, 64>}, {pipeline_mode = #tpu.pipeline_mode<synchronous>, transform_indices = @transform_20, window_bounds = array<i64: 64, 32>}, {pipeline_mode = #tpu.pipeline_mode<synchronous>, transform_indices = @transform_21, window_bounds = array<i64: 1, 32>}, {pipeline_mode = #tpu.pipeline_mode<synchronous>, transform_indices = @transform_22, window_bounds = array<i64: 1, 32>}, {pipeline_mode = #tpu.pipeline_mode<synchronous>, transform_indices = @transform_23, window_bounds = array<i64: 1, 32>}, {transform_indices = @transform_24, window_bounds = array<i64: 2, 8, 32>}, {transform_indices = @transform_25, window_bounds = array<i64: 2, 4, 8, 8>}, {transform_indices = @transform_26, window_bounds = array<i64: 2, 4, 8, 8>}]} {
    %c0 = arith.constant 0 : index
    %c0_0 = arith.constant 0 : index
    %c0_1 = arith.constant 0 : index
    %0 = vector.load %arg1[%c0, %c0_0, %c0_1] : memref<2x8x32xbf16, #tpu.memory_space<vmem>>, vector<2x8x32xbf16>
    %1 = vector.shape_cast %0 : vector<2x8x32xbf16> to vector<16x32xbf16>
    %2 = arith.extf %1 : vector<16x32xbf16> to vector<16x32xf32>
    %c0_2 = arith.constant 0 : index
    %c0_3 = arith.constant 0 : index
    %3 = vector.load %arg5[%c0_2, %c0_3] : memref<32x96xbf16, #tpu.memory_space<vmem>>, vector<32x96xbf16>
    %cst = arith.constant dense<0.000000e+00> : vector<16x96xf32>
    %4 = tpu.matmul %1, %3, %cst {dimension_numbers = #tpu.dot_dimension_numbers<[1], [0], [0], [1], [0, 0, 1, 1], [], []>} : vector<16x32xbf16>, vector<32x96xbf16>, vector<16x96xf32> -> vector<16x96xf32>
    %c0_4 = arith.constant 0 : index
    %c0_5 = arith.constant 0 : index
    %5 = vector.load %arg6[%c0_4, %c0_5] : memref<1x96xf32, #tpu.memory_space<vmem>>, vector<1x96xf32>
    %6 = vector.broadcast %5 : vector<1x96xf32> to vector<16x96xf32>
    %7 = arith.addf %4, %6 : vector<16x96xf32>
    %8 = vector.shape_cast %7 : vector<16x96xf32> to vector<2x8x96xf32>
    %9 = vector.extract_strided_slice %8 {offsets = [0, 0, 0], sizes = [2, 8, 32], strides = [1, 1, 1]} : vector<2x8x96xf32> to vector<2x8x32xf32>
    %10 = vector.extract_strided_slice %8 {offsets = [0, 0, 32], sizes = [2, 8, 32], strides = [1, 1, 1]} : vector<2x8x96xf32> to vector<2x8x32xf32>
    %11 = vector.extract_strided_slice %8 {offsets = [0, 0, 64], sizes = [2, 8, 32], strides = [1, 1, 1]} : vector<2x8x96xf32> to vector<2x8x32xf32>
    %c0_6 = arith.constant 0 : index
    %c0_7 = arith.constant 0 : index
    %c0_8 = arith.constant 0 : index
    %12 = vector.load %arg3[%c0_6, %c0_7, %c0_8] : memref<2x8x8xbf16, #tpu.memory_space<vmem>>, vector<2x8x8xbf16>
    %cst_9 = arith.constant 0.000000e+00 : f32
    %13 = vector.broadcast %cst_9 : f32 to vector<16x32xf32>
    %14 = vector.extract_strided_slice %9 {offsets = [0, 0, 0], sizes = [2, 8, 8], strides = [1, 1, 1]} : vector<2x8x32xf32> to vector<2x8x8xf32>
    %15 = vector.extract_strided_slice %10 {offsets = [0, 0, 0], sizes = [2, 8, 8], strides = [1, 1, 1]} : vector<2x8x32xf32> to vector<2x8x8xf32>
    %16 = arith.truncf %14 : vector<2x8x8xf32> to vector<2x8x8xbf16>
    %17 = arith.truncf %15 : vector<2x8x8xf32> to vector<2x8x8xbf16>
    "tpu.trace_start"() <{level = 10 : i32, message = "bqd,bkd->bqk"}> : () -> ()
    %cst_10 = arith.constant dense<0.000000e+00> : vector<2x8x8xf32>
    %18 = tpu.matmul %16, %17, %cst_10 {dimension_numbers = #tpu.dot_dimension_numbers<[2], [2], [1], [1], [0, 0, 0, 1, 1, 1], [0], [0]>} : vector<2x8x8xbf16>, vector<2x8x8xbf16>, vector<2x8x8xf32> -> vector<2x8x8xf32>
    "tpu.trace_stop"() : () -> ()
    %cst_11 = arith.constant 0.353553385 : f32
    %19 = vector.broadcast %cst_11 : f32 to vector<2x8x8xf32>
    %20 = arith.mulf %18, %19 : vector<2x8x8xf32>
    %21 = arith.extf %12 : vector<2x8x8xbf16> to vector<2x8x8xf32>
    %22 = arith.addf %20, %21 : vector<2x8x8xf32>
    %cst_12 = arith.constant dense<0xFF800000> : vector<2x8xf32>
    %23 = vector.multi_reduction <maximumf>, %22, %cst_12 [2] : vector<2x8x8xf32> to vector<2x8xf32>
    %24 = vector.shape_cast %23 : vector<2x8xf32> to vector<2x8x1xf32>
    %25 = vector.broadcast %24 : vector<2x8x1xf32> to vector<2x8x8xf32>
    %26 = arith.subf %22, %25 : vector<2x8x8xf32>
    %27 = math.exp %26 : vector<2x8x8xf32>
    %cst_13 = arith.constant dense<0.000000e+00> : vector<2x8xf32>
    %28 = vector.multi_reduction <add>, %27, %cst_13 [2] : vector<2x8x8xf32> to vector<2x8xf32>
    %29 = vector.shape_cast %28 : vector<2x8xf32> to vector<2x8x1xf32>
    %30 = tpu.reciprocal %29 {approx = true} : vector<2x8x1xf32> -> vector<2x8x1xf32>
    %31 = vector.broadcast %30 : vector<2x8x1xf32> to vector<2x8x8xf32>
    %32 = arith.mulf %27, %31 : vector<2x8x8xf32>
    %33 = vector.shape_cast %32 : vector<2x8x8xf32> to vector<2x1x8x8xf32>
    %34 = arith.truncf %33 : vector<2x1x8x8xf32> to vector<2x1x8x8xbf16>
    %c0_14 = arith.constant 0 : index
    %c0_15 = arith.constant 0 : index
    %c0_16 = arith.constant 0 : index
    %c0_17 = arith.constant 0 : index
    %35 = vector.load %arg26[%c0_14, %c0_15, %c0_16, %c0_17] : memref<2x4x8x8xbf16, #tpu.memory_space<vmem>>, vector<2x1x8x8xbf16>
    tpu.vector_store %arg26[%c0_14, %c0_15, %c0_16, %c0_17], %34 {strides = array<i32>} : memref<2x4x8x8xbf16, #tpu.memory_space<vmem>>, vector<2x1x8x8xbf16>,
    %36 = vector.extract_strided_slice %11 {offsets = [0, 0, 0], sizes = [2, 8, 8], strides = [1, 1, 1]} : vector<2x8x32xf32> to vector<2x8x8xf32>
    %37 = arith.truncf %32 : vector<2x8x8xf32> to vector<2x8x8xbf16>
    %38 = arith.truncf %36 : vector<2x8x8xf32> to vector<2x8x8xbf16>
    "tpu.trace_start"() <{level = 10 : i32, message = "bqk,bkd->bqd"}> : () -> ()
    %cst_18 = arith.constant dense<0.000000e+00> : vector<2x8x8xf32>
    %39 = tpu.matmul %37, %38, %cst_18 {dimension_numbers = #tpu.dot_dimension_numbers<[2], [1], [1], [2], [0, 0, 0, 1, 1, 2], [0], [0]>} : vector<2x8x8xbf16>, vector<2x8x8xbf16>, vector<2x8x8xf32> -> vector<2x8x8xf32>
    "tpu.trace_stop"() : () -> ()
    %40 = vector.shape_cast %39 : vector<2x8x8xf32> to vector<16x8xf32>
    %c0_19 = arith.constant 0 : index
    %c0_20 = arith.constant 0 : index
    %41 = vector.load %arg7[%c0_19, %c0_20] : memref<32x32xbf16, #tpu.memory_space<vmem>>, vector<8x32xbf16>
    %42 = arith.truncf %40 : vector<16x8xf32> to vector<16x8xbf16>
    %cst_21 = arith.constant dense<0.000000e+00> : vector<16x32xf32>
    %43 = tpu.matmul %42, %41, %cst_21 {dimension_numbers = #tpu.dot_dimension_numbers<[1], [0], [0], [1], [0, 0, 1, 1], [], []>} : vector<16x8xbf16>, vector<8x32xbf16>, vector<16x32xf32> -> vector<16x32xf32>
    %44 = arith.addf %13, %43 : vector<16x32xf32>
    %45 = vector.extract_strided_slice %9 {offsets = [0, 0, 8], sizes = [2, 8, 8], strides = [1, 1, 1]} : vector<2x8x32xf32> to vector<2x8x8xf32>
    %46 = vector.extract_strided_slice %10 {offsets = [0, 0, 8], sizes = [2, 8, 8], strides = [1, 1, 1]} : vector<2x8x32xf32> to vector<2x8x8xf32>
    %47 = arith.truncf %45 : vector<2x8x8xf32> to vector<2x8x8xbf16>
    %48 = arith.truncf %46 : vector<2x8x8xf32> to vector<2x8x8xbf16>
    "tpu.trace_start"() <{level = 10 : i32, message = "bqd,bkd->bqk"}> : () -> ()
    %cst_22 = arith.constant dense<0.000000e+00> : vector<2x8x8xf32>
    %49 = tpu.matmul %47, %48, %cst_22 {dimension_numbers = #tpu.dot_dimension_numbers<[2], [2], [1], [1], [0, 0, 0, 1, 1, 1], [0], [0]>} : vector<2x8x8xbf16>, vector<2x8x8xbf16>, vector<2x8x8xf32> -> vector<2x8x8xf32>
    "tpu.trace_stop"() : () -> ()
    %cst_23 = arith.constant 0.353553385 : f32
    %50 = vector.broadcast %cst_23 : f32 to vector<2x8x8xf32>
    %51 = arith.mulf %49, %50 : vector<2x8x8xf32>
    %52 = arith.extf %12 : vector<2x8x8xbf16> to vector<2x8x8xf32>
    %53 = arith.addf %51, %52 : vector<2x8x8xf32>
    %cst_24 = arith.constant dense<0xFF800000> : vector<2x8xf32>
    %54 = vector.multi_reduction <maximumf>, %53, %cst_24 [2] : vector<2x8x8xf32> to vector<2x8xf32>
    %55 = vector.shape_cast %54 : vector<2x8xf32> to vector<2x8x1xf32>
    %56 = vector.broadcast %55 : vector<2x8x1xf32> to vector<2x8x8xf32>
    %57 = arith.subf %53, %56 : vector<2x8x8xf32>
    %58 = math.exp %57 : vector<2x8x8xf32>
    %cst_25 = arith.constant dense<0.000000e+00> : vector<2x8xf32>
    %59 = vector.multi_reduction <add>, %58, %cst_25 [2] : vector<2x8x8xf32> to vector<2x8xf32>
    %60 = vector.shape_cast %59 : vector<2x8xf32> to vector<2x8x1xf32>
    %61 = tpu.reciprocal %60 {approx = true} : vector<2x8x1xf32> -> vector<2x8x1xf32>
    %62 = vector.broadcast %61 : vector<2x8x1xf32> to vector<2x8x8xf32>
    %63 = arith.mulf %58, %62 : vector<2x8x8xf32>
    %64 = vector.shape_cast %63 : vector<2x8x8xf32> to vector<2x1x8x8xf32>
    %65 = arith.truncf %64 : vector<2x1x8x8xf32> to vector<2x1x8x8xbf16>
    %c0_26 = arith.constant 0 : index
    %c1 = arith.constant 1 : index
    %c0_27 = arith.constant 0 : index
    %c0_28 = arith.constant 0 : index
    %66 = vector.load %arg26[%c0_26, %c1, %c0_27, %c0_28] : memref<2x4x8x8xbf16, #tpu.memory_space<vmem>>, vector<2x1x8x8xbf16>
    tpu.vector_store %arg26[%c0_26, %c1, %c0_27, %c0_28], %65 {strides = array<i32>} : memref<2x4x8x8xbf16, #tpu.memory_space<vmem>>, vector<2x1x8x8xbf16>,
    %67 = vector.extract_strided_slice %11 {offsets = [0, 0, 8], sizes = [2, 8, 8], strides = [1, 1, 1]} : vector<2x8x32xf32> to vector<2x8x8xf32>
    %68 = arith.truncf %63 : vector<2x8x8xf32> to vector<2x8x8xbf16>
    %69 = arith.truncf %67 : vector<2x8x8xf32> to vector<2x8x8xbf16>
    "tpu.trace_start"() <{level = 10 : i32, message = "bqk,bkd->bqd"}> : () -> ()
    %cst_29 = arith.constant dense<0.000000e+00> : vector<2x8x8xf32>
    %70 = tpu.matmul %68, %69, %cst_29 {dimension_numbers = #tpu.dot_dimension_numbers<[2], [1], [1], [2], [0, 0, 0, 1, 1, 2], [0], [0]>} : vector<2x8x8xbf16>, vector<2x8x8xbf16>, vector<2x8x8xf32> -> vector<2x8x8xf32>
    "tpu.trace_stop"() : () -> ()
    %71 = vector.shape_cast %70 : vector<2x8x8xf32> to vector<16x8xf32>
    %c8 = arith.constant 8 : index
    %c0_30 = arith.constant 0 : index
    %72 = vector.load %arg7[%c8, %c0_30] : memref<32x32xbf16, #tpu.memory_space<vmem>>, vector<8x32xbf16>
    %73 = arith.truncf %71 : vector<16x8xf32> to vector<16x8xbf16>
    %cst_31 = arith.constant dense<0.000000e+00> : vector<16x32xf32>
    %74 = tpu.matmul %73, %72, %cst_31 {dimension_numbers = #tpu.dot_dimension_numbers<[1], [0], [0], [1], [0, 0, 1, 1], [], []>} : vector<16x8xbf16>, vector<8x32xbf16>, vector<16x32xf32> -> vector<16x32xf32>
    %75 = arith.addf %44, %74 : vector<16x32xf32>
    %76 = vector.extract_strided_slice %9 {offsets = [0, 0, 16], sizes = [2, 8, 8], strides = [1, 1, 1]} : vector<2x8x32xf32> to vector<2x8x8xf32>
    %77 = vector.extract_strided_slice %10 {offsets = [0, 0, 16], sizes = [2, 8, 8], strides = [1, 1, 1]} : vector<2x8x32xf32> to vector<2x8x8xf32>
    %78 = arith.truncf %76 : vector<2x8x8xf32> to vector<2x8x8xbf16>
    %79 = arith.truncf %77 : vector<2x8x8xf32> to vector<2x8x8xbf16>
    "tpu.trace_start"() <{level = 10 : i32, message = "bqd,bkd->bqk"}> : () -> ()
    %cst_32 = arith.constant dense<0.000000e+00> : vector<2x8x8xf32>
    %80 = tpu.matmul %78, %79, %cst_32 {dimension_numbers = #tpu.dot_dimension_numbers<[2], [2], [1], [1], [0, 0, 0, 1, 1, 1], [0], [0]>} : vector<2x8x8xbf16>, vector<2x8x8xbf16>, vector<2x8x8xf32> -> vector<2x8x8xf32>
    "tpu.trace_stop"() : () -> ()
    %cst_33 = arith.constant 0.353553385 : f32
    %81 = vector.broadcast %cst_33 : f32 to vector<2x8x8xf32>
    %82 = arith.mulf %80, %81 : vector<2x8x8xf32>
    %83 = arith.extf %12 : vector<2x8x8xbf16> to vector<2x8x8xf32>
    %84 = arith.addf %82, %83 : vector<2x8x8xf32>
    %cst_34 = arith.constant dense<0xFF800000> : vector<2x8xf32>
    %85 = vector.multi_reduction <maximumf>, %84, %cst_34 [2] : vector<2x8x8xf32> to vector<2x8xf32>
    %86 = vector.shape_cast %85 : vector<2x8xf32> to vector<2x8x1xf32>
    %87 = vector.broadcast %86 : vector<2x8x1xf32> to vector<2x8x8xf32>
    %88 = arith.subf %84, %87 : vector<2x8x8xf32>
    %89 = math.exp %88 : vector<2x8x8xf32>
    %cst_35 = arith.constant dense<0.000000e+00> : vector<2x8xf32>
    %90 = vector.multi_reduction <add>, %89, %cst_35 [2] : vector<2x8x8xf32> to vector<2x8xf32>
    %91 = vector.shape_cast %90 : vector<2x8xf32> to vector<2x8x1xf32>
    %92 = tpu.reciprocal %91 {approx = true} : vector<2x8x1xf32> -> vector<2x8x1xf32>
    %93 = vector.broadcast %92 : vector<2x8x1xf32> to vector<2x8x8xf32>
    %94 = arith.mulf %89, %93 : vector<2x8x8xf32>
    %95 = vector.shape_cast %94 : vector<2x8x8xf32> to vector<2x1x8x8xf32>
    %96 = arith.truncf %95 : vector<2x1x8x8xf32> to vector<2x1x8x8xbf16>
    %c0_36 = arith.constant 0 : index
    %c2 = arith.constant 2 : index
    %c0_37 = arith.constant 0 : index
    %c0_38 = arith.constant 0 : index
    %97 = vector.load %arg26[%c0_36, %c2, %c0_37, %c0_38] : memref<2x4x8x8xbf16, #tpu.memory_space<vmem>>, vector<2x1x8x8xbf16>
    tpu.vector_store %arg26[%c0_36, %c2, %c0_37, %c0_38], %96 {strides = array<i32>} : memref<2x4x8x8xbf16, #tpu.memory_space<vmem>>, vector<2x1x8x8xbf16>,
    %98 = vector.extract_strided_slice %11 {offsets = [0, 0, 16], sizes = [2, 8, 8], strides = [1, 1, 1]} : vector<2x8x32xf32> to vector<2x8x8xf32>
    %99 = arith.truncf %94 : vector<2x8x8xf32> to vector<2x8x8xbf16>
    %100 = arith.truncf %98 : vector<2x8x8xf32> to vector<2x8x8xbf16>
    "tpu.trace_start"() <{level = 10 : i32, message = "bqk,bkd->bqd"}> : () -> ()
    %cst_39 = arith.constant dense<0.000000e+00> : vector<2x8x8xf32>
    %101 = tpu.matmul %99, %100, %cst_39 {dimension_numbers = #tpu.dot_dimension_numbers<[2], [1], [1], [2], [0, 0, 0, 1, 1, 2], [0], [0]>} : vector<2x8x8xbf16>, vector<2x8x8xbf16>, vector<2x8x8xf32> -> vector<2x8x8xf32>
    "tpu.trace_stop"() : () -> ()
    %102 = vector.shape_cast %101 : vector<2x8x8xf32> to vector<16x8xf32>
    %c16 = arith.constant 16 : index
    %c0_40 = arith.constant 0 : index
    %103 = vector.load %arg7[%c16, %c0_40] : memref<32x32xbf16, #tpu.memory_space<vmem>>, vector<8x32xbf16>
    %104 = arith.truncf %102 : vector<16x8xf32> to vector<16x8xbf16>
    %cst_41 = arith.constant dense<0.000000e+00> : vector<16x32xf32>
    %105 = tpu.matmul %104, %103, %cst_41 {dimension_numbers = #tpu.dot_dimension_numbers<[1], [0], [0], [1], [0, 0, 1, 1], [], []>} : vector<16x8xbf16>, vector<8x32xbf16>, vector<16x32xf32> -> vector<16x32xf32>
    %106 = arith.addf %75, %105 : vector<16x32xf32>
    %107 = vector.extract_strided_slice %9 {offsets = [0, 0, 24], sizes = [2, 8, 8], strides = [1, 1, 1]} : vector<2x8x32xf32> to vector<2x8x8xf32>
    %108 = vector.extract_strided_slice %10 {offsets = [0, 0, 24], sizes = [2, 8, 8], strides = [1, 1, 1]} : vector<2x8x32xf32> to vector<2x8x8xf32>
    %109 = arith.truncf %107 : vector<2x8x8xf32> to vector<2x8x8xbf16>
    %110 = arith.truncf %108 : vector<2x8x8xf32> to vector<2x8x8xbf16>
    "tpu.trace_start"() <{level = 10 : i32, message = "bqd,bkd->bqk"}> : () -> ()
    %cst_42 = arith.constant dense<0.000000e+00> : vector<2x8x8xf32>
    %111 = tpu.matmul %109, %110, %cst_42 {dimension_numbers = #tpu.dot_dimension_numbers<[2], [2], [1], [1], [0, 0, 0, 1, 1, 1], [0], [0]>} : vector<2x8x8xbf16>, vector<2x8x8xbf16>, vector<2x8x8xf32> -> vector<2x8x8xf32>
    "tpu.trace_stop"() : () -> ()
    %cst_43 = arith.constant 0.353553385 : f32
    %112 = vector.broadcast %cst_43 : f32 to vector<2x8x8xf32>
    %113 = arith.mulf %111, %112 : vector<2x8x8xf32>
    %114 = arith.extf %12 : vector<2x8x8xbf16> to vector<2x8x8xf32>
    %115 = arith.addf %113, %114 : vector<2x8x8xf32>
    %cst_44 = arith.constant dense<0xFF800000> : vector<2x8xf32>
    %116 = vector.multi_reduction <maximumf>, %115, %cst_44 [2] : vector<2x8x8xf32> to vector<2x8xf32>
    %117 = vector.shape_cast %116 : vector<2x8xf32> to vector<2x8x1xf32>
    %118 = vector.broadcast %117 : vector<2x8x1xf32> to vector<2x8x8xf32>
    %119 = arith.subf %115, %118 : vector<2x8x8xf32>
    %120 = math.exp %119 : vector<2x8x8xf32>
    %cst_45 = arith.constant dense<0.000000e+00> : vector<2x8xf32>
    %121 = vector.multi_reduction <add>, %120, %cst_45 [2] : vector<2x8x8xf32> to vector<2x8xf32>
    %122 = vector.shape_cast %121 : vector<2x8xf32> to vector<2x8x1xf32>
    %123 = tpu.reciprocal %122 {approx = true} : vector<2x8x1xf32> -> vector<2x8x1xf32>
    %124 = vector.broadcast %123 : vector<2x8x1xf32> to vector<2x8x8xf32>
    %125 = arith.mulf %120, %124 : vector<2x8x8xf32>
    %126 = vector.shape_cast %125 : vector<2x8x8xf32> to vector<2x1x8x8xf32>
    %127 = arith.truncf %126 : vector<2x1x8x8xf32> to vector<2x1x8x8xbf16>
    %c0_46 = arith.constant 0 : index
    %c3 = arith.constant 3 : index
    %c0_47 = arith.constant 0 : index
    %c0_48 = arith.constant 0 : index
    %128 = vector.load %arg26[%c0_46, %c3, %c0_47, %c0_48] : memref<2x4x8x8xbf16, #tpu.memory_space<vmem>>, vector<2x1x8x8xbf16>
    tpu.vector_store %arg26[%c0_46, %c3, %c0_47, %c0_48], %127 {strides = array<i32>} : memref<2x4x8x8xbf16, #tpu.memory_space<vmem>>, vector<2x1x8x8xbf16>,
    %129 = vector.extract_strided_slice %11 {offsets = [0, 0, 24], sizes = [2, 8, 8], strides = [1, 1, 1]} : vector<2x8x32xf32> to vector<2x8x8xf32>
    %130 = arith.truncf %125 : vector<2x8x8xf32> to vector<2x8x8xbf16>
    %131 = arith.truncf %129 : vector<2x8x8xf32> to vector<2x8x8xbf16>
    "tpu.trace_start"() <{level = 10 : i32, message = "bqk,bkd->bqd"}> : () -> ()
    %cst_49 = arith.constant dense<0.000000e+00> : vector<2x8x8xf32>
    %132 = tpu.matmul %130, %131, %cst_49 {dimension_numbers = #tpu.dot_dimension_numbers<[2], [1], [1], [2], [0, 0, 0, 1, 1, 2], [0], [0]>} : vector<2x8x8xbf16>, vector<2x8x8xbf16>, vector<2x8x8xf32> -> vector<2x8x8xf32>
    "tpu.trace_stop"() : () -> ()
    %133 = vector.shape_cast %132 : vector<2x8x8xf32> to vector<16x8xf32>
    %c24 = arith.constant 24 : index
    %c0_50 = arith.constant 0 : index
    %134 = vector.load %arg7[%c24, %c0_50] : memref<32x32xbf16, #tpu.memory_space<vmem>>, vector<8x32xbf16>
    %135 = arith.truncf %133 : vector<16x8xf32> to vector<16x8xbf16>
    %cst_51 = arith.constant dense<0.000000e+00> : vector<16x32xf32>
    %136 = tpu.matmul %135, %134, %cst_51 {dimension_numbers = #tpu.dot_dimension_numbers<[1], [0], [0], [1], [0, 0, 1, 1], [], []>} : vector<16x8xbf16>, vector<8x32xbf16>, vector<16x32xf32> -> vector<16x32xf32>
    %137 = arith.addf %106, %136 : vector<16x32xf32>
    %c0_52 = arith.constant 0 : index
    %c0_53 = arith.constant 0 : index
    %138 = vector.load %arg8[%c0_52, %c0_53] : memref<1x32xf32, #tpu.memory_space<vmem>>, vector<1x32xf32>
    %139 = vector.broadcast %138 : vector<1x32xf32> to vector<16x32xf32>
    %140 = arith.addf %137, %139 : vector<16x32xf32>
    %141 = arith.addf %2, %140 : vector<16x32xf32>
    %c0_54 = arith.constant 0 : index
    %c0_55 = arith.constant 0 : index
    %142 = vector.load %arg9[%c0_54, %c0_55] : memref<1x32xf32, #tpu.memory_space<vmem>>, vector<1x32xf32>
    %c0_56 = arith.constant 0 : index
    %c0_57 = arith.constant 0 : index
    %143 = vector.load %arg10[%c0_56, %c0_57] : memref<1x32xf32, #tpu.memory_space<vmem>>, vector<1x32xf32>
    %cst_58 = arith.constant dense<0.000000e+00> : vector<16xf32>
    %144 = vector.multi_reduction <add>, %141, %cst_58 [1] : vector<16x32xf32> to vector<16xf32>
    %145 = vector.shape_cast %144 : vector<16xf32> to vector<16x1xf32>
    %cst_59 = arith.constant 3.200000e+01 : f32
    %146 = vector.broadcast %cst_59 : f32 to vector<16x1xf32>
    %147 = arith.divf %145, %146 : vector<16x1xf32>
    %148 = vector.broadcast %147 : vector<16x1xf32> to vector<16x32xf32>
    %149 = arith.subf %141, %148 : vector<16x32xf32>
    %150 = arith.mulf %149, %149 : vector<16x32xf32>
    %cst_60 = arith.constant dense<0.000000e+00> : vector<16xf32>
    %151 = vector.multi_reduction <add>, %150, %cst_60 [1] : vector<16x32xf32> to vector<16xf32>
    %152 = vector.shape_cast %151 : vector<16xf32> to vector<16x1xf32>
    %cst_61 = arith.constant 3.200000e+01 : f32
    %153 = vector.broadcast %cst_61 : f32 to vector<16x1xf32>
    %154 = arith.divf %152, %153 : vector<16x1xf32>
    %155 = vector.broadcast %147 : vector<16x1xf32> to vector<16x32xf32>
    %156 = arith.subf %141, %155 : vector<16x32xf32>
    %cst_62 = arith.constant 9.99999996E-13 : f32
    %157 = vector.broadcast %cst_62 : f32 to vector<16x1xf32>
    %158 = arith.addf %154, %157 : vector<16x1xf32>
    %159 = math.rsqrt %158 : vector<16x1xf32>
    %160 = vector.broadcast %159 : vector<16x1xf32> to vector<16x32xf32>
    %161 = arith.mulf %156, %160 : vector<16x32xf32>
    %162 = vector.broadcast %142 : vector<1x32xf32> to vector<16x32xf32>
    %163 = arith.mulf %161, %162 : vector<16x32xf32>
    %164 = vector.broadcast %143 : vector<1x32xf32> to vector<16x32xf32>
    %165 = arith.addf %163, %164 : vector<16x32xf32>
    %c0_63 = arith.constant 0 : index
    %c0_64 = arith.constant 0 : index
    %166 = vector.load %arg11[%c0_63, %c0_64] : memref<32x32xbf16, #tpu.memory_space<vmem>>, vector<32x32xbf16>
    %167 = arith.truncf %165 : vector<16x32xf32> to vector<16x32xbf16>
    %cst_65 = arith.constant dense<0.000000e+00> : vector<16x32xf32>
    %168 = tpu.matmul %167, %166, %cst_65 {dimension_numbers = #tpu.dot_dimension_numbers<[1], [0], [0], [1], [0, 0, 1, 1], [], []>} : vector<16x32xbf16>, vector<32x32xbf16>, vector<16x32xf32> -> vector<16x32xf32>
    %c0_66 = arith.constant 0 : index
    %c0_67 = arith.constant 0 : index
    %169 = vector.load %arg12[%c0_66, %c0_67] : memref<1x32xf32, #tpu.memory_space<vmem>>, vector<1x32xf32>
    %170 = vector.broadcast %169 : vector<1x32xf32> to vector<16x32xf32>
    %171 = arith.addf %168, %170 : vector<16x32xf32>
    %172 = vector.shape_cast %171 : vector<16x32xf32> to vector<2x8x32xf32>
    %c0_68 = arith.constant 0 : index
    %c0_69 = arith.constant 0 : index
    %c0_70 = arith.constant 0 : index
    %173 = vector.load %arg2[%c0_68, %c0_69, %c0_70] : memref<2x8x32xbf16, #tpu.memory_space<vmem>>, vector<2x8x32xbf16>
    %174 = vector.shape_cast %173 : vector<2x8x32xbf16> to vector<16x32xbf16>
    %c0_71 = arith.constant 0 : index
    %c0_72 = arith.constant 0 : index
    %175 = vector.load %arg13[%c0_71, %c0_72] : memref<32x64xbf16, #tpu.memory_space<vmem>>, vector<32x64xbf16>
    %cst_73 = arith.constant dense<0.000000e+00> : vector<16x64xf32>
    %176 = tpu.matmul %174, %175, %cst_73 {dimension_numbers = #tpu.dot_dimension_numbers<[1], [0], [0], [1], [0, 0, 1, 1], [], []>} : vector<16x32xbf16>, vector<32x64xbf16>, vector<16x64xf32> -> vector<16x64xf32>
    %c0_74 = arith.constant 0 : index
    %c0_75 = arith.constant 0 : index
    %177 = vector.load %arg14[%c0_74, %c0_75] : memref<1x64xf32, #tpu.memory_space<vmem>>, vector<1x64xf32>
    %178 = vector.broadcast %177 : vector<1x64xf32> to vector<16x64xf32>
    %179 = arith.addf %176, %178 : vector<16x64xf32>
    %180 = vector.shape_cast %179 : vector<16x64xf32> to vector<2x8x64xf32>
    %181 = vector.extract_strided_slice %180 {offsets = [0, 0, 0], sizes = [2, 8, 32], strides = [1, 1, 1]} : vector<2x8x64xf32> to vector<2x8x32xf32>
    %182 = vector.extract_strided_slice %180 {offsets = [0, 0, 32], sizes = [2, 8, 32], strides = [1, 1, 1]} : vector<2x8x64xf32> to vector<2x8x32xf32>
    %c0_76 = arith.constant 0 : index
    %c0_77 = arith.constant 0 : index
    %c0_78 = arith.constant 0 : index
    %183 = vector.load %arg4[%c0_76, %c0_77, %c0_78] : memref<2x8x8xbf16, #tpu.memory_space<vmem>>, vector<2x8x8xbf16>
    %cst_79 = arith.constant 0.000000e+00 : f32
    %184 = vector.broadcast %cst_79 : f32 to vector<16x32xf32>
    %185 = vector.extract_strided_slice %172 {offsets = [0, 0, 0], sizes = [2, 8, 8], strides = [1, 1, 1]} : vector<2x8x32xf32> to vector<2x8x8xf32>
    %186 = vector.extract_strided_slice %181 {offsets = [0, 0, 0], sizes = [2, 8, 8], strides = [1, 1, 1]} : vector<2x8x32xf32> to vector<2x8x8xf32>
    %187 = arith.truncf %185 : vector<2x8x8xf32> to vector<2x8x8xbf16>
    %188 = arith.truncf %186 : vector<2x8x8xf32> to vector<2x8x8xbf16>
    "tpu.trace_start"() <{level = 10 : i32, message = "bqd,bkd->bqk"}> : () -> ()
    %cst_80 = arith.constant dense<0.000000e+00> : vector<2x8x8xf32>
    %189 = tpu.matmul %187, %188, %cst_80 {dimension_numbers = #tpu.dot_dimension_numbers<[2], [2], [1], [1], [0, 0, 0, 1, 1, 1], [0], [0]>} : vector<2x8x8xbf16>, vector<2x8x8xbf16>, vector<2x8x8xf32> -> vector<2x8x8xf32>
    "tpu.trace_stop"() : () -> ()
    %cst_81 = arith.constant 0.353553385 : f32
    %190 = vector.broadcast %cst_81 : f32 to vector<2x8x8xf32>
    %191 = arith.mulf %189, %190 : vector<2x8x8xf32>
    %192 = arith.extf %183 : vector<2x8x8xbf16> to vector<2x8x8xf32>
    %193 = arith.addf %191, %192 : vector<2x8x8xf32>
    %cst_82 = arith.constant dense<0xFF800000> : vector<2x8xf32>
    %194 = vector.multi_reduction <maximumf>, %193, %cst_82 [2] : vector<2x8x8xf32> to vector<2x8xf32>
    %195 = vector.shape_cast %194 : vector<2x8xf32> to vector<2x8x1xf32>
    %196 = vector.broadcast %195 : vector<2x8x1xf32> to vector<2x8x8xf32>
    %197 = arith.subf %193, %196 : vector<2x8x8xf32>
    %198 = math.exp %197 : vector<2x8x8xf32>
    %cst_83 = arith.constant dense<0.000000e+00> : vector<2x8xf32>
    %199 = vector.multi_reduction <add>, %198, %cst_83 [2] : vector<2x8x8xf32> to vector<2x8xf32>
    %200 = vector.shape_cast %199 : vector<2x8xf32> to vector<2x8x1xf32>
    %201 = tpu.reciprocal %200 {approx = true} : vector<2x8x1xf32> -> vector<2x8x1xf32>
    %202 = vector.broadcast %201 : vector<2x8x1xf32> to vector<2x8x8xf32>
    %203 = arith.mulf %198, %202 : vector<2x8x8xf32>
    %204 = vector.shape_cast %203 : vector<2x8x8xf32> to vector<2x1x8x8xf32>
    %205 = arith.truncf %204 : vector<2x1x8x8xf32> to vector<2x1x8x8xbf16>
    %c0_84 = arith.constant 0 : index
    %c0_85 = arith.constant 0 : index
    %c0_86 = arith.constant 0 : index
    %c0_87 = arith.constant 0 : index
    %206 = vector.load %arg27[%c0_84, %c0_85, %c0_86, %c0_87] : memref<2x4x8x8xbf16, #tpu.memory_space<vmem>>, vector<2x1x8x8xbf16>
    tpu.vector_store %arg27[%c0_84, %c0_85, %c0_86, %c0_87], %205 {strides = array<i32>} : memref<2x4x8x8xbf16, #tpu.memory_space<vmem>>, vector<2x1x8x8xbf16>,
    %207 = vector.extract_strided_slice %182 {offsets = [0, 0, 0], sizes = [2, 8, 8], strides = [1, 1, 1]} : vector<2x8x32xf32> to vector<2x8x8xf32>
    %208 = arith.truncf %203 : vector<2x8x8xf32> to vector<2x8x8xbf16>
    %209 = arith.truncf %207 : vector<2x8x8xf32> to vector<2x8x8xbf16>
    "tpu.trace_start"() <{level = 10 : i32, message = "bqk,bkd->bqd"}> : () -> ()
    %cst_88 = arith.constant dense<0.000000e+00> : vector<2x8x8xf32>
    %210 = tpu.matmul %208, %209, %cst_88 {dimension_numbers = #tpu.dot_dimension_numbers<[2], [1], [1], [2], [0, 0, 0, 1, 1, 2], [0], [0]>} : vector<2x8x8xbf16>, vector<2x8x8xbf16>, vector<2x8x8xf32> -> vector<2x8x8xf32>
    "tpu.trace_stop"() : () -> ()
    %211 = vector.shape_cast %210 : vector<2x8x8xf32> to vector<16x8xf32>
    %c0_89 = arith.constant 0 : index
    %c0_90 = arith.constant 0 : index
    %212 = vector.load %arg15[%c0_89, %c0_90] : memref<32x32xbf16, #tpu.memory_space<vmem>>, vector<8x32xbf16>
    %213 = arith.truncf %211 : vector<16x8xf32> to vector<16x8xbf16>
    %cst_91 = arith.constant dense<0.000000e+00> : vector<16x32xf32>
    %214 = tpu.matmul %213, %212, %cst_91 {dimension_numbers = #tpu.dot_dimension_numbers<[1], [0], [0], [1], [0, 0, 1, 1], [], []>} : vector<16x8xbf16>, vector<8x32xbf16>, vector<16x32xf32> -> vector<16x32xf32>
    %215 = arith.addf %184, %214 : vector<16x32xf32>
    %216 = vector.extract_strided_slice %172 {offsets = [0, 0, 8], sizes = [2, 8, 8], strides = [1, 1, 1]} : vector<2x8x32xf32> to vector<2x8x8xf32>
    %217 = vector.extract_strided_slice %181 {offsets = [0, 0, 8], sizes = [2, 8, 8], strides = [1, 1, 1]} : vector<2x8x32xf32> to vector<2x8x8xf32>
    %218 = arith.truncf %216 : vector<2x8x8xf32> to vector<2x8x8xbf16>
    %219 = arith.truncf %217 : vector<2x8x8xf32> to vector<2x8x8xbf16>
    "tpu.trace_start"() <{level = 10 : i32, message = "bqd,bkd->bqk"}> : () -> ()
    %cst_92 = arith.constant dense<0.000000e+00> : vector<2x8x8xf32>
    %220 = tpu.matmul %218, %219, %cst_92 {dimension_numbers = #tpu.dot_dimension_numbers<[2], [2], [1], [1], [0, 0, 0, 1, 1, 1], [0], [0]>} : vector<2x8x8xbf16>, vector<2x8x8xbf16>, vector<2x8x8xf32> -> vector<2x8x8xf32>
    "tpu.trace_stop"() : () -> ()
    %cst_93 = arith.constant 0.353553385 : f32
    %221 = vector.broadcast %cst_93 : f32 to vector<2x8x8xf32>
    %222 = arith.mulf %220, %221 : vector<2x8x8xf32>
    %223 = arith.extf %183 : vector<2x8x8xbf16> to vector<2x8x8xf32>
    %224 = arith.addf %222, %223 : vector<2x8x8xf32>
    %cst_94 = arith.constant dense<0xFF800000> : vector<2x8xf32>
    %225 = vector.multi_reduction <maximumf>, %224, %cst_94 [2] : vector<2x8x8xf32> to vector<2x8xf32>
    %226 = vector.shape_cast %225 : vector<2x8xf32> to vector<2x8x1xf32>
    %227 = vector.broadcast %226 : vector<2x8x1xf32> to vector<2x8x8xf32>
    %228 = arith.subf %224, %227 : vector<2x8x8xf32>
    %229 = math.exp %228 : vector<2x8x8xf32>
    %cst_95 = arith.constant dense<0.000000e+00> : vector<2x8xf32>
    %230 = vector.multi_reduction <add>, %229, %cst_95 [2] : vector<2x8x8xf32> to vector<2x8xf32>
    %231 = vector.shape_cast %230 : vector<2x8xf32> to vector<2x8x1xf32>
    %232 = tpu.reciprocal %231 {approx = true} : vector<2x8x1xf32> -> vector<2x8x1xf32>
    %233 = vector.broadcast %232 : vector<2x8x1xf32> to vector<2x8x8xf32>
    %234 = arith.mulf %229, %233 : vector<2x8x8xf32>
    %235 = vector.shape_cast %234 : vector<2x8x8xf32> to vector<2x1x8x8xf32>
    %236 = arith.truncf %235 : vector<2x1x8x8xf32> to vector<2x1x8x8xbf16>
    %c0_96 = arith.constant 0 : index
    %c1_97 = arith.constant 1 : index
    %c0_98 = arith.constant 0 : index
    %c0_99 = arith.constant 0 : index
    %237 = vector.load %arg27[%c0_96, %c1_97, %c0_98, %c0_99] : memref<2x4x8x8xbf16, #tpu.memory_space<vmem>>, vector<2x1x8x8xbf16>
    tpu.vector_store %arg27[%c0_96, %c1_97, %c0_98, %c0_99], %236 {strides = array<i32>} : memref<2x4x8x8xbf16, #tpu.memory_space<vmem>>, vector<2x1x8x8xbf16>,
    %238 = vector.extract_strided_slice %182 {offsets = [0, 0, 8], sizes = [2, 8, 8], strides = [1, 1, 1]} : vector<2x8x32xf32> to vector<2x8x8xf32>
    %239 = arith.truncf %234 : vector<2x8x8xf32> to vector<2x8x8xbf16>
    %240 = arith.truncf %238 : vector<2x8x8xf32> to vector<2x8x8xbf16>
    "tpu.trace_start"() <{level = 10 : i32, message = "bqk,bkd->bqd"}> : () -> ()
    %cst_100 = arith.constant dense<0.000000e+00> : vector<2x8x8xf32>
    %241 = tpu.matmul %239, %240, %cst_100 {dimension_numbers = #tpu.dot_dimension_numbers<[2], [1], [1], [2], [0, 0, 0, 1, 1, 2], [0], [0]>} : vector<2x8x8xbf16>, vector<2x8x8xbf16>, vector<2x8x8xf32> -> vector<2x8x8xf32>
    "tpu.trace_stop"() : () -> ()
    %242 = vector.shape_cast %241 : vector<2x8x8xf32> to vector<16x8xf32>
    %c8_101 = arith.constant 8 : index
    %c0_102 = arith.constant 0 : index
    %243 = vector.load %arg15[%c8_101, %c0_102] : memref<32x32xbf16, #tpu.memory_space<vmem>>, vector<8x32xbf16>
    %244 = arith.truncf %242 : vector<16x8xf32> to vector<16x8xbf16>
    %cst_103 = arith.constant dense<0.000000e+00> : vector<16x32xf32>
    %245 = tpu.matmul %244, %243, %cst_103 {dimension_numbers = #tpu.dot_dimension_numbers<[1], [0], [0], [1], [0, 0, 1, 1], [], []>} : vector<16x8xbf16>, vector<8x32xbf16>, vector<16x32xf32> -> vector<16x32xf32>
    %246 = arith.addf %215, %245 : vector<16x32xf32>
    %247 = vector.extract_strided_slice %172 {offsets = [0, 0, 16], sizes = [2, 8, 8], strides = [1, 1, 1]} : vector<2x8x32xf32> to vector<2x8x8xf32>
    %248 = vector.extract_strided_slice %181 {offsets = [0, 0, 16], sizes = [2, 8, 8], strides = [1, 1, 1]} : vector<2x8x32xf32> to vector<2x8x8xf32>
    %249 = arith.truncf %247 : vector<2x8x8xf32> to vector<2x8x8xbf16>
    %250 = arith.truncf %248 : vector<2x8x8xf32> to vector<2x8x8xbf16>
    "tpu.trace_start"() <{level = 10 : i32, message = "bqd,bkd->bqk"}> : () -> ()
    %cst_104 = arith.constant dense<0.000000e+00> : vector<2x8x8xf32>
    %251 = tpu.matmul %249, %250, %cst_104 {dimension_numbers = #tpu.dot_dimension_numbers<[2], [2], [1], [1], [0, 0, 0, 1, 1, 1], [0], [0]>} : vector<2x8x8xbf16>, vector<2x8x8xbf16>, vector<2x8x8xf32> -> vector<2x8x8xf32>
    "tpu.trace_stop"() : () -> ()
    %cst_105 = arith.constant 0.353553385 : f32
    %252 = vector.broadcast %cst_105 : f32 to vector<2x8x8xf32>
    %253 = arith.mulf %251, %252 : vector<2x8x8xf32>
    %254 = arith.extf %183 : vector<2x8x8xbf16> to vector<2x8x8xf32>
    %255 = arith.addf %253, %254 : vector<2x8x8xf32>
    %cst_106 = arith.constant dense<0xFF800000> : vector<2x8xf32>
    %256 = vector.multi_reduction <maximumf>, %255, %cst_106 [2] : vector<2x8x8xf32> to vector<2x8xf32>
    %257 = vector.shape_cast %256 : vector<2x8xf32> to vector<2x8x1xf32>
    %258 = vector.broadcast %257 : vector<2x8x1xf32> to vector<2x8x8xf32>
    %259 = arith.subf %255, %258 : vector<2x8x8xf32>
    %260 = math.exp %259 : vector<2x8x8xf32>
    %cst_107 = arith.constant dense<0.000000e+00> : vector<2x8xf32>
    %261 = vector.multi_reduction <add>, %260, %cst_107 [2] : vector<2x8x8xf32> to vector<2x8xf32>
    %262 = vector.shape_cast %261 : vector<2x8xf32> to vector<2x8x1xf32>
    %263 = tpu.reciprocal %262 {approx = true} : vector<2x8x1xf32> -> vector<2x8x1xf32>
    %264 = vector.broadcast %263 : vector<2x8x1xf32> to vector<2x8x8xf32>
    %265 = arith.mulf %260, %264 : vector<2x8x8xf32>
    %266 = vector.shape_cast %265 : vector<2x8x8xf32> to vector<2x1x8x8xf32>
    %267 = arith.truncf %266 : vector<2x1x8x8xf32> to vector<2x1x8x8xbf16>
    %c0_108 = arith.constant 0 : index
    %c2_109 = arith.constant 2 : index
    %c0_110 = arith.constant 0 : index
    %c0_111 = arith.constant 0 : index
    %268 = vector.load %arg27[%c0_108, %c2_109, %c0_110, %c0_111] : memref<2x4x8x8xbf16, #tpu.memory_space<vmem>>, vector<2x1x8x8xbf16>
    tpu.vector_store %arg27[%c0_108, %c2_109, %c0_110, %c0_111], %267 {strides = array<i32>} : memref<2x4x8x8xbf16, #tpu.memory_space<vmem>>, vector<2x1x8x8xbf16>,
    %269 = vector.extract_strided_slice %182 {offsets = [0, 0, 16], sizes = [2, 8, 8], strides = [1, 1, 1]} : vector<2x8x32xf32> to vector<2x8x8xf32>
    %270 = arith.truncf %265 : vector<2x8x8xf32> to vector<2x8x8xbf16>
    %271 = arith.truncf %269 : vector<2x8x8xf32> to vector<2x8x8xbf16>
    "tpu.trace_start"() <{level = 10 : i32, message = "bqk,bkd->bqd"}> : () -> ()
    %cst_112 = arith.constant dense<0.000000e+00> : vector<2x8x8xf32>
    %272 = tpu.matmul %270, %271, %cst_112 {dimension_numbers = #tpu.dot_dimension_numbers<[2], [1], [1], [2], [0, 0, 0, 1, 1, 2], [0], [0]>} : vector<2x8x8xbf16>, vector<2x8x8xbf16>, vector<2x8x8xf32> -> vector<2x8x8xf32>
    "tpu.trace_stop"() : () -> ()
    %273 = vector.shape_cast %272 : vector<2x8x8xf32> to vector<16x8xf32>
    %c16_113 = arith.constant 16 : index
    %c0_114 = arith.constant 0 : index
    %274 = vector.load %arg15[%c16_113, %c0_114] : memref<32x32xbf16, #tpu.memory_space<vmem>>, vector<8x32xbf16>
    %275 = arith.truncf %273 : vector<16x8xf32> to vector<16x8xbf16>
    %cst_115 = arith.constant dense<0.000000e+00> : vector<16x32xf32>
    %276 = tpu.matmul %275, %274, %cst_115 {dimension_numbers = #tpu.dot_dimension_numbers<[1], [0], [0], [1], [0, 0, 1, 1], [], []>} : vector<16x8xbf16>, vector<8x32xbf16>, vector<16x32xf32> -> vector<16x32xf32>
    %277 = arith.addf %246, %276 : vector<16x32xf32>
    %278 = vector.extract_strided_slice %172 {offsets = [0, 0, 24], sizes = [2, 8, 8], strides = [1, 1, 1]} : vector<2x8x32xf32> to vector<2x8x8xf32>
    %279 = vector.extract_strided_slice %181 {offsets = [0, 0, 24], sizes = [2, 8, 8], strides = [1, 1, 1]} : vector<2x8x32xf32> to vector<2x8x8xf32>
    %280 = arith.truncf %278 : vector<2x8x8xf32> to vector<2x8x8xbf16>
    %281 = arith.truncf %279 : vector<2x8x8xf32> to vector<2x8x8xbf16>
    "tpu.trace_start"() <{level = 10 : i32, message = "bqd,bkd->bqk"}> : () -> ()
    %cst_116 = arith.constant dense<0.000000e+00> : vector<2x8x8xf32>
    %282 = tpu.matmul %280, %281, %cst_116 {dimension_numbers = #tpu.dot_dimension_numbers<[2], [2], [1], [1], [0, 0, 0, 1, 1, 1], [0], [0]>} : vector<2x8x8xbf16>, vector<2x8x8xbf16>, vector<2x8x8xf32> -> vector<2x8x8xf32>
    "tpu.trace_stop"() : () -> ()
    %cst_117 = arith.constant 0.353553385 : f32
    %283 = vector.broadcast %cst_117 : f32 to vector<2x8x8xf32>
    %284 = arith.mulf %282, %283 : vector<2x8x8xf32>
    %285 = arith.extf %183 : vector<2x8x8xbf16> to vector<2x8x8xf32>
    %286 = arith.addf %284, %285 : vector<2x8x8xf32>
    %cst_118 = arith.constant dense<0xFF800000> : vector<2x8xf32>
    %287 = vector.multi_reduction <maximumf>, %286, %cst_118 [2] : vector<2x8x8xf32> to vector<2x8xf32>
    %288 = vector.shape_cast %287 : vector<2x8xf32> to vector<2x8x1xf32>
    %289 = vector.broadcast %288 : vector<2x8x1xf32> to vector<2x8x8xf32>
    %290 = arith.subf %286, %289 : vector<2x8x8xf32>
    %291 = math.exp %290 : vector<2x8x8xf32>
    %cst_119 = arith.constant dense<0.000000e+00> : vector<2x8xf32>
    %292 = vector.multi_reduction <add>, %291, %cst_119 [2] : vector<2x8x8xf32> to vector<2x8xf32>
    %293 = vector.shape_cast %292 : vector<2x8xf32> to vector<2x8x1xf32>
    %294 = tpu.reciprocal %293 {approx = true} : vector<2x8x1xf32> -> vector<2x8x1xf32>
    %295 = vector.broadcast %294 : vector<2x8x1xf32> to vector<2x8x8xf32>
    %296 = arith.mulf %291, %295 : vector<2x8x8xf32>
    %297 = vector.shape_cast %296 : vector<2x8x8xf32> to vector<2x1x8x8xf32>
    %298 = arith.truncf %297 : vector<2x1x8x8xf32> to vector<2x1x8x8xbf16>
    %c0_120 = arith.constant 0 : index
    %c3_121 = arith.constant 3 : index
    %c0_122 = arith.constant 0 : index
    %c0_123 = arith.constant 0 : index
    %299 = vector.load %arg27[%c0_120, %c3_121, %c0_122, %c0_123] : memref<2x4x8x8xbf16, #tpu.memory_space<vmem>>, vector<2x1x8x8xbf16>
    tpu.vector_store %arg27[%c0_120, %c3_121, %c0_122, %c0_123], %298 {strides = array<i32>} : memref<2x4x8x8xbf16, #tpu.memory_space<vmem>>, vector<2x1x8x8xbf16>,
    %300 = vector.extract_strided_slice %182 {offsets = [0, 0, 24], sizes = [2, 8, 8], strides = [1, 1, 1]} : vector<2x8x32xf32> to vector<2x8x8xf32>
    %301 = arith.truncf %296 : vector<2x8x8xf32> to vector<2x8x8xbf16>
    %302 = arith.truncf %300 : vector<2x8x8xf32> to vector<2x8x8xbf16>
    "tpu.trace_start"() <{level = 10 : i32, message = "bqk,bkd->bqd"}> : () -> ()
    %cst_124 = arith.constant dense<0.000000e+00> : vector<2x8x8xf32>
    %303 = tpu.matmul %301, %302, %cst_124 {dimension_numbers = #tpu.dot_dimension_numbers<[2], [1], [1], [2], [0, 0, 0, 1, 1, 2], [0], [0]>} : vector<2x8x8xbf16>, vector<2x8x8xbf16>, vector<2x8x8xf32> -> vector<2x8x8xf32>
    "tpu.trace_stop"() : () -> ()
    %304 = vector.shape_cast %303 : vector<2x8x8xf32> to vector<16x8xf32>
    %c24_125 = arith.constant 24 : index
    %c0_126 = arith.constant 0 : index
    %305 = vector.load %arg15[%c24_125, %c0_126] : memref<32x32xbf16, #tpu.memory_space<vmem>>, vector<8x32xbf16>
    %306 = arith.truncf %304 : vector<16x8xf32> to vector<16x8xbf16>
    %cst_127 = arith.constant dense<0.000000e+00> : vector<16x32xf32>
    %307 = tpu.matmul %306, %305, %cst_127 {dimension_numbers = #tpu.dot_dimension_numbers<[1], [0], [0], [1], [0, 0, 1, 1], [], []>} : vector<16x8xbf16>, vector<8x32xbf16>, vector<16x32xf32> -> vector<16x32xf32>
    %308 = arith.addf %277, %307 : vector<16x32xf32>
    %c0_128 = arith.constant 0 : index
    %c0_129 = arith.constant 0 : index
    %309 = vector.load %arg16[%c0_128, %c0_129] : memref<1x32xf32, #tpu.memory_space<vmem>>, vector<1x32xf32>
    %310 = vector.broadcast %309 : vector<1x32xf32> to vector<16x32xf32>
    %311 = arith.addf %308, %310 : vector<16x32xf32>
    %312 = arith.addf %165, %311 : vector<16x32xf32>
    %c0_130 = arith.constant 0 : index
    %c0_131 = arith.constant 0 : index
    %313 = vector.load %arg17[%c0_130, %c0_131] : memref<1x32xf32, #tpu.memory_space<vmem>>, vector<1x32xf32>
    %c0_132 = arith.constant 0 : index
    %c0_133 = arith.constant 0 : index
    %314 = vector.load %arg18[%c0_132, %c0_133] : memref<1x32xf32, #tpu.memory_space<vmem>>, vector<1x32xf32>
    %cst_134 = arith.constant dense<0.000000e+00> : vector<16xf32>
    %315 = vector.multi_reduction <add>, %312, %cst_134 [1] : vector<16x32xf32> to vector<16xf32>
    %316 = vector.shape_cast %315 : vector<16xf32> to vector<16x1xf32>
    %cst_135 = arith.constant 3.200000e+01 : f32
    %317 = vector.broadcast %cst_135 : f32 to vector<16x1xf32>
    %318 = arith.divf %316, %317 : vector<16x1xf32>
    %319 = vector.broadcast %318 : vector<16x1xf32> to vector<16x32xf32>
    %320 = arith.subf %312, %319 : vector<16x32xf32>
    %321 = arith.mulf %320, %320 : vector<16x32xf32>
    %cst_136 = arith.constant dense<0.000000e+00> : vector<16xf32>
    %322 = vector.multi_reduction <add>, %321, %cst_136 [1] : vector<16x32xf32> to vector<16xf32>
    %323 = vector.shape_cast %322 : vector<16xf32> to vector<16x1xf32>
    %cst_137 = arith.constant 3.200000e+01 : f32
    %324 = vector.broadcast %cst_137 : f32 to vector<16x1xf32>
    %325 = arith.divf %323, %324 : vector<16x1xf32>
    %326 = vector.broadcast %318 : vector<16x1xf32> to vector<16x32xf32>
    %327 = arith.subf %312, %326 : vector<16x32xf32>
    %cst_138 = arith.constant 9.99999996E-13 : f32
    %328 = vector.broadcast %cst_138 : f32 to vector<16x1xf32>
    %329 = arith.addf %325, %328 : vector<16x1xf32>
    %330 = math.rsqrt %329 : vector<16x1xf32>
    %331 = vector.broadcast %330 : vector<16x1xf32> to vector<16x32xf32>
    %332 = arith.mulf %327, %331 : vector<16x32xf32>
    %333 = vector.broadcast %313 : vector<1x32xf32> to vector<16x32xf32>
    %334 = arith.mulf %332, %333 : vector<16x32xf32>
    %335 = vector.broadcast %314 : vector<1x32xf32> to vector<16x32xf32>
    %336 = arith.addf %334, %335 : vector<16x32xf32>
    %c0_139 = arith.constant 0 : index
    %c0_140 = arith.constant 0 : index
    %337 = vector.load %arg19[%c0_139, %c0_140] : memref<32x64xbf16, #tpu.memory_space<vmem>>, vector<32x64xbf16>
    %338 = arith.truncf %336 : vector<16x32xf32> to vector<16x32xbf16>
    %cst_141 = arith.constant dense<0.000000e+00> : vector<16x64xf32>
    %339 = tpu.matmul %338, %337, %cst_141 {dimension_numbers = #tpu.dot_dimension_numbers<[1], [0], [0], [1], [0, 0, 1, 1], [], []>} : vector<16x32xbf16>, vector<32x64xbf16>, vector<16x64xf32> -> vector<16x64xf32>
    %c0_142 = arith.constant 0 : index
    %c0_143 = arith.constant 0 : index
    %340 = vector.load %arg20[%c0_142, %c0_143] : memref<1x64xf32, #tpu.memory_space<vmem>>, vector<1x64xf32>
    %341 = vector.broadcast %340 : vector<1x64xf32> to vector<16x64xf32>
    %342 = arith.addf %339, %341 : vector<16x64xf32>
    %cst_144 = arith.constant 5.000000e-01 : f32
    %343 = vector.broadcast %cst_144 : f32 to vector<16x64xf32>
    %344 = arith.mulf %343, %342 : vector<16x64xf32>
    %cst_145 = arith.constant 0.707106769 : f32
    %345 = vector.broadcast %cst_145 : f32 to vector<16x64xf32>
    %346 = arith.mulf %342, %345 : vector<16x64xf32>
    %347 = math.erf %346 : vector<16x64xf32>
    %cst_146 = arith.constant 1.000000e+00 : f32
    %348 = vector.broadcast %cst_146 : f32 to vector<16x64xf32>
    %349 = arith.addf %348, %347 : vector<16x64xf32>
    %350 = arith.mulf %344, %349 : vector<16x64xf32>
    %c0_147 = arith.constant 0 : index
    %c0_148 = arith.constant 0 : index
    %351 = vector.load %arg21[%c0_147, %c0_148] : memref<64x32xbf16, #tpu.memory_space<vmem>>, vector<64x32xbf16>
    %352 = arith.truncf %350 : vector<16x64xf32> to vector<16x64xbf16>
    %cst_149 = arith.constant dense<0.000000e+00> : vector<16x32xf32>
    %353 = tpu.matmul %352, %351, %cst_149 {dimension_numbers = #tpu.dot_dimension_numbers<[1], [0], [0], [1], [0, 0, 1, 1], [], []>} : vector<16x64xbf16>, vector<64x32xbf16>, vector<16x32xf32> -> vector<16x32xf32>
    %c0_150 = arith.constant 0 : index
    %c0_151 = arith.constant 0 : index
    %354 = vector.load %arg22[%c0_150, %c0_151] : memref<1x32xf32, #tpu.memory_space<vmem>>, vector<1x32xf32>
    %355 = vector.broadcast %354 : vector<1x32xf32> to vector<16x32xf32>
    %356 = arith.addf %353, %355 : vector<16x32xf32>
    %357 = arith.addf %336, %356 : vector<16x32xf32>
    %c0_152 = arith.constant 0 : index
    %c0_153 = arith.constant 0 : index
    %358 = vector.load %arg23[%c0_152, %c0_153] : memref<1x32xf32, #tpu.memory_space<vmem>>, vector<1x32xf32>
    %c0_154 = arith.constant 0 : index
    %c0_155 = arith.constant 0 : index
    %359 = vector.load %arg24[%c0_154, %c0_155] : memref<1x32xf32, #tpu.memory_space<vmem>>, vector<1x32xf32>
    %cst_156 = arith.constant dense<0.000000e+00> : vector<16xf32>
    %360 = vector.multi_reduction <add>, %357, %cst_156 [1] : vector<16x32xf32> to vector<16xf32>
    %361 = vector.shape_cast %360 : vector<16xf32> to vector<16x1xf32>
    %cst_157 = arith.constant 3.200000e+01 : f32
    %362 = vector.broadcast %cst_157 : f32 to vector<16x1xf32>
    %363 = arith.divf %361, %362 : vector<16x1xf32>
    %364 = vector.broadcast %363 : vector<16x1xf32> to vector<16x32xf32>
    %365 = arith.subf %357, %364 : vector<16x32xf32>
    %366 = arith.mulf %365, %365 : vector<16x32xf32>
    %cst_158 = arith.constant dense<0.000000e+00> : vector<16xf32>
    %367 = vector.multi_reduction <add>, %366, %cst_158 [1] : vector<16x32xf32> to vector<16xf32>
    %368 = vector.shape_cast %367 : vector<16xf32> to vector<16x1xf32>
    %cst_159 = arith.constant 3.200000e+01 : f32
    %369 = vector.broadcast %cst_159 : f32 to vector<16x1xf32>
    %370 = arith.divf %368, %369 : vector<16x1xf32>
    %371 = vector.broadcast %363 : vector<16x1xf32> to vector<16x32xf32>
    %372 = arith.subf %357, %371 : vector<16x32xf32>
    %cst_160 = arith.constant 9.99999996E-13 : f32
    %373 = vector.broadcast %cst_160 : f32 to vector<16x1xf32>
    %374 = arith.addf %370, %373 : vector<16x1xf32>
    %375 = math.rsqrt %374 : vector<16x1xf32>
    %376 = vector.broadcast %375 : vector<16x1xf32> to vector<16x32xf32>
    %377 = arith.mulf %372, %376 : vector<16x32xf32>
    %378 = vector.broadcast %358 : vector<1x32xf32> to vector<16x32xf32>
    %379 = arith.mulf %377, %378 : vector<16x32xf32>
    %380 = vector.broadcast %359 : vector<1x32xf32> to vector<16x32xf32>
    %381 = arith.addf %379, %380 : vector<16x32xf32>
    %382 = vector.shape_cast %381 : vector<16x32xf32> to vector<2x8x32xf32>
    %383 = arith.truncf %382 : vector<2x8x32xf32> to vector<2x8x32xbf16>
    %c0_161 = arith.constant 0 : index
    %c0_162 = arith.constant 0 : index
    %c0_163 = arith.constant 0 : index
    %384 = vector.load %arg25[%c0_161, %c0_162, %c0_163] : memref<2x8x32xbf16, #tpu.memory_space<vmem>>, vector<2x8x32xbf16>
    tpu.vector_store %arg25[%c0_161, %c0_162, %c0_163], %383 {strides = array<i32>} : memref<2x8x32xbf16, #tpu.memory_space<vmem>>, vector<2x8x32xbf16>,
    return
  }
  func.func @transform_0(%arg0: i32) -> (i32, i32, i32) {
    %c0_i32 = arith.constant 0 : i32
    %c0_i32_0 = arith.constant 0 : i32
    %c0_i32_1 = arith.constant 0 : i32
    return %arg0, %c0_i32, %c0_i32_0 : i32, i32, i32
  }
  func.func @transform_1(%arg0: i32) -> (i32, i32, i32) {
    %c0_i32 = arith.constant 0 : i32
    %c0_i32_0 = arith.constant 0 : i32
    %c0_i32_1 = arith.constant 0 : i32
    return %arg0, %c0_i32, %c0_i32_0 : i32, i32, i32
  }
  func.func @transform_2(%arg0: i32) -> (i32, i32, i32) {
    %c0_i32 = arith.constant 0 : i32
    %c0_i32_0 = arith.constant 0 : i32
    %c0_i32_1 = arith.constant 0 : i32
    return %arg0, %c0_i32, %c0_i32_0 : i32, i32, i32
  }
  func.func @transform_3(%arg0: i32) -> (i32, i32, i32) {
    %c0_i32 = arith.constant 0 : i32
    %c0_i32_0 = arith.constant 0 : i32
    %c0_i32_1 = arith.constant 0 : i32
    return %arg0, %c0_i32, %c0_i32_0 : i32, i32, i32
  }
  func.func @transform_4(%arg0: i32) -> (i32, i32) {
    %c0_i32 = arith.constant 0 : i32
    %c0_i32_0 = arith.constant 0 : i32
    %c0_i32_1 = arith.constant 0 : i32
    return %c0_i32, %c0_i32_0 : i32, i32
  }
  func.func @transform_5(%arg0: i32) -> (i32, i32) {
    %c0_i32 = arith.constant 0 : i32
    %c0_i32_0 = arith.constant 0 : i32
    %c0_i32_1 = arith.constant 0 : i32
    return %c0_i32, %c0_i32_0 : i32, i32
  }
  func.func @transform_6(%arg0: i32) -> (i32, i32) {
    %c0_i32 = arith.constant 0 : i32
    %c0_i32_0 = arith.constant 0 : i32
    %c0_i32_1 = arith.constant 0 : i32
    return %c0_i32, %c0_i32_0 : i32, i32
  }
  func.func @transform_7(%arg0: i32) -> (i32, i32) {
    %c0_i32 = arith.constant 0 : i32
    %c0_i32_0 = arith.constant 0 : i32
    %c0_i32_1 = arith.constant 0 : i32
    return %c0_i32, %c0_i32_0 : i32, i32
  }
  func.func @transform_8(%arg0: i32) -> (i32, i32) {
    %c0_i32 = arith.constant 0 : i32
    %c0_i32_0 = arith.constant 0 : i32
    %c0_i32_1 = arith.constant 0 : i32
    return %c0_i32, %c0_i32_0 : i32, i32
  }
  func.func @transform_9(%arg0: i32) -> (i32, i32) {
    %c0_i32 = arith.constant 0 : i32
    %c0_i32_0 = arith.constant 0 : i32
    %c0_i32_1 = arith.constant 0 : i32
    return %c0_i32, %c0_i32_0 : i32, i32
  }
  func.func @transform_10(%arg0: i32) -> (i32, i32) {
    %c0_i32 = arith.constant 0 : i32
    %c0_i32_0 = arith.constant 0 : i32
    %c0_i32_1 = arith.constant 0 : i32
    return %c0_i32, %c0_i32_0 : i32, i32
  }
  func.func @transform_11(%arg0: i32) -> (i32, i32) {
    %c0_i32 = arith.constant 0 : i32
    %c0_i32_0 = arith.constant 0 : i32
    %c0_i32_1 = arith.constant 0 : i32
    return %c0_i32, %c0_i32_0 : i32, i32
  }
  func.func @transform_12(%arg0: i32) -> (i32, i32) {
    %c0_i32 = arith.constant 0 : i32
    %c0_i32_0 = arith.constant 0 : i32
    %c0_i32_1 = arith.constant 0 : i32
    return %c0_i32, %c0_i32_0 : i32, i32
  }
  func.func @transform_13(%arg0: i32) -> (i32, i32) {
    %c0_i32 = arith.constant 0 : i32
    %c0_i32_0 = arith.constant 0 : i32
    %c0_i32_1 = arith.constant 0 : i32
    return %c0_i32, %c0_i32_0 : i32, i32
  }
  func.func @transform_14(%arg0: i32) -> (i32, i32) {
    %c0_i32 = arith.constant 0 : i32
    %c0_i32_0 = arith.constant 0 : i32
    %c0_i32_1 = arith.constant 0 : i32
    return %c0_i32, %c0_i32_0 : i32, i32
  }
  func.func @transform_15(%arg0: i32) -> (i32, i32) {
    %c0_i32 = arith.constant 0 : i32
    %c0_i32_0 = arith.constant 0 : i32
    %c0_i32_1 = arith.constant 0 : i32
    return %c0_i32, %c0_i32_0 : i32, i32
  }
  func.func @transform_16(%arg0: i32) -> (i32, i32) {
    %c0_i32 = arith.constant 0 : i32
    %c0_i32_0 = arith.constant 0 : i32
    %c0_i32_1 = arith.constant 0 : i32
    return %c0_i32, %c0_i32_0 : i32, i32
  }
  func.func @transform_17(%arg0: i32) -> (i32, i32) {
    %c0_i32 = arith.constant 0 : i32
    %c0_i32_0 = arith.constant 0 : i32
    %c0_i32_1 = arith.constant 0 : i32
    return %c0_i32, %c0_i32_0 : i32, i32
  }
  func.func @transform_18(%arg0: i32) -> (i32, i32) {
    %c0_i32 = arith.constant 0 : i32
    %c0_i32_0 = arith.constant 0 : i32
    %c0_i32_1 = arith.constant 0 : i32
    return %c0_i32, %c0_i32_0 : i32, i32
  }
  func.func @transform_19(%arg0: i32) -> (i32, i32) {
    %c0_i32 = arith.constant 0 : i32
    %c0_i32_0 = arith.constant 0 : i32
    %c0_i32_1 = arith.constant 0 : i32
    return %c0_i32, %c0_i32_0 : i32, i32
  }
  func.func @transform_20(%arg0: i32) -> (i32, i32) {
    %c0_i32 = arith.constant 0 : i32
    %c0_i32_0 = arith.constant 0 : i32
    %c0_i32_1 = arith.constant 0 : i32
    return %c0_i32, %c0_i32_0 : i32, i32
  }
  func.func @transform_21(%arg0: i32) -> (i32, i32) {
    %c0_i32 = arith.constant 0 : i32
    %c0_i32_0 = arith.constant 0 : i32
    %c0_i32_1 = arith.constant 0 : i32
    return %c0_i32, %c0_i32_0 : i32, i32
  }
  func.func @transform_22(%arg0: i32) -> (i32, i32) {
    %c0_i32 = arith.constant 0 : i32
    %c0_i32_0 = arith.constant 0 : i32
    %c0_i32_1 = arith.constant 0 : i32
    return %c0_i32, %c0_i32_0 : i32, i32
  }
  func.func @transform_23(%arg0: i32) -> (i32, i32) {
    %c0_i32 = arith.constant 0 : i32
    %c0_i32_0 = arith.constant 0 : i32
    %c0_i32_1 = arith.constant 0 : i32
    return %c0_i32, %c0_i32_0 : i32, i32
  }
  func.func @transform_24(%arg0: i32) -> (i32, i32, i32) {
    %c0_i32 = arith.constant 0 : i32
    %c0_i32_0 = arith.constant 0 : i32
    %c0_i32_1 = arith.constant 0 : i32
    return %arg0, %c0_i32, %c0_i32_0 : i32, i32, i32
  }
  func.func @transform_25(%arg0: i32) -> (i32, i32, i32, i32) {
    %c0_i32 = arith.constant 0 : i32
    %c0_i32_0 = arith.constant 0 : i32
    %c0_i32_1 = arith.constant 0 : i32
    %c0_i32_2 = arith.constant 0 : i32
    return %arg0, %c0_i32, %c0_i32_0, %c0_i32_1 : i32, i32, i32, i32
  }
  func.func @transform_26(%arg0: i32) -> (i32, i32, i32, i32) {
    %c0_i32 = arith.constant 0 : i32
    %c0_i32_0 = arith.constant 0 : i32
    %c0_i32_1 = arith.constant 0 : i32
    %c0_i32_2 = arith.constant 0 : i32
    return %arg0, %c0_i32, %c0_i32_0, %c0_i32_1 : i32, i32, i32, i32
  }
}

module attributes {stable_mosaic.version = 11 : i64} {
  func.func @_dec_layer_kernel(%arg0: i32, %arg1: memref<2x8x32xbf16, #tpu.memory_space<vmem>>, %arg2: memref<2x8x32xbf16, #tpu.memory_space<vmem>>, %arg3: memref<2x8x8xbf16, #tpu.memory_space<vmem>>, %arg4: memref<2x8x8xbf16, #tpu.memory_space<vmem>>, %arg5: memref<32x96xbf16, #tpu.memory_space<vmem>>, %arg6: memref<1x96xf32, #tpu.memory_space<vmem>>, %arg7: memref<32x32xbf16, #tpu.memory_space<vmem>>, %arg8: memref<1x32xf32, #tpu.memory_space<vmem>>, %arg9: memref<1x32xf32, #tpu.memory_space<vmem>>, %arg10: memref<1x32xf32, #tpu.memory_space<vmem>>, %arg11: memref<32x32xbf16, #tpu.memory_space<vmem>>, %arg12: memref<1x32xf32, #tpu.memory_space<vmem>>, %arg13: memref<32x64xbf16, #tpu.memory_space<vmem>>, %arg14: memref<1x64xf32, #tpu.memory_space<vmem>>, %arg15: memref<32x32xbf16, #tpu.memory_space<vmem>>, %arg16: memref<1x32xf32, #tpu.memory_space<vmem>>, %arg17: memref<1x32xf32, #tpu.memory_space<vmem>>, %arg18: memref<1x32xf32, #tpu.memory_space<vmem>>, %arg19: memref<32x64xbf16, #tpu.memory_space<vmem>>, %arg20: memref<1x64xf32, #tpu.memory_space<vmem>>, %arg21: memref<64x32xbf16, #tpu.memory_space<vmem>>, %arg22: memref<1x32xf32, #tpu.memory_space<vmem>>, %arg23: memref<1x32xf32, #tpu.memory_space<vmem>>, %arg24: memref<1x32xf32, #tpu.memory_space<vmem>>, %arg25: memref<32x128xbf16, #tpu.memory_space<vmem>>, %arg26: memref<2x8x32xbf16, #tpu.memory_space<vmem>>, %arg27: memref<2x4x8x8xbf16, #tpu.memory_space<vmem>>, %arg28: memref<2x4x8x8xbf16, #tpu.memory_space<vmem>>, %arg29: memref<2x1x128xf32, #tpu.memory_space<vmem>>) attributes {dimension_semantics = [#tpu.dimension_semantics<parallel>], iteration_bounds = array<i64: 1>, scalar_prefetch = 0 : i64, scratch_operands = 0 : i64, tpu.core_type = #tpu.core_type<tc>, window_params = [{transform_indices = @transform_0, window_bounds = array<i64: 2, 8, 32>}, {transform_indices = @transform_1, window_bounds = array<i64: 2, 8, 32>}, {transform_indices = @transform_2, window_bounds = array<i64: 2, 8, 8>}, {transform_indices = @transform_3, window_bounds = array<i64: 2, 8, 8>}, {pipeline_mode = #tpu.pipeline_mode<synchronous>, transform_indices = @transform_4, window_bounds = array<i64: 32, 96>}, {pipeline_mode = #tpu.pipeline_mode<synchronous>, transform_indices = @transform_5, window_bounds = array<i64: 1, 96>}, {pipeline_mode = #tpu.pipeline_mode<synchronous>, transform_indices = @transform_6, window_bounds = array<i64: 32, 32>}, {pipeline_mode = #tpu.pipeline_mode<synchronous>, transform_indices = @transform_7, window_bounds = array<i64: 1, 32>}, {pipeline_mode = #tpu.pipeline_mode<synchronous>, transform_indices = @transform_8, window_bounds = array<i64: 1, 32>}, {pipeline_mode = #tpu.pipeline_mode<synchronous>, transform_indices = @transform_9, window_bounds = array<i64: 1, 32>}, {pipeline_mode = #tpu.pipeline_mode<synchronous>, transform_indices = @transform_10, window_bounds = array<i64: 32, 32>}, {pipeline_mode = #tpu.pipeline_mode<synchronous>, transform_indices = @transform_11, window_bounds = array<i64: 1, 32>}, {pipeline_mode = #tpu.pipeline_mode<synchronous>, transform_indices = @transform_12, window_bounds = array<i64: 32, 64>}, {pipeline_mode = #tpu.pipeline_mode<synchronous>, transform_indices = @transform_13, window_bounds = array<i64: 1, 64>}, {pipeline_mode = #tpu.pipeline_mode<synchronous>, transform_indices = @transform_14, window_bounds = array<i64: 32, 32>}, {pipeline_mode = #tpu.pipeline_mode<synchronous>, transform_indices = @transform_15, window_bounds = array<i64: 1, 32>}, {pipeline_mode = #tpu.pipeline_mode<synchronous>, transform_indices = @transform_16, window_bounds = array<i64: 1, 32>}, {pipeline_mode = #tpu.pipeline_mode<synchronous>, transform_indices = @transform_17, window_bounds = array<i64: 1, 32>}, {pipeline_mode = #tpu.pipeline_mode<synchronous>, transform_indices = @transform_18, window_bounds = array<i64: 32, 64>}, {pipeline_mode = #tpu.pipeline_mode<synchronous>, transform_indices = @transform_19, window_bounds = array<i64: 1, 64>}, {pipeline_mode = #tpu.pipeline_mode<synchronous>, transform_indices = @transform_20, window_bounds = array<i64: 64, 32>}, {pipeline_mode = #tpu.pipeline_mode<synchronous>, transform_indices = @transform_21, window_bounds = array<i64: 1, 32>}, {pipeline_mode = #tpu.pipeline_mode<synchronous>, transform_indices = @transform_22, window_bounds = array<i64: 1, 32>}, {pipeline_mode = #tpu.pipeline_mode<synchronous>, transform_indices = @transform_23, window_bounds = array<i64: 1, 32>}, {pipeline_mode = #tpu.pipeline_mode<synchronous>, transform_indices = @transform_24, window_bounds = array<i64: 32, 128>}, {transform_indices = @transform_25, window_bounds = array<i64: 2, 8, 32>}, {transform_indices = @transform_26, window_bounds = array<i64: 2, 4, 8, 8>}, {transform_indices = @transform_27, window_bounds = array<i64: 2, 4, 8, 8>}, {transform_indices = @transform_28, window_bounds = array<i64: 2, 1, 128>}]} {
    %c0 = arith.constant 0 : index
    %c0_0 = arith.constant 0 : index
    %c0_1 = arith.constant 0 : index
    %0 = vector.load %arg1[%c0, %c0_0, %c0_1] : memref<2x8x32xbf16, #tpu.memory_space<vmem>>, vector<2x8x32xbf16>
    %1 = vector.shape_cast %0 : vector<2x8x32xbf16> to vector<16x32xbf16>
    %2 = arith.extf %1 : vector<16x32xbf16> to vector<16x32xf32>
    %c0_2 = arith.constant 0 : index
    %c0_3 = arith.constant 0 : index
    %3 = vector.load %arg5[%c0_2, %c0_3] : memref<32x96xbf16, #tpu.memory_space<vmem>>, vector<32x96xbf16>
    %cst = arith.constant dense<0.000000e+00> : vector<16x96xf32>
    %4 = tpu.matmul %1, %3, %cst {dimension_numbers = #tpu.dot_dimension_numbers<[1], [0], [0], [1], [0, 0, 1, 1], [], []>} : vector<16x32xbf16>, vector<32x96xbf16>, vector<16x96xf32> -> vector<16x96xf32>
    %c0_4 = arith.constant 0 : index
    %c0_5 = arith.constant 0 : index
    %5 = vector.load %arg6[%c0_4, %c0_5] : memref<1x96xf32, #tpu.memory_space<vmem>>, vector<1x96xf32>
    %6 = vector.broadcast %5 : vector<1x96xf32> to vector<16x96xf32>
    %7 = arith.addf %4, %6 : vector<16x96xf32>
    %8 = vector.shape_cast %7 : vector<16x96xf32> to vector<2x8x96xf32>
    %9 = vector.extract_strided_slice %8 {offsets = [0, 0, 0], sizes = [2, 8, 32], strides = [1, 1, 1]} : vector<2x8x96xf32> to vector<2x8x32xf32>
    %10 = vector.extract_strided_slice %8 {offsets = [0, 0, 32], sizes = [2, 8, 32], strides = [1, 1, 1]} : vector<2x8x96xf32> to vector<2x8x32xf32>
    %11 = vector.extract_strided_slice %8 {offsets = [0, 0, 64], sizes = [2, 8, 32], strides = [1, 1, 1]} : vector<2x8x96xf32> to vector<2x8x32xf32>
    %c0_6 = arith.constant 0 : index
    %c0_7 = arith.constant 0 : index
    %c0_8 = arith.constant 0 : index
    %12 = vector.load %arg3[%c0_6, %c0_7, %c0_8] : memref<2x8x8xbf16, #tpu.memory_space<vmem>>, vector<2x8x8xbf16>
    %cst_9 = arith.constant 0.000000e+00 : f32
    %13 = vector.broadcast %cst_9 : f32 to vector<16x32xf32>
    %14 = vector.extract_strided_slice %9 {offsets = [0, 0, 0], sizes = [2, 8, 8], strides = [1, 1, 1]} : vector<2x8x32xf32> to vector<2x8x8xf32>
    %15 = vector.extract_strided_slice %10 {offsets = [0, 0, 0], sizes = [2, 8, 8], strides = [1, 1, 1]} : vector<2x8x32xf32> to vector<2x8x8xf32>
    %16 = arith.truncf %14 : vector<2x8x8xf32> to vector<2x8x8xbf16>
    %17 = arith.truncf %15 : vector<2x8x8xf32> to vector<2x8x8xbf16>
    "tpu.trace_start"() <{level = 10 : i32, message = "bqd,bkd->bqk"}> : () -> ()
    %cst_10 = arith.constant dense<0.000000e+00> : vector<2x8x8xf32>
    %18 = tpu.matmul %16, %17, %cst_10 {dimension_numbers = #tpu.dot_dimension_numbers<[2], [2], [1], [1], [0, 0, 0, 1, 1, 1], [0], [0]>} : vector<2x8x8xbf16>, vector<2x8x8xbf16>, vector<2x8x8xf32> -> vector<2x8x8xf32>
    "tpu.trace_stop"() : () -> ()
    %cst_11 = arith.constant 0.353553385 : f32
    %19 = vector.broadcast %cst_11 : f32 to vector<2x8x8xf32>
    %20 = arith.mulf %18, %19 : vector<2x8x8xf32>
    %21 = arith.extf %12 : vector<2x8x8xbf16> to vector<2x8x8xf32>
    %22 = arith.addf %20, %21 : vector<2x8x8xf32>
    %cst_12 = arith.constant dense<0xFF800000> : vector<2x8xf32>
    %23 = vector.multi_reduction <maximumf>, %22, %cst_12 [2] : vector<2x8x8xf32> to vector<2x8xf32>
    %24 = vector.shape_cast %23 : vector<2x8xf32> to vector<2x8x1xf32>
    %25 = vector.broadcast %24 : vector<2x8x1xf32> to vector<2x8x8xf32>
    %26 = arith.subf %22, %25 : vector<2x8x8xf32>
    %27 = math.exp %26 : vector<2x8x8xf32>
    %cst_13 = arith.constant dense<0.000000e+00> : vector<2x8xf32>
    %28 = vector.multi_reduction <add>, %27, %cst_13 [2] : vector<2x8x8xf32> to vector<2x8xf32>
    %29 = vector.shape_cast %28 : vector<2x8xf32> to vector<2x8x1xf32>
    %30 = tpu.reciprocal %29 {approx = true} : vector<2x8x1xf32> -> vector<2x8x1xf32>
    %31 = vector.broadcast %30 : vector<2x8x1xf32> to vector<2x8x8xf32>
    %32 = arith.mulf %27, %31 : vector<2x8x8xf32>
    %33 = vector.shape_cast %32 : vector<2x8x8xf32> to vector<2x1x8x8xf32>
    %34 = arith.truncf %33 : vector<2x1x8x8xf32> to vector<2x1x8x8xbf16>
    %c0_14 = arith.constant 0 : index
    %c0_15 = arith.constant 0 : index
    %c0_16 = arith.constant 0 : index
    %c0_17 = arith.constant 0 : index
    %35 = vector.load %arg27[%c0_14, %c0_15, %c0_16, %c0_17] : memref<2x4x8x8xbf16, #tpu.memory_space<vmem>>, vector<2x1x8x8xbf16>
    tpu.vector_store %arg27[%c0_14, %c0_15, %c0_16, %c0_17], %34 {strides = array<i32>} : memref<2x4x8x8xbf16, #tpu.memory_space<vmem>>, vector<2x1x8x8xbf16>,
    %36 = vector.extract_strided_slice %11 {offsets = [0, 0, 0], sizes = [2, 8, 8], strides = [1, 1, 1]} : vector<2x8x32xf32> to vector<2x8x8xf32>
    %37 = arith.truncf %32 : vector<2x8x8xf32> to vector<2x8x8xbf16>
    %38 = arith.truncf %36 : vector<2x8x8xf32> to vector<2x8x8xbf16>
    "tpu.trace_start"() <{level = 10 : i32, message = "bqk,bkd->bqd"}> : () -> ()
    %cst_18 = arith.constant dense<0.000000e+00> : vector<2x8x8xf32>
    %39 = tpu.matmul %37, %38, %cst_18 {dimension_numbers = #tpu.dot_dimension_numbers<[2], [1], [1], [2], [0, 0, 0, 1, 1, 2], [0], [0]>} : vector<2x8x8xbf16>, vector<2x8x8xbf16>, vector<2x8x8xf32> -> vector<2x8x8xf32>
    "tpu.trace_stop"() : () -> ()
    %40 = vector.shape_cast %39 : vector<2x8x8xf32> to vector<16x8xf32>
    %c0_19 = arith.constant 0 : index
    %c0_20 = arith.constant 0 : index
    %41 = vector.load %arg7[%c0_19, %c0_20] : memref<32x32xbf16, #tpu.memory_space<vmem>>, vector<8x32xbf16>
    %42 = arith.truncf %40 : vector<16x8xf32> to vector<16x8xbf16>
    %cst_21 = arith.constant dense<0.000000e+00> : vector<16x32xf32>
    %43 = tpu.matmul %42, %41, %cst_21 {dimension_numbers = #tpu.dot_dimension_numbers<[1], [0], [0], [1], [0, 0, 1, 1], [], []>} : vector<16x8xbf16>, vector<8x32xbf16>, vector<16x32xf32> -> vector<16x32xf32>
    %44 = arith.addf %13, %43 : vector<16x32xf32>
    %45 = vector.extract_strided_slice %9 {offsets = [0, 0, 8], sizes = [2, 8, 8], strides = [1, 1, 1]} : vector<2x8x32xf32> to vector<2x8x8xf32>
    %46 = vector.extract_strided_slice %10 {offsets = [0, 0, 8], sizes = [2, 8, 8], strides = [1, 1, 1]} : vector<2x8x32xf32> to vector<2x8x8xf32>
    %47 = arith.truncf %45 : vector<2x8x8xf32> to vector<2x8x8xbf16>
    %48 = arith.truncf %46 : vector<2x8x8xf32> to vector<2x8x8xbf16>
    "tpu.trace_start"() <{level = 10 : i32, message = "bqd,bkd->bqk"}> : () -> ()
    %cst_22 = arith.constant dense<0.000000e+00> : vector<2x8x8xf32>
    %49 = tpu.matmul %47, %48, %cst_22 {dimension_numbers = #tpu.dot_dimension_numbers<[2], [2], [1], [1], [0, 0, 0, 1, 1, 1], [0], [0]>} : vector<2x8x8xbf16>, vector<2x8x8xbf16>, vector<2x8x8xf32> -> vector<2x8x8xf32>
    "tpu.trace_stop"() : () -> ()
    %cst_23 = arith.constant 0.353553385 : f32
    %50 = vector.broadcast %cst_23 : f32 to vector<2x8x8xf32>
    %51 = arith.mulf %49, %50 : vector<2x8x8xf32>
    %52 = arith.extf %12 : vector<2x8x8xbf16> to vector<2x8x8xf32>
    %53 = arith.addf %51, %52 : vector<2x8x8xf32>
    %cst_24 = arith.constant dense<0xFF800000> : vector<2x8xf32>
    %54 = vector.multi_reduction <maximumf>, %53, %cst_24 [2] : vector<2x8x8xf32> to vector<2x8xf32>
    %55 = vector.shape_cast %54 : vector<2x8xf32> to vector<2x8x1xf32>
    %56 = vector.broadcast %55 : vector<2x8x1xf32> to vector<2x8x8xf32>
    %57 = arith.subf %53, %56 : vector<2x8x8xf32>
    %58 = math.exp %57 : vector<2x8x8xf32>
    %cst_25 = arith.constant dense<0.000000e+00> : vector<2x8xf32>
    %59 = vector.multi_reduction <add>, %58, %cst_25 [2] : vector<2x8x8xf32> to vector<2x8xf32>
    %60 = vector.shape_cast %59 : vector<2x8xf32> to vector<2x8x1xf32>
    %61 = tpu.reciprocal %60 {approx = true} : vector<2x8x1xf32> -> vector<2x8x1xf32>
    %62 = vector.broadcast %61 : vector<2x8x1xf32> to vector<2x8x8xf32>
    %63 = arith.mulf %58, %62 : vector<2x8x8xf32>
    %64 = vector.shape_cast %63 : vector<2x8x8xf32> to vector<2x1x8x8xf32>
    %65 = arith.truncf %64 : vector<2x1x8x8xf32> to vector<2x1x8x8xbf16>
    %c0_26 = arith.constant 0 : index
    %c1 = arith.constant 1 : index
    %c0_27 = arith.constant 0 : index
    %c0_28 = arith.constant 0 : index
    %66 = vector.load %arg27[%c0_26, %c1, %c0_27, %c0_28] : memref<2x4x8x8xbf16, #tpu.memory_space<vmem>>, vector<2x1x8x8xbf16>
    tpu.vector_store %arg27[%c0_26, %c1, %c0_27, %c0_28], %65 {strides = array<i32>} : memref<2x4x8x8xbf16, #tpu.memory_space<vmem>>, vector<2x1x8x8xbf16>,
    %67 = vector.extract_strided_slice %11 {offsets = [0, 0, 8], sizes = [2, 8, 8], strides = [1, 1, 1]} : vector<2x8x32xf32> to vector<2x8x8xf32>
    %68 = arith.truncf %63 : vector<2x8x8xf32> to vector<2x8x8xbf16>
    %69 = arith.truncf %67 : vector<2x8x8xf32> to vector<2x8x8xbf16>
    "tpu.trace_start"() <{level = 10 : i32, message = "bqk,bkd->bqd"}> : () -> ()
    %cst_29 = arith.constant dense<0.000000e+00> : vector<2x8x8xf32>
    %70 = tpu.matmul %68, %69, %cst_29 {dimension_numbers = #tpu.dot_dimension_numbers<[2], [1], [1], [2], [0, 0, 0, 1, 1, 2], [0], [0]>} : vector<2x8x8xbf16>, vector<2x8x8xbf16>, vector<2x8x8xf32> -> vector<2x8x8xf32>
    "tpu.trace_stop"() : () -> ()
    %71 = vector.shape_cast %70 : vector<2x8x8xf32> to vector<16x8xf32>
    %c8 = arith.constant 8 : index
    %c0_30 = arith.constant 0 : index
    %72 = vector.load %arg7[%c8, %c0_30] : memref<32x32xbf16, #tpu.memory_space<vmem>>, vector<8x32xbf16>
    %73 = arith.truncf %71 : vector<16x8xf32> to vector<16x8xbf16>
    %cst_31 = arith.constant dense<0.000000e+00> : vector<16x32xf32>
    %74 = tpu.matmul %73, %72, %cst_31 {dimension_numbers = #tpu.dot_dimension_numbers<[1], [0], [0], [1], [0, 0, 1, 1], [], []>} : vector<16x8xbf16>, vector<8x32xbf16>, vector<16x32xf32> -> vector<16x32xf32>
    %75 = arith.addf %44, %74 : vector<16x32xf32>
    %76 = vector.extract_strided_slice %9 {offsets = [0, 0, 16], sizes = [2, 8, 8], strides = [1, 1, 1]} : vector<2x8x32xf32> to vector<2x8x8xf32>
    %77 = vector.extract_strided_slice %10 {offsets = [0, 0, 16], sizes = [2, 8, 8], strides = [1, 1, 1]} : vector<2x8x32xf32> to vector<2x8x8xf32>
    %78 = arith.truncf %76 : vector<2x8x8xf32> to vector<2x8x8xbf16>
    %79 = arith.truncf %77 : vector<2x8x8xf32> to vector<2x8x8xbf16>
    "tpu.trace_start"() <{level = 10 : i32, message = "bqd,bkd->bqk"}> : () -> ()
    %cst_32 = arith.constant dense<0.000000e+00> : vector<2x8x8xf32>
    %80 = tpu.matmul %78, %79, %cst_32 {dimension_numbers = #tpu.dot_dimension_numbers<[2], [2], [1], [1], [0, 0, 0, 1, 1, 1], [0], [0]>} : vector<2x8x8xbf16>, vector<2x8x8xbf16>, vector<2x8x8xf32> -> vector<2x8x8xf32>
    "tpu.trace_stop"() : () -> ()
    %cst_33 = arith.constant 0.353553385 : f32
    %81 = vector.broadcast %cst_33 : f32 to vector<2x8x8xf32>
    %82 = arith.mulf %80, %81 : vector<2x8x8xf32>
    %83 = arith.extf %12 : vector<2x8x8xbf16> to vector<2x8x8xf32>
    %84 = arith.addf %82, %83 : vector<2x8x8xf32>
    %cst_34 = arith.constant dense<0xFF800000> : vector<2x8xf32>
    %85 = vector.multi_reduction <maximumf>, %84, %cst_34 [2] : vector<2x8x8xf32> to vector<2x8xf32>
    %86 = vector.shape_cast %85 : vector<2x8xf32> to vector<2x8x1xf32>
    %87 = vector.broadcast %86 : vector<2x8x1xf32> to vector<2x8x8xf32>
    %88 = arith.subf %84, %87 : vector<2x8x8xf32>
    %89 = math.exp %88 : vector<2x8x8xf32>
    %cst_35 = arith.constant dense<0.000000e+00> : vector<2x8xf32>
    %90 = vector.multi_reduction <add>, %89, %cst_35 [2] : vector<2x8x8xf32> to vector<2x8xf32>
    %91 = vector.shape_cast %90 : vector<2x8xf32> to vector<2x8x1xf32>
    %92 = tpu.reciprocal %91 {approx = true} : vector<2x8x1xf32> -> vector<2x8x1xf32>
    %93 = vector.broadcast %92 : vector<2x8x1xf32> to vector<2x8x8xf32>
    %94 = arith.mulf %89, %93 : vector<2x8x8xf32>
    %95 = vector.shape_cast %94 : vector<2x8x8xf32> to vector<2x1x8x8xf32>
    %96 = arith.truncf %95 : vector<2x1x8x8xf32> to vector<2x1x8x8xbf16>
    %c0_36 = arith.constant 0 : index
    %c2 = arith.constant 2 : index
    %c0_37 = arith.constant 0 : index
    %c0_38 = arith.constant 0 : index
    %97 = vector.load %arg27[%c0_36, %c2, %c0_37, %c0_38] : memref<2x4x8x8xbf16, #tpu.memory_space<vmem>>, vector<2x1x8x8xbf16>
    tpu.vector_store %arg27[%c0_36, %c2, %c0_37, %c0_38], %96 {strides = array<i32>} : memref<2x4x8x8xbf16, #tpu.memory_space<vmem>>, vector<2x1x8x8xbf16>,
    %98 = vector.extract_strided_slice %11 {offsets = [0, 0, 16], sizes = [2, 8, 8], strides = [1, 1, 1]} : vector<2x8x32xf32> to vector<2x8x8xf32>
    %99 = arith.truncf %94 : vector<2x8x8xf32> to vector<2x8x8xbf16>
    %100 = arith.truncf %98 : vector<2x8x8xf32> to vector<2x8x8xbf16>
    "tpu.trace_start"() <{level = 10 : i32, message = "bqk,bkd->bqd"}> : () -> ()
    %cst_39 = arith.constant dense<0.000000e+00> : vector<2x8x8xf32>
    %101 = tpu.matmul %99, %100, %cst_39 {dimension_numbers = #tpu.dot_dimension_numbers<[2], [1], [1], [2], [0, 0, 0, 1, 1, 2], [0], [0]>} : vector<2x8x8xbf16>, vector<2x8x8xbf16>, vector<2x8x8xf32> -> vector<2x8x8xf32>
    "tpu.trace_stop"() : () -> ()
    %102 = vector.shape_cast %101 : vector<2x8x8xf32> to vector<16x8xf32>
    %c16 = arith.constant 16 : index
    %c0_40 = arith.constant 0 : index
    %103 = vector.load %arg7[%c16, %c0_40] : memref<32x32xbf16, #tpu.memory_space<vmem>>, vector<8x32xbf16>
    %104 = arith.truncf %102 : vector<16x8xf32> to vector<16x8xbf16>
    %cst_41 = arith.constant dense<0.000000e+00> : vector<16x32xf32>
    %105 = tpu.matmul %104, %103, %cst_41 {dimension_numbers = #tpu.dot_dimension_numbers<[1], [0], [0], [1], [0, 0, 1, 1], [], []>} : vector<16x8xbf16>, vector<8x32xbf16>, vector<16x32xf32> -> vector<16x32xf32>
    %106 = arith.addf %75, %105 : vector<16x32xf32>
    %107 = vector.extract_strided_slice %9 {offsets = [0, 0, 24], sizes = [2, 8, 8], strides = [1, 1, 1]} : vector<2x8x32xf32> to vector<2x8x8xf32>
    %108 = vector.extract_strided_slice %10 {offsets = [0, 0, 24], sizes = [2, 8, 8], strides = [1, 1, 1]} : vector<2x8x32xf32> to vector<2x8x8xf32>
    %109 = arith.truncf %107 : vector<2x8x8xf32> to vector<2x8x8xbf16>
    %110 = arith.truncf %108 : vector<2x8x8xf32> to vector<2x8x8xbf16>
    "tpu.trace_start"() <{level = 10 : i32, message = "bqd,bkd->bqk"}> : () -> ()
    %cst_42 = arith.constant dense<0.000000e+00> : vector<2x8x8xf32>
    %111 = tpu.matmul %109, %110, %cst_42 {dimension_numbers = #tpu.dot_dimension_numbers<[2], [2], [1], [1], [0, 0, 0, 1, 1, 1], [0], [0]>} : vector<2x8x8xbf16>, vector<2x8x8xbf16>, vector<2x8x8xf32> -> vector<2x8x8xf32>
    "tpu.trace_stop"() : () -> ()
    %cst_43 = arith.constant 0.353553385 : f32
    %112 = vector.broadcast %cst_43 : f32 to vector<2x8x8xf32>
    %113 = arith.mulf %111, %112 : vector<2x8x8xf32>
    %114 = arith.extf %12 : vector<2x8x8xbf16> to vector<2x8x8xf32>
    %115 = arith.addf %113, %114 : vector<2x8x8xf32>
    %cst_44 = arith.constant dense<0xFF800000> : vector<2x8xf32>
    %116 = vector.multi_reduction <maximumf>, %115, %cst_44 [2] : vector<2x8x8xf32> to vector<2x8xf32>
    %117 = vector.shape_cast %116 : vector<2x8xf32> to vector<2x8x1xf32>
    %118 = vector.broadcast %117 : vector<2x8x1xf32> to vector<2x8x8xf32>
    %119 = arith.subf %115, %118 : vector<2x8x8xf32>
    %120 = math.exp %119 : vector<2x8x8xf32>
    %cst_45 = arith.constant dense<0.000000e+00> : vector<2x8xf32>
    %121 = vector.multi_reduction <add>, %120, %cst_45 [2] : vector<2x8x8xf32> to vector<2x8xf32>
    %122 = vector.shape_cast %121 : vector<2x8xf32> to vector<2x8x1xf32>
    %123 = tpu.reciprocal %122 {approx = true} : vector<2x8x1xf32> -> vector<2x8x1xf32>
    %124 = vector.broadcast %123 : vector<2x8x1xf32> to vector<2x8x8xf32>
    %125 = arith.mulf %120, %124 : vector<2x8x8xf32>
    %126 = vector.shape_cast %125 : vector<2x8x8xf32> to vector<2x1x8x8xf32>
    %127 = arith.truncf %126 : vector<2x1x8x8xf32> to vector<2x1x8x8xbf16>
    %c0_46 = arith.constant 0 : index
    %c3 = arith.constant 3 : index
    %c0_47 = arith.constant 0 : index
    %c0_48 = arith.constant 0 : index
    %128 = vector.load %arg27[%c0_46, %c3, %c0_47, %c0_48] : memref<2x4x8x8xbf16, #tpu.memory_space<vmem>>, vector<2x1x8x8xbf16>
    tpu.vector_store %arg27[%c0_46, %c3, %c0_47, %c0_48], %127 {strides = array<i32>} : memref<2x4x8x8xbf16, #tpu.memory_space<vmem>>, vector<2x1x8x8xbf16>,
    %129 = vector.extract_strided_slice %11 {offsets = [0, 0, 24], sizes = [2, 8, 8], strides = [1, 1, 1]} : vector<2x8x32xf32> to vector<2x8x8xf32>
    %130 = arith.truncf %125 : vector<2x8x8xf32> to vector<2x8x8xbf16>
    %131 = arith.truncf %129 : vector<2x8x8xf32> to vector<2x8x8xbf16>
    "tpu.trace_start"() <{level = 10 : i32, message = "bqk,bkd->bqd"}> : () -> ()
    %cst_49 = arith.constant dense<0.000000e+00> : vector<2x8x8xf32>
    %132 = tpu.matmul %130, %131, %cst_49 {dimension_numbers = #tpu.dot_dimension_numbers<[2], [1], [1], [2], [0, 0, 0, 1, 1, 2], [0], [0]>} : vector<2x8x8xbf16>, vector<2x8x8xbf16>, vector<2x8x8xf32> -> vector<2x8x8xf32>
    "tpu.trace_stop"() : () -> ()
    %133 = vector.shape_cast %132 : vector<2x8x8xf32> to vector<16x8xf32>
    %c24 = arith.constant 24 : index
    %c0_50 = arith.constant 0 : index
    %134 = vector.load %arg7[%c24, %c0_50] : memref<32x32xbf16, #tpu.memory_space<vmem>>, vector<8x32xbf16>
    %135 = arith.truncf %133 : vector<16x8xf32> to vector<16x8xbf16>
    %cst_51 = arith.constant dense<0.000000e+00> : vector<16x32xf32>
    %136 = tpu.matmul %135, %134, %cst_51 {dimension_numbers = #tpu.dot_dimension_numbers<[1], [0], [0], [1], [0, 0, 1, 1], [], []>} : vector<16x8xbf16>, vector<8x32xbf16>, vector<16x32xf32> -> vector<16x32xf32>
    %137 = arith.addf %106, %136 : vector<16x32xf32>
    %c0_52 = arith.constant 0 : index
    %c0_53 = arith.constant 0 : index
    %138 = vector.load %arg8[%c0_52, %c0_53] : memref<1x32xf32, #tpu.memory_space<vmem>>, vector<1x32xf32>
    %139 = vector.broadcast %138 : vector<1x32xf32> to vector<16x32xf32>
    %140 = arith.addf %137, %139 : vector<16x32xf32>
    %141 = arith.addf %2, %140 : vector<16x32xf32>
    %c0_54 = arith.constant 0 : index
    %c0_55 = arith.constant 0 : index
    %142 = vector.load %arg9[%c0_54, %c0_55] : memref<1x32xf32, #tpu.memory_space<vmem>>, vector<1x32xf32>
    %c0_56 = arith.constant 0 : index
    %c0_57 = arith.constant 0 : index
    %143 = vector.load %arg10[%c0_56, %c0_57] : memref<1x32xf32, #tpu.memory_space<vmem>>, vector<1x32xf32>
    %cst_58 = arith.constant dense<0.000000e+00> : vector<16xf32>
    %144 = vector.multi_reduction <add>, %141, %cst_58 [1] : vector<16x32xf32> to vector<16xf32>
    %145 = vector.shape_cast %144 : vector<16xf32> to vector<16x1xf32>
    %cst_59 = arith.constant 3.200000e+01 : f32
    %146 = vector.broadcast %cst_59 : f32 to vector<16x1xf32>
    %147 = arith.divf %145, %146 : vector<16x1xf32>
    %148 = vector.broadcast %147 : vector<16x1xf32> to vector<16x32xf32>
    %149 = arith.subf %141, %148 : vector<16x32xf32>
    %150 = arith.mulf %149, %149 : vector<16x32xf32>
    %cst_60 = arith.constant dense<0.000000e+00> : vector<16xf32>
    %151 = vector.multi_reduction <add>, %150, %cst_60 [1] : vector<16x32xf32> to vector<16xf32>
    %152 = vector.shape_cast %151 : vector<16xf32> to vector<16x1xf32>
    %cst_61 = arith.constant 3.200000e+01 : f32
    %153 = vector.broadcast %cst_61 : f32 to vector<16x1xf32>
    %154 = arith.divf %152, %153 : vector<16x1xf32>
    %155 = vector.broadcast %147 : vector<16x1xf32> to vector<16x32xf32>
    %156 = arith.subf %141, %155 : vector<16x32xf32>
    %cst_62 = arith.constant 9.99999996E-13 : f32
    %157 = vector.broadcast %cst_62 : f32 to vector<16x1xf32>
    %158 = arith.addf %154, %157 : vector<16x1xf32>
    %159 = math.rsqrt %158 : vector<16x1xf32>
    %160 = vector.broadcast %159 : vector<16x1xf32> to vector<16x32xf32>
    %161 = arith.mulf %156, %160 : vector<16x32xf32>
    %162 = vector.broadcast %142 : vector<1x32xf32> to vector<16x32xf32>
    %163 = arith.mulf %161, %162 : vector<16x32xf32>
    %164 = vector.broadcast %143 : vector<1x32xf32> to vector<16x32xf32>
    %165 = arith.addf %163, %164 : vector<16x32xf32>
    %c0_63 = arith.constant 0 : index
    %c0_64 = arith.constant 0 : index
    %166 = vector.load %arg11[%c0_63, %c0_64] : memref<32x32xbf16, #tpu.memory_space<vmem>>, vector<32x32xbf16>
    %167 = arith.truncf %165 : vector<16x32xf32> to vector<16x32xbf16>
    %cst_65 = arith.constant dense<0.000000e+00> : vector<16x32xf32>
    %168 = tpu.matmul %167, %166, %cst_65 {dimension_numbers = #tpu.dot_dimension_numbers<[1], [0], [0], [1], [0, 0, 1, 1], [], []>} : vector<16x32xbf16>, vector<32x32xbf16>, vector<16x32xf32> -> vector<16x32xf32>
    %c0_66 = arith.constant 0 : index
    %c0_67 = arith.constant 0 : index
    %169 = vector.load %arg12[%c0_66, %c0_67] : memref<1x32xf32, #tpu.memory_space<vmem>>, vector<1x32xf32>
    %170 = vector.broadcast %169 : vector<1x32xf32> to vector<16x32xf32>
    %171 = arith.addf %168, %170 : vector<16x32xf32>
    %172 = vector.shape_cast %171 : vector<16x32xf32> to vector<2x8x32xf32>
    %c0_68 = arith.constant 0 : index
    %c0_69 = arith.constant 0 : index
    %c0_70 = arith.constant 0 : index
    %173 = vector.load %arg2[%c0_68, %c0_69, %c0_70] : memref<2x8x32xbf16, #tpu.memory_space<vmem>>, vector<2x8x32xbf16>
    %174 = vector.shape_cast %173 : vector<2x8x32xbf16> to vector<16x32xbf16>
    %c0_71 = arith.constant 0 : index
    %c0_72 = arith.constant 0 : index
    %175 = vector.load %arg13[%c0_71, %c0_72] : memref<32x64xbf16, #tpu.memory_space<vmem>>, vector<32x64xbf16>
    %cst_73 = arith.constant dense<0.000000e+00> : vector<16x64xf32>
    %176 = tpu.matmul %174, %175, %cst_73 {dimension_numbers = #tpu.dot_dimension_numbers<[1], [0], [0], [1], [0, 0, 1, 1], [], []>} : vector<16x32xbf16>, vector<32x64xbf16>, vector<16x64xf32> -> vector<16x64xf32>
    %c0_74 = arith.constant 0 : index
    %c0_75 = arith.constant 0 : index
    %177 = vector.load %arg14[%c0_74, %c0_75] : memref<1x64xf32, #tpu.memory_space<vmem>>, vector<1x64xf32>
    %178 = vector.broadcast %177 : vector<1x64xf32> to vector<16x64xf32>
    %179 = arith.addf %176, %178 : vector<16x64xf32>
    %180 = vector.shape_cast %179 : vector<16x64xf32> to vector<2x8x64xf32>
    %181 = vector.extract_strided_slice %180 {offsets = [0, 0, 0], sizes = [2, 8, 32], strides = [1, 1, 1]} : vector<2x8x64xf32> to vector<2x8x32xf32>
    %182 = vector.extract_strided_slice %180 {offsets = [0, 0, 32], sizes = [2, 8, 32], strides = [1, 1, 1]} : vector<2x8x64xf32> to vector<2x8x32xf32>
    %c0_76 = arith.constant 0 : index
    %c0_77 = arith.constant 0 : index
    %c0_78 = arith.constant 0 : index
    %183 = vector.load %arg4[%c0_76, %c0_77, %c0_78] : memref<2x8x8xbf16, #tpu.memory_space<vmem>>, vector<2x8x8xbf16>
    %cst_79 = arith.constant 0.000000e+00 : f32
    %184 = vector.broadcast %cst_79 : f32 to vector<16x32xf32>
    %185 = vector.extract_strided_slice %172 {offsets = [0, 0, 0], sizes = [2, 8, 8], strides = [1, 1, 1]} : vector<2x8x32xf32> to vector<2x8x8xf32>
    %186 = vector.extract_strided_slice %181 {offsets = [0, 0, 0], sizes = [2, 8, 8], strides = [1, 1, 1]} : vector<2x8x32xf32> to vector<2x8x8xf32>
    %187 = arith.truncf %185 : vector<2x8x8xf32> to vector<2x8x8xbf16>
    %188 = arith.truncf %186 : vector<2x8x8xf32> to vector<2x8x8xbf16>
    "tpu.trace_start"() <{level = 10 : i32, message = "bqd,bkd->bqk"}> : () -> ()
    %cst_80 = arith.constant dense<0.000000e+00> : vector<2x8x8xf32>
    %189 = tpu.matmul %187, %188, %cst_80 {dimension_numbers = #tpu.dot_dimension_numbers<[2], [2], [1], [1], [0, 0, 0, 1, 1, 1], [0], [0]>} : vector<2x8x8xbf16>, vector<2x8x8xbf16>, vector<2x8x8xf32> -> vector<2x8x8xf32>
    "tpu.trace_stop"() : () -> ()
    %cst_81 = arith.constant 0.353553385 : f32
    %190 = vector.broadcast %cst_81 : f32 to vector<2x8x8xf32>
    %191 = arith.mulf %189, %190 : vector<2x8x8xf32>
    %192 = arith.extf %183 : vector<2x8x8xbf16> to vector<2x8x8xf32>
    %193 = arith.addf %191, %192 : vector<2x8x8xf32>
    %cst_82 = arith.constant dense<0xFF800000> : vector<2x8xf32>
    %194 = vector.multi_reduction <maximumf>, %193, %cst_82 [2] : vector<2x8x8xf32> to vector<2x8xf32>
    %195 = vector.shape_cast %194 : vector<2x8xf32> to vector<2x8x1xf32>
    %196 = vector.broadcast %195 : vector<2x8x1xf32> to vector<2x8x8xf32>
    %197 = arith.subf %193, %196 : vector<2x8x8xf32>
    %198 = math.exp %197 : vector<2x8x8xf32>
    %cst_83 = arith.constant dense<0.000000e+00> : vector<2x8xf32>
    %199 = vector.multi_reduction <add>, %198, %cst_83 [2] : vector<2x8x8xf32> to vector<2x8xf32>
    %200 = vector.shape_cast %199 : vector<2x8xf32> to vector<2x8x1xf32>
    %201 = tpu.reciprocal %200 {approx = true} : vector<2x8x1xf32> -> vector<2x8x1xf32>
    %202 = vector.broadcast %201 : vector<2x8x1xf32> to vector<2x8x8xf32>
    %203 = arith.mulf %198, %202 : vector<2x8x8xf32>
    %204 = vector.shape_cast %203 : vector<2x8x8xf32> to vector<2x1x8x8xf32>
    %205 = arith.truncf %204 : vector<2x1x8x8xf32> to vector<2x1x8x8xbf16>
    %c0_84 = arith.constant 0 : index
    %c0_85 = arith.constant 0 : index
    %c0_86 = arith.constant 0 : index
    %c0_87 = arith.constant 0 : index
    %206 = vector.load %arg28[%c0_84, %c0_85, %c0_86, %c0_87] : memref<2x4x8x8xbf16, #tpu.memory_space<vmem>>, vector<2x1x8x8xbf16>
    tpu.vector_store %arg28[%c0_84, %c0_85, %c0_86, %c0_87], %205 {strides = array<i32>} : memref<2x4x8x8xbf16, #tpu.memory_space<vmem>>, vector<2x1x8x8xbf16>,
    %207 = vector.extract_strided_slice %182 {offsets = [0, 0, 0], sizes = [2, 8, 8], strides = [1, 1, 1]} : vector<2x8x32xf32> to vector<2x8x8xf32>
    %208 = arith.truncf %203 : vector<2x8x8xf32> to vector<2x8x8xbf16>
    %209 = arith.truncf %207 : vector<2x8x8xf32> to vector<2x8x8xbf16>
    "tpu.trace_start"() <{level = 10 : i32, message = "bqk,bkd->bqd"}> : () -> ()
    %cst_88 = arith.constant dense<0.000000e+00> : vector<2x8x8xf32>
    %210 = tpu.matmul %208, %209, %cst_88 {dimension_numbers = #tpu.dot_dimension_numbers<[2], [1], [1], [2], [0, 0, 0, 1, 1, 2], [0], [0]>} : vector<2x8x8xbf16>, vector<2x8x8xbf16>, vector<2x8x8xf32> -> vector<2x8x8xf32>
    "tpu.trace_stop"() : () -> ()
    %211 = vector.shape_cast %210 : vector<2x8x8xf32> to vector<16x8xf32>
    %c0_89 = arith.constant 0 : index
    %c0_90 = arith.constant 0 : index
    %212 = vector.load %arg15[%c0_89, %c0_90] : memref<32x32xbf16, #tpu.memory_space<vmem>>, vector<8x32xbf16>
    %213 = arith.truncf %211 : vector<16x8xf32> to vector<16x8xbf16>
    %cst_91 = arith.constant dense<0.000000e+00> : vector<16x32xf32>
    %214 = tpu.matmul %213, %212, %cst_91 {dimension_numbers = #tpu.dot_dimension_numbers<[1], [0], [0], [1], [0, 0, 1, 1], [], []>} : vector<16x8xbf16>, vector<8x32xbf16>, vector<16x32xf32> -> vector<16x32xf32>
    %215 = arith.addf %184, %214 : vector<16x32xf32>
    %216 = vector.extract_strided_slice %172 {offsets = [0, 0, 8], sizes = [2, 8, 8], strides = [1, 1, 1]} : vector<2x8x32xf32> to vector<2x8x8xf32>
    %217 = vector.extract_strided_slice %181 {offsets = [0, 0, 8], sizes = [2, 8, 8], strides = [1, 1, 1]} : vector<2x8x32xf32> to vector<2x8x8xf32>
    %218 = arith.truncf %216 : vector<2x8x8xf32> to vector<2x8x8xbf16>
    %219 = arith.truncf %217 : vector<2x8x8xf32> to vector<2x8x8xbf16>
    "tpu.trace_start"() <{level = 10 : i32, message = "bqd,bkd->bqk"}> : () -> ()
    %cst_92 = arith.constant dense<0.000000e+00> : vector<2x8x8xf32>
    %220 = tpu.matmul %218, %219, %cst_92 {dimension_numbers = #tpu.dot_dimension_numbers<[2], [2], [1], [1], [0, 0, 0, 1, 1, 1], [0], [0]>} : vector<2x8x8xbf16>, vector<2x8x8xbf16>, vector<2x8x8xf32> -> vector<2x8x8xf32>
    "tpu.trace_stop"() : () -> ()
    %cst_93 = arith.constant 0.353553385 : f32
    %221 = vector.broadcast %cst_93 : f32 to vector<2x8x8xf32>
    %222 = arith.mulf %220, %221 : vector<2x8x8xf32>
    %223 = arith.extf %183 : vector<2x8x8xbf16> to vector<2x8x8xf32>
    %224 = arith.addf %222, %223 : vector<2x8x8xf32>
    %cst_94 = arith.constant dense<0xFF800000> : vector<2x8xf32>
    %225 = vector.multi_reduction <maximumf>, %224, %cst_94 [2] : vector<2x8x8xf32> to vector<2x8xf32>
    %226 = vector.shape_cast %225 : vector<2x8xf32> to vector<2x8x1xf32>
    %227 = vector.broadcast %226 : vector<2x8x1xf32> to vector<2x8x8xf32>
    %228 = arith.subf %224, %227 : vector<2x8x8xf32>
    %229 = math.exp %228 : vector<2x8x8xf32>
    %cst_95 = arith.constant dense<0.000000e+00> : vector<2x8xf32>
    %230 = vector.multi_reduction <add>, %229, %cst_95 [2] : vector<2x8x8xf32> to vector<2x8xf32>
    %231 = vector.shape_cast %230 : vector<2x8xf32> to vector<2x8x1xf32>
    %232 = tpu.reciprocal %231 {approx = true} : vector<2x8x1xf32> -> vector<2x8x1xf32>
    %233 = vector.broadcast %232 : vector<2x8x1xf32> to vector<2x8x8xf32>
    %234 = arith.mulf %229, %233 : vector<2x8x8xf32>
    %235 = vector.shape_cast %234 : vector<2x8x8xf32> to vector<2x1x8x8xf32>
    %236 = arith.truncf %235 : vector<2x1x8x8xf32> to vector<2x1x8x8xbf16>
    %c0_96 = arith.constant 0 : index
    %c1_97 = arith.constant 1 : index
    %c0_98 = arith.constant 0 : index
    %c0_99 = arith.constant 0 : index
    %237 = vector.load %arg28[%c0_96, %c1_97, %c0_98, %c0_99] : memref<2x4x8x8xbf16, #tpu.memory_space<vmem>>, vector<2x1x8x8xbf16>
    tpu.vector_store %arg28[%c0_96, %c1_97, %c0_98, %c0_99], %236 {strides = array<i32>} : memref<2x4x8x8xbf16, #tpu.memory_space<vmem>>, vector<2x1x8x8xbf16>,
    %238 = vector.extract_strided_slice %182 {offsets = [0, 0, 8], sizes = [2, 8, 8], strides = [1, 1, 1]} : vector<2x8x32xf32> to vector<2x8x8xf32>
    %239 = arith.truncf %234 : vector<2x8x8xf32> to vector<2x8x8xbf16>
    %240 = arith.truncf %238 : vector<2x8x8xf32> to vector<2x8x8xbf16>
    "tpu.trace_start"() <{level = 10 : i32, message = "bqk,bkd->bqd"}> : () -> ()
    %cst_100 = arith.constant dense<0.000000e+00> : vector<2x8x8xf32>
    %241 = tpu.matmul %239, %240, %cst_100 {dimension_numbers = #tpu.dot_dimension_numbers<[2], [1], [1], [2], [0, 0, 0, 1, 1, 2], [0], [0]>} : vector<2x8x8xbf16>, vector<2x8x8xbf16>, vector<2x8x8xf32> -> vector<2x8x8xf32>
    "tpu.trace_stop"() : () -> ()
    %242 = vector.shape_cast %241 : vector<2x8x8xf32> to vector<16x8xf32>
    %c8_101 = arith.constant 8 : index
    %c0_102 = arith.constant 0 : index
    %243 = vector.load %arg15[%c8_101, %c0_102] : memref<32x32xbf16, #tpu.memory_space<vmem>>, vector<8x32xbf16>
    %244 = arith.truncf %242 : vector<16x8xf32> to vector<16x8xbf16>
    %cst_103 = arith.constant dense<0.000000e+00> : vector<16x32xf32>
    %245 = tpu.matmul %244, %243, %cst_103 {dimension_numbers = #tpu.dot_dimension_numbers<[1], [0], [0], [1], [0, 0, 1, 1], [], []>} : vector<16x8xbf16>, vector<8x32xbf16>, vector<16x32xf32> -> vector<16x32xf32>
    %246 = arith.addf %215, %245 : vector<16x32xf32>
    %247 = vector.extract_strided_slice %172 {offsets = [0, 0, 16], sizes = [2, 8, 8], strides = [1, 1, 1]} : vector<2x8x32xf32> to vector<2x8x8xf32>
    %248 = vector.extract_strided_slice %181 {offsets = [0, 0, 16], sizes = [2, 8, 8], strides = [1, 1, 1]} : vector<2x8x32xf32> to vector<2x8x8xf32>
    %249 = arith.truncf %247 : vector<2x8x8xf32> to vector<2x8x8xbf16>
    %250 = arith.truncf %248 : vector<2x8x8xf32> to vector<2x8x8xbf16>
    "tpu.trace_start"() <{level = 10 : i32, message = "bqd,bkd->bqk"}> : () -> ()
    %cst_104 = arith.constant dense<0.000000e+00> : vector<2x8x8xf32>
    %251 = tpu.matmul %249, %250, %cst_104 {dimension_numbers = #tpu.dot_dimension_numbers<[2], [2], [1], [1], [0, 0, 0, 1, 1, 1], [0], [0]>} : vector<2x8x8xbf16>, vector<2x8x8xbf16>, vector<2x8x8xf32> -> vector<2x8x8xf32>
    "tpu.trace_stop"() : () -> ()
    %cst_105 = arith.constant 0.353553385 : f32
    %252 = vector.broadcast %cst_105 : f32 to vector<2x8x8xf32>
    %253 = arith.mulf %251, %252 : vector<2x8x8xf32>
    %254 = arith.extf %183 : vector<2x8x8xbf16> to vector<2x8x8xf32>
    %255 = arith.addf %253, %254 : vector<2x8x8xf32>
    %cst_106 = arith.constant dense<0xFF800000> : vector<2x8xf32>
    %256 = vector.multi_reduction <maximumf>, %255, %cst_106 [2] : vector<2x8x8xf32> to vector<2x8xf32>
    %257 = vector.shape_cast %256 : vector<2x8xf32> to vector<2x8x1xf32>
    %258 = vector.broadcast %257 : vector<2x8x1xf32> to vector<2x8x8xf32>
    %259 = arith.subf %255, %258 : vector<2x8x8xf32>
    %260 = math.exp %259 : vector<2x8x8xf32>
    %cst_107 = arith.constant dense<0.000000e+00> : vector<2x8xf32>
    %261 = vector.multi_reduction <add>, %260, %cst_107 [2] : vector<2x8x8xf32> to vector<2x8xf32>
    %262 = vector.shape_cast %261 : vector<2x8xf32> to vector<2x8x1xf32>
    %263 = tpu.reciprocal %262 {approx = true} : vector<2x8x1xf32> -> vector<2x8x1xf32>
    %264 = vector.broadcast %263 : vector<2x8x1xf32> to vector<2x8x8xf32>
    %265 = arith.mulf %260, %264 : vector<2x8x8xf32>
    %266 = vector.shape_cast %265 : vector<2x8x8xf32> to vector<2x1x8x8xf32>
    %267 = arith.truncf %266 : vector<2x1x8x8xf32> to vector<2x1x8x8xbf16>
    %c0_108 = arith.constant 0 : index
    %c2_109 = arith.constant 2 : index
    %c0_110 = arith.constant 0 : index
    %c0_111 = arith.constant 0 : index
    %268 = vector.load %arg28[%c0_108, %c2_109, %c0_110, %c0_111] : memref<2x4x8x8xbf16, #tpu.memory_space<vmem>>, vector<2x1x8x8xbf16>
    tpu.vector_store %arg28[%c0_108, %c2_109, %c0_110, %c0_111], %267 {strides = array<i32>} : memref<2x4x8x8xbf16, #tpu.memory_space<vmem>>, vector<2x1x8x8xbf16>,
    %269 = vector.extract_strided_slice %182 {offsets = [0, 0, 16], sizes = [2, 8, 8], strides = [1, 1, 1]} : vector<2x8x32xf32> to vector<2x8x8xf32>
    %270 = arith.truncf %265 : vector<2x8x8xf32> to vector<2x8x8xbf16>
    %271 = arith.truncf %269 : vector<2x8x8xf32> to vector<2x8x8xbf16>
    "tpu.trace_start"() <{level = 10 : i32, message = "bqk,bkd->bqd"}> : () -> ()
    %cst_112 = arith.constant dense<0.000000e+00> : vector<2x8x8xf32>
    %272 = tpu.matmul %270, %271, %cst_112 {dimension_numbers = #tpu.dot_dimension_numbers<[2], [1], [1], [2], [0, 0, 0, 1, 1, 2], [0], [0]>} : vector<2x8x8xbf16>, vector<2x8x8xbf16>, vector<2x8x8xf32> -> vector<2x8x8xf32>
    "tpu.trace_stop"() : () -> ()
    %273 = vector.shape_cast %272 : vector<2x8x8xf32> to vector<16x8xf32>
    %c16_113 = arith.constant 16 : index
    %c0_114 = arith.constant 0 : index
    %274 = vector.load %arg15[%c16_113, %c0_114] : memref<32x32xbf16, #tpu.memory_space<vmem>>, vector<8x32xbf16>
    %275 = arith.truncf %273 : vector<16x8xf32> to vector<16x8xbf16>
    %cst_115 = arith.constant dense<0.000000e+00> : vector<16x32xf32>
    %276 = tpu.matmul %275, %274, %cst_115 {dimension_numbers = #tpu.dot_dimension_numbers<[1], [0], [0], [1], [0, 0, 1, 1], [], []>} : vector<16x8xbf16>, vector<8x32xbf16>, vector<16x32xf32> -> vector<16x32xf32>
    %277 = arith.addf %246, %276 : vector<16x32xf32>
    %278 = vector.extract_strided_slice %172 {offsets = [0, 0, 24], sizes = [2, 8, 8], strides = [1, 1, 1]} : vector<2x8x32xf32> to vector<2x8x8xf32>
    %279 = vector.extract_strided_slice %181 {offsets = [0, 0, 24], sizes = [2, 8, 8], strides = [1, 1, 1]} : vector<2x8x32xf32> to vector<2x8x8xf32>
    %280 = arith.truncf %278 : vector<2x8x8xf32> to vector<2x8x8xbf16>
    %281 = arith.truncf %279 : vector<2x8x8xf32> to vector<2x8x8xbf16>
    "tpu.trace_start"() <{level = 10 : i32, message = "bqd,bkd->bqk"}> : () -> ()
    %cst_116 = arith.constant dense<0.000000e+00> : vector<2x8x8xf32>
    %282 = tpu.matmul %280, %281, %cst_116 {dimension_numbers = #tpu.dot_dimension_numbers<[2], [2], [1], [1], [0, 0, 0, 1, 1, 1], [0], [0]>} : vector<2x8x8xbf16>, vector<2x8x8xbf16>, vector<2x8x8xf32> -> vector<2x8x8xf32>
    "tpu.trace_stop"() : () -> ()
    %cst_117 = arith.constant 0.353553385 : f32
    %283 = vector.broadcast %cst_117 : f32 to vector<2x8x8xf32>
    %284 = arith.mulf %282, %283 : vector<2x8x8xf32>
    %285 = arith.extf %183 : vector<2x8x8xbf16> to vector<2x8x8xf32>
    %286 = arith.addf %284, %285 : vector<2x8x8xf32>
    %cst_118 = arith.constant dense<0xFF800000> : vector<2x8xf32>
    %287 = vector.multi_reduction <maximumf>, %286, %cst_118 [2] : vector<2x8x8xf32> to vector<2x8xf32>
    %288 = vector.shape_cast %287 : vector<2x8xf32> to vector<2x8x1xf32>
    %289 = vector.broadcast %288 : vector<2x8x1xf32> to vector<2x8x8xf32>
    %290 = arith.subf %286, %289 : vector<2x8x8xf32>
    %291 = math.exp %290 : vector<2x8x8xf32>
    %cst_119 = arith.constant dense<0.000000e+00> : vector<2x8xf32>
    %292 = vector.multi_reduction <add>, %291, %cst_119 [2] : vector<2x8x8xf32> to vector<2x8xf32>
    %293 = vector.shape_cast %292 : vector<2x8xf32> to vector<2x8x1xf32>
    %294 = tpu.reciprocal %293 {approx = true} : vector<2x8x1xf32> -> vector<2x8x1xf32>
    %295 = vector.broadcast %294 : vector<2x8x1xf32> to vector<2x8x8xf32>
    %296 = arith.mulf %291, %295 : vector<2x8x8xf32>
    %297 = vector.shape_cast %296 : vector<2x8x8xf32> to vector<2x1x8x8xf32>
    %298 = arith.truncf %297 : vector<2x1x8x8xf32> to vector<2x1x8x8xbf16>
    %c0_120 = arith.constant 0 : index
    %c3_121 = arith.constant 3 : index
    %c0_122 = arith.constant 0 : index
    %c0_123 = arith.constant 0 : index
    %299 = vector.load %arg28[%c0_120, %c3_121, %c0_122, %c0_123] : memref<2x4x8x8xbf16, #tpu.memory_space<vmem>>, vector<2x1x8x8xbf16>
    tpu.vector_store %arg28[%c0_120, %c3_121, %c0_122, %c0_123], %298 {strides = array<i32>} : memref<2x4x8x8xbf16, #tpu.memory_space<vmem>>, vector<2x1x8x8xbf16>,
    %300 = vector.extract_strided_slice %182 {offsets = [0, 0, 24], sizes = [2, 8, 8], strides = [1, 1, 1]} : vector<2x8x32xf32> to vector<2x8x8xf32>
    %301 = arith.truncf %296 : vector<2x8x8xf32> to vector<2x8x8xbf16>
    %302 = arith.truncf %300 : vector<2x8x8xf32> to vector<2x8x8xbf16>
    "tpu.trace_start"() <{level = 10 : i32, message = "bqk,bkd->bqd"}> : () -> ()
    %cst_124 = arith.constant dense<0.000000e+00> : vector<2x8x8xf32>
    %303 = tpu.matmul %301, %302, %cst_124 {dimension_numbers = #tpu.dot_dimension_numbers<[2], [1], [1], [2], [0, 0, 0, 1, 1, 2], [0], [0]>} : vector<2x8x8xbf16>, vector<2x8x8xbf16>, vector<2x8x8xf32> -> vector<2x8x8xf32>
    "tpu.trace_stop"() : () -> ()
    %304 = vector.shape_cast %303 : vector<2x8x8xf32> to vector<16x8xf32>
    %c24_125 = arith.constant 24 : index
    %c0_126 = arith.constant 0 : index
    %305 = vector.load %arg15[%c24_125, %c0_126] : memref<32x32xbf16, #tpu.memory_space<vmem>>, vector<8x32xbf16>
    %306 = arith.truncf %304 : vector<16x8xf32> to vector<16x8xbf16>
    %cst_127 = arith.constant dense<0.000000e+00> : vector<16x32xf32>
    %307 = tpu.matmul %306, %305, %cst_127 {dimension_numbers = #tpu.dot_dimension_numbers<[1], [0], [0], [1], [0, 0, 1, 1], [], []>} : vector<16x8xbf16>, vector<8x32xbf16>, vector<16x32xf32> -> vector<16x32xf32>
    %308 = arith.addf %277, %307 : vector<16x32xf32>
    %c0_128 = arith.constant 0 : index
    %c0_129 = arith.constant 0 : index
    %309 = vector.load %arg16[%c0_128, %c0_129] : memref<1x32xf32, #tpu.memory_space<vmem>>, vector<1x32xf32>
    %310 = vector.broadcast %309 : vector<1x32xf32> to vector<16x32xf32>
    %311 = arith.addf %308, %310 : vector<16x32xf32>
    %312 = arith.addf %165, %311 : vector<16x32xf32>
    %c0_130 = arith.constant 0 : index
    %c0_131 = arith.constant 0 : index
    %313 = vector.load %arg17[%c0_130, %c0_131] : memref<1x32xf32, #tpu.memory_space<vmem>>, vector<1x32xf32>
    %c0_132 = arith.constant 0 : index
    %c0_133 = arith.constant 0 : index
    %314 = vector.load %arg18[%c0_132, %c0_133] : memref<1x32xf32, #tpu.memory_space<vmem>>, vector<1x32xf32>
    %cst_134 = arith.constant dense<0.000000e+00> : vector<16xf32>
    %315 = vector.multi_reduction <add>, %312, %cst_134 [1] : vector<16x32xf32> to vector<16xf32>
    %316 = vector.shape_cast %315 : vector<16xf32> to vector<16x1xf32>
    %cst_135 = arith.constant 3.200000e+01 : f32
    %317 = vector.broadcast %cst_135 : f32 to vector<16x1xf32>
    %318 = arith.divf %316, %317 : vector<16x1xf32>
    %319 = vector.broadcast %318 : vector<16x1xf32> to vector<16x32xf32>
    %320 = arith.subf %312, %319 : vector<16x32xf32>
    %321 = arith.mulf %320, %320 : vector<16x32xf32>
    %cst_136 = arith.constant dense<0.000000e+00> : vector<16xf32>
    %322 = vector.multi_reduction <add>, %321, %cst_136 [1] : vector<16x32xf32> to vector<16xf32>
    %323 = vector.shape_cast %322 : vector<16xf32> to vector<16x1xf32>
    %cst_137 = arith.constant 3.200000e+01 : f32
    %324 = vector.broadcast %cst_137 : f32 to vector<16x1xf32>
    %325 = arith.divf %323, %324 : vector<16x1xf32>
    %326 = vector.broadcast %318 : vector<16x1xf32> to vector<16x32xf32>
    %327 = arith.subf %312, %326 : vector<16x32xf32>
    %cst_138 = arith.constant 9.99999996E-13 : f32
    %328 = vector.broadcast %cst_138 : f32 to vector<16x1xf32>
    %329 = arith.addf %325, %328 : vector<16x1xf32>
    %330 = math.rsqrt %329 : vector<16x1xf32>
    %331 = vector.broadcast %330 : vector<16x1xf32> to vector<16x32xf32>
    %332 = arith.mulf %327, %331 : vector<16x32xf32>
    %333 = vector.broadcast %313 : vector<1x32xf32> to vector<16x32xf32>
    %334 = arith.mulf %332, %333 : vector<16x32xf32>
    %335 = vector.broadcast %314 : vector<1x32xf32> to vector<16x32xf32>
    %336 = arith.addf %334, %335 : vector<16x32xf32>
    %c0_139 = arith.constant 0 : index
    %c0_140 = arith.constant 0 : index
    %337 = vector.load %arg19[%c0_139, %c0_140] : memref<32x64xbf16, #tpu.memory_space<vmem>>, vector<32x64xbf16>
    %338 = arith.truncf %336 : vector<16x32xf32> to vector<16x32xbf16>
    %cst_141 = arith.constant dense<0.000000e+00> : vector<16x64xf32>
    %339 = tpu.matmul %338, %337, %cst_141 {dimension_numbers = #tpu.dot_dimension_numbers<[1], [0], [0], [1], [0, 0, 1, 1], [], []>} : vector<16x32xbf16>, vector<32x64xbf16>, vector<16x64xf32> -> vector<16x64xf32>
    %c0_142 = arith.constant 0 : index
    %c0_143 = arith.constant 0 : index
    %340 = vector.load %arg20[%c0_142, %c0_143] : memref<1x64xf32, #tpu.memory_space<vmem>>, vector<1x64xf32>
    %341 = vector.broadcast %340 : vector<1x64xf32> to vector<16x64xf32>
    %342 = arith.addf %339, %341 : vector<16x64xf32>
    %cst_144 = arith.constant 5.000000e-01 : f32
    %343 = vector.broadcast %cst_144 : f32 to vector<16x64xf32>
    %344 = arith.mulf %343, %342 : vector<16x64xf32>
    %cst_145 = arith.constant 0.707106769 : f32
    %345 = vector.broadcast %cst_145 : f32 to vector<16x64xf32>
    %346 = arith.mulf %342, %345 : vector<16x64xf32>
    %347 = math.erf %346 : vector<16x64xf32>
    %cst_146 = arith.constant 1.000000e+00 : f32
    %348 = vector.broadcast %cst_146 : f32 to vector<16x64xf32>
    %349 = arith.addf %348, %347 : vector<16x64xf32>
    %350 = arith.mulf %344, %349 : vector<16x64xf32>
    %c0_147 = arith.constant 0 : index
    %c0_148 = arith.constant 0 : index
    %351 = vector.load %arg21[%c0_147, %c0_148] : memref<64x32xbf16, #tpu.memory_space<vmem>>, vector<64x32xbf16>
    %352 = arith.truncf %350 : vector<16x64xf32> to vector<16x64xbf16>
    %cst_149 = arith.constant dense<0.000000e+00> : vector<16x32xf32>
    %353 = tpu.matmul %352, %351, %cst_149 {dimension_numbers = #tpu.dot_dimension_numbers<[1], [0], [0], [1], [0, 0, 1, 1], [], []>} : vector<16x64xbf16>, vector<64x32xbf16>, vector<16x32xf32> -> vector<16x32xf32>
    %c0_150 = arith.constant 0 : index
    %c0_151 = arith.constant 0 : index
    %354 = vector.load %arg22[%c0_150, %c0_151] : memref<1x32xf32, #tpu.memory_space<vmem>>, vector<1x32xf32>
    %355 = vector.broadcast %354 : vector<1x32xf32> to vector<16x32xf32>
    %356 = arith.addf %353, %355 : vector<16x32xf32>
    %357 = arith.addf %336, %356 : vector<16x32xf32>
    %c0_152 = arith.constant 0 : index
    %c0_153 = arith.constant 0 : index
    %358 = vector.load %arg23[%c0_152, %c0_153] : memref<1x32xf32, #tpu.memory_space<vmem>>, vector<1x32xf32>
    %c0_154 = arith.constant 0 : index
    %c0_155 = arith.constant 0 : index
    %359 = vector.load %arg24[%c0_154, %c0_155] : memref<1x32xf32, #tpu.memory_space<vmem>>, vector<1x32xf32>
    %cst_156 = arith.constant dense<0.000000e+00> : vector<16xf32>
    %360 = vector.multi_reduction <add>, %357, %cst_156 [1] : vector<16x32xf32> to vector<16xf32>
    %361 = vector.shape_cast %360 : vector<16xf32> to vector<16x1xf32>
    %cst_157 = arith.constant 3.200000e+01 : f32
    %362 = vector.broadcast %cst_157 : f32 to vector<16x1xf32>
    %363 = arith.divf %361, %362 : vector<16x1xf32>
    %364 = vector.broadcast %363 : vector<16x1xf32> to vector<16x32xf32>
    %365 = arith.subf %357, %364 : vector<16x32xf32>
    %366 = arith.mulf %365, %365 : vector<16x32xf32>
    %cst_158 = arith.constant dense<0.000000e+00> : vector<16xf32>
    %367 = vector.multi_reduction <add>, %366, %cst_158 [1] : vector<16x32xf32> to vector<16xf32>
    %368 = vector.shape_cast %367 : vector<16xf32> to vector<16x1xf32>
    %cst_159 = arith.constant 3.200000e+01 : f32
    %369 = vector.broadcast %cst_159 : f32 to vector<16x1xf32>
    %370 = arith.divf %368, %369 : vector<16x1xf32>
    %371 = vector.broadcast %363 : vector<16x1xf32> to vector<16x32xf32>
    %372 = arith.subf %357, %371 : vector<16x32xf32>
    %cst_160 = arith.constant 9.99999996E-13 : f32
    %373 = vector.broadcast %cst_160 : f32 to vector<16x1xf32>
    %374 = arith.addf %370, %373 : vector<16x1xf32>
    %375 = math.rsqrt %374 : vector<16x1xf32>
    %376 = vector.broadcast %375 : vector<16x1xf32> to vector<16x32xf32>
    %377 = arith.mulf %372, %376 : vector<16x32xf32>
    %378 = vector.broadcast %358 : vector<1x32xf32> to vector<16x32xf32>
    %379 = arith.mulf %377, %378 : vector<16x32xf32>
    %380 = vector.broadcast %359 : vector<1x32xf32> to vector<16x32xf32>
    %381 = arith.addf %379, %380 : vector<16x32xf32>
    %382 = vector.shape_cast %381 : vector<16x32xf32> to vector<2x8x32xf32>
    %383 = arith.truncf %382 : vector<2x8x32xf32> to vector<2x8x32xbf16>
    %c0_161 = arith.constant 0 : index
    %c0_162 = arith.constant 0 : index
    %c0_163 = arith.constant 0 : index
    %384 = vector.load %arg26[%c0_161, %c0_162, %c0_163] : memref<2x8x32xbf16, #tpu.memory_space<vmem>>, vector<2x8x32xbf16>
    tpu.vector_store %arg26[%c0_161, %c0_162, %c0_163], %383 {strides = array<i32>} : memref<2x8x32xbf16, #tpu.memory_space<vmem>>, vector<2x8x32xbf16>,
    %cst_164 = arith.constant dense<0xFF800000> : vector<2x32xf32>
    %385 = vector.multi_reduction <maximumf>, %382, %cst_164 [1] : vector<2x8x32xf32> to vector<2x32xf32>
    %c0_165 = arith.constant 0 : index
    %c0_166 = arith.constant 0 : index
    %386 = vector.load %arg25[%c0_165, %c0_166] : memref<32x128xbf16, #tpu.memory_space<vmem>>, vector<32x128xbf16>
    %387 = arith.truncf %385 : vector<2x32xf32> to vector<2x32xbf16>
    %cst_167 = arith.constant dense<0.000000e+00> : vector<2x128xf32>
    %388 = tpu.matmul %387, %386, %cst_167 {dimension_numbers = #tpu.dot_dimension_numbers<[1], [0], [0], [1], [0, 0, 1, 1], [], []>} : vector<2x32xbf16>, vector<32x128xbf16>, vector<2x128xf32> -> vector<2x128xf32>
    %389 = vector.shape_cast %388 : vector<2x128xf32> to vector<2x1x128xf32>
    %c0_168 = arith.constant 0 : index
    %c0_169 = arith.constant 0 : index
    %c0_170 = arith.constant 0 : index
    %390 = vector.load %arg29[%c0_168, %c0_169, %c0_170] : memref<2x1x128xf32, #tpu.memory_space<vmem>>, vector<2x1x128xf32>
    tpu.vector_store %arg29[%c0_168, %c0_169, %c0_170], %389 {strides = array<i32>} : memref<2x1x128xf32, #tpu.memory_space<vmem>>, vector<2x1x128xf32>,
    return
  }
  func.func @transform_0(%arg0: i32) -> (i32, i32, i32) {
    %c0_i32 = arith.constant 0 : i32
    %c0_i32_0 = arith.constant 0 : i32
    %c0_i32_1 = arith.constant 0 : i32
    return %arg0, %c0_i32, %c0_i32_0 : i32, i32, i32
  }
  func.func @transform_1(%arg0: i32) -> (i32, i32, i32) {
    %c0_i32 = arith.constant 0 : i32
    %c0_i32_0 = arith.constant 0 : i32
    %c0_i32_1 = arith.constant 0 : i32
    return %arg0, %c0_i32, %c0_i32_0 : i32, i32, i32
  }
  func.func @transform_2(%arg0: i32) -> (i32, i32, i32) {
    %c0_i32 = arith.constant 0 : i32
    %c0_i32_0 = arith.constant 0 : i32
    %c0_i32_1 = arith.constant 0 : i32
    return %arg0, %c0_i32, %c0_i32_0 : i32, i32, i32
  }
  func.func @transform_3(%arg0: i32) -> (i32, i32, i32) {
    %c0_i32 = arith.constant 0 : i32
    %c0_i32_0 = arith.constant 0 : i32
    %c0_i32_1 = arith.constant 0 : i32
    return %arg0, %c0_i32, %c0_i32_0 : i32, i32, i32
  }
  func.func @transform_4(%arg0: i32) -> (i32, i32) {
    %c0_i32 = arith.constant 0 : i32
    %c0_i32_0 = arith.constant 0 : i32
    %c0_i32_1 = arith.constant 0 : i32
    return %c0_i32, %c0_i32_0 : i32, i32
  }
  func.func @transform_5(%arg0: i32) -> (i32, i32) {
    %c0_i32 = arith.constant 0 : i32
    %c0_i32_0 = arith.constant 0 : i32
    %c0_i32_1 = arith.constant 0 : i32
    return %c0_i32, %c0_i32_0 : i32, i32
  }
  func.func @transform_6(%arg0: i32) -> (i32, i32) {
    %c0_i32 = arith.constant 0 : i32
    %c0_i32_0 = arith.constant 0 : i32
    %c0_i32_1 = arith.constant 0 : i32
    return %c0_i32, %c0_i32_0 : i32, i32
  }
  func.func @transform_7(%arg0: i32) -> (i32, i32) {
    %c0_i32 = arith.constant 0 : i32
    %c0_i32_0 = arith.constant 0 : i32
    %c0_i32_1 = arith.constant 0 : i32
    return %c0_i32, %c0_i32_0 : i32, i32
  }
  func.func @transform_8(%arg0: i32) -> (i32, i32) {
    %c0_i32 = arith.constant 0 : i32
    %c0_i32_0 = arith.constant 0 : i32
    %c0_i32_1 = arith.constant 0 : i32
    return %c0_i32, %c0_i32_0 : i32, i32
  }
  func.func @transform_9(%arg0: i32) -> (i32, i32) {
    %c0_i32 = arith.constant 0 : i32
    %c0_i32_0 = arith.constant 0 : i32
    %c0_i32_1 = arith.constant 0 : i32
    return %c0_i32, %c0_i32_0 : i32, i32
  }
  func.func @transform_10(%arg0: i32) -> (i32, i32) {
    %c0_i32 = arith.constant 0 : i32
    %c0_i32_0 = arith.constant 0 : i32
    %c0_i32_1 = arith.constant 0 : i32
    return %c0_i32, %c0_i32_0 : i32, i32
  }
  func.func @transform_11(%arg0: i32) -> (i32, i32) {
    %c0_i32 = arith.constant 0 : i32
    %c0_i32_0 = arith.constant 0 : i32
    %c0_i32_1 = arith.constant 0 : i32
    return %c0_i32, %c0_i32_0 : i32, i32
  }
  func.func @transform_12(%arg0: i32) -> (i32, i32) {
    %c0_i32 = arith.constant 0 : i32
    %c0_i32_0 = arith.constant 0 : i32
    %c0_i32_1 = arith.constant 0 : i32
    return %c0_i32, %c0_i32_0 : i32, i32
  }
  func.func @transform_13(%arg0: i32) -> (i32, i32) {
    %c0_i32 = arith.constant 0 : i32
    %c0_i32_0 = arith.constant 0 : i32
    %c0_i32_1 = arith.constant 0 : i32
    return %c0_i32, %c0_i32_0 : i32, i32
  }
  func.func @transform_14(%arg0: i32) -> (i32, i32) {
    %c0_i32 = arith.constant 0 : i32
    %c0_i32_0 = arith.constant 0 : i32
    %c0_i32_1 = arith.constant 0 : i32
    return %c0_i32, %c0_i32_0 : i32, i32
  }
  func.func @transform_15(%arg0: i32) -> (i32, i32) {
    %c0_i32 = arith.constant 0 : i32
    %c0_i32_0 = arith.constant 0 : i32
    %c0_i32_1 = arith.constant 0 : i32
    return %c0_i32, %c0_i32_0 : i32, i32
  }
  func.func @transform_16(%arg0: i32) -> (i32, i32) {
    %c0_i32 = arith.constant 0 : i32
    %c0_i32_0 = arith.constant 0 : i32
    %c0_i32_1 = arith.constant 0 : i32
    return %c0_i32, %c0_i32_0 : i32, i32
  }
  func.func @transform_17(%arg0: i32) -> (i32, i32) {
    %c0_i32 = arith.constant 0 : i32
    %c0_i32_0 = arith.constant 0 : i32
    %c0_i32_1 = arith.constant 0 : i32
    return %c0_i32, %c0_i32_0 : i32, i32
  }
  func.func @transform_18(%arg0: i32) -> (i32, i32) {
    %c0_i32 = arith.constant 0 : i32
    %c0_i32_0 = arith.constant 0 : i32
    %c0_i32_1 = arith.constant 0 : i32
    return %c0_i32, %c0_i32_0 : i32, i32
  }
  func.func @transform_19(%arg0: i32) -> (i32, i32) {
    %c0_i32 = arith.constant 0 : i32
    %c0_i32_0 = arith.constant 0 : i32
    %c0_i32_1 = arith.constant 0 : i32
    return %c0_i32, %c0_i32_0 : i32, i32
  }
  func.func @transform_20(%arg0: i32) -> (i32, i32) {
    %c0_i32 = arith.constant 0 : i32
    %c0_i32_0 = arith.constant 0 : i32
    %c0_i32_1 = arith.constant 0 : i32
    return %c0_i32, %c0_i32_0 : i32, i32
  }
  func.func @transform_21(%arg0: i32) -> (i32, i32) {
    %c0_i32 = arith.constant 0 : i32
    %c0_i32_0 = arith.constant 0 : i32
    %c0_i32_1 = arith.constant 0 : i32
    return %c0_i32, %c0_i32_0 : i32, i32
  }
  func.func @transform_22(%arg0: i32) -> (i32, i32) {
    %c0_i32 = arith.constant 0 : i32
    %c0_i32_0 = arith.constant 0 : i32
    %c0_i32_1 = arith.constant 0 : i32
    return %c0_i32, %c0_i32_0 : i32, i32
  }
  func.func @transform_23(%arg0: i32) -> (i32, i32) {
    %c0_i32 = arith.constant 0 : i32
    %c0_i32_0 = arith.constant 0 : i32
    %c0_i32_1 = arith.constant 0 : i32
    return %c0_i32, %c0_i32_0 : i32, i32
  }
  func.func @transform_24(%arg0: i32) -> (i32, i32) {
    %c0_i32 = arith.constant 0 : i32
    %c0_i32_0 = arith.constant 0 : i32
    %c0_i32_1 = arith.constant 0 : i32
    return %c0_i32, %c0_i32_0 : i32, i32
  }
  func.func @transform_25(%arg0: i32) -> (i32, i32, i32) {
    %c0_i32 = arith.constant 0 : i32
    %c0_i32_0 = arith.constant 0 : i32
    %c0_i32_1 = arith.constant 0 : i32
    return %arg0, %c0_i32, %c0_i32_0 : i32, i32, i32
  }
  func.func @transform_26(%arg0: i32) -> (i32, i32, i32, i32) {
    %c0_i32 = arith.constant 0 : i32
    %c0_i32_0 = arith.constant 0 : i32
    %c0_i32_1 = arith.constant 0 : i32
    %c0_i32_2 = arith.constant 0 : i32
    return %arg0, %c0_i32, %c0_i32_0, %c0_i32_1 : i32, i32, i32, i32
  }
  func.func @transform_27(%arg0: i32) -> (i32, i32, i32, i32) {
    %c0_i32 = arith.constant 0 : i32
    %c0_i32_0 = arith.constant 0 : i32
    %c0_i32_1 = arith.constant 0 : i32
    %c0_i32_2 = arith.constant 0 : i32
    return %arg0, %c0_i32, %c0_i32_0, %c0_i32_1 : i32, i32, i32, i32
  }
  func.func @transform_28(%arg0: i32) -> (i32, i32, i32) {
    %c0_i32 = arith.constant 0 : i32
    %c0_i32_0 = arith.constant 0 : i32
    %c0_i32_1 = arith.constant 0 : i32
    return %arg0, %c0_i32, %c0_i32_0 : i32, i32, i32
  }
}

</mosaic_0001>

<bundles_post_ra>
// kernel: tpu_custom_call.1
= control target key start
LH: loop header
LB: loop body
LE: loop exit
PB: predicated region body
PF: predicated region fallthrough
CT: control target
= control target key end

     0   :  { %6 = vsyncpa [#allocation3], 0  ;;  %s441_s0 = inlined_call_operand.hbm [shape: f32[8,128], index: 0, kind: input, shape index: {}]   ;;  %s442_s1 = inlined_call_operand.hbm [shape: f32[16,128], index: 1, kind: output, shape index: {}]  }
   0x1   :  { %7 = vsyncpa [#allocation4], 0 }
   0x2   :  { %9 = vsyncpa [#allocation4 + $0x1], 0  ;;  %s357_s6 = smov 0   ;;  %s359_s7 = smov 0  }
   0x3   :  { %s361_s8 = smov 0   ;;  %s363_s9 = smov 0  }
   0x4 LB: > { %s378_s10 = sadd.s32 4294967295, %s344_s9   ;;  %s188_s11 = sadd.s32 4294967294, %s344_s9   ;;  %s344_s9 = sphi %s363_s9, %s448_s9   ;;  %s340_s8 = sphi %s361_s8, %s447_s8   ;;  %s336_s7 = sphi %s359_s7, %s446_s7   ;;  %s332_s6 = sphi %s357_s6, %s445_s6  }
   0x5   : > { %s382_s12 = sadd.s32 1, %s344_s9   ;;  %s43_s13 = sadd.s32 1, %s340_s8 }
   0x6   : > { %s40_s14 = ssub.s32 %s344_s9, %s382_s12  ;;  %p53_p0 = scmp.ne.s32.totalorder %s340_s8, %s336_s7 }
   0x7   : > { %p41_p1 = scmp.eq.s32.totalorder %s40_s14, 0  ;;  %p54_p2 = scmp.eq.s32.totalorder %s378_s10, 1 }
   0x8   : > { %p59_p3 = scmp.ne.s32.totalorder %s336_s7, %s332_s6  ;;  %p60_p4 = scmp.eq.s32.totalorder %s188_s11, 1 }
   0x9   : > { %s393_s15 = scalar_select %p41_p1, %s340_s8, %s43_s13  }
   0xa   : > { %p395_p5 = por %p54_p2, %p53_p0  ;;  %p399_p6 = por %p60_p4, %p59_p3 }
   0xb   : > { %p189_p7 = scmp.ge.s32.totalorder %s344_s9, 1  ;;  %p67_p8 = scmp.lt.s32.totalorder %s344_s9, 3 }
   0xc   : > { %p212_p9 = scmp.eq.s32.totalorder %s378_s10, 0  ;;  %s79_s20 = sshll.u32 %s441_s0, 4  ;;  %s80_s20 = int_to_ptr.hbm [resolvable:$true] %s79_s20 }
   0xd   : > { %p68_p10 = pnand %p189_p7, %p67_p8  ;;  %s346_s21 = smov [#allocation2]  }
   0xe   : > { %s81_s22 = sshll.u32 %s346_s21, 4  ;;  %s82_s22 = int_to_ptr.vmem [resolvable:$true] %s81_s22 }
   0xf   : > { %p204_p11 = pneg %p68_p10  ;;  %94 = sbr.rel (%p68_p10) target bundleno = 37 (0x25), region = 24 }
  0x11   : > { %p205_p12 = pnand %p212_p9, %p204_p11 }
  0x13   : > { %207 = dma.hbm_to_vmem [thread:$0]  (!%p205_p12), %s80_s20, 128, %s82_s22, [#allocation3]  }
  0x14   : > { %323 = dma.done.wait (%p212_p9), [#allocation3], 128  }
  0x15   : > { %325 = vsyncadd (%p212_p9), [#allocation3], 4294967168  ;;  %s107_s23 = sand.u32 1, %s336_s7   ;;  %s195_s24 = sshll.u32 %s378_s10, 3  ;;  %v110_v0 = vld [vmem:[#allocation2] sm:$0xff] }
  0x16   : > { %s193_s25 = sshll.u32 %s107_s23, 3  ;;  %s124_s28 = scalar_lea.hbm %s442_s1, %s195_s24  ;;  %v111_v1 = vadd.f32 1.0, %v110_v0 }
  0x17   : > { %s109_s29 = scalar_lea.vmem [#allocation5], %s193_s25  ;;  %s128_s2 = sshll.u32 %s124_s28, 4  ;;  %s129_s2 = int_to_ptr.hbm [resolvable:$true] %s128_s2 }
  0x18   : > { %s126_s30 = sshll.u32 %s109_s29, 4  ;;  %112 = vst [vmem:[%s109_s29] sm:$0xff] %v111_v1  ;;  %s114_s3 = scalar_lea.sflag [#allocation4], %s107_s23  ;;  %s127_s30 = int_to_ptr.vmem [resolvable:$true] %s126_s30 }
  0x19   : > { %s292_s4 = sshra.s32 %s129_s2, 4  ;;  %s298_s13 = scalar_lea.hbm %s442_s1, 16  ;;  %s293_s4 = int_to_ptr.hbm [resolvable:$true] %s292_s4 }
  0x1a   : > { %s294_s5 = scalar_lea.hbm %s293_s4, 8  ;;  %p299_p2 = scmp.lt.s32.totalorder %s293_s4, %s442_s1 }
  0x1b   : > { %p295_p13 = scmp.ne.s32.totalorder %s293_s4, %s294_s5  ;;  %p300_p3 = scmp.lt.s32.totalorder %s298_s13, %s294_s5 }
  0x1d   : > { %p296_p0 = pnand %p295_p13, %p395_p5  ;;  %p301_p4 = por %p300_p3, %p299_p2 }
  0x1f   : > { %p297_p1 = pneg %p296_p0 }
  0x21   : > { %p302_p7 = pnand %p301_p4, %p297_p1 }
  0x23   : > { %305 = shalt.err (!%p302_p7)
}
  0x24   : > { %202 = dma.vmem_to_hbm [thread:$0]  (%p395_p5), %s127_s30, 128, %s129_s2, %s114_s3  }
  0x25 PF: > { %p214_p8 = scmp.ge.s32.totalorder %s344_s9, 2  ;;  %s140_s19 = sand.u32 1, %s332_s6  }
  0x26   : > { %s141_s20 = scalar_lea.sflag [#allocation4], %s140_s19 }
  0x27   : > { %p209_p9 = pnand %p214_p8, %p399_p6 }
  0x29   : > { %p210_p10 = pneg %p209_p9 }
  0x2b   : > { %327 = dma.done.wait (%p210_p10), %s141_s20, 128  }
  0x2c   : > { %329 = vsyncadd (%p210_p10), %s141_s20, 4294967168  ;;  %p12_p11 = scmp.ge.s32.totalorder %s382_s12, 4   ;;  %s445_s6 = smov %s336_s7 }
  0x2d   : > { %s446_s7 = smov %s340_s8  ;;  %s447_s8 = smov %s393_s15 }
  0x2e   : > { %s448_s9 = smov %s382_s12  ;;  %14 = sbr.rel (!%p12_p11) target bundleno = 4 (0x4), region = 61 }
  0x33   :  { %147 = vsyncpa [#allocation3], 1 }
  0x34   :  { %149 = vsyncpa [#allocation3 + $0x1], 1 }
  0x35   :  { %150 = vsyncpa [#allocation4], 1 }
  0x36   :  { %152 = vsyncpa [#allocation4 + $0x1], 1 }

// kernel: _lambda_.4
= control target key start
LH: loop header
LB: loop body
LE: loop exit
PB: predicated region body
PF: predicated region fallthrough
CT: control target
= control target key end

     0   :  { %s1523_s0 = inlined_call_operand.vmem [shape: bf16[2,8,32], index: 0, kind: input, shape index: {}]   ;;  %s1524_s1 = inlined_call_operand.vmem [shape: bf16[2,8,8], index: 1, kind: input, shape index: {}]   ;;  %s1525_s2 = inlined_call_operand.vmem [shape: bf16[32,96], index: 2, kind: input, shape index: {}]   ;;  %s1526_s3 = inlined_call_operand.vmem [shape: f32[1,96], index: 3, kind: input, shape index: {}]   ;;  %s1527_s4 = inlined_call_operand.vmem [shape: bf16[32,32], index: 4, kind: input, shape index: {}]   ;;  %s1528_s5 = inlined_call_operand.vmem [shape: f32[1,32], index: 5, kind: input, shape index: {}]   ;;  %s1529_s6 = inlined_call_operand.vmem [shape: f32[1,32], index: 6, kind: input, shape index: {}]   ;;  %s1530_s7 = inlined_call_operand.vmem [shape: f32[1,32], index: 7, kind: input, shape index: {}]   ;;  %s1531_s8 = inlined_call_operand.vmem [shape: bf16[32,64], index: 8, kind: input, shape index: {}]   ;;  %s1532_s9 = inlined_call_operand.vmem [shape: f32[1,64], index: 9, kind: input, shape index: {}]   ;;  %s1533_s10 = inlined_call_operand.vmem [shape: bf16[64,32], index: 10, kind: input, shape index: {}]   ;;  %s1534_s11 = inlined_call_operand.vmem [shape: f32[1,32], index: 11, kind: input, shape index: {}]   ;;  %s1535_s12 = inlined_call_operand.vmem [shape: f32[1,32], index: 12, kind: input, shape index: {}]   ;;  %s1536_s13 = inlined_call_operand.vmem [shape: f32[1,32], index: 13, kind: input, shape index: {}]   ;;  %s1537_s14 = inlined_call_operand.vmem [shape: bf16[2,8,32], index: 14, kind: output, shape index: {0}]   ;;  %s1538_s15 = inlined_call_operand.hbm [shape: bf16[2,4,8,8], index: 15, kind: output, shape index: {1}]  }
   0x1   :  { %v1076_v0 = vld [vmem:[%s1525_s2 + $0x8] sm:$0xff]  ;;  %v1075_v1 = vld [vmem:[%s1525_s2] sm:$0xff] }
   0x2   :  { %90 = vmatpush.bf16.msra.mxu0 %v1076_v0 }
   0x3   :  { %21 = vsyncpa [#allocation3], 0  ;;  %v1074_v2 = vld [vmem:[%s1523_s0] sm:$0xff]  ;;  %vm80_vm0 = vcmask 261120   ;;  %s1181_s2 = smov 96   ;;  %s1182_s26 = smov 88  }
   0x4   :  { %v1101_v3 = vld [vmem:[%s1526_s3] ss:$0 sm:$0xff]  ;;  %s1183_s3 = smov 120   ;;  %s1184_s27 = smov 56   ;;  %vm107_vm1 = vcmask 64512   ;;  %vm189_vm2 = vcmask 1043456  }
   0x5   :  { %s1185_s28 = smov 80   ;;  %v1084_v28 = vld [vmem:[%s1524_s1] sm:$0xff]   ;;  %s1186_s1 = smov 112   ;;  %vm181_vm3 = vcmask 60416  }
   0x6   :  { %91 = vmatpush.bf16.msra.mxu0 %v1075_v1  ;;  %v1315_v29 = vunpack.c.l.bf16 %v1084_v28  ;;  %v1325_v55 = vunpack.c.h.bf16 %v1084_v28  ;;  %s1187_s16 = smov 64   ;;  %s1188_s17 = smov 48  }
   0x7   :  { %s1189_s18 = smov 72   ;;  %s1190_s19 = smov 104  }
   0x8   :  { %s1191_s24 = smov 40   ;;  %s999_s29 = sshll.u32 %s1538_s15, 4  ;;  %s1000_s29 = int_to_ptr.hbm [resolvable:$true] %s999_s29 }
   0x9   :  { %1025 = vmatmul.msk.bf16.vlgmr.msra.gmra.mxu0 %vm80_vm0, %v1074_v2  ;;  %s1194_s30 = smov 4  }
  0x86   :  { %v93_v4 = vpop.f32.mrf.mxu0 }
  0x87   :  { %v94_v5 = vadd.f32 %v1101_v3, %v93_v4 }
  0x89   :  { %v100_v6 = vpack.c.bf16 %v94_v5, %v94_v5 }
  0x8b   :  { %v103_v7 = vunpack.c.l.b16 %v100_v6 }
  0x8d   :  { %v1288_v8 = vpack.c.b16 %v103_v7, %v103_v7 }
  0x8e   :  { %v95_v9 = vpop.f32.mrf.mxu0 }
  0x8f   :  { %v96_v10 = vadd.f32 %v1101_v3, %v95_v9  ;;  %105 = vrot.lane.b32.xlu1 %v1288_v8, %s1181_s2  ;;  %231 = vrot.lane.b32.xlu0 %v1288_v8, %s1182_s26 }
  0x91   :  { %v101_v11 = vpack.c.bf16 %v96_v10, %v96_v10 }
  0x93   :  { %v128_v12 = vunpack.c.l.b16 %v101_v11 }
  0x95   :  { %v1292_v13 = vpack.c.b16 %v128_v12, %v128_v12 }
  0x97   :  { %254 = vrot.lane.b32.xlu2 %v1292_v13, %s1182_s26  ;;  %130 = vrot.lane.b32.xlu1 %v1292_v13, %s1181_s2 }
  0x98   :  { %229 = vrot.lane.b32.xlu0 %v1288_v8, %s1183_s3 }
  0x9f   :  { %252 = vrot.lane.b32.xlu2 %v1292_v13, %s1183_s3 }
  0xa7   :  { %306 = vrot.lane.b32.xlu2 %v1288_v8, %s1184_s27 }
  0xaf   :  { %392 = vrot.lane.b32.xlu2 %v1288_v8, %s1185_s28 }
  0xf1   :  { %v255_v14 = vpop.permute.xlu2 %254 }
  0xf2   :  { %v260_v20 = vsel %vm107_vm1, %v255_v14, 0 }
  0xf9   :  { %v253_v15 = vpop.permute.xlu2 %252 }
 0x101   :  { %v106_v16 = vpop.permute.xlu1 %105  ;;  %v232_v17 = vpop.permute.xlu0 %231 }
 0x102   :  { %v112_v18 = vsel %vm107_vm1, %v106_v16, 0  ;;  %v237_v19 = vsel %vm107_vm1, %v232_v17, 0  ;;  %v307_v21 = vpop.permute.xlu2 %306 }
 0x103   :  { %121 = vmatpush.bf16.xpose.msra.mxu1 %v112_v18  ;;  %246 = vmatpush.bf16.xpose.msrb.mxu0 %v237_v19  ;;  %v312_v25 = vsel %vm189_vm2, %v307_v21, 0 }
 0x109   :  { %v131_v22 = vpop.permute.xlu1 %130 }
 0x10a   :  { %v230_v23 = vpop.permute.xlu0 %229  ;;  %1026 = vmatmul.msk.bf16.vlgmr.msra.gmra.mxu1 %vm107_vm1, %v100_v6  ;;  %v136_v24 = vsel %vm107_vm1, %v131_v22, 0  ;;  %v393_v26 = vpop.permute.xlu2 %392 }
 0x10b   :  { %269 = vmatpush.bf16.xpose.msrb.mxu1 %v260_v20  ;;  %1030 = vmatmul.msk.bf16.vlgmr.msrb.gmra.mxu0 %vm107_vm1, %v230_v23  ;;  %v398_v27 = vsel %vm107_vm1, %v393_v26, 0 }
 0x10c   :  { %145 = vmatpush.bf16.xpose.msra.mxu2 %v136_v24 }
 0x113   :  { %1027 = vmatmul.msk.bf16.vlgmr.msra.gmra.mxu2 %vm107_vm1, %v101_v11 }
 0x114   :  { %321 = vmatpush.bf16.msrb.mxu2 %v312_v25  ;;  %v348_v25 = vld [vmem:[%s1527_s4 + $0x4] sm:$0xf] }
 0x115   :  { %v354_v26 = vsel %vm189_vm2, %v348_v25, 0 }
 0x116   :  { %363 = vmatpush.bf16.msra.mxu0 %v354_v26 }
 0x118   :  { %407 = vmatpush.bf16.xpose.msra.mxu2 %v398_v27 }
 0x11a   :  { %1031 = vmatmul.msk.bf16.vlgmr.msrb.gmra.mxu1 %vm107_vm1, %v253_v15 }
 0x187   :  { %v123_v30 = vpop.f32.mrf.mxu1 }
 0x188   :  { %v151_v31 = vmul.f32 0.35355338, %v123_v30  ;;  %v248_v32 = vpop.f32.mrf.mxu0 }
 0x189   :  { %v275_v33 = vmul.f32 0.35355338, %v248_v32 }
 0x18a   :  { %v155_v34 = vadd.f32 %v1315_v29, %v151_v31 }
 0x18b   :  { %v277_v35 = vadd.f32 %v1315_v29, %v275_v33 }
 0x18c   :  { %v157_v36 = vsel %vm107_vm1, %v155_v34, -inf }
 0x18d   :  { %158 = vmax.xlane.f32.xlu2 %v157_v36  ;;  %v279_v37 = vsel %vm107_vm1, %v277_v35, -inf }
 0x18e   :  { %280 = vmax.xlane.f32.xlu0 %v279_v37 }
 0x18f   :  { %v125_v38 = vpop.f32.mrf.mxu1 }
 0x190   :  { %v250_v39 = vpop.f32.mrf.mxu0 }
 0x196   :  { %v147_v40 = vpop.f32.mrf.mxu2 }
 0x197   :  { %v271_v41 = vpop.f32.mrf.mxu1  ;;  %v152_v53 = vmul.f32 0.35355338, %v147_v40 }
 0x198   :  { %v276_v57 = vmul.f32 0.35355338, %v271_v41 }
 0x199   :  { %v156_v56 = vadd.f32 %v1325_v55, %v152_v53 }
 0x19a   :  { %v278_v59 = vadd.f32 %v1325_v55, %v276_v57 }
 0x19b   :  { %v160_v58 = vsel %vm107_vm1, %v156_v56, -inf }
 0x19c   :  { %v282_v60 = vsel %vm107_vm1, %v278_v59, -inf }
 0x19e   :  { %v149_v42 = vpop.f32.mrf.mxu2 }
 0x19f   :  { %v273_v43 = vpop.f32.mrf.mxu1 }
 0x1a2   :  { %390 = vrot.lane.b32.xlu0 %v1288_v8, %s1186_s1 }
 0x200   :  { %v159_v44 = vpop.xlane.xlu2 %158 }
 0x201   :  { %v163_v45 = vsub.f32 %v155_v34, %v159_v44  ;;  %v281_v46 = vpop.xlane.xlu0 %280 }
 0x202   :  { %v285_v47 = vsub.f32 %v277_v35, %v281_v46 }
 0x203   :  { %v165_v48 = vmul.f32 1.442695, %v163_v45 }
 0x204   :  { %v287_v49 = vmul.f32 1.442695, %v285_v47 }
 0x205   :  { %1109 = vpow2.f32 %v165_v48 }
 0x206   :  { %1111 = vpow2.f32 %v287_v49  ;;  %v227_v49 = vld [vmem:[%s1527_s4] sm:$0xf] }
 0x20b   :  { %v1110_v50 = vpop.eup %1109 }
 0x20c   :  { %v1112_v51 = vpop.eup %1111  ;;  %v169_v52 = vsel %vm107_vm1, %v1110_v50, 0.0 }
 0x20d   :  { %170 = vadd.xlane.f32.xlu2 %v169_v52  ;;  %v291_v54 = vsel %vm107_vm1, %v1112_v51, 0.0 }
 0x20e   :  { %292 = vadd.xlane.f32.xlu1 %v291_v54 }
 0x214   :  { %v391_v16 = vpop.permute.xlu0 %390 }
 0x216   :  { %161 = vmax.xlane.f32.xlu1 %v160_v58 }
 0x21e   :  { %283 = vmax.xlane.f32.xlu1 %v282_v60 }
 0x225   :  { %206 = vrot.lane.b32.xlu2 %v1292_v13, %s1187_s16 }
 0x22d   :  { %327 = vrot.lane.b32.xlu2 %v1292_v13, %s1184_s27 }
 0x235   :  { %415 = vrot.lane.b32.xlu2 %v1292_v13, %s1185_s28 }
 0x237   :  { %184 = vrot.lane.b32.xlu1 %v1288_v8, %s1187_s16 }
 0x280   :  { %v171_v61 = vpop.xlane.xlu2 %170 }
 0x281   :  { %1113 = vrcp.f32 %v171_v61  ;;  %v293_v62 = vpop.xlane.xlu1 %292 }
 0x282   :  { %1115 = vrcp.f32 %v293_v62 }
 0x287   :  { %v1114_v63 = vpop.eup %1113 }
 0x288   :  { %v1116_v0 = vpop.eup %1115  ;;  %v177_v1 = vmul.f32 %v1114_v63, %v1110_v50  ;;  %v207_v18 = vpop.permute.xlu2 %206  ;;  %v374_v50 = vsel %vm189_vm2, %v227_v49, 0 }
 0x289   :  { %v299_v2 = vmul.f32 %v1116_v0, %v1112_v51  ;;  %v162_v3 = vpop.xlane.xlu1 %161  ;;  %v212_v22 = vsel %vm189_vm2, %v207_v18, 0  ;;  %383 = vmatpush.bf16.msra.mxu1 %v374_v50 }
 0x28a   :  { %v164_v4 = vsub.f32 %v156_v56, %v162_v3  ;;  %v179_v5 = vpack.c.bf16 %v177_v1, %v177_v1 }
 0x28b   :  { %v301_v6 = vpack.c.bf16 %v299_v2, %v299_v2 }
 0x28c   :  { %v167_v7 = vmul.f32 1.442695, %v164_v4  ;;  %182 = vst.msk [vmem:[#allocation2] sm:$0xf] %vm181_vm3, %v179_v5 }
 0x28d   :  { %304 = vst.msk [vmem:[#allocation2 + $0x4] sm:$0xf] %vm181_vm3, %v301_v6  ;;  %1032 = vmatmul.msk.bf16.vlgmr.msrb.gmra.mxu2 %vm107_vm1, %v301_v6 }
 0x28e   :  { %1117 = vpow2.f32 %v167_v7 }
 0x290   :  { %v328_v21 = vpop.permute.xlu2 %327 }
 0x291   :  { %v284_v9 = vpop.xlane.xlu1 %283  ;;  %v333_v23 = vsel %vm189_vm2, %v328_v21, 0 }
 0x292   :  { %v286_v10 = vsub.f32 %v278_v59, %v284_v9 }
 0x294   :  { %v1118_v11 = vpop.eup %1117  ;;  %v289_v12 = vmul.f32 1.442695, %v286_v10 }
 0x295   :  { %v172_v14 = vsel %vm107_vm1, %v1118_v11, 0.0 }
 0x296   :  { %1119 = vpow2.f32 %v289_v12  ;;  %173 = vadd.xlane.f32.xlu0 %v172_v14 }
 0x298   :  { %v416_v32 = vpop.permute.xlu2 %415 }
 0x299   :  { %v421_v34 = vsel %vm107_vm1, %v416_v32, 0 }
 0x29c   :  { %v1120_v15 = vpop.eup %1119 }
 0x29d   :  { %1036 = vmatmul.msk.bf16.vlgmr.msra.gmra.mxu2 %vm107_vm1, %v391_v16  ;;  %v294_v17 = vsel %vm107_vm1, %v1120_v15, 0.0 }
 0x29e   :  { %295 = vadd.xlane.f32.xlu1 %v294_v17 }
 0x2a9   :  { %v185_v19 = vpop.permute.xlu1 %184 }
 0x2aa   :  { %413 = vrot.lane.b32.xlu0 %v1292_v13, %s1186_s1  ;;  %v191_v20 = vsel %vm189_vm2, %v185_v19, 0 }
 0x2ab   :  { %200 = vmatpush.bf16.msra.mxu3 %v191_v20 }
 0x2ae   :  { %1028 = vmatmul.msk.bf16.vlgmr.msra.gmra.mxu3 %vm107_vm1, %v179_v5 }
 0x2af   :  { %221 = vmatpush.bf16.msrb.mxu3 %v212_v22 }
 0x2b3   :  { %342 = vmatpush.bf16.msra.mxu3 %v333_v23 }
 0x2b7   :  { %467 = vrot.lane.b32.xlu1 %v1288_v8, %s1188_s17 }
 0x2bf   :  { %558 = vrot.lane.b32.xlu1 %v1292_v13, %s1189_s18 }
 0x2c7   :  { %533 = vrot.lane.b32.xlu1 %v1288_v8, %s1190_s19 }
 0x309   :  { %v174_v24 = vpop.xlane.xlu0 %173 }
 0x30a   :  { %1121 = vrcp.f32 %v174_v24 }
 0x310   :  { %v1122_v27 = vpop.eup %1121  ;;  %v323_v28 = vpop.f32.mrf.mxu2 }
 0x311   :  { %v178_v30 = vmul.f32 %v1122_v27, %v1118_v11  ;;  %v296_v31 = vpop.xlane.xlu1 %295 }
 0x312   :  { %1123 = vrcp.f32 %v296_v31 }
 0x313   :  { %v180_v33 = vpack.c.bf16 %v178_v30, %v178_v30 }
 0x315   :  { %183 = vst.msk [vmem:[#allocation2 + $0x10] sm:$0xf] %vm181_vm3, %v180_v33  ;;  %1029 = vmatmul.msk.bf16.vlgmr.msrb.gmra.mxu3 %vm107_vm1, %v180_v33 }
 0x316   :  { %430 = vmatpush.bf16.xpose.msrb.mxu3 %v421_v34 }
 0x318   :  { %v1124_v35 = vpop.eup %1123  ;;  %v325_v36 = vpop.f32.mrf.mxu2 }
 0x319   :  { %v300_v37 = vmul.f32 %v1124_v35, %v1120_v15 }
 0x31b   :  { %v302_v38 = vpack.c.bf16 %v300_v37, %v300_v37 }
 0x31c   :  { %v414_v47 = vpop.permute.xlu0 %413 }
 0x31d   :  { %305 = vst.msk [vmem:[#allocation2 + $0x14] sm:$0xf] %vm181_vm3, %v302_v38 }
 0x320   :  { %v409_v39 = vpop.f32.mrf.mxu2 }
 0x321   :  { %v436_v40 = vmul.f32 0.35355338, %v409_v39 }
 0x323   :  { %v438_v41 = vadd.f32 %v1315_v29, %v436_v40 }
 0x325   :  { %1033 = vmatmul.msk.bf16.vlgmr.msra.gmra.mxu3 %vm107_vm1, %v302_v38  ;;  %v440_v42 = vsel %vm107_vm1, %v438_v41, -inf }
 0x326   :  { %441 = vmax.xlane.f32.xlu2 %v440_v42 }
 0x328   :  { %v411_v43 = vpop.f32.mrf.mxu2 }
 0x329   :  { %v468_v44 = vpop.permute.xlu1 %467 }
 0x32a   :  { %v473_v45 = vsel %vm189_vm2, %v468_v44, 0 }
 0x32b   :  { %482 = vmatpush.bf16.msrb.mxu0 %v473_v45 }
 0x331   :  { %v202_v46 = vpop.f32.mrf.mxu3  ;;  %v559_v57 = vpop.permute.xlu1 %558 }
 0x332   :  { %v564_v2 = vsel %vm107_vm1, %v559_v57, 0 }
 0x335   :  { %1037 = vmatmul.msk.bf16.vlgmr.msrb.gmra.mxu3 %vm107_vm1, %v414_v47 }
 0x339   :  { %v204_v48 = vpop.f32.mrf.mxu3  ;;  %v534_v0 = vpop.permute.xlu1 %533 }
 0x33a   :  { %v509_v48 = vld [vmem:[%s1527_s4 + $0x8] sm:$0xf] }
 0x33e   :  { %535 = vrot.lane.b32.xlu2 %v1288_v8, %s1189_s18 }
 0x398   :  { %v223_v51 = vpop.f32.mrf.mxu3 }
 0x399   :  { %v228_v52 = vpack.c.bf16 %v223_v51, %v202_v46  ;;  %v442_v53 = vpop.xlane.xlu2 %441 }
 0x39a   :  { %v446_v54 = vsub.f32 %v438_v41, %v442_v53 }
 0x39b   :  { %1035 = vmatmul.msk.bf16.vlgmr.msra.gmra.mxu1 %vm107_vm1, %v228_v52 }
 0x39c   :  { %v448_v56 = vmul.f32 1.442695, %v446_v54 }
 0x39e   :  { %1125 = vpow2.f32 %v448_v56 }
 0x3a0   :  { %v225_v58 = vpop.f32.mrf.mxu3 }
 0x3a1   :  { %v536_v59 = vpop.permute.xlu2 %535 }
 0x3a2   :  { %v541_v60 = vsel %vm107_vm1, %v536_v59, 0 }
 0x3a3   :  { %550 = vmatpush.bf16.xpose.msra.mxu3 %v541_v60 }
 0x3a4   :  { %v1126_v61 = vpop.eup %1125 }
 0x3a5   :  { %v452_v62 = vsel %vm107_vm1, %v1126_v61, 0.0 }
 0x3a6   :  { %453 = vadd.xlane.f32.xlu0 %v452_v62 }
 0x3a8   :  { %v344_v63 = vpop.f32.mrf.mxu3 }
 0x3a9   :  { %v349_v1 = vpack.c.bf16 %v344_v63, %v323_v28 }
 0x3aa   :  { %1041 = vmatmul.msk.bf16.vlgmr.msra.gmra.mxu3 %vm107_vm1, %v534_v0 }
 0x3ab   :  { %1034 = vmatmul.msk.bf16.vlgmr.msra.gmra.mxu0 %vm107_vm1, %v349_v1 }
 0x3ac   :  { %573 = vmatpush.bf16.xpose.msra.mxu0 %v564_v2 }
 0x3b0   :  { %v346_v3 = vpop.f32.mrf.mxu3 }
 0x3b8   :  { %v432_v4 = vpop.f32.mrf.mxu3 }
 0x3b9   :  { %v437_v5 = vmul.f32 0.35355338, %v432_v4 }
 0x3ba   :  { %556 = vrot.lane.b32.xlu0 %v1292_v13, %s1190_s19 }
 0x3bb   :  { %v439_v6 = vadd.f32 %v1325_v55, %v437_v5 }
 0x3bd   :  { %v443_v7 = vsel %vm107_vm1, %v439_v6, -inf }
 0x3be   :  { %444 = vmax.xlane.f32.xlu1 %v443_v7 }
 0x3c0   :  { %v434_v9 = vpop.f32.mrf.mxu3 }
 0x3c2   :  { %488 = vrot.lane.b32.xlu0 %v1292_v13, %s1188_s17 }
 0x418   :  { %v385_v15 = vpop.f32.mrf.mxu1 }
 0x419   :  { %v454_v10 = vpop.xlane.xlu0 %453 }
 0x41a   :  { %1127 = vrcp.f32 %v454_v10 }
 0x420   :  { %v1128_v11 = vpop.eup %1127  ;;  %v387_v57 = vpop.f32.mrf.mxu1 }
 0x421   :  { %v460_v12 = vmul.f32 %v1128_v11, %v1126_v61 }
 0x423   :  { %v462_v14 = vpack.c.bf16 %v460_v12, %v460_v12 }
 0x425   :  { %465 = vst.msk [vmem:[#allocation2 + $0x8] sm:$0xf] %vm181_vm3, %v462_v14  ;;  %1038 = vmatmul.msk.bf16.vlgmr.msrb.gmra.mxu0 %vm107_vm1, %v462_v14 }
 0x428   :  { %v365_v16 = vpop.f32.mrf.mxu0 }
 0x429   :  { %v1390_v17 = vadd.f32 %v385_v15, %v365_v16 }
 0x42c   :  { %v557_v18 = vpop.permute.xlu0 %556 }
 0x42d   :  { %v552_v19 = vpop.f32.mrf.mxu3 }
 0x42e   :  { %v579_v20 = vmul.f32 0.35355338, %v552_v19 }
 0x430   :  { %v581_v21 = vadd.f32 %v1315_v29, %v579_v20  ;;  %v1397_v32 = vpop.f32.mrf.mxu0 }
 0x431   :  { %v445_v22 = vpop.xlane.xlu1 %444 }
 0x432   :  { %v447_v23 = vsub.f32 %v439_v6, %v445_v22  ;;  %v583_v24 = vsel %vm107_vm1, %v581_v21, -inf }
 0x433   :  { %584 = vmax.xlane.f32.xlu1 %v583_v24 }
 0x434   :  { %v450_v25 = vmul.f32 1.442695, %v447_v23  ;;  %v489_v26 = vpop.permute.xlu0 %488  ;;  %v388_v23 = vadd.f32 %v387_v57, %v1397_v32 }
 0x435   :  { %v494_v27 = vsel %vm189_vm2, %v489_v26, 0  ;;  %v554_v28 = vpop.f32.mrf.mxu3  ;;  %1042 = vmatmul.msk.bf16.vlgmr.msra.gmra.mxu0 %vm107_vm1, %v557_v18  ;;  %v51_v18 = vld [vmem:[%s1523_s0] sm:$0xff]  }
 0x436   :  { %1129 = vpow2.f32 %v450_v25  ;;  %503 = vmatpush.bf16.msrb.mxu1 %v494_v27 }
 0x43c   :  { %v1130_v30 = vpop.eup %1129 }
 0x43d   :  { %v455_v31 = vsel %vm107_vm1, %v1130_v30, 0.0 }
 0x43e   :  { %456 = vadd.xlane.f32.xlu2 %v455_v31 }
 0x4a2   :  { %v484_v29 = vpop.f32.mrf.mxu0 }
 0x4a6   :  { %v585_v33 = vpop.xlane.xlu1 %584 }
 0x4a7   :  { %v589_v34 = vsub.f32 %v581_v21, %v585_v33  ;;  %v53_v21 = vunpack.c.l.bf16 %v51_v18 }
 0x4a9   :  { %v591_v35 = vmul.f32 1.442695, %v589_v34  ;;  %v1192_v34 = vmov 32.0  }
 0x4aa   :  { %v486_v36 = vpop.f32.mrf.mxu0 }
 0x4ab   :  { %1131 = vpow2.f32 %v591_v35 }
 0x4b1   :  { %v1132_v37 = vpop.eup %1131  ;;  %v457_v38 = vpop.xlane.xlu2 %456 }
 0x4b2   :  { %1133 = vrcp.f32 %v457_v38  ;;  %v575_v39 = vpop.f32.mrf.mxu0  ;;  %v595_v40 = vsel %vm107_vm1, %v1132_v37, 0.0 }
 0x4b3   :  { %v580_v41 = vmul.f32 0.35355338, %v575_v39  ;;  %596 = vadd.xlane.f32.xlu1 %v595_v40 }
 0x4b5   :  { %v582_v42 = vadd.f32 %v1325_v55, %v580_v41  ;;  %v515_v55 = vsel %vm189_vm2, %v509_v48, 0 }
 0x4b6   :  { %524 = vmatpush.bf16.msrb.mxu2 %v515_v55 }
 0x4b7   :  { %v586_v43 = vsel %vm107_vm1, %v582_v42, -inf }
 0x4b8   :  { %v1134_v44 = vpop.eup %1133  ;;  %587 = vmax.xlane.f32.xlu0 %v586_v43 }
 0x4b9   :  { %v461_v45 = vmul.f32 %v1134_v44, %v1130_v30  ;;  %v54_v30 = vunpack.c.h.bf16 %v51_v18  ;;  %v1105_v18 = vld [vmem:[%s1532_s9] ss:$0 sm:$0xff] }
 0x4ba   :  { %v577_v46 = vpop.f32.mrf.mxu0 }
 0x4bb   :  { %v463_v47 = vpack.c.bf16 %v461_v45, %v461_v45 }
 0x4bd   :  { %466 = vst.msk [vmem:[#allocation2 + $0x18] sm:$0xf] %vm181_vm3, %v463_v47  ;;  %1039 = vmatmul.msk.bf16.vlgmr.msrb.gmra.mxu1 %vm107_vm1, %v463_v47 }
 0x4cc   :  { %610 = vrot.lane.b32.xlu1 %v1288_v8, %s1191_s24 }
 0x526   :  { %v597_v49 = vpop.xlane.xlu1 %596 }
 0x527   :  { %1135 = vrcp.f32 %v597_v49  ;;  %v1078_v49 = vld [vmem:[%s1531_s8 + $0x8] sm:$0xff] }
 0x528   :  { %777 = vmatpush.bf16.msrb.mxu0 %v1078_v49 }
 0x52b   :  { %v588_v50 = vpop.xlane.xlu0 %587 }
 0x52c   :  { %v590_v51 = vsub.f32 %v582_v42, %v588_v50 }
 0x52d   :  { %v1136_v52 = vpop.eup %1135 }
 0x52e   :  { %v603_v53 = vmul.f32 %v1136_v52, %v1132_v37  ;;  %v593_v54 = vmul.f32 1.442695, %v590_v51 }
 0x530   :  { %v605_v56 = vpack.c.bf16 %v603_v53, %v603_v53  ;;  %1137 = vpow2.f32 %v593_v54  ;;  %v1077_v53 = vld [vmem:[%s1531_s8] sm:$0xff] }
 0x531   :  { %778 = vmatpush.bf16.msrb.mxu0 %v1077_v53 }
 0x532   :  { %608 = vst.msk [vmem:[#allocation2 + $0xc] sm:$0xf] %vm181_vm3, %v605_v56 }
 0x536   :  { %v1138_v8 = vpop.eup %1137 }
 0x537   :  { %v598_v58 = vsel %vm107_vm1, %v1138_v8, 0.0 }
 0x538   :  { %599 = vadd.xlane.f32.xlu2 %v598_v58 }
 0x53a   :  { %v505_v59 = vpop.f32.mrf.mxu1 }
 0x53b   :  { %v510_v60 = vpack.c.bf16 %v505_v59, %v484_v29 }
 0x53d   :  { %1040 = vmatmul.msk.bf16.vlgmr.msrb.gmra.mxu2 %vm107_vm1, %v510_v60 }
 0x53e   :  { %v611_v61 = vpop.permute.xlu1 %610 }
 0x53f   :  { %v616_v62 = vsel %vm189_vm2, %v611_v61, 0 }
 0x540   :  { %625 = vmatpush.bf16.msra.mxu1 %v616_v62 }
 0x542   :  { %v507_v63 = vpop.f32.mrf.mxu1 }
 0x543   :  { %1043 = vmatmul.msk.bf16.vlgmr.msra.gmra.mxu1 %vm107_vm1, %v605_v56 }
 0x550   :  { %631 = vrot.lane.b32.xlu2 %v1292_v13, %s1191_s24  ;;  %v652_v13 = vld [vmem:[%s1527_s4 + $0xc] sm:$0xf] }
 0x551   :  { %v658_v11 = vsel %vm189_vm2, %v652_v13, 0 }
 0x552   :  { %667 = vmatpush.bf16.msrb.mxu3 %v658_v11 }
 0x5ab   :  { %v600_v0 = vpop.xlane.xlu2 %599 }
 0x5ac   :  { %1139 = vrcp.f32 %v600_v0 }
 0x5ad   :  { %1141 = vrcp.f32 %v1192_v34 }
 0x5b2   :  { %v1140_v1 = vpop.eup %1139 }
 0x5b3   :  { %v604_v2 = vmul.f32 %v1140_v1, %v1138_v8  ;;  %v632_v3 = vpop.permute.xlu2 %631  ;;  %v1142_v35 = vpop.eup %1141 }
 0x5b4   :  { %v637_v4 = vsel %vm189_vm2, %v632_v3, 0  ;;  %v693_v36 = vmul.f32 32.0, %v1142_v35  ;;  %vm697_vm4 = vweird.f32 %v1142_v35 }
 0x5b5   :  { %v606_v5 = vpack.c.bf16 %v604_v2, %v604_v2  ;;  %646 = vmatpush.bf16.msra.mxu2 %v637_v4 }
 0x5b6   :  { %v694_v37 = vsub.f32 1.0, %v693_v36 }
 0x5b7   :  { %609 = vst.msk [vmem:[#allocation2 + $0x1c] sm:$0xf] %vm181_vm3, %v606_v5 }
 0x5b8   :  { %1044 = vmatmul.msk.bf16.vlgmr.msra.gmra.mxu2 %vm107_vm1, %v606_v5  ;;  %v695_v38 = vmul.f32 %v1142_v35, %v694_v37  ;;  %v1103_v5 = vld [vmem:[%s1529_s6] ss:$0 sm:$0xff]  ;;  %v1082_v37 = vld [vmem:[%s1533_s10 + $0x18] sm:$0xff] }
 0x5b9   :  { %918 = vmatpush.bf16.msrb.mxu1 %v1082_v37 }
 0x5ba   :  { %v696_v32 = vadd.f32 %v1142_v35, %v695_v38 }
 0x5bc   :  { %v1433_v39 = vsel %vm697_vm4, %v1142_v35, %v696_v32  ;;  %vm910_vm4 = vcmask 523264  }
 0x5c0   :  { %v526_v6 = vpop.f32.mrf.mxu2  ;;  %v627_v7 = vpop.f32.mrf.mxu1 }
 0x5c1   :  { %v531_v9 = vadd.f32 %v526_v6, %v1390_v17  ;;  %v1102_v17 = vld [vmem:[%s1528_s5] ss:$0 sm:$0xff] }
 0x5c8   :  { %v629_v10 = vpop.f32.mrf.mxu1  ;;  %v528_v12 = vpop.f32.mrf.mxu2 }
 0x5c9   :  { %v532_v25 = vadd.f32 %v528_v12, %v388_v23  ;;  %v1104_v10 = vld [vmem:[%s1530_s7] ss:$0 sm:$0xff] }
 0x63b   :  { %v648_v14 = vpop.f32.mrf.mxu2 }
 0x63c   :  { %v653_v15 = vpack.c.bf16 %v648_v14, %v627_v7 }
 0x63e   :  { %1045 = vmatmul.msk.bf16.vlgmr.msrb.gmra.mxu3 %vm107_vm1, %v653_v15 }
 0x643   :  { %v650_v16 = vpop.f32.mrf.mxu2 }
 0x6c1   :  { %v669_v19 = vpop.f32.mrf.mxu3 }
 0x6c2   :  { %v674_v20 = vadd.f32 %v669_v19, %v531_v9 }
 0x6c4   :  { %v680_v22 = vadd.f32 %v1102_v17, %v674_v20 }
 0x6c6   :  { %v682_v24 = vadd.f32 %v680_v22, %v53_v21 }
 0x6c8   :  { %v686_v26 = vsel %vm80_vm0, %v682_v24, 0.0 }
 0x6c9   :  { %v671_v27 = vpop.f32.mrf.mxu3  ;;  %687 = vadd.xlane.f32.xlu0 %v686_v26 }
 0x6ca   :  { %v675_v28 = vadd.f32 %v671_v27, %v532_v25 }
 0x6cc   :  { %v681_v31 = vadd.f32 %v1102_v17, %v675_v28 }
 0x6ce   :  { %v683_v29 = vadd.f32 %v681_v31, %v54_v30 }
 0x6d0   :  { %v689_v33 = vsel %vm80_vm0, %v683_v29, 0.0 }
 0x6d1   :  { %690 = vadd.xlane.f32.xlu2 %v689_v33 }
 0x73c   :  { %v688_v40 = vpop.xlane.xlu0 %687 }
 0x73d   :  { %v699_v41 = vmul.f32 %v1433_v39, %v688_v40 }
 0x73f   :  { %v701_v42 = vsub.f32 %v682_v24, %v699_v41 }
 0x741   :  { %v703_v43 = vmul.f32 %v701_v42, %v701_v42 }
 0x743   :  { %v705_v44 = vsel %vm80_vm0, %v703_v43, 0.0 }
 0x744   :  { %v691_v45 = vpop.xlane.xlu2 %690  ;;  %706 = vadd.xlane.f32.xlu0 %v705_v44 }
 0x745   :  { %v700_v46 = vmul.f32 %v1433_v39, %v691_v45  ;;  %v1081_v45 = vld [vmem:[%s1533_s10 + $0x10] sm:$0xff] }
 0x746   :  { %919 = vmatpush.bf16.msrb.mxu1 %v1081_v45 }
 0x747   :  { %v702_v47 = vsub.f32 %v683_v29, %v700_v46 }
 0x749   :  { %v704_v48 = vmul.f32 %v702_v47, %v702_v47 }
 0x74b   :  { %v708_v55 = vsel %vm80_vm0, %v704_v48, 0.0 }
 0x74c   :  { %709 = vadd.xlane.f32.xlu1 %v708_v55 }
 0x7b7   :  { %v707_v50 = vpop.xlane.xlu0 %706 }
 0x7b8   :  { %v711_v51 = vmul.f32 %v707_v50, %v1433_v39 }
 0x7ba   :  { %v713_v52 = vadd.f32 1e-12, %v711_v51 }
 0x7bc   :  { %1143 = vrsqrt.f32 %v713_v52  ;;  %vm721_vm6 = vweird.f32 %v713_v52 }
 0x7bf   :  { %v710_v54 = vpop.xlane.xlu1 %709 }
 0x7c0   :  { %v712_v56 = vmul.f32 %v710_v54, %v1433_v39 }
 0x7c2   :  { %v1144_v57 = vpop.eup %1143  ;;  %v714_v8 = vadd.f32 1e-12, %v712_v56 }
 0x7c3   :  { %v716_v58 = vmul.f32 %v1144_v57, %v713_v52  ;;  %vm722_vm5 = vweird.f32 %v1144_v57  ;;  %v1080_v52 = vld [vmem:[%s1533_s10 + $0x8] sm:$0xff] }
 0x7c4   :  { %1145 = vrsqrt.f32 %v714_v8  ;;  %vm723_vm7 = vmor %vm721_vm6, %vm722_vm5  ;;  %vm731_vm9 = vweird.f32 %v714_v8  ;;  %920 = vmatpush.bf16.msrb.mxu1 %v1080_v52 }
 0x7c5   :  { %v717_v59 = vmul.f32 %v1144_v57, %v716_v58  ;;  %v1079_v58 = vld [vmem:[%s1533_s10] sm:$0xff] }
 0x7c7   :  { %v718_v60 = vmul.f32 0.5, %v717_v59 }
 0x7c8   :  { %921 = vmatpush.bf16.msrb.mxu1 %v1079_v58 }
 0x7c9   :  { %v719_v61 = vsub.f32 1.5, %v718_v60 }
 0x7ca   :  { %v1146_v62 = vpop.eup %1145 }
 0x7cb   :  { %v720_v63 = vmul.f32 %v1144_v57, %v719_v61  ;;  %v726_v0 = vmul.f32 %v1146_v62, %v714_v8  ;;  %vm732_vm8 = vweird.f32 %v1146_v62 }
 0x7cc   :  { %vm733_vm10 = vmor %vm731_vm9, %vm732_vm8  ;;  %vm988_vm8 = vcmask 257024  }
 0x7cd   :  { %v727_v1 = vmul.f32 %v1146_v62, %v726_v0  ;;  %v724_v2 = vsel %vm723_vm7, %v1144_v57, %v720_v63 }
 0x7ce   :  { %v735_v6 = vmul.f32 %v724_v2, %v701_v42 }
 0x7cf   :  { %v728_v3 = vmul.f32 0.5, %v727_v1 }
 0x7d0   :  { %v740_v13 = vmul.f32 %v1103_v5, %v735_v6 }
 0x7d1   :  { %v729_v4 = vsub.f32 1.5, %v728_v3 }
 0x7d2   :  { %v1453_v14 = vadd.f32 %v1104_v10, %v740_v13 }
 0x7d3   :  { %v730_v7 = vmul.f32 %v1146_v62, %v729_v4 }
 0x7d5   :  { %v734_v9 = vsel %vm733_vm10, %v1146_v62, %v730_v7 }
 0x7d6   :  { %v736_v11 = vmul.f32 %v734_v9, %v702_v47 }
 0x7d8   :  { %v741_v12 = vmul.f32 %v1103_v5, %v736_v11 }
 0x7da   :  { %v1455_v15 = vadd.f32 %v1104_v10, %v741_v12 }
 0x7dc   :  { %v751_v16 = vpack.c.bf16 %v1455_v15, %v1453_v14 }
 0x7de   :  { %1054 = vmatmul.msk.bf16.vlgmr.msrb.gmra.mxu0 %vm80_vm0, %v751_v16 }
 0x85b   :  { %v780_v17 = vpop.f32.mrf.mxu0 }
 0x85c   :  { %v1463_v19 = vadd.f32 %v1105_v18, %v780_v17 }
 0x85e   :  { %v1466_v20 = vmul.f32 0.70710677, %v1463_v19 }
 0x860   :  { %v789_v21 = vmul.f32 %v1466_v20, %v1466_v20 }
 0x862   :  { %v790_v22 = vmin.f32 %v789_v21, 16.0 }
 0x863   :  { %v782_v23 = vpop.f32.mrf.mxu0 }
 0x864   :  { %v791_v24 = vmul.f32 2.1237322e-06, %v790_v22  ;;  %v802_v25 = vmul.f32 3.8918573e-05, %v790_v22  ;;  %v1470_v26 = vadd.f32 %v1105_v18, %v782_v23 }
 0x866   :  { %v792_v27 = vadd.f32 0.00028619796, %v791_v24  ;;  %v803_v28 = vadd.f32 0.001143296, %v802_v25  ;;  %v1473_v30 = vmul.f32 0.70710677, %v1470_v26 }
 0x868   :  { %v804_v31 = vmul.f32 %v803_v28, %v790_v22  ;;  %v829_v29 = vmul.f32 %v1473_v30, %v1473_v30  ;;  %v793_v33 = vmul.f32 %v792_v27, %v790_v22 }
 0x86a   :  { %v805_v34 = vadd.f32 0.014752088, %v804_v31  ;;  %v830_v35 = vmin.f32 %v829_v29, 16.0  ;;  %v794_v40 = vadd.f32 0.0036580483, %v793_v33 }
 0x86c   :  { %v806_v36 = vmul.f32 %v805_v34, %v790_v22  ;;  %v831_v38 = vmul.f32 2.1237322e-06, %v830_v35  ;;  %v842_v32 = vmul.f32 3.8918573e-05, %v830_v35  ;;  %v795_v48 = vmul.f32 %v794_v40, %v790_v22 }
 0x86e   :  { %v807_v41 = vadd.f32 0.112945676, %v806_v36  ;;  %v832_v42 = vadd.f32 0.00028619796, %v831_v38  ;;  %v843_v43 = vadd.f32 0.001143296, %v842_v32 }
 0x86f   :  { %v796_v54 = vadd.f32 0.05243302, %v795_v48 }
 0x870   :  { %v808_v44 = vmul.f32 %v807_v41, %v790_v22  ;;  %v833_v46 = vmul.f32 %v832_v42, %v830_v35  ;;  %v844_v47 = vmul.f32 %v843_v43, %v830_v35  ;;  %v785_v42 = vmul.f32 0.5, %v1463_v19 }
 0x871   :  { %v797_v60 = vmul.f32 %v796_v54, %v790_v22  ;;  %v786_v43 = vmul.f32 0.5, %v1470_v26 }
 0x872   :  { %v809_v55 = vadd.f32 0.4994258, %v808_v44  ;;  %v834_v49 = vadd.f32 0.0036580483, %v833_v46  ;;  %v845_v50 = vadd.f32 0.014752088, %v844_v47 }
 0x873   :  { %v798_v1 = vadd.f32 0.18741608, %v797_v60 }
 0x874   :  { %v810_v51 = vmul.f32 %v809_v55, %v790_v22  ;;  %v846_v53 = vmul.f32 %v845_v50, %v830_v35  ;;  %v835_v57 = vmul.f32 %v834_v49, %v830_v35 }
 0x875   :  { %v799_v6 = vmul.f32 %v798_v1, %v790_v22 }
 0x876   :  { %v811_v56 = vadd.f32 1.0, %v810_v51  ;;  %v847_v8 = vadd.f32 0.112945676, %v846_v53  ;;  %v836_v61 = vadd.f32 0.05243302, %v835_v57 }
 0x877   :  { %v800_v12 = vadd.f32 1.1283791, %v799_v6 }
 0x878   :  { %1147 = vrcp.f32 %v811_v56  ;;  %v848_v59 = vmul.f32 %v847_v8, %v830_v35  ;;  %v837_v3 = vmul.f32 %v836_v61, %v830_v35  ;;  %v823_v9 = vand.u32 2147483648, %v811_v56 }
 0x879   :  { %v821_v13 = vand.u32 2147483647, %v811_v56  ;;  %vm817_vm12 = vweird.f32 %v811_v56  ;;  %v801_v25 = vmul.f32 %v800_v12, %v1466_v20 }
 0x87a   :  { %v849_v62 = vadd.f32 0.4994258, %v848_v59  ;;  %v838_v10 = vadd.f32 0.18741608, %v837_v3  ;;  %v824_v17 = vor.u32 1.1754944e-38, %v823_v9 }
 0x87b   :  { %vm822_vm14 = vcmp.eq.f32.partialorder %v821_v13, 8.507059e+37 }
 0x87c   :  { %v850_v63 = vmul.f32 %v849_v62, %v830_v35  ;;  %v839_v21 = vmul.f32 %v838_v10, %v830_v35 }
 0x87e   :  { %v1148_v0 = vpop.eup %1147  ;;  %v851_v4 = vadd.f32 1.0, %v850_v63  ;;  %v840_v22 = vadd.f32 1.1283791, %v839_v21 }
 0x87f   :  { %v813_v2 = vmul.f32 %v1148_v0, %v811_v56  ;;  %vm818_vm11 = vweird.f32 %v1148_v0 }
 0x880   :  { %1149 = vrcp.f32 %v851_v4  ;;  %vm819_vm13 = vmor %vm817_vm12, %vm818_vm11  ;;  %v863_v28 = vand.u32 2147483648, %v851_v4  ;;  %v861_v33 = vand.u32 2147483647, %v851_v4  ;;  %vm857_vm1 = vweird.f32 %v851_v4 }
 0x881   :  { %v814_v5 = vsub.f32 1.0, %v813_v2  ;;  %v841_v38 = vmul.f32 %v840_v22, %v1473_v30  ;;  %v1106_v30 = vld [vmem:[%s1534_s11] ss:$0 sm:$0xff]  ;;  %s1193_s11 = smov [#allocation2]  }
 0x882   :  { %v864_v36 = vor.u32 1.1754944e-38, %v863_v28  ;;  %vm862_vm3 = vcmp.eq.f32.partialorder %v861_v33, 8.507059e+37  ;;  %s997_s3 = sshll.u32 %s1193_s11, 4  ;;  %s998_s3 = int_to_ptr.vmem [resolvable:$true] %s997_s3 }
 0x883   :  { %v815_v7 = vmul.f32 %v1148_v0, %v814_v5  ;;  %1005 = dma.vmem_to_hbm [thread:$0]  %s998_s3, 512, %s1000_s29, [#allocation3], %s1187_s16, %s1187_s16, %s1194_s30  }
 0x885   :  { %v816_v11 = vadd.f32 %v1148_v0, %v815_v7 }
 0x886   :  { %v1150_v16 = vpop.eup %1149 }
 0x887   :  { %v820_v18 = vsel %vm819_vm13, %v1148_v0, %v816_v11  ;;  %v853_v23 = vmul.f32 %v1150_v16, %v851_v4  ;;  %vm858_vm15 = vweird.f32 %v1150_v16  ;;  %v1107_v11 = vld [vmem:[%s1535_s12] ss:$0 sm:$0xff] }
 0x888   :  { %v825_v24 = vsel %vm822_vm14, %v824_v17, %v820_v18  ;;  %vm859_vm2 = vmor %vm857_vm1, %vm858_vm15 }
 0x889   :  { %v854_v27 = vsub.f32 1.0, %v853_v23  ;;  %v826_v31 = vmul.f32 %v825_v24, %v801_v25 }
 0x88b   :  { %v855_v29 = vmul.f32 %v1150_v16, %v854_v27  ;;  %v1055_v37 = vclamps-f32 %v826_v31, 1.0 }
 0x88d   :  { %v856_v34 = vadd.f32 %v1150_v16, %v855_v29  ;;  %v869_v41 = vadd.f32 1.0, %v1055_v37 }
 0x88f   :  { %v860_v35 = vsel %vm859_vm2, %v1150_v16, %v856_v34  ;;  %v871_v45 = vmul.f32 %v869_v41, %v785_v42 }
 0x890   :  { %v865_v32 = vsel %vm862_vm3, %v864_v36, %v860_v35 }
 0x891   :  { %v866_v40 = vmul.f32 %v865_v32, %v841_v38 }
 0x893   :  { %v1056_v20 = vclamps-f32 %v866_v40, 1.0 }
 0x895   :  { %v870_v44 = vadd.f32 1.0, %v1056_v20 }
 0x897   :  { %v872_v46 = vmul.f32 %v870_v44, %v786_v43 }
 0x899   :  { %v881_v47 = vpack.c.bf16 %v872_v46, %v871_v45 }
 0x89b   :  { %1073 = vmatmul.msk.bf16.vlgmr.msrb.gmra.mxu1 %vm910_vm4, %v881_v47 }
 0x918   :  { %v923_v48 = vpop.f32.mrf.mxu1 }
 0x919   :  { %v924_v55 = vadd.f32 %v1106_v30, %v923_v48 }
 0x91b   :  { %v928_v49 = vadd.f32 %v924_v55, %v1453_v14 }
 0x91d   :  { %v932_v50 = vsel %vm80_vm0, %v928_v49, 0.0 }
 0x91e   :  { %933 = vadd.xlane.f32.xlu0 %v932_v50 }
 0x920   :  { %v925_v19 = vpop.f32.mrf.mxu1 }
 0x921   :  { %v926_v51 = vadd.f32 %v1106_v30, %v925_v19 }
 0x923   :  { %v929_v26 = vadd.f32 %v926_v51, %v1455_v15 }
 0x925   :  { %v935_v52 = vsel %vm80_vm0, %v929_v26, 0.0 }
 0x926   :  { %936 = vadd.xlane.f32.xlu0 %v935_v52 }
 0x991   :  { %v934_v53 = vpop.xlane.xlu0 %933 }
 0x992   :  { %v938_v54 = vmul.f32 %v934_v53, %v1433_v39 }
 0x994   :  { %v940_v56 = vsub.f32 %v928_v49, %v938_v54 }
 0x996   :  { %v942_v57 = vmul.f32 %v940_v56, %v940_v56 }
 0x998   :  { %v944_v8 = vsel %vm80_vm0, %v942_v57, 0.0 }
 0x999   :  { %945 = vadd.xlane.f32.xlu0 %v944_v8  ;;  %v937_v58 = vpop.xlane.xlu0 %936 }
 0x99a   :  { %v939_v14 = vmul.f32 %v937_v58, %v1433_v39 }
 0x99c   :  { %v941_v59 = vsub.f32 %v929_v26, %v939_v14 }
 0x99e   :  { %v943_v60 = vmul.f32 %v941_v59, %v941_v59 }
 0x9a0   :  { %v947_v61 = vsel %vm80_vm0, %v943_v60, 0.0 }
 0x9a1   :  { %948 = vadd.xlane.f32.xlu0 %v947_v61 }
 0xa0c   :  { %v946_v15 = vpop.xlane.xlu0 %945 }
 0xa0d   :  { %v950_v62 = vmul.f32 %v946_v15, %v1433_v39 }
 0xa0f   :  { %v952_v63 = vadd.f32 1e-12, %v950_v62 }
 0xa11   :  { %1151 = vrsqrt.f32 %v952_v63  ;;  %vm960_vm5 = vweird.f32 %v952_v63 }
 0xa14   :  { %v949_v0 = vpop.xlane.xlu0 %948 }
 0xa15   :  { %v951_v1 = vmul.f32 %v949_v0, %v1433_v39  ;;  %v1108_v39 = vld [vmem:[%s1536_s13] ss:$0 sm:$0xff] }
 0xa17   :  { %v1152_v2 = vpop.eup %1151  ;;  %v953_v3 = vadd.f32 1e-12, %v951_v1 }
 0xa18   :  { %v955_v4 = vmul.f32 %v1152_v2, %v952_v63  ;;  %vm961_vm0 = vweird.f32 %v1152_v2 }
 0xa19   :  { %1153 = vrsqrt.f32 %v953_v3  ;;  %vm962_vm6 = vmor %vm960_vm5, %vm961_vm0  ;;  %vm970_vm9 = vweird.f32 %v953_v3 }
 0xa1a   :  { %v956_v5 = vmul.f32 %v1152_v2, %v955_v4 }
 0xa1c   :  { %v957_v6 = vmul.f32 0.5, %v956_v5 }
 0xa1e   :  { %v958_v7 = vsub.f32 1.5, %v957_v6 }
 0xa1f   :  { %v1154_v9 = vpop.eup %1153 }
 0xa20   :  { %v959_v10 = vmul.f32 %v1152_v2, %v958_v7  ;;  %v965_v13 = vmul.f32 %v1154_v9, %v953_v3  ;;  %vm971_vm7 = vweird.f32 %v1154_v9 }
 0xa21   :  { %vm972_vm10 = vmor %vm970_vm9, %vm971_vm7 }
 0xa22   :  { %v963_v12 = vsel %vm962_vm6, %v1152_v2, %v959_v10  ;;  %v966_v16 = vmul.f32 %v1154_v9, %v965_v13 }
 0xa23   :  { %v974_v18 = vmul.f32 %v963_v12, %v940_v56 }
 0xa24   :  { %v967_v17 = vmul.f32 0.5, %v966_v16 }
 0xa25   :  { %v979_v21 = vmul.f32 %v1107_v11, %v974_v18 }
 0xa26   :  { %v968_v23 = vsub.f32 1.5, %v967_v17 }
 0xa27   :  { %v984_v24 = vadd.f32 %v1108_v39, %v979_v21 }
 0xa28   :  { %v969_v25 = vmul.f32 %v1154_v9, %v968_v23 }
 0xa29   :  { %v986_v27 = vpack.c.bf16 %v984_v24, %v984_v24 }
 0xa2a   :  { %v973_v22 = vsel %vm972_vm10, %v1154_v9, %v969_v25 }
 0xa2b   :  { %989 = vst.msk [vmem:[%s1537_s14] sm:$0xf] %vm988_vm8, %v986_v27  ;;  %v975_v28 = vmul.f32 %v973_v22, %v941_v59 }
 0xa2d   :  { %v980_v31 = vmul.f32 %v1107_v11, %v975_v28 }
 0xa2f   :  { %v985_v29 = vadd.f32 %v1108_v39, %v980_v31 }
 0xa31   :  { %v987_v33 = vpack.c.bf16 %v985_v29, %v985_v29 }
 0xa33   :  { %990 = vst.msk [vmem:[%s1537_s14 + $0x4] sm:$0xf] %vm988_vm8, %v987_v33 }
 0xa34   :  { %1179 = dma.done.wait [#allocation3], 512  }
 0xa35   :  { %1180 = vsyncadd [#allocation3], 4294966784 }
 0xa36   :  { %1012 = vsyncpa [#allocation3], 1 }

// kernel: _lambda_.6
= control target key start
LH: loop header
LB: loop body
LE: loop exit
PB: predicated region body
PF: predicated region fallthrough
CT: control target
= control target key end

     0   :  { %s3130_s0 = inlined_call_operand.vmem [shape: bf16[2,8,32], index: 0, kind: input, shape index: {}]   ;;  %s3131_s1 = inlined_call_operand.vmem [shape: bf16[2,8,32], index: 1, kind: input, shape index: {}]   ;;  %s3132_s2 = inlined_call_operand.vmem [shape: bf16[2,8,8], index: 2, kind: input, shape index: {}]   ;;  %s3133_s3 = inlined_call_operand.vmem [shape: bf16[2,8,8], index: 3, kind: input, shape index: {}]   ;;  %s3134_s4 = inlined_call_operand.vmem [shape: bf16[32,96], index: 4, kind: input, shape index: {}]   ;;  %s3135_s5 = inlined_call_operand.vmem [shape: f32[1,96], index: 5, kind: input, shape index: {}]   ;;  %s3136_s6 = inlined_call_operand.vmem [shape: bf16[32,32], index: 6, kind: input, shape index: {}]   ;;  %s3137_s7 = inlined_call_operand.vmem [shape: f32[1,32], index: 7, kind: input, shape index: {}]   ;;  %s3138_s8 = inlined_call_operand.hbm [shape: f32[1,32], index: 8, kind: input, shape index: {}]   ;;  %s3139_s9 = inlined_call_operand.hbm [shape: f32[1,32], index: 9, kind: input, shape index: {}]   ;;  %s3140_s10 = inlined_call_operand.vmem [shape: bf16[32,32], index: 10, kind: input, shape index: {}]   ;;  %s3141_s11 = inlined_call_operand.hbm [shape: f32[1,32], index: 11, kind: input, shape index: {}]   ;;  %s3142_s12 = inlined_call_operand.vmem [shape: bf16[32,64], index: 12, kind: input, shape index: {}]   ;;  %s3143_s13 = inlined_call_operand.hbm [shape: f32[1,64], index: 13, kind: input, shape index: {}]   ;;  %s3144_s14 = inlined_call_operand.vmem [shape: bf16[32,32], index: 14, kind: input, shape index: {}]   ;;  %s3145_s15 = inlined_call_operand.hbm [shape: f32[1,32], index: 15, kind: input, shape index: {}]   ;;  %s3146_s16 = inlined_call_operand.hbm [shape: f32[1,32], index: 16, kind: input, shape index: {}]   ;;  %s3147_s17 = inlined_call_operand.hbm [shape: f32[1,32], index: 17, kind: input, shape index: {}]   ;;  %s3148_s18 = inlined_call_operand.vmem [shape: bf16[32,64], index: 18, kind: input, shape index: {}]   ;;  %s3149_s19 = inlined_call_operand.hbm [shape: f32[1,64], index: 19, kind: input, shape index: {}]   ;;  %s3150_s20 = inlined_call_operand.vmem [shape: bf16[64,32], index: 20, kind: input, shape index: {}]   ;;  %s3151_s21 = inlined_call_operand.hbm [shape: f32[1,32], index: 21, kind: input, shape index: {}]   ;;  %s3152_s22 = inlined_call_operand.hbm [shape: f32[1,32], index: 22, kind: input, shape index: {}]   ;;  %s3153_s23 = inlined_call_operand.hbm [shape: f32[1,32], index: 23, kind: input, shape index: {}]   ;;  %s3154_s24 = inlined_call_operand.vmem [shape: bf16[2,8,32], index: 24, kind: output, shape index: {0}]   ;;  %s3155_s25 = inlined_call_operand.hbm [shape: bf16[2,4,8,8], index: 25, kind: output, shape index: {1}]   ;;  %s3156_s26 = inlined_call_operand.hbm [shape: bf16[2,4,8,8], index: 26, kind: output, shape index: {2}]  }
   0x1   :  { %3161 = sst [smem:[#allocation31_spill]] %s3130_s0 }
   0x2   :  { %3162 = sst [smem:[#allocation32_spill]] %s3131_s1 }
   0x3   :  { %3163 = sst [smem:[#allocation33_spill]] %s3132_s2 }
   0x4   :  { %3164 = sst [smem:[#allocation34_spill]] %s3133_s3 }
   0x5   :  { %3165 = sst [smem:[#allocation35_spill]] %s3134_s4 }
   0x6   :  { %3166 = sst [smem:[#allocation36_spill]] %s3135_s5 }
   0x7   :  { %3167 = sst [smem:[#allocation37_spill]] %s3136_s6 }
   0x8   :  { %3168 = sst [smem:[#allocation38_spill]] %s3137_s7 }
   0x9   :  { %3169 = sst [smem:[#allocation39_spill]] %s3138_s8 }
   0xa   :  { %3170 = sst [smem:[#allocation40_spill]] %s3139_s9 }
   0xb   :  { %3171 = sst [smem:[#allocation41_spill]] %s3140_s10 }
   0xc   :  { %32 = vsyncpa [#allocation3], 0 }
   0xd   :  { %33 = vsyncpa [#allocation6], 0 }
   0xe   :  { %34 = vsyncpa [#allocation9], 0 }
   0xf   :  { %35 = vsyncpa [#allocation12], 0 }
  0x10   :  { %36 = vsyncpa [#allocation15], 0 }
  0x11   :  { %37 = vsyncpa [#allocation18], 0 }
  0x12   :  { %38 = vsyncpa [#allocation4], 0  ;;  %s3172_s7 = sld [smem:[#allocation40_spill]] }
  0x18   :  { %s72_s28 = sshll.u32 %s3172_s7, 4  ;;  %s73_s28 = int_to_ptr.hbm [resolvable:$true] %s72_s28 }
  0x19   :  { %39 = vsyncpa [#allocation22], 0  ;;  %s2517_s8 = smov [#allocation5]   ;;  %s98_s9 = sshll.u32 %s3143_s13, 4  ;;  %s99_s9 = int_to_ptr.hbm [resolvable:$true] %s98_s9 }
  0x1a   :  { %s74_s4 = sshll.u32 %s2517_s8, 4  ;;  %s2518_s30 = smov [#allocation8]   ;;  %s75_s4 = int_to_ptr.vmem [resolvable:$true] %s74_s4 }
  0x1b   :  { %77 = dma.hbm_to_vmem [thread:$0]  %s73_s28, 16, %s75_s4, [#allocation6]  }
  0x1c   :  { %s100_s2 = sshll.u32 %s2518_s30, 4  ;;  %s122_s6 = sshll.u32 %s3146_s16, 4  ;;  %s101_s2 = int_to_ptr.vmem [resolvable:$true] %s100_s2  ;;  %s123_s6 = int_to_ptr.hbm [resolvable:$true] %s122_s6 }
  0x1d   :  { %103 = dma.hbm_to_vmem [thread:$0]  %s99_s9, 16, %s101_s2, [#allocation9]  }
  0x1e   :  { %s146_s3 = sshll.u32 %s3149_s19, 4  ;;  %s2519_s7 = smov [#allocation11]   ;;  %s147_s3 = int_to_ptr.hbm [resolvable:$true] %s146_s3 }
  0x1f   :  { %s124_s8 = sshll.u32 %s2519_s7, 4  ;;  %s2520_s13 = smov [#allocation14]   ;;  %s125_s8 = int_to_ptr.vmem [resolvable:$true] %s124_s8 }
  0x20   :  { %127 = dma.hbm_to_vmem [thread:$0]  %s123_s6, 16, %s125_s8, [#allocation12]  }
  0x21   :  { %s148_s28 = sshll.u32 %s2520_s13, 4  ;;  %s170_s0 = sshll.u32 %s3152_s22, 4  ;;  %s149_s28 = int_to_ptr.vmem [resolvable:$true] %s148_s28  ;;  %s171_s0 = int_to_ptr.hbm [resolvable:$true] %s170_s0 }
  0x22   :  { %151 = dma.hbm_to_vmem [thread:$0]  %s147_s3, 16, %s149_s28, [#allocation15]  }
  0x23   :  { %s3173_s30 = sld [smem:[#allocation39_spill]]  ;;  %s2521_s5 = smov [#allocation17]  }
  0x24   :  { %s172_s19 = sshll.u32 %s2521_s5, 4  ;;  %s2522_s10 = smov [#allocation2]   ;;  %s173_s19 = int_to_ptr.vmem [resolvable:$true] %s172_s19 }
  0x25   :  { %175 = dma.hbm_to_vmem [thread:$0]  %s171_s0, 16, %s173_s19, [#allocation18]  }
  0x26   :  { %s63_s6 = sshll.u32 %s2522_s10, 4  ;;  %s85_s7 = sshll.u32 %s3141_s11, 4  ;;  %s64_s6 = int_to_ptr.vmem [resolvable:$true] %s63_s6  ;;  %s86_s7 = int_to_ptr.hbm [resolvable:$true] %s85_s7 }
  0x27   :  { %s111_s8 = sshll.u32 %s3145_s15, 4  ;;  %s2523_s13 = smov [#allocation7]   ;;  %s112_s8 = int_to_ptr.hbm [resolvable:$true] %s111_s8 }
  0x28   :  { %s87_s28 = sshll.u32 %s2523_s13, 4  ;;  %s2524_s4 = smov [#allocation10]   ;;  %s88_s28 = int_to_ptr.vmem [resolvable:$true] %s87_s28 }
  0x29   :  { %s61_s2 = sshll.u32 %s3173_s30, 4  ;;  %s113_s29 = sshll.u32 %s2524_s4, 4  ;;  %s62_s2 = int_to_ptr.hbm [resolvable:$true] %s61_s2  ;;  %s114_s29 = int_to_ptr.vmem [resolvable:$true] %s113_s29 }
  0x2a   :  { %66 = dma.hbm_to_vmem [thread:$0]  %s62_s2, 16, %s64_s6, [#allocation3]  }
  0x2b   :  { %90 = dma.hbm_to_vmem [thread:$0]  %s86_s7, 16, %s88_s28, [#allocation6]  }
  0x2c   :  { %s133_s9 = sshll.u32 %s3147_s17, 4  ;;  %s159_s2 = sshll.u32 %s3151_s21, 4  ;;  %s134_s9 = int_to_ptr.hbm [resolvable:$true] %s133_s9  ;;  %s160_s2 = int_to_ptr.hbm [resolvable:$true] %s159_s2 }
  0x2d   :  { %116 = dma.hbm_to_vmem [thread:$0]  %s112_s8, 16, %s114_s29, [#allocation9]  }
  0x2e   :  { %s2525_s5 = smov [#allocation13]   ;;  %s2526_s19 = smov [#allocation16]  }
  0x2f   :  { %s135_s15 = sshll.u32 %s2525_s5, 4  ;;  %s161_s10 = sshll.u32 %s2526_s19, 4  ;;  %s136_s15 = int_to_ptr.vmem [resolvable:$true] %s135_s15  ;;  %s162_s10 = int_to_ptr.vmem [resolvable:$true] %s161_s10 }
  0x30   :  { %138 = dma.hbm_to_vmem [thread:$0]  %s134_s9, 16, %s136_s15, [#allocation12]  }
  0x31   :  { %s181_s27 = sshll.u32 %s3153_s23, 4  ;;  %s2527_s17 = smov [#allocation19]   ;;  %s182_s27 = int_to_ptr.hbm [resolvable:$true] %s181_s27 }
  0x32   :  { %164 = dma.hbm_to_vmem [thread:$0]  %s160_s2, 16, %s162_s10, [#allocation15]  }
  0x33   :  { %s183_s7 = sshll.u32 %s2527_s17, 4  ;;  %s184_s7 = int_to_ptr.vmem [resolvable:$true] %s183_s7 }
  0x34   :  { %186 = dma.hbm_to_vmem [thread:$0]  %s182_s27, 16, %s184_s7, [#allocation18]  }
  0x35   :  { %2501 = dma.done.wait [#allocation3], 16  }
  0x36   :  { %2502 = vsyncadd [#allocation3], 4294967280 }
  0x37   :  { %2503 = dma.done.wait [#allocation6], 32  }
  0x38   :  { %2504 = vsyncadd [#allocation6], 4294967264 }
  0x39   :  { %2505 = dma.done.wait [#allocation9], 32  }
  0x3a   :  { %2506 = vsyncadd [#allocation9], 4294967264 }
  0x3b   :  { %2507 = dma.done.wait [#allocation12], 32  }
  0x3c   :  { %2508 = vsyncadd [#allocation12], 4294967264 }
  0x3d   :  { %2509 = dma.done.wait [#allocation15], 32  }
  0x3e   :  { %2510 = vsyncadd [#allocation15], 4294967264 }
  0x3f   :  { %2511 = dma.done.wait [#allocation18], 32  }
  0x40   :  { %2512 = vsyncadd [#allocation18], 4294967264  ;;  %s3174_s22 = sld [smem:[#allocation35_spill]]  ;;  %vm261_vm0 = vcmask 261120   ;;  %s2528_s9 = smov 96   ;;  %vm288_vm1 = vcmask 64512  }
  0x41   :  { %s3175_s4 = sld [smem:[#allocation31_spill]]  ;;  %s2529_s11 = smov 88   ;;  %vm370_vm2 = vcmask 1043456   ;;  %vm362_vm3 = vcmask 60416  }
  0x42   :  { %s3176_s16 = sld [smem:[#allocation36_spill]]  ;;  %s2530_s30 = smov 120  }
  0x43   :  { %s2531_s2 = smov 56   ;;  %s2532_s5 = smov 80  }
  0x44   :  { %s3177_s10 = sld [smem:[#allocation33_spill]]  ;;  %s2533_s6 = smov 112  }
  0x45   :  { %s2534_s1 = smov 64   ;;  %s2535_s27 = smov 48  }
  0x46   :  { %v2048_v0 = vld [vmem:[%s3174_s22 + $0x8] sm:$0xff]  ;;  %v2047_v1 = vld [vmem:[%s3174_s22] sm:$0xff]  ;;  %s2536_s17 = smov 72   ;;  %s2537_s7 = smov 104  }
  0x47   :  { %271 = vmatpush.bf16.msra.mxu0 %v2048_v0  ;;  %v2046_v2 = vld [vmem:[%s3175_s4] sm:$0xff]  ;;  %s3178_s22 = sld [smem:[#allocation37_spill]]  ;;  %s2538_s13 = smov 40  }
  0x48   :  { %v2094_v3 = vld [vmem:[%s3176_s16] ss:$0 sm:$0xff]  ;;  %s3181_s0 = sld [smem:[#allocation41_spill]]  ;;  %s2541_s15 = smov [#allocation21]  }
  0x49   :  { %s3182_s19 = sld [smem:[#allocation34_spill]] }
  0x4a   :  { %v2061_v28 = vld [vmem:[%s3177_s10] sm:$0xff]  }
  0x4b   :  { %272 = vmatpush.bf16.msra.mxu0 %v2047_v1  ;;  %v2757_v29 = vunpack.c.l.bf16 %v2061_v28  ;;  %v2767_v55 = vunpack.c.h.bf16 %v2061_v28 }
  0x4e   :  { %1955 = vmatmul.msk.bf16.vlgmr.msra.gmra.mxu0 %vm261_vm0, %v2046_v2 }
  0xcb   :  { %v274_v4 = vpop.f32.mrf.mxu0 }
  0xcc   :  { %v275_v5 = vadd.f32 %v2094_v3, %v274_v4 }
  0xce   :  { %v281_v6 = vpack.c.bf16 %v275_v5, %v275_v5 }
  0xd0   :  { %v284_v7 = vunpack.c.l.b16 %v281_v6 }
  0xd2   :  { %v2724_v8 = vpack.c.b16 %v284_v7, %v284_v7 }
  0xd3   :  { %v276_v9 = vpop.f32.mrf.mxu0 }
  0xd4   :  { %v277_v10 = vadd.f32 %v2094_v3, %v276_v9  ;;  %286 = vrot.lane.b32.xlu1 %v2724_v8, %s2528_s9  ;;  %412 = vrot.lane.b32.xlu0 %v2724_v8, %s2529_s11 }
  0xd6   :  { %v282_v11 = vpack.c.bf16 %v277_v10, %v277_v10 }
  0xd8   :  { %v309_v12 = vunpack.c.l.b16 %v282_v11 }
  0xda   :  { %v2730_v13 = vpack.c.b16 %v309_v12, %v309_v12 }
  0xdc   :  { %435 = vrot.lane.b32.xlu2 %v2730_v13, %s2529_s11  ;;  %311 = vrot.lane.b32.xlu1 %v2730_v13, %s2528_s9 }
  0xdd   :  { %410 = vrot.lane.b32.xlu0 %v2724_v8, %s2530_s30 }
  0xe4   :  { %433 = vrot.lane.b32.xlu2 %v2730_v13, %s2530_s30 }
  0xec   :  { %487 = vrot.lane.b32.xlu2 %v2724_v8, %s2531_s2 }
  0xf4   :  { %573 = vrot.lane.b32.xlu2 %v2724_v8, %s2532_s5 }
 0x136   :  { %v436_v14 = vpop.permute.xlu2 %435 }
 0x137   :  { %v441_v20 = vsel %vm288_vm1, %v436_v14, 0 }
 0x13e   :  { %v434_v15 = vpop.permute.xlu2 %433 }
 0x146   :  { %v287_v16 = vpop.permute.xlu1 %286  ;;  %v413_v17 = vpop.permute.xlu0 %412 }
 0x147   :  { %v293_v18 = vsel %vm288_vm1, %v287_v16, 0  ;;  %v418_v19 = vsel %vm288_vm1, %v413_v17, 0  ;;  %v488_v21 = vpop.permute.xlu2 %487 }
 0x148   :  { %302 = vmatpush.bf16.xpose.msra.mxu1 %v293_v18  ;;  %427 = vmatpush.bf16.xpose.msrb.mxu0 %v418_v19  ;;  %v493_v25 = vsel %vm370_vm2, %v488_v21, 0 }
 0x14e   :  { %v312_v22 = vpop.permute.xlu1 %311 }
 0x14f   :  { %v411_v23 = vpop.permute.xlu0 %410  ;;  %1956 = vmatmul.msk.bf16.vlgmr.msra.gmra.mxu1 %vm288_vm1, %v281_v6  ;;  %v317_v24 = vsel %vm288_vm1, %v312_v22, 0  ;;  %v574_v26 = vpop.permute.xlu2 %573 }
 0x150   :  { %450 = vmatpush.bf16.xpose.msrb.mxu1 %v441_v20  ;;  %1960 = vmatmul.msk.bf16.vlgmr.msrb.gmra.mxu0 %vm288_vm1, %v411_v23  ;;  %v579_v27 = vsel %vm288_vm1, %v574_v26, 0 }
 0x151   :  { %326 = vmatpush.bf16.xpose.msra.mxu2 %v317_v24 }
 0x158   :  { %1957 = vmatmul.msk.bf16.vlgmr.msra.gmra.mxu2 %vm288_vm1, %v282_v11 }
 0x159   :  { %502 = vmatpush.bf16.msrb.mxu2 %v493_v25  ;;  %v529_v25 = vld [vmem:[%s3178_s22 + $0x4] sm:$0xf] }
 0x15a   :  { %v535_v26 = vsel %vm370_vm2, %v529_v25, 0 }
 0x15b   :  { %544 = vmatpush.bf16.msra.mxu0 %v535_v26 }
 0x15d   :  { %588 = vmatpush.bf16.xpose.msra.mxu2 %v579_v27 }
 0x15f   :  { %1961 = vmatmul.msk.bf16.vlgmr.msrb.gmra.mxu1 %vm288_vm1, %v434_v15 }
 0x1cc   :  { %v304_v30 = vpop.f32.mrf.mxu1 }
 0x1cd   :  { %v332_v31 = vmul.f32 0.35355338, %v304_v30  ;;  %v429_v32 = vpop.f32.mrf.mxu0 }
 0x1ce   :  { %v456_v33 = vmul.f32 0.35355338, %v429_v32 }
 0x1cf   :  { %v336_v34 = vadd.f32 %v2757_v29, %v332_v31 }
 0x1d0   :  { %v458_v35 = vadd.f32 %v2757_v29, %v456_v33 }
 0x1d1   :  { %v338_v36 = vsel %vm288_vm1, %v336_v34, -inf }
 0x1d2   :  { %339 = vmax.xlane.f32.xlu2 %v338_v36  ;;  %v460_v37 = vsel %vm288_vm1, %v458_v35, -inf }
 0x1d3   :  { %461 = vmax.xlane.f32.xlu0 %v460_v37 }
 0x1d4   :  { %v306_v38 = vpop.f32.mrf.mxu1 }
 0x1d5   :  { %v431_v39 = vpop.f32.mrf.mxu0 }
 0x1db   :  { %v328_v40 = vpop.f32.mrf.mxu2 }
 0x1dc   :  { %v452_v41 = vpop.f32.mrf.mxu1  ;;  %v333_v53 = vmul.f32 0.35355338, %v328_v40 }
 0x1dd   :  { %v457_v57 = vmul.f32 0.35355338, %v452_v41 }
 0x1de   :  { %v337_v56 = vadd.f32 %v2767_v55, %v333_v53 }
 0x1df   :  { %v459_v59 = vadd.f32 %v2767_v55, %v457_v57 }
 0x1e0   :  { %v341_v58 = vsel %vm288_vm1, %v337_v56, -inf }
 0x1e1   :  { %v463_v60 = vsel %vm288_vm1, %v459_v59, -inf }
 0x1e3   :  { %v330_v42 = vpop.f32.mrf.mxu2 }
 0x1e4   :  { %v454_v43 = vpop.f32.mrf.mxu1 }
 0x1e7   :  { %571 = vrot.lane.b32.xlu0 %v2724_v8, %s2533_s6 }
 0x245   :  { %v340_v44 = vpop.xlane.xlu2 %339 }
 0x246   :  { %v344_v45 = vsub.f32 %v336_v34, %v340_v44  ;;  %v462_v46 = vpop.xlane.xlu0 %461 }
 0x247   :  { %v466_v47 = vsub.f32 %v458_v35, %v462_v46 }
 0x248   :  { %v346_v48 = vmul.f32 1.442695, %v344_v45 }
 0x249   :  { %v468_v49 = vmul.f32 1.442695, %v466_v47 }
 0x24a   :  { %2107 = vpow2.f32 %v346_v48 }
 0x24b   :  { %2109 = vpow2.f32 %v468_v49  ;;  %v408_v49 = vld [vmem:[%s3178_s22] sm:$0xf] }
 0x250   :  { %v2108_v50 = vpop.eup %2107 }
 0x251   :  { %v2110_v51 = vpop.eup %2109  ;;  %v350_v52 = vsel %vm288_vm1, %v2108_v50, 0.0 }
 0x252   :  { %351 = vadd.xlane.f32.xlu2 %v350_v52  ;;  %v472_v54 = vsel %vm288_vm1, %v2110_v51, 0.0 }
 0x253   :  { %473 = vadd.xlane.f32.xlu1 %v472_v54 }
 0x259   :  { %v572_v16 = vpop.permute.xlu0 %571 }
 0x25b   :  { %342 = vmax.xlane.f32.xlu1 %v341_v58 }
 0x263   :  { %464 = vmax.xlane.f32.xlu1 %v463_v60 }
 0x26a   :  { %387 = vrot.lane.b32.xlu2 %v2730_v13, %s2534_s1 }
 0x272   :  { %508 = vrot.lane.b32.xlu2 %v2730_v13, %s2531_s2 }
 0x27a   :  { %596 = vrot.lane.b32.xlu2 %v2730_v13, %s2532_s5 }
 0x27c   :  { %365 = vrot.lane.b32.xlu1 %v2724_v8, %s2534_s1 }
 0x2c5   :  { %v352_v61 = vpop.xlane.xlu2 %351 }
 0x2c6   :  { %2111 = vrcp.f32 %v352_v61  ;;  %v474_v62 = vpop.xlane.xlu1 %473 }
 0x2c7   :  { %2113 = vrcp.f32 %v474_v62 }
 0x2cc   :  { %v2112_v63 = vpop.eup %2111 }
 0x2cd   :  { %v2114_v0 = vpop.eup %2113  ;;  %v358_v1 = vmul.f32 %v2112_v63, %v2108_v50  ;;  %v388_v18 = vpop.permute.xlu2 %387  ;;  %v555_v50 = vsel %vm370_vm2, %v408_v49, 0 }
 0x2ce   :  { %v480_v2 = vmul.f32 %v2114_v0, %v2110_v51  ;;  %v343_v3 = vpop.xlane.xlu1 %342  ;;  %v393_v22 = vsel %vm370_vm2, %v388_v18, 0  ;;  %564 = vmatpush.bf16.msra.mxu1 %v555_v50 }
 0x2cf   :  { %v345_v4 = vsub.f32 %v337_v56, %v343_v3  ;;  %v360_v5 = vpack.c.bf16 %v358_v1, %v358_v1 }
 0x2d0   :  { %v482_v6 = vpack.c.bf16 %v480_v2, %v480_v2 }
 0x2d1   :  { %v348_v7 = vmul.f32 1.442695, %v345_v4  ;;  %363 = vst.msk [vmem:[#allocation20] sm:$0xf] %vm362_vm3, %v360_v5 }
 0x2d2   :  { %485 = vst.msk [vmem:[#allocation20 + $0x4] sm:$0xf] %vm362_vm3, %v482_v6  ;;  %1962 = vmatmul.msk.bf16.vlgmr.msrb.gmra.mxu2 %vm288_vm1, %v482_v6 }
 0x2d3   :  { %2115 = vpow2.f32 %v348_v7 }
 0x2d5   :  { %v509_v21 = vpop.permute.xlu2 %508 }
 0x2d6   :  { %v465_v9 = vpop.xlane.xlu1 %464  ;;  %v514_v23 = vsel %vm370_vm2, %v509_v21, 0 }
 0x2d7   :  { %v467_v10 = vsub.f32 %v459_v59, %v465_v9 }
 0x2d9   :  { %v2116_v11 = vpop.eup %2115  ;;  %v470_v12 = vmul.f32 1.442695, %v467_v10 }
 0x2da   :  { %v353_v14 = vsel %vm288_vm1, %v2116_v11, 0.0 }
 0x2db   :  { %2117 = vpow2.f32 %v470_v12  ;;  %354 = vadd.xlane.f32.xlu0 %v353_v14 }
 0x2dd   :  { %v597_v32 = vpop.permute.xlu2 %596 }
 0x2de   :  { %v602_v34 = vsel %vm288_vm1, %v597_v32, 0 }
 0x2e1   :  { %v2118_v15 = vpop.eup %2117 }
 0x2e2   :  { %1966 = vmatmul.msk.bf16.vlgmr.msra.gmra.mxu2 %vm288_vm1, %v572_v16  ;;  %v475_v17 = vsel %vm288_vm1, %v2118_v15, 0.0 }
 0x2e3   :  { %476 = vadd.xlane.f32.xlu1 %v475_v17 }
 0x2ee   :  { %v366_v19 = vpop.permute.xlu1 %365 }
 0x2ef   :  { %594 = vrot.lane.b32.xlu0 %v2730_v13, %s2533_s6  ;;  %v372_v20 = vsel %vm370_vm2, %v366_v19, 0 }
 0x2f0   :  { %381 = vmatpush.bf16.msra.mxu3 %v372_v20 }
 0x2f3   :  { %1958 = vmatmul.msk.bf16.vlgmr.msra.gmra.mxu3 %vm288_vm1, %v360_v5 }
 0x2f4   :  { %402 = vmatpush.bf16.msrb.mxu3 %v393_v22 }
 0x2f8   :  { %523 = vmatpush.bf16.msra.mxu3 %v514_v23 }
 0x2fc   :  { %648 = vrot.lane.b32.xlu1 %v2724_v8, %s2535_s27 }
 0x304   :  { %739 = vrot.lane.b32.xlu1 %v2730_v13, %s2536_s17 }
 0x30c   :  { %714 = vrot.lane.b32.xlu1 %v2724_v8, %s2537_s7 }
 0x34e   :  { %v355_v24 = vpop.xlane.xlu0 %354 }
 0x34f   :  { %2119 = vrcp.f32 %v355_v24 }
 0x355   :  { %v2120_v27 = vpop.eup %2119  ;;  %v504_v28 = vpop.f32.mrf.mxu2 }
 0x356   :  { %v359_v30 = vmul.f32 %v2120_v27, %v2116_v11  ;;  %v477_v31 = vpop.xlane.xlu1 %476 }
 0x357   :  { %2121 = vrcp.f32 %v477_v31 }
 0x358   :  { %v361_v33 = vpack.c.bf16 %v359_v30, %v359_v30 }
 0x35a   :  { %364 = vst.msk [vmem:[#allocation20 + $0x10] sm:$0xf] %vm362_vm3, %v361_v33  ;;  %1959 = vmatmul.msk.bf16.vlgmr.msrb.gmra.mxu3 %vm288_vm1, %v361_v33 }
 0x35b   :  { %611 = vmatpush.bf16.xpose.msrb.mxu3 %v602_v34 }
 0x35d   :  { %v2122_v35 = vpop.eup %2121  ;;  %v506_v36 = vpop.f32.mrf.mxu2 }
 0x35e   :  { %v481_v37 = vmul.f32 %v2122_v35, %v2118_v15 }
 0x360   :  { %v483_v38 = vpack.c.bf16 %v481_v37, %v481_v37 }
 0x361   :  { %v595_v47 = vpop.permute.xlu0 %594 }
 0x362   :  { %486 = vst.msk [vmem:[#allocation20 + $0x14] sm:$0xf] %vm362_vm3, %v483_v38 }
 0x365   :  { %v590_v39 = vpop.f32.mrf.mxu2 }
 0x366   :  { %v617_v40 = vmul.f32 0.35355338, %v590_v39 }
 0x368   :  { %v619_v41 = vadd.f32 %v2757_v29, %v617_v40 }
 0x36a   :  { %1963 = vmatmul.msk.bf16.vlgmr.msra.gmra.mxu3 %vm288_vm1, %v483_v38  ;;  %v621_v42 = vsel %vm288_vm1, %v619_v41, -inf }
 0x36b   :  { %622 = vmax.xlane.f32.xlu2 %v621_v42 }
 0x36d   :  { %v592_v43 = vpop.f32.mrf.mxu2 }
 0x36e   :  { %v649_v44 = vpop.permute.xlu1 %648 }
 0x36f   :  { %v654_v45 = vsel %vm370_vm2, %v649_v44, 0 }
 0x370   :  { %663 = vmatpush.bf16.msrb.mxu0 %v654_v45 }
 0x376   :  { %v383_v46 = vpop.f32.mrf.mxu3  ;;  %v740_v57 = vpop.permute.xlu1 %739 }
 0x377   :  { %v745_v2 = vsel %vm288_vm1, %v740_v57, 0 }
 0x37a   :  { %1967 = vmatmul.msk.bf16.vlgmr.msrb.gmra.mxu3 %vm288_vm1, %v595_v47 }
 0x37e   :  { %v385_v48 = vpop.f32.mrf.mxu3  ;;  %v715_v0 = vpop.permute.xlu1 %714 }
 0x37f   :  { %v690_v48 = vld [vmem:[%s3178_s22 + $0x8] sm:$0xf] }
 0x383   :  { %716 = vrot.lane.b32.xlu2 %v2724_v8, %s2536_s17 }
 0x3dd   :  { %v404_v51 = vpop.f32.mrf.mxu3 }
 0x3de   :  { %v409_v52 = vpack.c.bf16 %v404_v51, %v383_v46  ;;  %v623_v53 = vpop.xlane.xlu2 %622 }
 0x3df   :  { %v627_v54 = vsub.f32 %v619_v41, %v623_v53 }
 0x3e0   :  { %1965 = vmatmul.msk.bf16.vlgmr.msra.gmra.mxu1 %vm288_vm1, %v409_v52 }
 0x3e1   :  { %v629_v56 = vmul.f32 1.442695, %v627_v54 }
 0x3e3   :  { %2123 = vpow2.f32 %v629_v56 }
 0x3e5   :  { %v406_v58 = vpop.f32.mrf.mxu3 }
 0x3e6   :  { %v717_v59 = vpop.permute.xlu2 %716 }
 0x3e7   :  { %v722_v60 = vsel %vm288_vm1, %v717_v59, 0 }
 0x3e8   :  { %731 = vmatpush.bf16.xpose.msra.mxu3 %v722_v60 }
 0x3e9   :  { %v2124_v61 = vpop.eup %2123 }
 0x3ea   :  { %v633_v62 = vsel %vm288_vm1, %v2124_v61, 0.0 }
 0x3eb   :  { %634 = vadd.xlane.f32.xlu0 %v633_v62 }
 0x3ed   :  { %v525_v63 = vpop.f32.mrf.mxu3 }
 0x3ee   :  { %v530_v1 = vpack.c.bf16 %v525_v63, %v504_v28 }
 0x3ef   :  { %1971 = vmatmul.msk.bf16.vlgmr.msra.gmra.mxu3 %vm288_vm1, %v715_v0 }
 0x3f0   :  { %1964 = vmatmul.msk.bf16.vlgmr.msra.gmra.mxu0 %vm288_vm1, %v530_v1 }
 0x3f1   :  { %754 = vmatpush.bf16.xpose.msra.mxu0 %v745_v2 }
 0x3f5   :  { %v527_v3 = vpop.f32.mrf.mxu3 }
 0x3fd   :  { %v613_v4 = vpop.f32.mrf.mxu3 }
 0x3fe   :  { %v618_v5 = vmul.f32 0.35355338, %v613_v4 }
 0x3ff   :  { %737 = vrot.lane.b32.xlu0 %v2730_v13, %s2537_s7 }
 0x400   :  { %v620_v6 = vadd.f32 %v2767_v55, %v618_v5 }
 0x402   :  { %v624_v7 = vsel %vm288_vm1, %v620_v6, -inf }
 0x403   :  { %625 = vmax.xlane.f32.xlu1 %v624_v7 }
 0x405   :  { %v615_v9 = vpop.f32.mrf.mxu3 }
 0x407   :  { %669 = vrot.lane.b32.xlu0 %v2730_v13, %s2535_s27  ;;  %s3179_s27 = sld [smem:[#allocation38_spill]] }
 0x45d   :  { %v566_v15 = vpop.f32.mrf.mxu1 }
 0x45e   :  { %v635_v10 = vpop.xlane.xlu0 %634 }
 0x45f   :  { %2125 = vrcp.f32 %v635_v10 }
 0x465   :  { %v2126_v11 = vpop.eup %2125  ;;  %v568_v57 = vpop.f32.mrf.mxu1 }
 0x466   :  { %v641_v12 = vmul.f32 %v2126_v11, %v2124_v61 }
 0x468   :  { %v643_v14 = vpack.c.bf16 %v641_v12, %v641_v12 }
 0x46a   :  { %646 = vst.msk [vmem:[#allocation20 + $0x8] sm:$0xf] %vm362_vm3, %v643_v14  ;;  %1968 = vmatmul.msk.bf16.vlgmr.msrb.gmra.mxu0 %vm288_vm1, %v643_v14 }
 0x46d   :  { %v546_v16 = vpop.f32.mrf.mxu0 }
 0x46e   :  { %v2832_v17 = vadd.f32 %v566_v15, %v546_v16 }
 0x471   :  { %v738_v18 = vpop.permute.xlu0 %737 }
 0x472   :  { %v733_v19 = vpop.f32.mrf.mxu3 }
 0x473   :  { %v760_v20 = vmul.f32 0.35355338, %v733_v19 }
 0x475   :  { %v762_v21 = vadd.f32 %v2757_v29, %v760_v20  ;;  %v2839_v32 = vpop.f32.mrf.mxu0 }
 0x476   :  { %v626_v22 = vpop.xlane.xlu1 %625 }
 0x477   :  { %v628_v23 = vsub.f32 %v620_v6, %v626_v22  ;;  %v764_v24 = vsel %vm288_vm1, %v762_v21, -inf }
 0x478   :  { %765 = vmax.xlane.f32.xlu1 %v764_v24 }
 0x479   :  { %v631_v25 = vmul.f32 1.442695, %v628_v23  ;;  %v670_v26 = vpop.permute.xlu0 %669  ;;  %v569_v23 = vadd.f32 %v568_v57, %v2839_v32  ;;  %v2049_v57 = vld [vmem:[%s3181_s0] sm:$0xff] }
 0x47a   :  { %v675_v27 = vsel %vm370_vm2, %v670_v26, 0  ;;  %v735_v28 = vpop.f32.mrf.mxu3  ;;  %1972 = vmatmul.msk.bf16.vlgmr.msra.gmra.mxu0 %vm288_vm1, %v738_v18  ;;  %v232_v18 = vld [vmem:[%s3175_s4] sm:$0xff]  }
 0x47b   :  { %2127 = vpow2.f32 %v631_v25  ;;  %684 = vmatpush.bf16.msrb.mxu1 %v675_v27 }
 0x481   :  { %v2128_v30 = vpop.eup %2127 }
 0x482   :  { %v636_v31 = vsel %vm288_vm1, %v2128_v30, 0.0 }
 0x483   :  { %637 = vadd.xlane.f32.xlu2 %v636_v31 }
 0x4e7   :  { %v665_v29 = vpop.f32.mrf.mxu0 }
 0x4eb   :  { %v766_v33 = vpop.xlane.xlu1 %765 }
 0x4ec   :  { %v770_v34 = vsub.f32 %v762_v21, %v766_v33  ;;  %v234_v21 = vunpack.c.l.bf16 %v232_v18 }
 0x4ee   :  { %v772_v35 = vmul.f32 1.442695, %v770_v34  ;;  %v2539_v34 = vmov 32.0  }
 0x4ef   :  { %v667_v36 = vpop.f32.mrf.mxu0 }
 0x4f0   :  { %2129 = vpow2.f32 %v772_v35 }
 0x4f6   :  { %v2130_v37 = vpop.eup %2129  ;;  %v638_v38 = vpop.xlane.xlu2 %637 }
 0x4f7   :  { %2131 = vrcp.f32 %v638_v38  ;;  %v756_v39 = vpop.f32.mrf.mxu0  ;;  %v776_v40 = vsel %vm288_vm1, %v2130_v37, 0.0 }
 0x4f8   :  { %v761_v41 = vmul.f32 0.35355338, %v756_v39  ;;  %777 = vadd.xlane.f32.xlu1 %v776_v40 }
 0x4fa   :  { %v763_v42 = vadd.f32 %v2767_v55, %v761_v41  ;;  %v696_v55 = vsel %vm370_vm2, %v690_v48, 0 }
 0x4fb   :  { %705 = vmatpush.bf16.msrb.mxu2 %v696_v55 }
 0x4fc   :  { %v767_v43 = vsel %vm288_vm1, %v763_v42, -inf }
 0x4fd   :  { %v2132_v44 = vpop.eup %2131  ;;  %768 = vmax.xlane.f32.xlu0 %v767_v43 }
 0x4fe   :  { %v642_v45 = vmul.f32 %v2132_v44, %v2128_v30  ;;  %v235_v30 = vunpack.c.h.bf16 %v232_v18 }
 0x4ff   :  { %v758_v46 = vpop.f32.mrf.mxu0 }
 0x500   :  { %v644_v47 = vpack.c.bf16 %v642_v45, %v642_v45 }
 0x502   :  { %647 = vst.msk [vmem:[#allocation20 + $0x18] sm:$0xf] %vm362_vm3, %v644_v47  ;;  %1969 = vmatmul.msk.bf16.vlgmr.msrb.gmra.mxu1 %vm288_vm1, %v644_v47 }
 0x511   :  { %791 = vrot.lane.b32.xlu1 %v2724_v8, %s2538_s13 }
 0x56b   :  { %v778_v49 = vpop.xlane.xlu1 %777 }
 0x56c   :  { %2133 = vrcp.f32 %v778_v49  ;;  %v2053_v49 = vld [vmem:[%s3142_s12 + $0x8] sm:$0xff] }
 0x570   :  { %v769_v50 = vpop.xlane.xlu0 %768 }
 0x571   :  { %v771_v51 = vsub.f32 %v763_v42, %v769_v50  ;;  %v2052_v50 = vld [vmem:[%s3142_s12] sm:$0xff]  ;;  %s1905_s12 = sshll.u32 %s3155_s25, 4  ;;  %s1906_s12 = int_to_ptr.hbm [resolvable:$true] %s1905_s12 }
 0x572   :  { %v2134_v52 = vpop.eup %2133 }
 0x573   :  { %v784_v53 = vmul.f32 %v2134_v52, %v2130_v37  ;;  %v774_v54 = vmul.f32 1.442695, %v771_v51  ;;  %v2050_v52 = vld [vmem:[%s3181_s0 + $0x8] sm:$0xff] }
 0x574   :  { %958 = vmatpush.bf16.msrb.mxu0 %v2050_v52 }
 0x575   :  { %v786_v56 = vpack.c.bf16 %v784_v53, %v784_v53  ;;  %2135 = vpow2.f32 %v774_v54 }
 0x577   :  { %789 = vst.msk [vmem:[#allocation20 + $0xc] sm:$0xf] %vm362_vm3, %v786_v56 }
 0x578   :  { %959 = vmatpush.bf16.msrb.mxu0 %v2049_v57 }
 0x57b   :  { %v2136_v8 = vpop.eup %2135 }
 0x57c   :  { %v779_v58 = vsel %vm288_vm1, %v2136_v8, 0.0 }
 0x57d   :  { %780 = vadd.xlane.f32.xlu2 %v779_v58 }
 0x57f   :  { %v686_v59 = vpop.f32.mrf.mxu1 }
 0x580   :  { %v691_v60 = vpack.c.bf16 %v686_v59, %v665_v29 }
 0x582   :  { %1970 = vmatmul.msk.bf16.vlgmr.msrb.gmra.mxu2 %vm288_vm1, %v691_v60 }
 0x583   :  { %v792_v61 = vpop.permute.xlu1 %791 }
 0x584   :  { %v797_v62 = vsel %vm370_vm2, %v792_v61, 0 }
 0x585   :  { %806 = vmatpush.bf16.msra.mxu1 %v797_v62 }
 0x587   :  { %v688_v63 = vpop.f32.mrf.mxu1 }
 0x588   :  { %1973 = vmatmul.msk.bf16.vlgmr.msra.gmra.mxu1 %vm288_vm1, %v786_v56 }
 0x589   :  { %1002 = vmatpush.bf16.msrb.mxu1 %v2053_v49  ;;  %v2065_v49 = vld [vmem:[%s3182_s19] sm:$0xff]   ;;  %s1916_s19 = sshll.u32 %s2541_s15, 4  ;;  %s1917_s19 = int_to_ptr.vmem [resolvable:$true] %s1916_s19 }
 0x58d   :  { %1003 = vmatpush.bf16.msrb.mxu1 %v2052_v50  ;;  %v2932_v50 = vunpack.c.l.bf16 %v2065_v49 }
 0x595   :  { %812 = vrot.lane.b32.xlu2 %v2730_v13, %s2538_s13  ;;  %v833_v13 = vld [vmem:[%s3178_s22 + $0xc] sm:$0xf]  ;;  %s3180_s13 = sld [smem:[#allocation32_spill]] }
 0x596   :  { %v839_v11 = vsel %vm370_vm2, %v833_v13, 0 }
 0x597   :  { %848 = vmatpush.bf16.msrb.mxu3 %v839_v11 }
 0x59b   :  { %v2051_v51 = vld [vmem:[%s3180_s13] sm:$0xff] }
 0x59c   :  { %1997 = vmatmul.msk.bf16.vlgmr.msrb.gmra.mxu1 %vm261_vm0, %v2051_v51 }
 0x5f0   :  { %v781_v0 = vpop.xlane.xlu2 %780 }
 0x5f1   :  { %2137 = vrcp.f32 %v781_v0 }
 0x5f2   :  { %2139 = vrcp.f32 %v2539_v34 }
 0x5f7   :  { %v2138_v1 = vpop.eup %2137 }
 0x5f8   :  { %v785_v2 = vmul.f32 %v2138_v1, %v2136_v8  ;;  %v813_v3 = vpop.permute.xlu2 %812  ;;  %v2140_v35 = vpop.eup %2139 }
 0x5f9   :  { %v818_v4 = vsel %vm370_vm2, %v813_v3, 0  ;;  %v874_v36 = vmul.f32 32.0, %v2140_v35  ;;  %vm878_vm4 = vweird.f32 %v2140_v35 }
 0x5fa   :  { %v787_v5 = vpack.c.bf16 %v785_v2, %v785_v2  ;;  %827 = vmatpush.bf16.msra.mxu2 %v818_v4 }
 0x5fb   :  { %v875_v37 = vsub.f32 1.0, %v874_v36 }
 0x5fc   :  { %790 = vst.msk [vmem:[#allocation20 + $0x1c] sm:$0xf] %vm362_vm3, %v787_v5 }
 0x5fd   :  { %1974 = vmatmul.msk.bf16.vlgmr.msra.gmra.mxu2 %vm288_vm1, %v787_v5  ;;  %v876_v38 = vmul.f32 %v2140_v35, %v875_v37 }
 0x5ff   :  { %v877_v32 = vadd.f32 %v2140_v35, %v876_v38 }
 0x601   :  { %v2875_v39 = vsel %vm878_vm4, %v2140_v35, %v877_v32 }
 0x605   :  { %v707_v6 = vpop.f32.mrf.mxu2  ;;  %v808_v7 = vpop.f32.mrf.mxu1 }
 0x606   :  { %v712_v9 = vadd.f32 %v707_v6, %v2832_v17  ;;  %v2095_v17 = vld [vmem:[%s3179_s27] ss:$0 sm:$0xff] }
 0x60d   :  { %v810_v10 = vpop.f32.mrf.mxu1  ;;  %v709_v12 = vpop.f32.mrf.mxu2 }
 0x60e   :  { %v713_v25 = vadd.f32 %v709_v12, %v569_v23  ;;  %v2097_v12 = vld [vmem:[#allocation5] ss:$0 sm:$0xff] }
 0x680   :  { %v829_v14 = vpop.f32.mrf.mxu2 }
 0x681   :  { %v834_v15 = vpack.c.bf16 %v829_v14, %v808_v7 }
 0x683   :  { %1975 = vmatmul.msk.bf16.vlgmr.msrb.gmra.mxu3 %vm288_vm1, %v834_v15 }
 0x688   :  { %v831_v16 = vpop.f32.mrf.mxu2 }
 0x706   :  { %v850_v19 = vpop.f32.mrf.mxu3 }
 0x707   :  { %v855_v20 = vadd.f32 %v850_v19, %v712_v9  ;;  %v2096_v9 = vld [vmem:[#allocation2] ss:$0 sm:$0xff] }
 0x709   :  { %v861_v22 = vadd.f32 %v2095_v17, %v855_v20  ;;  %v2098_v20 = vld [vmem:[#allocation8] ss:$0 sm:$0xff] }
 0x70b   :  { %v863_v24 = vadd.f32 %v861_v22, %v234_v21  ;;  %v1005_v21 = vpop.f32.mrf.mxu1 }
 0x70c   :  { %v1006_v22 = vadd.f32 %v2098_v20, %v1005_v21 }
 0x70d   :  { %v867_v26 = vsel %vm261_vm0, %v863_v24, 0.0 }
 0x70e   :  { %v852_v27 = vpop.f32.mrf.mxu3  ;;  %868 = vadd.xlane.f32.xlu0 %v867_v26  ;;  %v1014_v23 = vpack.c.bf16 %v1006_v22, %v1006_v22 }
 0x70f   :  { %v856_v28 = vadd.f32 %v852_v27, %v713_v25 }
 0x710   :  { %v1087_v25 = vunpack.c.l.b16 %v1014_v23 }
 0x711   :  { %v862_v31 = vadd.f32 %v2095_v17, %v856_v28 }
 0x712   :  { %v2907_v26 = vpack.c.b16 %v1087_v25, %v1087_v25 }
 0x713   :  { %v864_v29 = vadd.f32 %v862_v31, %v235_v30  ;;  %v1007_v27 = vpop.f32.mrf.mxu1 }
 0x714   :  { %v1008_v28 = vadd.f32 %v2098_v20, %v1007_v27 }
 0x715   :  { %v870_v33 = vsel %vm261_vm0, %v864_v29, 0.0 }
 0x716   :  { %871 = vadd.xlane.f32.xlu2 %v870_v33  ;;  %v1015_v30 = vpack.c.bf16 %v1008_v28, %v1008_v28 }
 0x718   :  { %v1039_v31 = vsel %vm288_vm1, %v1015_v30, 0 }
 0x719   :  { %1048 = vmatpush.bf16.xpose.msra.mxu3 %v1039_v31 }
 0x781   :  { %v869_v40 = vpop.xlane.xlu0 %868 }
 0x782   :  { %v880_v41 = vmul.f32 %v2875_v39, %v869_v40  ;;  %v1111_v40 = vunpack.c.l.b16 %v1015_v30 }
 0x784   :  { %v882_v42 = vsub.f32 %v863_v24, %v880_v41  ;;  %v1020_v24 = vsel %vm288_vm1, %v1014_v23, 0 }
 0x785   :  { %1029 = vmatpush.bf16.xpose.msrb.mxu2 %v1020_v24 }
 0x786   :  { %v884_v43 = vmul.f32 %v882_v42, %v882_v42 }
 0x788   :  { %v886_v44 = vsel %vm261_vm0, %v884_v43, 0.0  ;;  %v2918_v43 = vpack.c.b16 %v1111_v40, %v1111_v40 }
 0x789   :  { %v872_v45 = vpop.xlane.xlu2 %871  ;;  %887 = vadd.xlane.f32.xlu0 %v886_v44 }
 0x78a   :  { %v881_v46 = vmul.f32 %v2875_v39, %v872_v45 }
 0x78c   :  { %v883_v47 = vsub.f32 %v864_v29, %v881_v46  ;;  %v2099_v29 = vld [vmem:[#allocation7] ss:$0 sm:$0xff] }
 0x78e   :  { %v885_v48 = vmul.f32 %v883_v47, %v883_v47 }
 0x790   :  { %v889_v55 = vsel %vm261_vm0, %v885_v48, 0.0 }
 0x791   :  { %890 = vadd.xlane.f32.xlu1 %v889_v55 }
 0x79d   :  { %1141 = vrot.lane.b32.xlu0 %v2907_v26, %s2530_s30 }
 0x7fc   :  { %v888_v53 = vpop.xlane.xlu0 %887 }
 0x7fd   :  { %v892_v54 = vmul.f32 %v888_v53, %v2875_v39 }
 0x7ff   :  { %v894_v56 = vadd.f32 1e-12, %v892_v54 }
 0x801   :  { %2141 = vrsqrt.f32 %v894_v56  ;;  %vm902_vm6 = vweird.f32 %v894_v56 }
 0x804   :  { %v891_v8 = vpop.xlane.xlu1 %890 }
 0x805   :  { %v893_v58 = vmul.f32 %v891_v8, %v2875_v39 }
 0x807   :  { %v2142_v59 = vpop.eup %2141  ;;  %v895_v60 = vadd.f32 1e-12, %v893_v58 }
 0x808   :  { %v897_v61 = vmul.f32 %v2142_v59, %v894_v56  ;;  %vm903_vm5 = vweird.f32 %v2142_v59 }
 0x809   :  { %2143 = vrsqrt.f32 %v895_v60  ;;  %vm904_vm7 = vmor %vm902_vm6, %vm903_vm5  ;;  %vm912_vm9 = vweird.f32 %v895_v60 }
 0x80a   :  { %v898_v62 = vmul.f32 %v2142_v59, %v897_v61 }
 0x80c   :  { %v899_v63 = vmul.f32 0.5, %v898_v62 }
 0x80e   :  { %v900_v0 = vsub.f32 1.5, %v899_v63 }
 0x80f   :  { %v2144_v1 = vpop.eup %2143  ;;  %v1142_v45 = vpop.permute.xlu0 %1141 }
 0x810   :  { %v901_v2 = vmul.f32 %v2142_v59, %v900_v0  ;;  %v907_v3 = vmul.f32 %v2144_v1, %v895_v60  ;;  %vm913_vm8 = vweird.f32 %v2144_v1  ;;  %v1147_v46 = vsel %vm288_vm1, %v1142_v45, 0 }
 0x811   :  { %vm914_vm10 = vmor %vm912_vm9, %vm913_vm8  ;;  %1156 = vmatpush.bf16.xpose.msra.mxu2 %v1147_v46 }
 0x812   :  { %v908_v4 = vmul.f32 %v2144_v1, %v907_v3  ;;  %v905_v5 = vsel %vm904_vm7, %v2142_v59, %v901_v2 }
 0x813   :  { %v916_v10 = vmul.f32 %v905_v5, %v882_v42 }
 0x814   :  { %v909_v6 = vmul.f32 0.5, %v908_v4 }
 0x815   :  { %v921_v14 = vmul.f32 %v2096_v9, %v916_v10 }
 0x816   :  { %v910_v7 = vsub.f32 1.5, %v909_v6 }
 0x817   :  { %v2899_v18 = vadd.f32 %v2097_v12, %v921_v14  ;;  %v2949_v14 = vunpack.c.h.bf16 %v2065_v49 }
 0x818   :  { %v911_v13 = vmul.f32 %v2144_v1, %v910_v7 }
 0x81a   :  { %v915_v11 = vsel %vm914_vm10, %v2144_v1, %v911_v13  ;;  %vm1816_vm10 = vcmask 523264  }
 0x81b   :  { %v917_v15 = vmul.f32 %v915_v11, %v883_v47 }
 0x81d   :  { %v922_v16 = vmul.f32 %v2096_v9, %v917_v15 }
 0x81f   :  { %v2901_v17 = vadd.f32 %v2097_v12, %v922_v16 }
 0x821   :  { %v932_v19 = vpack.c.bf16 %v2901_v17, %v2899_v18 }
 0x823   :  { %1984 = vmatmul.msk.bf16.vlgmr.msrb.gmra.mxu0 %vm261_vm0, %v932_v19 }
 0x8a0   :  { %v961_v33 = vpop.f32.mrf.mxu0 }
 0x8a1   :  { %v962_v34 = vadd.f32 %v2099_v29, %v961_v33 }
 0x8a3   :  { %v1012_v35 = vpack.c.bf16 %v962_v34, %v962_v34 }
 0x8a5   :  { %v1137_v36 = vunpack.c.l.b16 %v1012_v35  ;;  %1998 = vmatmul.msk.bf16.vlgmr.msrb.gmra.mxu2 %vm288_vm1, %v1012_v35 }
 0x8a7   :  { %v2913_v37 = vpack.c.b16 %v1137_v36, %v1137_v36 }
 0x8a8   :  { %v963_v38 = vpop.f32.mrf.mxu0 }
 0x8a9   :  { %v964_v32 = vadd.f32 %v2099_v29, %v963_v38  ;;  %1139 = vrot.lane.b32.xlu0 %v2913_v37, %s2530_s30 }
 0x8ab   :  { %v1013_v41 = vpack.c.bf16 %v964_v32, %v964_v32 }
 0x8ad   :  { %v1163_v42 = vunpack.c.l.b16 %v1013_v41  ;;  %1999 = vmatmul.msk.bf16.vlgmr.msra.gmra.mxu3 %vm288_vm1, %v1013_v41 }
 0x8af   :  { %v2920_v44 = vpack.c.b16 %v1163_v42, %v1163_v42 }
 0x8b1   :  { %1165 = vrot.lane.b32.xlu2 %v2920_v44, %s2530_s30  ;;  %1167 = vrot.lane.b32.xlu0 %v2918_v43, %s2530_s30 }
 0x90b   :  { %v1166_v53 = vpop.permute.xlu2 %1165 }
 0x91b   :  { %v1140_v47 = vpop.permute.xlu0 %1139 }
 0x91c   :  { %2002 = vmatmul.msk.bf16.vlgmr.msra.gmra.mxu2 %vm288_vm1, %v1140_v47 }
 0x923   :  { %v1168_v48 = vpop.permute.xlu0 %1167 }
 0x924   :  { %v1173_v55 = vsel %vm288_vm1, %v1168_v48, 0 }
 0x925   :  { %1182 = vmatpush.bf16.xpose.msrb.mxu3 %v1173_v55 }
 0x928   :  { %v1031_v51 = vpop.f32.mrf.mxu2 }
 0x929   :  { %v1054_v52 = vmul.f32 0.35355338, %v1031_v51 }
 0x92b   :  { %v1058_v54 = vadd.f32 %v2932_v50, %v1054_v52 }
 0x92c   :  { %2003 = vmatmul.msk.bf16.vlgmr.msrb.gmra.mxu3 %vm288_vm1, %v1166_v53 }
 0x92d   :  { %v1060_v56 = vsel %vm288_vm1, %v1058_v54, -inf }
 0x92e   :  { %1061 = vmax.xlane.f32.xlu0 %v1060_v56 }
 0x930   :  { %v1033_v57 = vpop.f32.mrf.mxu2  ;;  %v1050_v8 = vpop.f32.mrf.mxu3 }
 0x931   :  { %v1055_v16 = vmul.f32 0.35355338, %v1050_v8 }
 0x933   :  { %v1059_v20 = vadd.f32 %v2949_v14, %v1055_v16 }
 0x935   :  { %v1063_v25 = vsel %vm288_vm1, %v1059_v20, -inf }
 0x938   :  { %v1052_v58 = vpop.f32.mrf.mxu3 }
 0x939   :  { %v1261_v58 = vld [vmem:[%s3144_s14 + $0x4] sm:$0xf] }
 0x942   :  { %1219 = vrot.lane.b32.xlu0 %v2907_v26, %s2529_s11 }
 0x99f   :  { %v1158_v59 = vpop.f32.mrf.mxu2 }
 0x9a0   :  { %v1188_v60 = vmul.f32 0.35355338, %v1158_v59  ;;  %v1267_v59 = vsel %vm370_vm2, %v1261_v58, 0 }
 0x9a1   :  { %v1062_v2 = vpop.xlane.xlu0 %1061  ;;  %1276 = vmatpush.bf16.msrb.mxu2 %v1267_v59 }
 0x9a2   :  { %v1190_v61 = vadd.f32 %v2932_v50, %v1188_v60  ;;  %v1066_v3 = vsub.f32 %v1058_v54, %v1062_v2 }
 0x9a4   :  { %v1192_v62 = vsel %vm288_vm1, %v1190_v61, -inf  ;;  %v1068_v4 = vmul.f32 1.442695, %v1066_v3 }
 0x9a5   :  { %1193 = vmax.xlane.f32.xlu1 %v1192_v62 }
 0x9a6   :  { %2145 = vpow2.f32 %v1068_v4 }
 0x9a7   :  { %v1160_v63 = vpop.f32.mrf.mxu2 }
 0x9ac   :  { %v2146_v5 = vpop.eup %2145 }
 0x9ad   :  { %v1072_v6 = vsel %vm288_vm1, %v2146_v5, 0.0 }
 0x9af   :  { %v1184_v0 = vpop.f32.mrf.mxu3 }
 0x9b0   :  { %v1189_v11 = vmul.f32 0.35355338, %v1184_v0 }
 0x9b2   :  { %v1191_v15 = vadd.f32 %v2949_v14, %v1189_v11 }
 0x9b4   :  { %v1195_v19 = vsel %vm288_vm1, %v1191_v15, -inf  ;;  %v1220_v21 = vpop.permute.xlu0 %1219 }
 0x9b5   :  { %v1225_v24 = vsel %vm370_vm2, %v1220_v21, 0 }
 0x9b7   :  { %v1186_v1 = vpop.f32.mrf.mxu3 }
 0x9be   :  { %1089 = vrot.lane.b32.xlu1 %v2907_v26, %s2528_s9 }
 0x9e8   :  { %1073 = vadd.xlane.f32.xlu1 %v1072_v6 }
 0xa01   :  { %1305 = vrot.lane.b32.xlu1 %v2907_v26, %s2533_s6 }
 0xa09   :  { %1303 = vrot.lane.b32.xlu1 %v2913_v37, %s2533_s6 }
 0xa18   :  { %v1194_v7 = vpop.xlane.xlu1 %1193 }
 0xa19   :  { %v1198_v9 = vsub.f32 %v1190_v61, %v1194_v7 }
 0xa1b   :  { %v1200_v10 = vmul.f32 1.442695, %v1198_v9 }
 0xa1d   :  { %2147 = vpow2.f32 %v1200_v10 }
 0xa23   :  { %v2148_v13 = vpop.eup %2147 }
 0xa24   :  { %v1204_v12 = vsel %vm288_vm1, %v2148_v13, 0.0 }
 0xa25   :  { %1205 = vadd.xlane.f32.xlu2 %v1204_v12 }
 0xa2d   :  { %1196 = vmax.xlane.f32.xlu2 %v1195_v19 }
 0xa30   :  { %v1090_v22 = vpop.permute.xlu1 %1089 }
 0xa31   :  { %v1095_v23 = vsel %vm370_vm2, %v1090_v22, 0  ;;  %v1134_v22 = vld [vmem:[%s3144_s14] sm:$0xf] }
 0xa32   :  { %1104 = vmatpush.bf16.msra.mxu0 %v1095_v23  ;;  %v1287_v23 = vsel %vm370_vm2, %v1134_v22, 0 }
 0xa33   :  { %1064 = vmax.xlane.f32.xlu1 %v1063_v25  ;;  %1296 = vmatpush.bf16.msra.mxu3 %v1287_v23 }
 0xa36   :  { %1234 = vmatpush.bf16.msrb.mxu0 %v1225_v24 }
 0xa45   :  { %1113 = vrot.lane.b32.xlu2 %v2918_v43, %s2528_s9  ;;  %s2542_s9 = smov 4  }
 0xa4c   :  { %1240 = vrot.lane.b32.xlu1 %v2918_v43, %s2529_s11 }
 0xa5b   :  { %v1074_v27 = vpop.xlane.xlu1 %1073 }
 0xa5c   :  { %2149 = vrcp.f32 %v1074_v27 }
 0xa62   :  { %v2150_v28 = vpop.eup %2149 }
 0xa63   :  { %v1080_v30 = vmul.f32 %v2150_v28, %v2146_v5 }
 0xa65   :  { %v1082_v31 = vpack.c.bf16 %v1080_v30, %v1080_v30 }
 0xa67   :  { %1084 = vst.msk [vmem:[#allocation21] sm:$0xf] %vm362_vm3, %v1082_v31  ;;  %2000 = vmatmul.msk.bf16.vlgmr.msra.gmra.mxu0 %vm288_vm1, %v1082_v31 }
 0xa73   :  { %v1306_v29 = vpop.permute.xlu1 %1305 }
 0xa74   :  { %v1311_v33 = vsel %vm288_vm1, %v1306_v29, 0 }
 0xa75   :  { %1320 = vmatpush.bf16.xpose.msra.mxu0 %v1311_v33 }
 0xa7b   :  { %v1304_v35 = vpop.permute.xlu1 %1303 }
 0xa98   :  { %v1206_v34 = vpop.xlane.xlu2 %1205 }
 0xa99   :  { %2151 = vrcp.f32 %v1206_v34 }
 0xa9f   :  { %v2152_v36 = vpop.eup %2151 }
 0xaa0   :  { %v1212_v38 = vmul.f32 %v2152_v36, %v2148_v13  ;;  %v1197_v32 = vpop.xlane.xlu2 %1196 }
 0xaa1   :  { %v1199_v40 = vsub.f32 %v1191_v15, %v1197_v32 }
 0xaa2   :  { %v1214_v41 = vpack.c.bf16 %v1212_v38, %v1212_v38 }
 0xaa3   :  { %v1202_v42 = vmul.f32 1.442695, %v1199_v40 }
 0xaa4   :  { %1217 = vst.msk [vmem:[#allocation21 + $0x4] sm:$0xf] %vm362_vm3, %v1214_v41  ;;  %2004 = vmatmul.msk.bf16.vlgmr.msrb.gmra.mxu0 %vm288_vm1, %v1214_v41 }
 0xaa5   :  { %2153 = vpow2.f32 %v1202_v42 }
 0xaa6   :  { %v1065_v45 = vpop.xlane.xlu1 %1064 }
 0xaa7   :  { %v1067_v46 = vsub.f32 %v1059_v20, %v1065_v45 }
 0xaa8   :  { %v1114_v47 = vpop.permute.xlu2 %1113 }
 0xaa9   :  { %v1070_v48 = vmul.f32 1.442695, %v1067_v46  ;;  %v1119_v55 = vsel %vm370_vm2, %v1114_v47, 0 }
 0xaaa   :  { %1128 = vmatpush.bf16.msra.mxu1 %v1119_v55 }
 0xaab   :  { %v2154_v49 = vpop.eup %2153  ;;  %2155 = vpow2.f32 %v1070_v48 }
 0xaac   :  { %v1207_v51 = vsel %vm288_vm1, %v2154_v49, 0.0 }
 0xaad   :  { %1208 = vadd.xlane.f32.xlu2 %v1207_v51 }
 0xab1   :  { %v2156_v52 = vpop.eup %2155 }
 0xab2   :  { %v1075_v53 = vsel %vm288_vm1, %v2156_v52, 0.0 }
 0xab3   :  { %1076 = vadd.xlane.f32.xlu0 %v1075_v53 }
 0xab4   :  { %2008 = vmatmul.msk.bf16.vlgmr.msra.gmra.mxu0 %vm288_vm1, %v1304_v35 }
 0xabe   :  { %v1241_v54 = vpop.permute.xlu1 %1240 }
 0xabf   :  { %v1246_v56 = vsel %vm370_vm2, %v1241_v54, 0 }
 0xac0   :  { %1255 = vmatpush.bf16.msrb.mxu1 %v1246_v56 }
 0xac5   :  { %1380 = vrot.lane.b32.xlu2 %v2907_v26, %s2532_s5 }
 0xac7   :  { %1328 = vrot.lane.b32.xlu0 %v2918_v43, %s2533_s6 }
 0xacd   :  { %1448 = vrot.lane.b32.xlu2 %v2907_v26, %s2537_s7 }
 0xacf   :  { %1326 = vrot.lane.b32.xlu0 %v2920_v44, %s2533_s6  ;;  %s1918_s6 = sshll.u32 %s3156_s26, 4  ;;  %s1919_s6 = int_to_ptr.hbm [resolvable:$true] %s1918_s6 }
 0xad5   :  { %1471 = vrot.lane.b32.xlu2 %v2918_v43, %s2537_s7 }
 0xae4   :  { %v1106_v57 = vpop.f32.mrf.mxu0 }
 0xaec   :  { %v1108_v8 = vpop.f32.mrf.mxu0 }
 0xb20   :  { %v1209_v60 = vpop.xlane.xlu2 %1208 }
 0xb21   :  { %2157 = vrcp.f32 %v1209_v60  ;;  %v1236_v61 = vpop.f32.mrf.mxu0 }
 0xb26   :  { %v1077_v62 = vpop.xlane.xlu0 %1076 }
 0xb27   :  { %v2158_v63 = vpop.eup %2157  ;;  %2159 = vrcp.f32 %v1077_v62 }
 0xb28   :  { %v1213_v0 = vmul.f32 %v2158_v63, %v2154_v49  ;;  %v1381_v1 = vpop.permute.xlu2 %1380 }
 0xb29   :  { %v1386_v2 = vsel %vm370_vm2, %v1381_v1, 0  ;;  %v1238_v3 = vpop.f32.mrf.mxu0 }
 0xb2a   :  { %v1215_v4 = vpack.c.bf16 %v1213_v0, %v1213_v0  ;;  %1395 = vmatpush.bf16.msra.mxu2 %v1386_v2 }
 0xb2c   :  { %1218 = vst.msk [vmem:[#allocation21 + $0x14] sm:$0xf] %vm362_vm3, %v1215_v4 }
 0xb2d   :  { %v2160_v5 = vpop.eup %2159 }
 0xb2e   :  { %v1081_v6 = vmul.f32 %v2160_v5, %v2156_v52 }
 0xb30   :  { %v1083_v7 = vpack.c.bf16 %v1081_v6, %v1081_v6  ;;  %v1449_v19 = vpop.permute.xlu2 %1448 }
 0xb31   :  { %v1322_v9 = vpop.f32.mrf.mxu0  ;;  %v1454_v20 = vsel %vm288_vm1, %v1449_v19, 0 }
 0xb32   :  { %1085 = vst.msk [vmem:[#allocation21 + $0x10] sm:$0xf] %vm362_vm3, %v1083_v7  ;;  %v1349_v10 = vmul.f32 0.35355338, %v1322_v9  ;;  %2001 = vmatmul.msk.bf16.vlgmr.msra.gmra.mxu1 %vm288_vm1, %v1083_v7 }
 0xb34   :  { %v1351_v13 = vadd.f32 %v2932_v50, %v1349_v10 }
 0xb36   :  { %v1353_v11 = vsel %vm288_vm1, %v1351_v13, -inf }
 0xb37   :  { %1354 = vmax.xlane.f32.xlu1 %v1353_v11 }
 0xb38   :  { %v1472_v33 = vpop.permute.xlu2 %1471 }
 0xb39   :  { %v1324_v12 = vpop.f32.mrf.mxu0  ;;  %v1329_v15 = vpop.permute.xlu0 %1328  ;;  %v1477_v36 = vsel %vm288_vm1, %v1472_v33, 0 }
 0xb3a   :  { %v1334_v16 = vsel %vm288_vm1, %v1329_v15, 0 }
 0xb3b   :  { %1343 = vmatpush.bf16.xpose.msra.mxu1 %v1334_v16 }
 0xb41   :  { %v1327_v21 = vpop.permute.xlu0 %1326 }
 0xb42   :  { %2005 = vmatmul.msk.bf16.vlgmr.msrb.gmra.mxu1 %vm288_vm1, %v1215_v4 }
 0xb43   :  { %1463 = vmatpush.bf16.xpose.msrb.mxu1 %v1454_v20 }
 0xb50   :  { %1446 = vrot.lane.b32.xlu1 %v2913_v37, %s2537_s7 }
 0xb52   :  { %2009 = vmatmul.msk.bf16.vlgmr.msra.gmra.mxu1 %vm288_vm1, %v1327_v21 }
 0xb58   :  { %1401 = vrot.lane.b32.xlu1 %v2918_v43, %s2532_s5 }
 0xbaa   :  { %v1355_v24 = vpop.xlane.xlu1 %1354 }
 0xbab   :  { %v1359_v25 = vsub.f32 %v1351_v13, %v1355_v24 }
 0xbad   :  { %v1361_v27 = vmul.f32 1.442695, %v1359_v25 }
 0xbaf   :  { %2161 = vpow2.f32 %v1361_v27  ;;  %v1130_v28 = vpop.f32.mrf.mxu1 }
 0xbb0   :  { %v1135_v30 = vpack.c.bf16 %v1130_v28, %v1106_v57 }
 0xbb2   :  { %2007 = vmatmul.msk.bf16.vlgmr.msra.gmra.mxu3 %vm288_vm1, %v1135_v30 }
 0xbb5   :  { %v2162_v37 = vpop.eup %2161 }
 0xbb6   :  { %v1365_v31 = vsel %vm288_vm1, %v2162_v37, 0.0 }
 0xbb7   :  { %1366 = vadd.xlane.f32.xlu0 %v1365_v31  ;;  %v1132_v29 = vpop.f32.mrf.mxu1 }
 0xbbf   :  { %v1257_v34 = vpop.f32.mrf.mxu1 }
 0xbc0   :  { %v1262_v35 = vpack.c.bf16 %v1257_v34, %v1236_v61 }
 0xbc2   :  { %v1447_v38 = vpop.permute.xlu1 %1446  ;;  %2006 = vmatmul.msk.bf16.vlgmr.msrb.gmra.mxu2 %vm288_vm1, %v1262_v35 }
 0xbc3   :  { %1486 = vmatpush.bf16.xpose.msrb.mxu2 %v1477_v36  ;;  %2013 = vmatmul.msk.bf16.vlgmr.msrb.gmra.mxu1 %vm288_vm1, %v1447_v38 }
 0xbc7   :  { %v1259_v32 = vpop.f32.mrf.mxu1 }
 0xbca   :  { %v1402_v40 = vpop.permute.xlu1 %1401 }
 0xbcb   :  { %v1407_v41 = vsel %vm370_vm2, %v1402_v40, 0  ;;  %1469 = vrot.lane.b32.xlu0 %v2920_v44, %s2537_s7 }
 0xbcc   :  { %1416 = vmatpush.bf16.msrb.mxu3 %v1407_v41 }
 0xbcf   :  { %v1345_v42 = vpop.f32.mrf.mxu1 }
 0xbd0   :  { %v1350_v45 = vmul.f32 0.35355338, %v1345_v42 }
 0xbd2   :  { %v1352_v46 = vadd.f32 %v2949_v14, %v1350_v45 }
 0xbd4   :  { %v1356_v47 = vsel %vm288_vm1, %v1352_v46, -inf }
 0xbd5   :  { %1357 = vmax.xlane.f32.xlu2 %v1356_v47 }
 0xbd7   :  { %v1347_v48 = vpop.f32.mrf.mxu1 }
 0xc2a   :  { %v1367_v55 = vpop.xlane.xlu0 %1366 }
 0xc2b   :  { %2163 = vrcp.f32 %v1367_v55 }
 0xc31   :  { %v2164_v49 = vpop.eup %2163 }
 0xc32   :  { %v1373_v51 = vmul.f32 %v2164_v49, %v2162_v37 }
 0xc34   :  { %v1375_v52 = vpack.c.bf16 %v1373_v51, %v1373_v51 }
 0xc35   :  { %v1298_v56 = vpop.f32.mrf.mxu3 }
 0xc36   :  { %1378 = vst.msk [vmem:[#allocation21 + $0x8] sm:$0xf] %vm362_vm3, %v1375_v52  ;;  %2010 = vmatmul.msk.bf16.vlgmr.msra.gmra.mxu2 %vm288_vm1, %v1375_v52 }
 0xc3d   :  { %v1470_v57 = vpop.permute.xlu0 %1469  ;;  %v1300_v31 = vpop.f32.mrf.mxu3 }
 0xc40   :  { %v1465_v53 = vpop.f32.mrf.mxu1 }
 0xc41   :  { %v1492_v44 = vmul.f32 0.35355338, %v1465_v53 }
 0xc43   :  { %v1494_v54 = vadd.f32 %v2932_v50, %v1492_v44 }
 0xc45   :  { %v1278_v8 = vpop.f32.mrf.mxu2  ;;  %v1496_v58 = vsel %vm288_vm1, %v1494_v54, -inf }
 0xc46   :  { %v3017_v59 = vadd.f32 %v1298_v56, %v1278_v8  ;;  %1497 = vmax.xlane.f32.xlu1 %v1496_v58  ;;  %2014 = vmatmul.msk.bf16.vlgmr.msrb.gmra.mxu2 %vm288_vm1, %v1470_v57  ;;  %v2100_v56 = vld [vmem:[#allocation10] ss:$0 sm:$0xff] }
 0xc48   :  { %v1358_v60 = vpop.xlane.xlu2 %1357  ;;  %v1467_v61 = vpop.f32.mrf.mxu1 }
 0xc49   :  { %v1360_v62 = vsub.f32 %v1352_v46, %v1358_v60 }
 0xc4b   :  { %v1363_v63 = vmul.f32 1.442695, %v1360_v62 }
 0xc4d   :  { %2165 = vpow2.f32 %v1363_v63  ;;  %v3023_v50 = vpop.f32.mrf.mxu2 }
 0xc53   :  { %v2166_v0 = vpop.eup %2165 }
 0xc54   :  { %v1368_v1 = vsel %vm288_vm1, %v2166_v0, 0.0 }
 0xc55   :  { %1369 = vadd.xlane.f32.xlu0 %v1368_v1 }
 0xc69   :  { %1523 = vrot.lane.b32.xlu0 %v2907_v26, %s2536_s17 }
 0xcb9   :  { %v1397_v2 = vpop.f32.mrf.mxu2  ;;  %v1498_v4 = vpop.xlane.xlu1 %1497 }
 0xcba   :  { %v1502_v5 = vsub.f32 %v1494_v54, %v1498_v4 }
 0xcbc   :  { %v1504_v7 = vmul.f32 1.442695, %v1502_v5 }
 0xcc1   :  { %v1399_v3 = vpop.f32.mrf.mxu2 }
 0xcc8   :  { %v1370_v6 = vpop.xlane.xlu0 %1369 }
 0xcc9   :  { %2167 = vrcp.f32 %v1370_v6  ;;  %v1488_v9 = vpop.f32.mrf.mxu2 }
 0xcca   :  { %v1493_v10 = vmul.f32 0.35355338, %v1488_v9  ;;  %2169 = vpow2.f32 %v1504_v7 }
 0xccc   :  { %v1495_v13 = vadd.f32 %v2949_v14, %v1493_v10  ;;  %v1422_v14 = vld [vmem:[%s3144_s14 + $0x8] sm:$0xf] }
 0xccd   :  { %v1428_v23 = vsel %vm370_vm2, %v1422_v14, 0 }
 0xcce   :  { %v1499_v11 = vsel %vm288_vm1, %v1495_v13, -inf  ;;  %1437 = vmatpush.bf16.msrb.mxu0 %v1428_v23 }
 0xccf   :  { %v2168_v12 = vpop.eup %2167  ;;  %1500 = vmax.xlane.f32.xlu2 %v1499_v11 }
 0xcd0   :  { %v1374_v15 = vmul.f32 %v2168_v12, %v2166_v0  ;;  %v2170_v19 = vpop.eup %2169 }
 0xcd1   :  { %v1490_v26 = vpop.f32.mrf.mxu2  ;;  %v1508_v20 = vsel %vm288_vm1, %v2170_v19, 0.0 }
 0xcd2   :  { %v1376_v16 = vpack.c.bf16 %v1374_v15, %v1374_v15 }
 0xcd4   :  { %1379 = vst.msk [vmem:[#allocation21 + $0x18] sm:$0xf] %vm362_vm3, %v1376_v16  ;;  %2011 = vmatmul.msk.bf16.vlgmr.msrb.gmra.mxu3 %vm288_vm1, %v1376_v16  ;;  %v2054_v16 = vld [vmem:[%s3148_s18] sm:$0xff] }
 0xcd7   :  { %1509 = vadd.xlane.f32.xlu2 %v1508_v20 }
 0xcdb   :  { %v1524_v21 = vpop.permute.xlu0 %1523 }
 0xcdc   :  { %v1529_v22 = vsel %vm370_vm2, %v1524_v21, 0 }
 0xcdd   :  { %1538 = vmatpush.bf16.msra.mxu3 %v1529_v22 }
 0xd42   :  { %v1501_v24 = vpop.xlane.xlu2 %1500 }
 0xd43   :  { %v1503_v25 = vsub.f32 %v1495_v13, %v1501_v24 }
 0xd45   :  { %v1506_v27 = vmul.f32 1.442695, %v1503_v25 }
 0xd47   :  { %2171 = vpow2.f32 %v1506_v27 }
 0xd4a   :  { %v1510_v28 = vpop.xlane.xlu2 %1509 }
 0xd4b   :  { %2173 = vrcp.f32 %v1510_v28 }
 0xd4d   :  { %v2172_v30 = vpop.eup %2171 }
 0xd4e   :  { %v1511_v37 = vsel %vm288_vm1, %v2172_v30, 0.0 }
 0xd4f   :  { %1512 = vadd.xlane.f32.xlu2 %v1511_v37 }
 0xd51   :  { %v2174_v29 = vpop.eup %2173 }
 0xd52   :  { %v1516_v33 = vmul.f32 %v2174_v29, %v2170_v19 }
 0xd54   :  { %v1518_v34 = vpack.c.bf16 %v1516_v33, %v1516_v33 }
 0xd56   :  { %1521 = vst.msk [vmem:[#allocation21 + $0xc] sm:$0xf] %vm362_vm3, %v1518_v34  ;;  %2015 = vmatmul.msk.bf16.vlgmr.msra.gmra.mxu3 %vm288_vm1, %v1518_v34  ;;  %v2101_v34 = vld [vmem:[#allocation11] ss:$0 sm:$0xff] }
 0xd57   :  { %v1418_v35 = vpop.f32.mrf.mxu3 }
 0xd58   :  { %v1423_v36 = vpack.c.bf16 %v1418_v35, %v1397_v2 }
 0xd5a   :  { %2012 = vmatmul.msk.bf16.vlgmr.msrb.gmra.mxu0 %vm288_vm1, %v1423_v36 }
 0xd5f   :  { %v1420_v38 = vpop.f32.mrf.mxu3 }
 0xd67   :  { %1544 = vrot.lane.b32.xlu2 %v2918_v43, %s2536_s17  ;;  %v1565_v43 = vld [vmem:[%s3144_s14 + $0xc] sm:$0xf] }
 0xd68   :  { %v1571_v51 = vsel %vm370_vm2, %v1565_v43, 0 }
 0xd69   :  { %1580 = vmatpush.bf16.msra.mxu1 %v1571_v51 }
 0xdc2   :  { %v1513_v32 = vpop.xlane.xlu2 %1512 }
 0xdc3   :  { %2175 = vrcp.f32 %v1513_v32  ;;  %v2102_v32 = vld [vmem:[#allocation13] ss:$0 sm:$0xff] }
 0xdc9   :  { %v2176_v40 = vpop.eup %2175 }
 0xdca   :  { %v1517_v41 = vmul.f32 %v2176_v40, %v2172_v30  ;;  %v1545_v42 = vpop.permute.xlu2 %1544 }
 0xdcb   :  { %v1550_v45 = vsel %vm370_vm2, %v1545_v42, 0 }
 0xdcc   :  { %v1519_v46 = vpack.c.bf16 %v1517_v41, %v1517_v41  ;;  %1559 = vmatpush.bf16.msra.mxu0 %v1550_v45 }
 0xdce   :  { %1522 = vst.msk [vmem:[#allocation21 + $0x1c] sm:$0xf] %vm362_vm3, %v1519_v46 }
 0xdcf   :  { %2016 = vmatmul.msk.bf16.vlgmr.msra.gmra.mxu0 %vm288_vm1, %v1519_v46  ;;  %1924 = dma.vmem_to_hbm [thread:$0]  %s1917_s19, 512, %s1919_s6, [#allocation22], %s2534_s1, %s2534_s1, %s2542_s9  }
 0xdd7   :  { %v1439_v47 = vpop.f32.mrf.mxu0 }
 0xdd8   :  { %v1444_v48 = vadd.f32 %v1439_v47, %v3017_v59  ;;  %v1301_v59 = vadd.f32 %v1300_v31, %v3023_v50 }
 0xdd9   :  { %v1540_v55 = vpop.f32.mrf.mxu3 }
 0xddf   :  { %v1441_v52 = vpop.f32.mrf.mxu0 }
 0xde0   :  { %v1445_v61 = vadd.f32 %v1441_v52, %v1301_v59 }
 0xde1   :  { %v1542_v49 = vpop.f32.mrf.mxu3 }
 0xe4c   :  { %v1561_v53 = vpop.f32.mrf.mxu0 }
 0xe4d   :  { %v1566_v44 = vpack.c.bf16 %v1561_v53, %v1540_v55 }
 0xe4f   :  { %2017 = vmatmul.msk.bf16.vlgmr.msra.gmra.mxu1 %vm288_vm1, %v1566_v44 }
 0xe54   :  { %v1563_v54 = vpop.f32.mrf.mxu0 }
 0xecc   :  { %v1582_v57 = vpop.f32.mrf.mxu1 }
 0xecd   :  { %v1587_v8 = vadd.f32 %v1582_v57, %v1444_v48  ;;  %v2103_v48 = vld [vmem:[#allocation14] ss:$0 sm:$0xff] }
 0xecf   :  { %v1593_v58 = vadd.f32 %v2100_v56, %v1587_v8 }
 0xed1   :  { %v1595_v60 = vadd.f32 %v1593_v58, %v2899_v18 }
 0xed3   :  { %v1599_v62 = vsel %vm261_vm0, %v1595_v60, 0.0 }
 0xed4   :  { %1600 = vadd.xlane.f32.xlu1 %v1599_v62  ;;  %v1584_v63 = vpop.f32.mrf.mxu1 }
 0xed5   :  { %v1588_v0 = vadd.f32 %v1584_v63, %v1445_v61 }
 0xed7   :  { %v1594_v1 = vadd.f32 %v2100_v56, %v1588_v0 }
 0xed9   :  { %v1596_v2 = vadd.f32 %v1594_v1, %v2901_v17  ;;  %v2055_v17 = vld [vmem:[%s3148_s18 + $0x8] sm:$0xff]  ;;  %v2059_v1 = vld [vmem:[%s3150_s20 + $0x18] sm:$0xff] }
 0xeda   :  { %1683 = vmatpush.bf16.msra.mxu2 %v2055_v17  ;;  %1824 = vmatpush.bf16.msrb.mxu3 %v2059_v1 }
 0xedb   :  { %v1602_v3 = vsel %vm261_vm0, %v1596_v2, 0.0 }
 0xedc   :  { %1603 = vadd.xlane.f32.xlu1 %v1602_v3 }
 0xede   :  { %1684 = vmatpush.bf16.msra.mxu2 %v2054_v16 }
 0xf47   :  { %v1601_v4 = vpop.xlane.xlu1 %1600 }
 0xf48   :  { %v1605_v5 = vmul.f32 %v1601_v4, %v2875_v39 }
 0xf4a   :  { %v1607_v6 = vsub.f32 %v1595_v60, %v1605_v5 }
 0xf4c   :  { %v1609_v7 = vmul.f32 %v1607_v6, %v1607_v6 }
 0xf4e   :  { %v1611_v50 = vsel %vm261_vm0, %v1609_v7, 0.0 }
 0xf4f   :  { %1612 = vadd.xlane.f32.xlu0 %v1611_v50  ;;  %v1604_v18 = vpop.xlane.xlu1 %1603 }
 0xf50   :  { %v1606_v9 = vmul.f32 %v1604_v18, %v2875_v39  ;;  %v2058_v18 = vld [vmem:[%s3150_s20 + $0x10] sm:$0xff] }
 0xf51   :  { %1825 = vmatpush.bf16.msrb.mxu3 %v2058_v18 }
 0xf52   :  { %v1608_v10 = vsub.f32 %v1596_v2, %v1606_v9 }
 0xf54   :  { %v1610_v13 = vmul.f32 %v1608_v10, %v1608_v10 }
 0xf56   :  { %v1614_v11 = vsel %vm261_vm0, %v1610_v13, 0.0 }
 0xf57   :  { %1615 = vadd.xlane.f32.xlu1 %v1614_v11 }
 0xfc2   :  { %v1613_v12 = vpop.xlane.xlu0 %1612 }
 0xfc3   :  { %v1617_v15 = vmul.f32 %v1613_v12, %v2875_v39 }
 0xfc5   :  { %v1619_v26 = vadd.f32 1e-12, %v1617_v15 }
 0xfc7   :  { %2177 = vrsqrt.f32 %v1619_v26  ;;  %vm1627_vm12 = vweird.f32 %v1619_v26 }
 0xfca   :  { %v1616_v19 = vpop.xlane.xlu1 %1615 }
 0xfcb   :  { %v1618_v20 = vmul.f32 %v1616_v19, %v2875_v39 }
 0xfcd   :  { %v2178_v21 = vpop.eup %2177  ;;  %v1620_v22 = vadd.f32 1e-12, %v1618_v20 }
 0xfce   :  { %v1622_v14 = vmul.f32 %v2178_v21, %v1619_v26  ;;  %vm1628_vm11 = vweird.f32 %v2178_v21  ;;  %v2057_v26 = vld [vmem:[%s3150_s20 + $0x8] sm:$0xff] }
 0xfcf   :  { %2179 = vrsqrt.f32 %v1620_v22  ;;  %vm1629_vm13 = vmor %vm1627_vm12, %vm1628_vm11  ;;  %vm1637_vm15 = vweird.f32 %v1620_v22  ;;  %1826 = vmatpush.bf16.msrb.mxu3 %v2057_v26 }
 0xfd0   :  { %v1623_v23 = vmul.f32 %v2178_v21, %v1622_v14  ;;  %v2056_v14 = vld [vmem:[%s3150_s20] sm:$0xff]  ;;  %s2540_s20 = smov [#allocation20]  }
 0xfd1   :  { %s1903_s0 = sshll.u32 %s2540_s20, 4  ;;  %s1904_s0 = int_to_ptr.vmem [resolvable:$true] %s1903_s0 }
 0xfd2   :  { %v1624_v24 = vmul.f32 0.5, %v1623_v23  ;;  %1911 = dma.vmem_to_hbm [thread:$0]  %s1904_s0, 512, %s1906_s12, [#allocation4], %s2534_s1, %s2534_s1, %s2542_s9  }
 0xfd3   :  { %1827 = vmatpush.bf16.msrb.mxu3 %v2056_v14 }
 0xfd4   :  { %v1625_v25 = vsub.f32 1.5, %v1624_v24 }
 0xfd5   :  { %v2180_v27 = vpop.eup %2179 }
 0xfd6   :  { %v1626_v28 = vmul.f32 %v2178_v21, %v1625_v25  ;;  %v1632_v30 = vmul.f32 %v2180_v27, %v1620_v22  ;;  %vm1638_vm14 = vweird.f32 %v2180_v27 }
 0xfd7   :  { %vm1639_vm1 = vmor %vm1637_vm15, %vm1638_vm14  ;;  %vm1894_vm14 = vcmask 257024  }
 0xfd8   :  { %v1633_v37 = vmul.f32 %v2180_v27, %v1632_v30  ;;  %v1630_v31 = vsel %vm1629_vm13, %v2178_v21, %v1626_v28 }
 0xfd9   :  { %v1641_v35 = vmul.f32 %v1630_v31, %v1607_v6 }
 0xfda   :  { %v1634_v29 = vmul.f32 0.5, %v1633_v37 }
 0xfdb   :  { %v1646_v40 = vmul.f32 %v2101_v34, %v1641_v35 }
 0xfdc   :  { %v1635_v33 = vsub.f32 1.5, %v1634_v29 }
 0xfdd   :  { %v3067_v45 = vadd.f32 %v2102_v32, %v1646_v40 }
 0xfde   :  { %v1636_v36 = vmul.f32 %v2180_v27, %v1635_v33 }
 0xfe0   :  { %v1640_v38 = vsel %vm1639_vm1, %v2180_v27, %v1636_v36 }
 0xfe1   :  { %v1642_v41 = vmul.f32 %v1640_v38, %v1608_v10 }
 0xfe3   :  { %v1647_v42 = vmul.f32 %v2101_v34, %v1642_v41 }
 0xfe5   :  { %v3069_v46 = vadd.f32 %v2102_v32, %v1647_v42 }
 0xfe7   :  { %v1657_v47 = vpack.c.bf16 %v3069_v46, %v3067_v45 }
 0xfe9   :  { %2026 = vmatmul.msk.bf16.vlgmr.msra.gmra.mxu2 %vm261_vm0, %v1657_v47 }
0x106c   :  { %v1686_v55 = vpop.f32.mrf.mxu2 }
0x106d   :  { %v3074_v49 = vadd.f32 %v2103_v48, %v1686_v55 }
0x106f   :  { %v3077_v43 = vmul.f32 0.70710677, %v3074_v49 }
0x1071   :  { %v1695_v51 = vmul.f32 %v3077_v43, %v3077_v43 }
0x1073   :  { %v1696_v52 = vmin.f32 %v1695_v51, 16.0 }
0x1074   :  { %v1688_v53 = vpop.f32.mrf.mxu2 }
0x1075   :  { %v1697_v44 = vmul.f32 2.1237322e-06, %v1696_v52  ;;  %v1708_v54 = vmul.f32 3.8918573e-05, %v1696_v52  ;;  %v3081_v56 = vadd.f32 %v2103_v48, %v1688_v53 }
0x1077   :  { %v1698_v57 = vadd.f32 0.00028619796, %v1697_v44  ;;  %v1709_v8 = vadd.f32 0.001143296, %v1708_v54  ;;  %v3084_v58 = vmul.f32 0.70710677, %v3081_v56 }
0x1079   :  { %v1710_v59 = vmul.f32 %v1709_v8, %v1696_v52  ;;  %v1735_v60 = vmul.f32 %v3084_v58, %v3084_v58  ;;  %v1699_v61 = vmul.f32 %v1698_v57, %v1696_v52 }
0x107b   :  { %v1711_v62 = vadd.f32 0.014752088, %v1710_v59  ;;  %v1736_v63 = vmin.f32 %v1735_v60, 16.0  ;;  %v1700_v4 = vadd.f32 0.0036580483, %v1699_v61 }
0x107d   :  { %v1712_v0 = vmul.f32 %v1711_v62, %v1696_v52  ;;  %v1737_v2 = vmul.f32 2.1237322e-06, %v1736_v63  ;;  %v1748_v3 = vmul.f32 3.8918573e-05, %v1736_v63  ;;  %v1701_v13 = vmul.f32 %v1700_v4, %v1696_v52 }
0x107f   :  { %v1713_v5 = vadd.f32 0.112945676, %v1712_v0  ;;  %v1738_v6 = vadd.f32 0.00028619796, %v1737_v2  ;;  %v1749_v7 = vadd.f32 0.001143296, %v1748_v3 }
0x1080   :  { %v1702_v19 = vadd.f32 0.05243302, %v1701_v13  ;;  %v2104_v13 = vld [vmem:[#allocation16] ss:$0 sm:$0xff] }
0x1081   :  { %v1714_v50 = vmul.f32 %v1713_v5, %v1696_v52  ;;  %v1739_v9 = vmul.f32 %v1738_v6, %v1736_v63  ;;  %v1750_v10 = vmul.f32 %v1749_v7, %v1736_v63  ;;  %v1691_v6 = vmul.f32 0.5, %v3074_v49 }
0x1082   :  { %v1703_v24 = vmul.f32 %v1702_v19, %v1696_v52  ;;  %v1692_v7 = vmul.f32 0.5, %v3081_v56 }
0x1083   :  { %v1715_v11 = vadd.f32 0.4994258, %v1714_v50  ;;  %v1740_v17 = vadd.f32 0.0036580483, %v1739_v9  ;;  %v1751_v12 = vadd.f32 0.014752088, %v1750_v10 }
0x1084   :  { %v1704_v37 = vadd.f32 0.18741608, %v1703_v24 }
0x1085   :  { %v1716_v15 = vmul.f32 %v1715_v11, %v1696_v52  ;;  %v1752_v16 = vmul.f32 %v1751_v12, %v1736_v63  ;;  %v1741_v21 = vmul.f32 %v1740_v17, %v1736_v63 }
0x1086   :  { %v1705_v35 = vmul.f32 %v1704_v37, %v1696_v52 }
0x1087   :  { %v1717_v20 = vadd.f32 1.0, %v1716_v15  ;;  %v1753_v22 = vadd.f32 0.112945676, %v1752_v16  ;;  %v1742_v25 = vadd.f32 0.05243302, %v1741_v21 }
0x1088   :  { %v1706_v42 = vadd.f32 1.1283791, %v1705_v35 }
0x1089   :  { %2181 = vrcp.f32 %v1717_v20  ;;  %v1754_v23 = vmul.f32 %v1753_v22, %v1736_v63  ;;  %v1743_v29 = vmul.f32 %v1742_v25, %v1736_v63  ;;  %v1729_v38 = vand.u32 2147483648, %v1717_v20 }
0x108a   :  { %v1727_v40 = vand.u32 2147483647, %v1717_v20  ;;  %vm1723_vm3 = vweird.f32 %v1717_v20  ;;  %v1707_v54 = vmul.f32 %v1706_v42, %v3077_v43 }
0x108b   :  { %v1755_v27 = vadd.f32 0.4994258, %v1754_v23  ;;  %v1744_v32 = vadd.f32 0.18741608, %v1743_v29  ;;  %v1730_v55 = vor.u32 1.1754944e-38, %v1729_v38 }
0x108c   :  { %vm1728_vm5 = vcmp.eq.f32.partialorder %v1727_v40, 8.507059e+37 }
0x108d   :  { %v1756_v28 = vmul.f32 %v1755_v27, %v1736_v63  ;;  %v1745_v51 = vmul.f32 %v1744_v32, %v1736_v63 }
0x108f   :  { %v2182_v30 = vpop.eup %2181  ;;  %v1757_v33 = vadd.f32 1.0, %v1756_v28  ;;  %v1746_v52 = vadd.f32 1.1283791, %v1745_v51 }
0x1090   :  { %v1719_v31 = vmul.f32 %v2182_v30, %v1717_v20  ;;  %vm1724_vm2 = vweird.f32 %v2182_v30 }
0x1091   :  { %2183 = vrcp.f32 %v1757_v33  ;;  %vm1725_vm4 = vmor %vm1723_vm3, %vm1724_vm2  ;;  %v1769_v8 = vand.u32 2147483648, %v1757_v33  ;;  %v1767_v61 = vand.u32 2147483647, %v1757_v33  ;;  %vm1763_vm7 = vweird.f32 %v1757_v33 }
0x1092   :  { %v1720_v34 = vsub.f32 1.0, %v1719_v31  ;;  %v1747_v2 = vmul.f32 %v1746_v52, %v3084_v58 }
0x1093   :  { %v1770_v0 = vor.u32 1.1754944e-38, %v1769_v8  ;;  %vm1768_vm9 = vcmp.eq.f32.partialorder %v1767_v61, 8.507059e+37 }
0x1094   :  { %v1721_v36 = vmul.f32 %v2182_v30, %v1720_v34 }
0x1096   :  { %v1722_v41 = vadd.f32 %v2182_v30, %v1721_v36 }
0x1097   :  { %v2184_v47 = vpop.eup %2183 }
0x1098   :  { %v1726_v48 = vsel %vm1725_vm4, %v2182_v30, %v1722_v41  ;;  %v1759_v53 = vmul.f32 %v2184_v47, %v1757_v33  ;;  %vm1764_vm6 = vweird.f32 %v2184_v47  ;;  %v2105_v41 = vld [vmem:[#allocation17] ss:$0 sm:$0xff] }
0x1099   :  { %v1731_v44 = vsel %vm1728_vm5, %v1730_v55, %v1726_v48  ;;  %vm1765_vm8 = vmor %vm1763_vm7, %vm1764_vm6  ;;  %v2106_v48 = vld [vmem:[#allocation19] ss:$0 sm:$0xff] }
0x109a   :  { %v1760_v57 = vsub.f32 1.0, %v1759_v53  ;;  %v1732_v59 = vmul.f32 %v1731_v44, %v1707_v54 }
0x109c   :  { %v1761_v60 = vmul.f32 %v2184_v47, %v1760_v57  ;;  %v2027_v1 = vclamps-f32 %v1732_v59, 1.0 }
0x109e   :  { %v1762_v62 = vadd.f32 %v2184_v47, %v1761_v60  ;;  %v1775_v5 = vadd.f32 1.0, %v2027_v1 }
0x10a0   :  { %v1766_v63 = vsel %vm1765_vm8, %v2184_v47, %v1762_v62  ;;  %v1777_v18 = vmul.f32 %v1775_v5, %v1691_v6 }
0x10a1   :  { %v1771_v3 = vsel %vm1768_vm9, %v1770_v0, %v1766_v63 }
0x10a2   :  { %v1772_v4 = vmul.f32 %v1771_v3, %v1747_v2 }
0x10a4   :  { %v2028_v43 = vclamps-f32 %v1772_v4, 1.0 }
0x10a6   :  { %v1776_v50 = vadd.f32 1.0, %v2028_v43 }
0x10a8   :  { %v1778_v9 = vmul.f32 %v1776_v50, %v1692_v7 }
0x10aa   :  { %v1787_v10 = vpack.c.bf16 %v1778_v9, %v1777_v18 }
0x10ac   :  { %2045 = vmatmul.msk.bf16.vlgmr.msrb.gmra.mxu3 %vm1816_vm10, %v1787_v10 }
0x112f   :  { %v1829_v11 = vpop.f32.mrf.mxu3 }
0x1130   :  { %v1830_v17 = vadd.f32 %v2104_v13, %v1829_v11 }
0x1132   :  { %v1834_v58 = vadd.f32 %v1830_v17, %v3067_v45 }
0x1134   :  { %v1838_v12 = vsel %vm261_vm0, %v1834_v58, 0.0 }
0x1135   :  { %1839 = vadd.xlane.f32.xlu2 %v1838_v12 }
0x1137   :  { %v1831_v15 = vpop.f32.mrf.mxu3 }
0x1138   :  { %v1832_v26 = vadd.f32 %v2104_v13, %v1831_v15 }
0x113a   :  { %v1835_v49 = vadd.f32 %v1832_v26, %v3069_v46 }
0x113c   :  { %v1841_v56 = vsel %vm261_vm0, %v1835_v49, 0.0 }
0x113d   :  { %1842 = vadd.xlane.f32.xlu1 %v1841_v56 }
0x11a8   :  { %v1840_v16 = vpop.xlane.xlu2 %1839 }
0x11a9   :  { %v1844_v19 = vmul.f32 %v1840_v16, %v2875_v39 }
0x11ab   :  { %v1846_v20 = vsub.f32 %v1834_v58, %v1844_v19 }
0x11ad   :  { %v1848_v21 = vmul.f32 %v1846_v20, %v1846_v20 }
0x11af   :  { %v1850_v22 = vsel %vm261_vm0, %v1848_v21, 0.0 }
0x11b0   :  { %v1843_v14 = vpop.xlane.xlu1 %1842  ;;  %1851 = vadd.xlane.f32.xlu1 %v1850_v22 }
0x11b1   :  { %v1845_v45 = vmul.f32 %v1843_v14, %v2875_v39 }
0x11b3   :  { %v1847_v23 = vsub.f32 %v1835_v49, %v1845_v45 }
0x11b5   :  { %v1849_v24 = vmul.f32 %v1847_v23, %v1847_v23 }
0x11b7   :  { %v1853_v25 = vsel %vm261_vm0, %v1849_v24, 0.0 }
0x11b8   :  { %1854 = vadd.xlane.f32.xlu1 %v1853_v25 }
0x1223   :  { %v1852_v46 = vpop.xlane.xlu1 %1851 }
0x1224   :  { %v1856_v27 = vmul.f32 %v1852_v46, %v2875_v39 }
0x1226   :  { %v1858_v28 = vadd.f32 1e-12, %v1856_v27 }
0x1228   :  { %2185 = vrsqrt.f32 %v1858_v28  ;;  %vm1866_vm11 = vweird.f32 %v1858_v28 }
0x122b   :  { %v1855_v30 = vpop.xlane.xlu1 %1854 }
0x122c   :  { %v1857_v37 = vmul.f32 %v1855_v30, %v2875_v39 }
0x122e   :  { %v2186_v31 = vpop.eup %2185  ;;  %v1859_v29 = vadd.f32 1e-12, %v1857_v37 }
0x122f   :  { %v1861_v33 = vmul.f32 %v2186_v31, %v1858_v28  ;;  %vm1867_vm0 = vweird.f32 %v2186_v31 }
0x1230   :  { %2187 = vrsqrt.f32 %v1859_v29  ;;  %vm1868_vm12 = vmor %vm1866_vm11, %vm1867_vm0  ;;  %vm1876_vm15 = vweird.f32 %v1859_v29 }
0x1231   :  { %v1862_v34 = vmul.f32 %v2186_v31, %v1861_v33 }
0x1233   :  { %v1863_v35 = vmul.f32 0.5, %v1862_v34 }
0x1235   :  { %v1864_v36 = vsub.f32 1.5, %v1863_v35 }
0x1236   :  { %v2188_v38 = vpop.eup %2187 }
0x1237   :  { %v1865_v32 = vmul.f32 %v2186_v31, %v1864_v36  ;;  %v1871_v40 = vmul.f32 %v2188_v38, %v1859_v29  ;;  %vm1877_vm13 = vweird.f32 %v2188_v38 }
0x1238   :  { %vm1878_vm1 = vmor %vm1876_vm15, %vm1877_vm13 }
0x1239   :  { %v1869_v42 = vsel %vm1868_vm12, %v2186_v31, %v1865_v32  ;;  %v1872_v47 = vmul.f32 %v2188_v38, %v1871_v40 }
0x123a   :  { %v1880_v55 = vmul.f32 %v1869_v42, %v1846_v20 }
0x123b   :  { %v1873_v51 = vmul.f32 0.5, %v1872_v47 }
0x123c   :  { %v1885_v39 = vmul.f32 %v2105_v41, %v1880_v55 }
0x123d   :  { %v1874_v53 = vsub.f32 1.5, %v1873_v51 }
0x123e   :  { %v1890_v44 = vadd.f32 %v2106_v48, %v1885_v39 }
0x123f   :  { %v1875_v54 = vmul.f32 %v2188_v38, %v1874_v53 }
0x1240   :  { %v1892_v57 = vpack.c.bf16 %v1890_v44, %v1890_v44 }
0x1241   :  { %v1879_v52 = vsel %vm1878_vm1, %v2188_v38, %v1875_v54 }
0x1242   :  { %1895 = vst.msk [vmem:[%s3154_s24] sm:$0xf] %vm1894_vm14, %v1892_v57  ;;  %v1881_v8 = vmul.f32 %v1879_v52, %v1847_v23 }
0x1244   :  { %v1886_v59 = vmul.f32 %v2105_v41, %v1881_v8 }
0x1246   :  { %v1891_v60 = vadd.f32 %v2106_v48, %v1886_v59 }
0x1248   :  { %v1893_v61 = vpack.c.bf16 %v1891_v60, %v1891_v60 }
0x124a   :  { %1896 = vst.msk [vmem:[%s3154_s24 + $0x4] sm:$0xf] %vm1894_vm14, %v1893_v61 }
0x124b   :  { %2513 = dma.done.wait [#allocation4], 512  }
0x124c   :  { %2514 = vsyncadd [#allocation4], 4294966784 }
0x124d   :  { %2515 = dma.done.wait [#allocation22], 512  }
0x124e   :  { %2516 = vsyncadd [#allocation22], 4294966784 }
0x124f   :  { %1935 = vsyncpa [#allocation3], 1 }
0x1250   :  { %1936 = vsyncpa [#allocation6], 1 }
0x1251   :  { %1937 = vsyncpa [#allocation9], 1 }
0x1252   :  { %1938 = vsyncpa [#allocation12], 1 }
0x1253   :  { %1939 = vsyncpa [#allocation15], 1 }
0x1254   :  { %1940 = vsyncpa [#allocation18], 1 }
0x1255   :  { %1941 = vsyncpa [#allocation4], 1 }
0x1256   :  { %1942 = vsyncpa [#allocation22], 1 }

// kernel: _lambda_.7
= control target key start
LH: loop header
LB: loop body
LE: loop exit
PB: predicated region body
PF: predicated region fallthrough
CT: control target
= control target key end

     0   :  { %s3361_s0 = inlined_call_operand.vmem [shape: bf16[2,8,32], index: 0, kind: input, shape index: {}]   ;;  %s3362_s1 = inlined_call_operand.vmem [shape: bf16[2,8,32], index: 1, kind: input, shape index: {}]   ;;  %s3363_s2 = inlined_call_operand.vmem [shape: bf16[2,8,8], index: 2, kind: input, shape index: {}]   ;;  %s3364_s3 = inlined_call_operand.vmem [shape: bf16[2,8,8], index: 3, kind: input, shape index: {}]   ;;  %s3365_s4 = inlined_call_operand.vmem [shape: bf16[32,96], index: 4, kind: input, shape index: {}]   ;;  %s3366_s5 = inlined_call_operand.vmem [shape: f32[1,96], index: 5, kind: input, shape index: {}]   ;;  %s3367_s6 = inlined_call_operand.vmem [shape: bf16[32,32], index: 6, kind: input, shape index: {}]   ;;  %s3368_s7 = inlined_call_operand.hbm [shape: f32[1,32], index: 7, kind: input, shape index: {}]   ;;  %s3369_s8 = inlined_call_operand.hbm [shape: f32[1,32], index: 8, kind: input, shape index: {}]   ;;  %s3370_s9 = inlined_call_operand.hbm [shape: f32[1,32], index: 9, kind: input, shape index: {}]   ;;  %s3371_s10 = inlined_call_operand.vmem [shape: bf16[32,32], index: 10, kind: input, shape index: {}]   ;;  %s3372_s11 = inlined_call_operand.hbm [shape: f32[1,32], index: 11, kind: input, shape index: {}]   ;;  %s3373_s12 = inlined_call_operand.vmem [shape: bf16[32,64], index: 12, kind: input, shape index: {}]   ;;  %s3374_s13 = inlined_call_operand.hbm [shape: f32[1,64], index: 13, kind: input, shape index: {}]   ;;  %s3375_s14 = inlined_call_operand.vmem [shape: bf16[32,32], index: 14, kind: input, shape index: {}]   ;;  %s3376_s15 = inlined_call_operand.hbm [shape: f32[1,32], index: 15, kind: input, shape index: {}]   ;;  %s3377_s16 = inlined_call_operand.hbm [shape: f32[1,32], index: 16, kind: input, shape index: {}]   ;;  %s3378_s17 = inlined_call_operand.hbm [shape: f32[1,32], index: 17, kind: input, shape index: {}]   ;;  %s3379_s18 = inlined_call_operand.vmem [shape: bf16[32,64], index: 18, kind: input, shape index: {}]   ;;  %s3380_s19 = inlined_call_operand.hbm [shape: f32[1,64], index: 19, kind: input, shape index: {}]   ;;  %s3381_s20 = inlined_call_operand.vmem [shape: bf16[64,32], index: 20, kind: input, shape index: {}]   ;;  %s3382_s21 = inlined_call_operand.hbm [shape: f32[1,32], index: 21, kind: input, shape index: {}]   ;;  %s3383_s22 = inlined_call_operand.hbm [shape: f32[1,32], index: 22, kind: input, shape index: {}]   ;;  %s3384_s23 = inlined_call_operand.hbm [shape: f32[1,32], index: 23, kind: input, shape index: {}]   ;;  %s3385_s24 = inlined_call_operand.vmem [shape: bf16[32,128], index: 24, kind: input, shape index: {}]   ;;  %s3386_s25 = inlined_call_operand.hbm [shape: bf16[2,8,32], index: 25, kind: output, shape index: {0}]   ;;  %s3387_s26 = inlined_call_operand.hbm [shape: bf16[2,4,8,8], index: 26, kind: output, shape index: {1}]   ;;  %s3388_s27 = inlined_call_operand.hbm [shape: bf16[2,4,8,8], index: 27, kind: output, shape index: {2}]   ;;  %s3389_s28 = inlined_call_operand.hbm [shape: f32[2,1,128], index: 28, kind: output, shape index: {3}]  }
   0x1   :  { %3395 = sst [smem:[#allocation38_spill]] %s3361_s0 }
   0x2   :  { %3396 = sst [smem:[#allocation39_spill]] %s3362_s1 }
   0x3   :  { %3397 = sst [smem:[#allocation40_spill]] %s3363_s2 }
   0x4   :  { %3398 = sst [smem:[#allocation41_spill]] %s3364_s3 }
   0x5   :  { %3399 = sst [smem:[#allocation42_spill]] %s3365_s4 }
   0x6   :  { %3400 = sst [smem:[#allocation43_spill]] %s3366_s5 }
   0x7   :  { %3401 = sst [smem:[#allocation44_spill]] %s3367_s6 }
   0x8   :  { %3402 = sst [smem:[#allocation45_spill]] %s3368_s7 }
   0x9   :  { %3403 = sst [smem:[#allocation46_spill]] %s3369_s8 }
   0xa   :  { %3404 = sst [smem:[#allocation47_spill]] %s3370_s9 }
   0xb   :  { %3405 = sst [smem:[#allocation48_spill]] %s3371_s10 }
   0xc   :  { %3406 = sst [smem:[#allocation49_spill]] %s3372_s11 }
   0xd   :  { %3407 = sst [smem:[#allocation50_spill]] %s3373_s12 }
   0xe   :  { %3408 = sst [smem:[#allocation51_spill]] %s3389_s28 }
   0xf   :  { %34 = vsyncpa [#allocation3], 0 }
  0x10   :  { %35 = vsyncpa [#allocation6], 0 }
  0x11   :  { %36 = vsyncpa [#allocation9], 0 }
  0x12   :  { %37 = vsyncpa [#allocation12], 0 }
  0x13   :  { %38 = vsyncpa [#allocation15], 0 }
  0x14   :  { %39 = vsyncpa [#allocation18], 0 }
  0x15   :  { %40 = vsyncpa [#allocation21], 0 }
  0x16   :  { %41 = vsyncpa [#allocation4], 0 }
  0x17   :  { %42 = vsyncpa [#allocation24], 0  ;;  %s3409_s9 = sld [smem:[#allocation46_spill]] }
  0x1d   :  { %s74_s30 = sshll.u32 %s3409_s9, 4  ;;  %s75_s30 = int_to_ptr.hbm [resolvable:$true] %s74_s30 }
  0x1e   :  { %43 = vsyncpa [#allocation27], 0  ;;  %s2720_s3 = smov [#allocation5]   ;;  %s3410_s11 = sld [smem:[#allocation49_spill]] }
  0x1f   :  { %s76_s6 = sshll.u32 %s2720_s3, 4  ;;  %s2721_s2 = smov [#allocation8]   ;;  %s77_s6 = int_to_ptr.vmem [resolvable:$true] %s76_s6 }
  0x20   :  { %79 = dma.hbm_to_vmem [thread:$0]  %s75_s30, 16, %s77_s6, [#allocation6]  }
  0x21   :  { %s100_s7 = sshll.u32 %s2721_s2, 4  ;;  %s124_s4 = sshll.u32 %s3376_s15, 4  ;;  %s101_s7 = int_to_ptr.vmem [resolvable:$true] %s100_s7  ;;  %s125_s4 = int_to_ptr.hbm [resolvable:$true] %s124_s4 }
  0x22   :  { %s146_s9 = sshll.u32 %s3378_s17, 4  ;;  %s2722_s3 = smov [#allocation11]   ;;  %s147_s9 = int_to_ptr.hbm [resolvable:$true] %s146_s9 }
  0x23   :  { %s126_s28 = sshll.u32 %s2722_s3, 4  ;;  %s2723_s30 = smov [#allocation14]   ;;  %s127_s28 = int_to_ptr.vmem [resolvable:$true] %s126_s28 }
  0x24   :  { %s98_s29 = sshll.u32 %s3410_s11, 4  ;;  %s148_s6 = sshll.u32 %s2723_s30, 4  ;;  %s99_s29 = int_to_ptr.hbm [resolvable:$true] %s98_s29  ;;  %s149_s6 = int_to_ptr.vmem [resolvable:$true] %s148_s6 }
  0x25   :  { %103 = dma.hbm_to_vmem [thread:$0]  %s99_s29, 16, %s101_s7, [#allocation9]  }
  0x26   :  { %129 = dma.hbm_to_vmem [thread:$0]  %s125_s4, 16, %s127_s28, [#allocation12]  }
  0x27   :  { %s172_s11 = sshll.u32 %s3382_s21, 4  ;;  %s3411_s2 = sld [smem:[#allocation45_spill]]  ;;  %s173_s11 = int_to_ptr.hbm [resolvable:$true] %s172_s11 }
  0x28   :  { %151 = dma.hbm_to_vmem [thread:$0]  %s147_s9, 16, %s149_s6, [#allocation15]  }
  0x29   :  { %s2724_s12 = smov [#allocation17]   ;;  %s2725_s1 = smov [#allocation2]  }
  0x2a   :  { %s174_s17 = sshll.u32 %s2724_s12, 4  ;;  %s65_s28 = sshll.u32 %s2725_s1, 4  ;;  %s175_s17 = int_to_ptr.vmem [resolvable:$true] %s174_s17  ;;  %s66_s28 = int_to_ptr.vmem [resolvable:$true] %s65_s28 }
  0x2b   :  { %177 = dma.hbm_to_vmem [thread:$0]  %s173_s11, 16, %s175_s17, [#allocation18]  }
  0x2c   :  { %s3412_s5 = sld [smem:[#allocation47_spill]]  ;;  %s111_s30 = sshll.u32 %s3374_s13, 4  ;;  %s112_s30 = int_to_ptr.hbm [resolvable:$true] %s111_s30 }
  0x2d   :  { %s63_s7 = sshll.u32 %s3411_s2, 4  ;;  %s2726_s6 = smov [#allocation7]   ;;  %s64_s7 = int_to_ptr.hbm [resolvable:$true] %s63_s7 }
  0x2e   :  { %68 = dma.hbm_to_vmem [thread:$0]  %s64_s7, 16, %s66_s28, [#allocation3]  }
  0x2f   :  { %s87_s10 = sshll.u32 %s2726_s6, 4  ;;  %s2727_s0 = smov [#allocation10]   ;;  %s88_s10 = int_to_ptr.vmem [resolvable:$true] %s87_s10 }
  0x30   :  { %s113_s11 = sshll.u32 %s2727_s0, 4  ;;  %s135_s2 = sshll.u32 %s3377_s16, 4  ;;  %s114_s11 = int_to_ptr.vmem [resolvable:$true] %s113_s11  ;;  %s136_s2 = int_to_ptr.hbm [resolvable:$true] %s135_s2 }
  0x31   :  { %116 = dma.hbm_to_vmem [thread:$0]  %s112_s30, 16, %s114_s11, [#allocation9]  }
  0x32   :  { %s85_s3 = sshll.u32 %s3412_s5, 4  ;;  %s159_s17 = sshll.u32 %s3380_s19, 4  ;;  %s86_s3 = int_to_ptr.hbm [resolvable:$true] %s85_s3  ;;  %s160_s17 = int_to_ptr.hbm [resolvable:$true] %s159_s17 }
  0x33   :  { %90 = dma.hbm_to_vmem [thread:$0]  %s86_s3, 16, %s88_s10, [#allocation6]  }
  0x34   :  { %s2728_s1 = smov [#allocation13]   ;;  %s2729_s28 = smov [#allocation16]  }
  0x35   :  { %s137_s13 = sshll.u32 %s2728_s1, 4  ;;  %s161_s4 = sshll.u32 %s2729_s28, 4  ;;  %s138_s13 = int_to_ptr.vmem [resolvable:$true] %s137_s13  ;;  %s162_s4 = int_to_ptr.vmem [resolvable:$true] %s161_s4 }
  0x36   :  { %140 = dma.hbm_to_vmem [thread:$0]  %s136_s2, 16, %s138_s13, [#allocation12]  }
  0x37   :  { %s183_s3 = sshll.u32 %s3383_s22, 4  ;;  %s194_s9 = sshll.u32 %s3384_s23, 4  ;;  %s184_s3 = int_to_ptr.hbm [resolvable:$true] %s183_s3  ;;  %s195_s9 = int_to_ptr.hbm [resolvable:$true] %s194_s9 }
  0x38   :  { %164 = dma.hbm_to_vmem [thread:$0]  %s160_s17, 16, %s162_s4, [#allocation15]  }
  0x39   :  { %s2730_s30 = smov [#allocation19]   ;;  %s2731_s6 = smov [#allocation20]  }
  0x3a   :  { %s185_s19 = sshll.u32 %s2730_s30, 4  ;;  %s196_s10 = sshll.u32 %s2731_s6, 4  ;;  %s186_s19 = int_to_ptr.vmem [resolvable:$true] %s185_s19  ;;  %s197_s10 = int_to_ptr.vmem [resolvable:$true] %s196_s10 }
  0x3b   :  { %188 = dma.hbm_to_vmem [thread:$0]  %s184_s3, 16, %s186_s19, [#allocation18]  }
  0x3c   :  { %199 = dma.hbm_to_vmem [thread:$0]  %s195_s9, 16, %s197_s10, [#allocation21]  }
  0x3d   :  { %2700 = dma.done.wait [#allocation3], 16  }
  0x3e   :  { %2701 = vsyncadd [#allocation3], 4294967280 }
  0x3f   :  { %2702 = dma.done.wait [#allocation6], 32  }
  0x40   :  { %2703 = vsyncadd [#allocation6], 4294967264 }
  0x41   :  { %2704 = dma.done.wait [#allocation9], 32  }
  0x42   :  { %2705 = vsyncadd [#allocation9], 4294967264 }
  0x43   :  { %2706 = dma.done.wait [#allocation12], 32  }
  0x44   :  { %2707 = vsyncadd [#allocation12], 4294967264 }
  0x45   :  { %2708 = dma.done.wait [#allocation15], 32  }
  0x46   :  { %2709 = vsyncadd [#allocation15], 4294967264 }
  0x47   :  { %2710 = dma.done.wait [#allocation18], 32  }
  0x48   :  { %2711 = vsyncadd [#allocation18], 4294967264 }
  0x49   :  { %2712 = dma.done.wait [#allocation21], 16  }
  0x4a   :  { %2713 = vsyncadd [#allocation21], 4294967280  ;;  %s3413_s0 = sld [smem:[#allocation42_spill]]  ;;  %vm280_vm0 = vcmask 261120   ;;  %s2732_s13 = smov 96   ;;  %vm307_vm1 = vcmask 64512  }
  0x4b   :  { %s3414_s12 = sld [smem:[#allocation38_spill]]  ;;  %s2733_s28 = smov 88   ;;  %vm389_vm2 = vcmask 1043456   ;;  %vm381_vm3 = vcmask 60416  }
  0x4c   :  { %s3415_s1 = sld [smem:[#allocation43_spill]]  ;;  %s2734_s4 = smov 120  }
  0x4d   :  { %s2735_s8 = smov 56   ;;  %s2736_s5 = smov 80  }
  0x4e   :  { %s3416_s21 = sld [smem:[#allocation40_spill]]  ;;  %s2737_s9 = smov 112  }
  0x4f   :  { %s2738_s30 = smov 64   ;;  %s2739_s19 = smov 48  }
  0x50   :  { %v2168_v0 = vld [vmem:[%s3413_s0 + $0x8] sm:$0xff]  ;;  %v2167_v1 = vld [vmem:[%s3413_s0] sm:$0xff]  ;;  %s2740_s6 = smov 72   ;;  %s2741_s10 = smov 104  }
  0x51   :  { %290 = vmatpush.bf16.msra.mxu0 %v2168_v0  ;;  %v2166_v2 = vld [vmem:[%s3414_s12] sm:$0xff]  ;;  %s3417_s0 = sld [smem:[#allocation44_spill]]  ;;  %s2742_s29 = smov 40  }
  0x52   :  { %v2221_v3 = vld [vmem:[%s3415_s1] ss:$0 sm:$0xff]  ;;  %s3419_s11 = sld [smem:[#allocation39_spill]]  ;;  %s2750_s15 = smov 1  }
  0x53   :  { %s3420_s2 = sld [smem:[#allocation48_spill]] }
  0x54   :  { %v2183_v28 = vld [vmem:[%s3416_s21] sm:$0xff]   ;;  %s3418_s21 = sld [smem:[#allocation50_spill]] }
  0x55   :  { %291 = vmatpush.bf16.msra.mxu0 %v2167_v1  ;;  %v2978_v29 = vunpack.c.l.bf16 %v2183_v28  ;;  %v2988_v55 = vunpack.c.h.bf16 %v2183_v28  ;;  %s3421_s3 = sld [smem:[#allocation41_spill]] }
  0x58   :  { %2066 = vmatmul.msk.bf16.vlgmr.msra.gmra.mxu0 %vm280_vm0, %v2166_v2 }
  0xd5   :  { %v293_v4 = vpop.f32.mrf.mxu0 }
  0xd6   :  { %v294_v5 = vadd.f32 %v2221_v3, %v293_v4 }
  0xd8   :  { %v300_v6 = vpack.c.bf16 %v294_v5, %v294_v5 }
  0xda   :  { %v303_v7 = vunpack.c.l.b16 %v300_v6 }
  0xdc   :  { %v2945_v8 = vpack.c.b16 %v303_v7, %v303_v7 }
  0xdd   :  { %v295_v9 = vpop.f32.mrf.mxu0 }
  0xde   :  { %v296_v10 = vadd.f32 %v2221_v3, %v295_v9  ;;  %305 = vrot.lane.b32.xlu1 %v2945_v8, %s2732_s13  ;;  %431 = vrot.lane.b32.xlu0 %v2945_v8, %s2733_s28 }
  0xe0   :  { %v301_v11 = vpack.c.bf16 %v296_v10, %v296_v10 }
  0xe2   :  { %v328_v12 = vunpack.c.l.b16 %v301_v11 }
  0xe4   :  { %v2951_v13 = vpack.c.b16 %v328_v12, %v328_v12 }
  0xe6   :  { %454 = vrot.lane.b32.xlu2 %v2951_v13, %s2733_s28  ;;  %330 = vrot.lane.b32.xlu1 %v2951_v13, %s2732_s13 }
  0xe7   :  { %429 = vrot.lane.b32.xlu0 %v2945_v8, %s2734_s4 }
  0xee   :  { %452 = vrot.lane.b32.xlu2 %v2951_v13, %s2734_s4 }
  0xf6   :  { %506 = vrot.lane.b32.xlu2 %v2945_v8, %s2735_s8 }
  0xfe   :  { %592 = vrot.lane.b32.xlu2 %v2945_v8, %s2736_s5 }
 0x140   :  { %v455_v14 = vpop.permute.xlu2 %454 }
 0x141   :  { %v460_v20 = vsel %vm307_vm1, %v455_v14, 0 }
 0x148   :  { %v453_v15 = vpop.permute.xlu2 %452 }
 0x150   :  { %v306_v16 = vpop.permute.xlu1 %305  ;;  %v432_v17 = vpop.permute.xlu0 %431 }
 0x151   :  { %v312_v18 = vsel %vm307_vm1, %v306_v16, 0  ;;  %v437_v19 = vsel %vm307_vm1, %v432_v17, 0  ;;  %v507_v21 = vpop.permute.xlu2 %506 }
 0x152   :  { %321 = vmatpush.bf16.xpose.msra.mxu1 %v312_v18  ;;  %446 = vmatpush.bf16.xpose.msrb.mxu0 %v437_v19  ;;  %v512_v25 = vsel %vm389_vm2, %v507_v21, 0 }
 0x158   :  { %v331_v22 = vpop.permute.xlu1 %330 }
 0x159   :  { %v430_v23 = vpop.permute.xlu0 %429  ;;  %2067 = vmatmul.msk.bf16.vlgmr.msra.gmra.mxu1 %vm307_vm1, %v300_v6  ;;  %v336_v24 = vsel %vm307_vm1, %v331_v22, 0  ;;  %v593_v26 = vpop.permute.xlu2 %592 }
 0x15a   :  { %469 = vmatpush.bf16.xpose.msrb.mxu1 %v460_v20  ;;  %2071 = vmatmul.msk.bf16.vlgmr.msrb.gmra.mxu0 %vm307_vm1, %v430_v23  ;;  %v598_v27 = vsel %vm307_vm1, %v593_v26, 0 }
 0x15b   :  { %345 = vmatpush.bf16.xpose.msra.mxu2 %v336_v24 }
 0x162   :  { %2068 = vmatmul.msk.bf16.vlgmr.msra.gmra.mxu2 %vm307_vm1, %v301_v11 }
 0x163   :  { %521 = vmatpush.bf16.msrb.mxu2 %v512_v25  ;;  %v548_v25 = vld [vmem:[%s3417_s0 + $0x4] sm:$0xf] }
 0x164   :  { %v554_v26 = vsel %vm389_vm2, %v548_v25, 0 }
 0x165   :  { %563 = vmatpush.bf16.msra.mxu0 %v554_v26 }
 0x167   :  { %607 = vmatpush.bf16.xpose.msra.mxu2 %v598_v27 }
 0x169   :  { %2072 = vmatmul.msk.bf16.vlgmr.msrb.gmra.mxu1 %vm307_vm1, %v453_v15 }
 0x1d6   :  { %v323_v30 = vpop.f32.mrf.mxu1 }
 0x1d7   :  { %v351_v31 = vmul.f32 0.35355338, %v323_v30  ;;  %v448_v32 = vpop.f32.mrf.mxu0 }
 0x1d8   :  { %v475_v33 = vmul.f32 0.35355338, %v448_v32 }
 0x1d9   :  { %v355_v34 = vadd.f32 %v2978_v29, %v351_v31 }
 0x1da   :  { %v477_v35 = vadd.f32 %v2978_v29, %v475_v33 }
 0x1db   :  { %v357_v36 = vsel %vm307_vm1, %v355_v34, -inf }
 0x1dc   :  { %358 = vmax.xlane.f32.xlu2 %v357_v36  ;;  %v479_v37 = vsel %vm307_vm1, %v477_v35, -inf }
 0x1dd   :  { %480 = vmax.xlane.f32.xlu0 %v479_v37 }
 0x1de   :  { %v325_v38 = vpop.f32.mrf.mxu1 }
 0x1df   :  { %v450_v39 = vpop.f32.mrf.mxu0 }
 0x1e5   :  { %v347_v40 = vpop.f32.mrf.mxu2 }
 0x1e6   :  { %v471_v41 = vpop.f32.mrf.mxu1  ;;  %v352_v53 = vmul.f32 0.35355338, %v347_v40 }
 0x1e7   :  { %v476_v57 = vmul.f32 0.35355338, %v471_v41 }
 0x1e8   :  { %v356_v56 = vadd.f32 %v2988_v55, %v352_v53 }
 0x1e9   :  { %v478_v59 = vadd.f32 %v2988_v55, %v476_v57 }
 0x1ea   :  { %v360_v58 = vsel %vm307_vm1, %v356_v56, -inf }
 0x1eb   :  { %v482_v60 = vsel %vm307_vm1, %v478_v59, -inf }
 0x1ed   :  { %v349_v42 = vpop.f32.mrf.mxu2 }
 0x1ee   :  { %v473_v43 = vpop.f32.mrf.mxu1 }
 0x1f1   :  { %590 = vrot.lane.b32.xlu0 %v2945_v8, %s2737_s9 }
 0x24f   :  { %v359_v44 = vpop.xlane.xlu2 %358 }
 0x250   :  { %v363_v45 = vsub.f32 %v355_v34, %v359_v44  ;;  %v481_v46 = vpop.xlane.xlu0 %480 }
 0x251   :  { %v485_v47 = vsub.f32 %v477_v35, %v481_v46 }
 0x252   :  { %v365_v48 = vmul.f32 1.442695, %v363_v45 }
 0x253   :  { %v487_v49 = vmul.f32 1.442695, %v485_v47 }
 0x254   :  { %2234 = vpow2.f32 %v365_v48 }
 0x255   :  { %2236 = vpow2.f32 %v487_v49  ;;  %v427_v49 = vld [vmem:[%s3417_s0] sm:$0xf] }
 0x25a   :  { %v2235_v50 = vpop.eup %2234 }
 0x25b   :  { %v2237_v51 = vpop.eup %2236  ;;  %v369_v52 = vsel %vm307_vm1, %v2235_v50, 0.0 }
 0x25c   :  { %370 = vadd.xlane.f32.xlu2 %v369_v52  ;;  %v491_v54 = vsel %vm307_vm1, %v2237_v51, 0.0 }
 0x25d   :  { %492 = vadd.xlane.f32.xlu1 %v491_v54 }
 0x263   :  { %v591_v16 = vpop.permute.xlu0 %590 }
 0x265   :  { %361 = vmax.xlane.f32.xlu1 %v360_v58 }
 0x26d   :  { %483 = vmax.xlane.f32.xlu1 %v482_v60 }
 0x274   :  { %406 = vrot.lane.b32.xlu2 %v2951_v13, %s2738_s30 }
 0x27c   :  { %527 = vrot.lane.b32.xlu2 %v2951_v13, %s2735_s8 }
 0x284   :  { %615 = vrot.lane.b32.xlu2 %v2951_v13, %s2736_s5 }
 0x286   :  { %384 = vrot.lane.b32.xlu1 %v2945_v8, %s2738_s30 }
 0x2cf   :  { %v371_v61 = vpop.xlane.xlu2 %370 }
 0x2d0   :  { %2238 = vrcp.f32 %v371_v61  ;;  %v493_v62 = vpop.xlane.xlu1 %492 }
 0x2d1   :  { %2240 = vrcp.f32 %v493_v62 }
 0x2d6   :  { %v2239_v63 = vpop.eup %2238 }
 0x2d7   :  { %v2241_v0 = vpop.eup %2240  ;;  %v377_v1 = vmul.f32 %v2239_v63, %v2235_v50  ;;  %v407_v18 = vpop.permute.xlu2 %406  ;;  %v574_v50 = vsel %vm389_vm2, %v427_v49, 0 }
 0x2d8   :  { %v499_v2 = vmul.f32 %v2241_v0, %v2237_v51  ;;  %v362_v3 = vpop.xlane.xlu1 %361  ;;  %v412_v22 = vsel %vm389_vm2, %v407_v18, 0  ;;  %583 = vmatpush.bf16.msra.mxu1 %v574_v50 }
 0x2d9   :  { %v364_v4 = vsub.f32 %v356_v56, %v362_v3  ;;  %v379_v5 = vpack.c.bf16 %v377_v1, %v377_v1 }
 0x2da   :  { %v501_v6 = vpack.c.bf16 %v499_v2, %v499_v2 }
 0x2db   :  { %v367_v7 = vmul.f32 1.442695, %v364_v4  ;;  %382 = vst.msk [vmem:[#allocation23] sm:$0xf] %vm381_vm3, %v379_v5 }
 0x2dc   :  { %504 = vst.msk [vmem:[#allocation23 + $0x4] sm:$0xf] %vm381_vm3, %v501_v6  ;;  %2073 = vmatmul.msk.bf16.vlgmr.msrb.gmra.mxu2 %vm307_vm1, %v501_v6 }
 0x2dd   :  { %2242 = vpow2.f32 %v367_v7 }
 0x2df   :  { %v528_v21 = vpop.permute.xlu2 %527 }
 0x2e0   :  { %v484_v9 = vpop.xlane.xlu1 %483  ;;  %v533_v23 = vsel %vm389_vm2, %v528_v21, 0 }
 0x2e1   :  { %v486_v10 = vsub.f32 %v478_v59, %v484_v9 }
 0x2e3   :  { %v2243_v11 = vpop.eup %2242  ;;  %v489_v12 = vmul.f32 1.442695, %v486_v10 }
 0x2e4   :  { %v372_v14 = vsel %vm307_vm1, %v2243_v11, 0.0 }
 0x2e5   :  { %2244 = vpow2.f32 %v489_v12  ;;  %373 = vadd.xlane.f32.xlu0 %v372_v14 }
 0x2e7   :  { %v616_v32 = vpop.permute.xlu2 %615 }
 0x2e8   :  { %v621_v34 = vsel %vm307_vm1, %v616_v32, 0 }
 0x2eb   :  { %v2245_v15 = vpop.eup %2244 }
 0x2ec   :  { %2077 = vmatmul.msk.bf16.vlgmr.msra.gmra.mxu2 %vm307_vm1, %v591_v16  ;;  %v494_v17 = vsel %vm307_vm1, %v2245_v15, 0.0 }
 0x2ed   :  { %495 = vadd.xlane.f32.xlu1 %v494_v17 }
 0x2f8   :  { %v385_v19 = vpop.permute.xlu1 %384 }
 0x2f9   :  { %613 = vrot.lane.b32.xlu0 %v2951_v13, %s2737_s9  ;;  %v391_v20 = vsel %vm389_vm2, %v385_v19, 0 }
 0x2fa   :  { %400 = vmatpush.bf16.msra.mxu3 %v391_v20 }
 0x2fd   :  { %2069 = vmatmul.msk.bf16.vlgmr.msra.gmra.mxu3 %vm307_vm1, %v379_v5 }
 0x2fe   :  { %421 = vmatpush.bf16.msrb.mxu3 %v412_v22 }
 0x302   :  { %542 = vmatpush.bf16.msra.mxu3 %v533_v23 }
 0x306   :  { %667 = vrot.lane.b32.xlu1 %v2945_v8, %s2739_s19 }
 0x30e   :  { %758 = vrot.lane.b32.xlu1 %v2951_v13, %s2740_s6 }
 0x316   :  { %733 = vrot.lane.b32.xlu1 %v2945_v8, %s2741_s10 }
 0x358   :  { %v374_v24 = vpop.xlane.xlu0 %373 }
 0x359   :  { %2246 = vrcp.f32 %v374_v24 }
 0x35f   :  { %v2247_v27 = vpop.eup %2246  ;;  %v523_v28 = vpop.f32.mrf.mxu2 }
 0x360   :  { %v378_v30 = vmul.f32 %v2247_v27, %v2243_v11  ;;  %v496_v31 = vpop.xlane.xlu1 %495 }
 0x361   :  { %2248 = vrcp.f32 %v496_v31 }
 0x362   :  { %v380_v33 = vpack.c.bf16 %v378_v30, %v378_v30 }
 0x364   :  { %383 = vst.msk [vmem:[#allocation23 + $0x10] sm:$0xf] %vm381_vm3, %v380_v33  ;;  %2070 = vmatmul.msk.bf16.vlgmr.msrb.gmra.mxu3 %vm307_vm1, %v380_v33 }
 0x365   :  { %630 = vmatpush.bf16.xpose.msrb.mxu3 %v621_v34 }
 0x367   :  { %v2249_v35 = vpop.eup %2248  ;;  %v525_v36 = vpop.f32.mrf.mxu2 }
 0x368   :  { %v500_v37 = vmul.f32 %v2249_v35, %v2245_v15 }
 0x36a   :  { %v502_v38 = vpack.c.bf16 %v500_v37, %v500_v37 }
 0x36b   :  { %v614_v47 = vpop.permute.xlu0 %613 }
 0x36c   :  { %505 = vst.msk [vmem:[#allocation23 + $0x14] sm:$0xf] %vm381_vm3, %v502_v38 }
 0x36f   :  { %v609_v39 = vpop.f32.mrf.mxu2 }
 0x370   :  { %v636_v40 = vmul.f32 0.35355338, %v609_v39 }
 0x372   :  { %v638_v41 = vadd.f32 %v2978_v29, %v636_v40 }
 0x374   :  { %2074 = vmatmul.msk.bf16.vlgmr.msra.gmra.mxu3 %vm307_vm1, %v502_v38  ;;  %v640_v42 = vsel %vm307_vm1, %v638_v41, -inf }
 0x375   :  { %641 = vmax.xlane.f32.xlu2 %v640_v42 }
 0x377   :  { %v611_v43 = vpop.f32.mrf.mxu2 }
 0x378   :  { %v668_v44 = vpop.permute.xlu1 %667 }
 0x379   :  { %v673_v45 = vsel %vm389_vm2, %v668_v44, 0 }
 0x37a   :  { %682 = vmatpush.bf16.msrb.mxu0 %v673_v45 }
 0x380   :  { %v402_v46 = vpop.f32.mrf.mxu3  ;;  %v759_v57 = vpop.permute.xlu1 %758 }
 0x381   :  { %v764_v2 = vsel %vm307_vm1, %v759_v57, 0 }
 0x384   :  { %2078 = vmatmul.msk.bf16.vlgmr.msrb.gmra.mxu3 %vm307_vm1, %v614_v47 }
 0x388   :  { %v404_v48 = vpop.f32.mrf.mxu3  ;;  %v734_v0 = vpop.permute.xlu1 %733 }
 0x389   :  { %v709_v48 = vld [vmem:[%s3417_s0 + $0x8] sm:$0xf] }
 0x38d   :  { %735 = vrot.lane.b32.xlu2 %v2945_v8, %s2740_s6 }
 0x3e7   :  { %v423_v51 = vpop.f32.mrf.mxu3 }
 0x3e8   :  { %v428_v52 = vpack.c.bf16 %v423_v51, %v402_v46  ;;  %v642_v53 = vpop.xlane.xlu2 %641 }
 0x3e9   :  { %v646_v54 = vsub.f32 %v638_v41, %v642_v53 }
 0x3ea   :  { %2076 = vmatmul.msk.bf16.vlgmr.msra.gmra.mxu1 %vm307_vm1, %v428_v52 }
 0x3eb   :  { %v648_v56 = vmul.f32 1.442695, %v646_v54 }
 0x3ed   :  { %2250 = vpow2.f32 %v648_v56 }
 0x3ef   :  { %v425_v58 = vpop.f32.mrf.mxu3 }
 0x3f0   :  { %v736_v59 = vpop.permute.xlu2 %735 }
 0x3f1   :  { %v741_v60 = vsel %vm307_vm1, %v736_v59, 0 }
 0x3f2   :  { %750 = vmatpush.bf16.xpose.msra.mxu3 %v741_v60 }
 0x3f3   :  { %v2251_v61 = vpop.eup %2250 }
 0x3f4   :  { %v652_v62 = vsel %vm307_vm1, %v2251_v61, 0.0 }
 0x3f5   :  { %653 = vadd.xlane.f32.xlu0 %v652_v62 }
 0x3f7   :  { %v544_v63 = vpop.f32.mrf.mxu3 }
 0x3f8   :  { %v549_v1 = vpack.c.bf16 %v544_v63, %v523_v28 }
 0x3f9   :  { %2082 = vmatmul.msk.bf16.vlgmr.msra.gmra.mxu3 %vm307_vm1, %v734_v0 }
 0x3fa   :  { %2075 = vmatmul.msk.bf16.vlgmr.msra.gmra.mxu0 %vm307_vm1, %v549_v1 }
 0x3fb   :  { %773 = vmatpush.bf16.xpose.msra.mxu0 %v764_v2 }
 0x3ff   :  { %v546_v3 = vpop.f32.mrf.mxu3 }
 0x407   :  { %v632_v4 = vpop.f32.mrf.mxu3 }
 0x408   :  { %v637_v5 = vmul.f32 0.35355338, %v632_v4 }
 0x409   :  { %756 = vrot.lane.b32.xlu0 %v2951_v13, %s2741_s10 }
 0x40a   :  { %v639_v6 = vadd.f32 %v2988_v55, %v637_v5 }
 0x40c   :  { %v643_v7 = vsel %vm307_vm1, %v639_v6, -inf }
 0x40d   :  { %644 = vmax.xlane.f32.xlu1 %v643_v7 }
 0x40f   :  { %v634_v9 = vpop.f32.mrf.mxu3 }
 0x411   :  { %688 = vrot.lane.b32.xlu0 %v2951_v13, %s2739_s19 }
 0x467   :  { %v585_v15 = vpop.f32.mrf.mxu1 }
 0x468   :  { %v654_v10 = vpop.xlane.xlu0 %653 }
 0x469   :  { %2252 = vrcp.f32 %v654_v10 }
 0x46f   :  { %v2253_v11 = vpop.eup %2252  ;;  %v587_v57 = vpop.f32.mrf.mxu1 }
 0x470   :  { %v660_v12 = vmul.f32 %v2253_v11, %v2251_v61 }
 0x472   :  { %v662_v14 = vpack.c.bf16 %v660_v12, %v660_v12 }
 0x474   :  { %665 = vst.msk [vmem:[#allocation23 + $0x8] sm:$0xf] %vm381_vm3, %v662_v14  ;;  %2079 = vmatmul.msk.bf16.vlgmr.msrb.gmra.mxu0 %vm307_vm1, %v662_v14 }
 0x477   :  { %v565_v16 = vpop.f32.mrf.mxu0 }
 0x478   :  { %v3053_v17 = vadd.f32 %v585_v15, %v565_v16 }
 0x47b   :  { %v757_v18 = vpop.permute.xlu0 %756 }
 0x47c   :  { %v752_v19 = vpop.f32.mrf.mxu3 }
 0x47d   :  { %v779_v20 = vmul.f32 0.35355338, %v752_v19  ;;  %v2222_v19 = vld [vmem:[#allocation2] ss:$0 sm:$0xff] }
 0x47f   :  { %v781_v21 = vadd.f32 %v2978_v29, %v779_v20  ;;  %v3060_v32 = vpop.f32.mrf.mxu0 }
 0x480   :  { %v645_v22 = vpop.xlane.xlu1 %644 }
 0x481   :  { %v647_v23 = vsub.f32 %v639_v6, %v645_v22  ;;  %v783_v24 = vsel %vm307_vm1, %v781_v21, -inf }
 0x482   :  { %784 = vmax.xlane.f32.xlu1 %v783_v24 }
 0x483   :  { %v650_v25 = vmul.f32 1.442695, %v647_v23  ;;  %v689_v26 = vpop.permute.xlu0 %688  ;;  %v588_v23 = vadd.f32 %v587_v57, %v3060_v32  ;;  %v2169_v57 = vld [vmem:[%s3420_s2] sm:$0xff] }
 0x484   :  { %v694_v27 = vsel %vm389_vm2, %v689_v26, 0  ;;  %v754_v28 = vpop.f32.mrf.mxu3  ;;  %2083 = vmatmul.msk.bf16.vlgmr.msra.gmra.mxu0 %vm307_vm1, %v757_v18  ;;  %v251_v18 = vld [vmem:[%s3414_s12] sm:$0xff]  }
 0x485   :  { %2254 = vpow2.f32 %v650_v25  ;;  %703 = vmatpush.bf16.msrb.mxu1 %v694_v27 }
 0x48b   :  { %v2255_v30 = vpop.eup %2254 }
 0x48c   :  { %v655_v31 = vsel %vm307_vm1, %v2255_v30, 0.0 }
 0x48d   :  { %656 = vadd.xlane.f32.xlu2 %v655_v31 }
 0x4f1   :  { %v684_v29 = vpop.f32.mrf.mxu0 }
 0x4f5   :  { %v785_v33 = vpop.xlane.xlu1 %784 }
 0x4f6   :  { %v789_v34 = vsub.f32 %v781_v21, %v785_v33  ;;  %v253_v21 = vunpack.c.l.bf16 %v251_v18 }
 0x4f8   :  { %v791_v35 = vmul.f32 1.442695, %v789_v34  ;;  %v2743_v34 = vmov 32.0  }
 0x4f9   :  { %v686_v36 = vpop.f32.mrf.mxu0 }
 0x4fa   :  { %2256 = vpow2.f32 %v791_v35 }
 0x500   :  { %v2257_v37 = vpop.eup %2256  ;;  %v657_v38 = vpop.xlane.xlu2 %656 }
 0x501   :  { %2258 = vrcp.f32 %v657_v38  ;;  %v775_v39 = vpop.f32.mrf.mxu0  ;;  %v795_v40 = vsel %vm307_vm1, %v2257_v37, 0.0 }
 0x502   :  { %v780_v41 = vmul.f32 0.35355338, %v775_v39  ;;  %796 = vadd.xlane.f32.xlu1 %v795_v40 }
 0x504   :  { %v782_v42 = vadd.f32 %v2988_v55, %v780_v41  ;;  %v715_v55 = vsel %vm389_vm2, %v709_v48, 0 }
 0x505   :  { %724 = vmatpush.bf16.msrb.mxu2 %v715_v55 }
 0x506   :  { %v786_v43 = vsel %vm307_vm1, %v782_v42, -inf }
 0x507   :  { %v2259_v44 = vpop.eup %2258  ;;  %787 = vmax.xlane.f32.xlu0 %v786_v43 }
 0x508   :  { %v661_v45 = vmul.f32 %v2259_v44, %v2255_v30  ;;  %v254_v30 = vunpack.c.h.bf16 %v251_v18 }
 0x509   :  { %v777_v46 = vpop.f32.mrf.mxu0 }
 0x50a   :  { %v663_v47 = vpack.c.bf16 %v661_v45, %v661_v45 }
 0x50c   :  { %666 = vst.msk [vmem:[#allocation23 + $0x18] sm:$0xf] %vm381_vm3, %v663_v47  ;;  %2080 = vmatmul.msk.bf16.vlgmr.msrb.gmra.mxu1 %vm307_vm1, %v663_v47 }
 0x51b   :  { %810 = vrot.lane.b32.xlu1 %v2945_v8, %s2742_s29 }
 0x575   :  { %v797_v49 = vpop.xlane.xlu1 %796 }
 0x576   :  { %2260 = vrcp.f32 %v797_v49  ;;  %v2173_v49 = vld [vmem:[%s3418_s21 + $0x8] sm:$0xff] }
 0x57a   :  { %v788_v50 = vpop.xlane.xlu0 %787 }
 0x57b   :  { %v790_v51 = vsub.f32 %v782_v42, %v788_v50  ;;  %v2172_v50 = vld [vmem:[%s3418_s21] sm:$0xff]  ;;  %s2747_s21 = smov [#allocation25]  }
 0x57c   :  { %v2261_v52 = vpop.eup %2260  ;;  %s2006_s19 = sshll.u32 %s2747_s21, 4  ;;  %s2007_s19 = int_to_ptr.vmem [resolvable:$true] %s2006_s19 }
 0x57d   :  { %v803_v53 = vmul.f32 %v2261_v52, %v2257_v37  ;;  %v793_v54 = vmul.f32 1.442695, %v790_v51  ;;  %v2171_v51 = vld [vmem:[%s3419_s11] sm:$0xff]  ;;  %v2170_v52 = vld [vmem:[%s3420_s2 + $0x8] sm:$0xff] }
 0x57e   :  { %977 = vmatpush.bf16.msrb.mxu0 %v2170_v52 }
 0x57f   :  { %v805_v56 = vpack.c.bf16 %v803_v53, %v803_v53  ;;  %2262 = vpow2.f32 %v793_v54 }
 0x581   :  { %808 = vst.msk [vmem:[#allocation23 + $0xc] sm:$0xf] %vm381_vm3, %v805_v56 }
 0x582   :  { %978 = vmatpush.bf16.msrb.mxu0 %v2169_v57 }
 0x585   :  { %v2263_v8 = vpop.eup %2262 }
 0x586   :  { %v798_v58 = vsel %vm307_vm1, %v2263_v8, 0.0 }
 0x587   :  { %799 = vadd.xlane.f32.xlu2 %v798_v58 }
 0x589   :  { %v705_v59 = vpop.f32.mrf.mxu1 }
 0x58a   :  { %v710_v60 = vpack.c.bf16 %v705_v59, %v684_v29 }
 0x58c   :  { %2081 = vmatmul.msk.bf16.vlgmr.msrb.gmra.mxu2 %vm307_vm1, %v710_v60 }
 0x58d   :  { %v811_v61 = vpop.permute.xlu1 %810 }
 0x58e   :  { %v816_v62 = vsel %vm389_vm2, %v811_v61, 0 }
 0x58f   :  { %825 = vmatpush.bf16.msra.mxu1 %v816_v62 }
 0x591   :  { %v707_v63 = vpop.f32.mrf.mxu1 }
 0x592   :  { %2084 = vmatmul.msk.bf16.vlgmr.msra.gmra.mxu1 %vm307_vm1, %v805_v56 }
 0x593   :  { %1021 = vmatpush.bf16.msrb.mxu1 %v2173_v49  ;;  %v2187_v49 = vld [vmem:[%s3421_s3] sm:$0xff]  }
 0x597   :  { %1022 = vmatpush.bf16.msrb.mxu1 %v2172_v50  ;;  %v3150_v50 = vunpack.c.l.bf16 %v2187_v49 }
 0x59f   :  { %831 = vrot.lane.b32.xlu2 %v2951_v13, %s2742_s29  ;;  %v852_v13 = vld [vmem:[%s3417_s0 + $0xc] sm:$0xf]  ;;  %s3422_s0 = sld [smem:[#allocation51_spill]] }
 0x5a0   :  { %v858_v11 = vsel %vm389_vm2, %v852_v13, 0 }
 0x5a1   :  { %867 = vmatpush.bf16.msrb.mxu3 %v858_v11 }
 0x5a2   :  { %2108 = vmatmul.msk.bf16.vlgmr.msrb.gmra.mxu1 %vm280_vm0, %v2171_v51 }
 0x5a5   :  { %s2021_s11 = sshll.u32 %s3422_s0, 4  ;;  %s2022_s11 = int_to_ptr.hbm [resolvable:$true] %s2021_s11 }
 0x5fa   :  { %v800_v0 = vpop.xlane.xlu2 %799 }
 0x5fb   :  { %2264 = vrcp.f32 %v800_v0 }
 0x5fc   :  { %2266 = vrcp.f32 %v2743_v34 }
 0x601   :  { %v2265_v1 = vpop.eup %2264 }
 0x602   :  { %v804_v2 = vmul.f32 %v2265_v1, %v2263_v8  ;;  %v832_v3 = vpop.permute.xlu2 %831  ;;  %v2267_v35 = vpop.eup %2266 }
 0x603   :  { %v837_v4 = vsel %vm389_vm2, %v832_v3, 0  ;;  %v893_v36 = vmul.f32 32.0, %v2267_v35  ;;  %vm897_vm4 = vweird.f32 %v2267_v35 }
 0x604   :  { %v806_v5 = vpack.c.bf16 %v804_v2, %v804_v2  ;;  %846 = vmatpush.bf16.msra.mxu2 %v837_v4 }
 0x605   :  { %v894_v37 = vsub.f32 1.0, %v893_v36 }
 0x606   :  { %809 = vst.msk [vmem:[#allocation23 + $0x1c] sm:$0xf] %vm381_vm3, %v806_v5 }
 0x607   :  { %2085 = vmatmul.msk.bf16.vlgmr.msra.gmra.mxu2 %vm307_vm1, %v806_v5  ;;  %v895_v38 = vmul.f32 %v2267_v35, %v894_v37 }
 0x609   :  { %v896_v32 = vadd.f32 %v2267_v35, %v895_v38 }
 0x60b   :  { %v3093_v39 = vsel %vm897_vm4, %v2267_v35, %v896_v32 }
 0x60f   :  { %v726_v6 = vpop.f32.mrf.mxu2  ;;  %v827_v7 = vpop.f32.mrf.mxu1 }
 0x610   :  { %v731_v9 = vadd.f32 %v726_v6, %v3053_v17 }
 0x617   :  { %v829_v10 = vpop.f32.mrf.mxu1  ;;  %v728_v12 = vpop.f32.mrf.mxu2 }
 0x618   :  { %v732_v25 = vadd.f32 %v728_v12, %v588_v23  ;;  %v2224_v12 = vld [vmem:[#allocation7] ss:$0 sm:$0xff] }
 0x68a   :  { %v848_v14 = vpop.f32.mrf.mxu2 }
 0x68b   :  { %v853_v15 = vpack.c.bf16 %v848_v14, %v827_v7 }
 0x68d   :  { %2086 = vmatmul.msk.bf16.vlgmr.msrb.gmra.mxu3 %vm307_vm1, %v853_v15 }
 0x692   :  { %v850_v16 = vpop.f32.mrf.mxu2 }
 0x710   :  { %v869_v17 = vpop.f32.mrf.mxu3 }
 0x711   :  { %v874_v20 = vadd.f32 %v869_v17, %v731_v9  ;;  %v2223_v9 = vld [vmem:[#allocation5] ss:$0 sm:$0xff] }
 0x713   :  { %v880_v22 = vadd.f32 %v2222_v19, %v874_v20  ;;  %v2225_v20 = vld [vmem:[#allocation10] ss:$0 sm:$0xff] }
 0x715   :  { %v882_v24 = vadd.f32 %v880_v22, %v253_v21  ;;  %v1024_v21 = vpop.f32.mrf.mxu1 }
 0x716   :  { %v1025_v22 = vadd.f32 %v2225_v20, %v1024_v21 }
 0x717   :  { %v886_v26 = vsel %vm280_vm0, %v882_v24, 0.0 }
 0x718   :  { %v871_v27 = vpop.f32.mrf.mxu3  ;;  %887 = vadd.xlane.f32.xlu0 %v886_v26  ;;  %v1033_v23 = vpack.c.bf16 %v1025_v22, %v1025_v22 }
 0x719   :  { %v875_v28 = vadd.f32 %v871_v27, %v732_v25 }
 0x71a   :  { %v1106_v25 = vunpack.c.l.b16 %v1033_v23 }
 0x71b   :  { %v881_v31 = vadd.f32 %v2222_v19, %v875_v28 }
 0x71c   :  { %v3125_v26 = vpack.c.b16 %v1106_v25, %v1106_v25 }
 0x71d   :  { %v883_v29 = vadd.f32 %v881_v31, %v254_v30  ;;  %v1026_v27 = vpop.f32.mrf.mxu1 }
 0x71e   :  { %v1027_v28 = vadd.f32 %v2225_v20, %v1026_v27 }
 0x71f   :  { %v889_v33 = vsel %vm280_vm0, %v883_v29, 0.0 }
 0x720   :  { %890 = vadd.xlane.f32.xlu2 %v889_v33  ;;  %v1034_v30 = vpack.c.bf16 %v1027_v28, %v1027_v28 }
 0x722   :  { %v1058_v31 = vsel %vm307_vm1, %v1034_v30, 0 }
 0x723   :  { %1067 = vmatpush.bf16.xpose.msra.mxu3 %v1058_v31 }
 0x78b   :  { %v888_v40 = vpop.xlane.xlu0 %887 }
 0x78c   :  { %v899_v41 = vmul.f32 %v3093_v39, %v888_v40  ;;  %v1130_v40 = vunpack.c.l.b16 %v1034_v30 }
 0x78e   :  { %v901_v42 = vsub.f32 %v882_v24, %v899_v41  ;;  %v1039_v24 = vsel %vm307_vm1, %v1033_v23, 0 }
 0x78f   :  { %1048 = vmatpush.bf16.xpose.msrb.mxu2 %v1039_v24 }
 0x790   :  { %v903_v43 = vmul.f32 %v901_v42, %v901_v42 }
 0x792   :  { %v905_v44 = vsel %vm280_vm0, %v903_v43, 0.0  ;;  %v3136_v43 = vpack.c.b16 %v1130_v40, %v1130_v40 }
 0x793   :  { %v891_v45 = vpop.xlane.xlu2 %890  ;;  %906 = vadd.xlane.f32.xlu0 %v905_v44 }
 0x794   :  { %v900_v46 = vmul.f32 %v3093_v39, %v891_v45 }
 0x796   :  { %v902_v47 = vsub.f32 %v883_v29, %v900_v46  ;;  %v2226_v29 = vld [vmem:[#allocation8] ss:$0 sm:$0xff] }
 0x798   :  { %v904_v48 = vmul.f32 %v902_v47, %v902_v47 }
 0x79a   :  { %v908_v55 = vsel %vm280_vm0, %v904_v48, 0.0 }
 0x79b   :  { %909 = vadd.xlane.f32.xlu1 %v908_v55 }
 0x7a7   :  { %1160 = vrot.lane.b32.xlu0 %v3125_v26, %s2734_s4 }
 0x806   :  { %v907_v53 = vpop.xlane.xlu0 %906 }
 0x807   :  { %v911_v54 = vmul.f32 %v907_v53, %v3093_v39 }
 0x809   :  { %v913_v56 = vadd.f32 1e-12, %v911_v54 }
 0x80b   :  { %2268 = vrsqrt.f32 %v913_v56  ;;  %vm921_vm6 = vweird.f32 %v913_v56 }
 0x80e   :  { %v910_v8 = vpop.xlane.xlu1 %909 }
 0x80f   :  { %v912_v58 = vmul.f32 %v910_v8, %v3093_v39 }
 0x811   :  { %v2269_v59 = vpop.eup %2268  ;;  %v914_v60 = vadd.f32 1e-12, %v912_v58 }
 0x812   :  { %v916_v61 = vmul.f32 %v2269_v59, %v913_v56  ;;  %vm922_vm5 = vweird.f32 %v2269_v59 }
 0x813   :  { %2270 = vrsqrt.f32 %v914_v60  ;;  %vm923_vm7 = vmor %vm921_vm6, %vm922_vm5  ;;  %vm931_vm9 = vweird.f32 %v914_v60 }
 0x814   :  { %v917_v62 = vmul.f32 %v2269_v59, %v916_v61 }
 0x816   :  { %v918_v63 = vmul.f32 0.5, %v917_v62 }
 0x818   :  { %v919_v0 = vsub.f32 1.5, %v918_v63 }
 0x819   :  { %v2271_v1 = vpop.eup %2270  ;;  %v1161_v45 = vpop.permute.xlu0 %1160 }
 0x81a   :  { %v920_v2 = vmul.f32 %v2269_v59, %v919_v0  ;;  %v926_v3 = vmul.f32 %v2271_v1, %v914_v60  ;;  %vm932_vm8 = vweird.f32 %v2271_v1  ;;  %v1166_v46 = vsel %vm307_vm1, %v1161_v45, 0 }
 0x81b   :  { %vm933_vm10 = vmor %vm931_vm9, %vm932_vm8  ;;  %1175 = vmatpush.bf16.xpose.msra.mxu2 %v1166_v46 }
 0x81c   :  { %v927_v4 = vmul.f32 %v2271_v1, %v926_v3  ;;  %v924_v5 = vsel %vm923_vm7, %v2269_v59, %v920_v2 }
 0x81d   :  { %v935_v10 = vmul.f32 %v924_v5, %v901_v42 }
 0x81e   :  { %v928_v6 = vmul.f32 0.5, %v927_v4 }
 0x81f   :  { %v940_v14 = vmul.f32 %v2223_v9, %v935_v10 }
 0x820   :  { %v929_v7 = vsub.f32 1.5, %v928_v6 }
 0x821   :  { %v3117_v18 = vadd.f32 %v2224_v12, %v940_v14  ;;  %v3167_v14 = vunpack.c.h.bf16 %v2187_v49 }
 0x822   :  { %v930_v13 = vmul.f32 %v2271_v1, %v929_v7 }
 0x824   :  { %v934_v11 = vsel %vm933_vm10, %v2271_v1, %v930_v13  ;;  %vm1835_vm10 = vcmask 523264  }
 0x825   :  { %v936_v15 = vmul.f32 %v934_v11, %v902_v47 }
 0x827   :  { %v941_v16 = vmul.f32 %v2223_v9, %v936_v15 }
 0x829   :  { %v3119_v19 = vadd.f32 %v2224_v12, %v941_v16 }
 0x82b   :  { %v951_v17 = vpack.c.bf16 %v3119_v19, %v3117_v18 }
 0x82d   :  { %2095 = vmatmul.msk.bf16.vlgmr.msrb.gmra.mxu0 %vm280_vm0, %v951_v17 }
 0x8aa   :  { %v980_v33 = vpop.f32.mrf.mxu0 }
 0x8ab   :  { %v981_v34 = vadd.f32 %v2226_v29, %v980_v33 }
 0x8ad   :  { %v1031_v35 = vpack.c.bf16 %v981_v34, %v981_v34 }
 0x8af   :  { %v1156_v36 = vunpack.c.l.b16 %v1031_v35  ;;  %2109 = vmatmul.msk.bf16.vlgmr.msrb.gmra.mxu2 %vm307_vm1, %v1031_v35 }
 0x8b1   :  { %v3131_v37 = vpack.c.b16 %v1156_v36, %v1156_v36 }
 0x8b2   :  { %v982_v38 = vpop.f32.mrf.mxu0 }
 0x8b3   :  { %v983_v32 = vadd.f32 %v2226_v29, %v982_v38  ;;  %1158 = vrot.lane.b32.xlu0 %v3131_v37, %s2734_s4 }
 0x8b5   :  { %v1032_v41 = vpack.c.bf16 %v983_v32, %v983_v32 }
 0x8b7   :  { %v1182_v42 = vunpack.c.l.b16 %v1032_v41  ;;  %2110 = vmatmul.msk.bf16.vlgmr.msra.gmra.mxu3 %vm307_vm1, %v1032_v41 }
 0x8b9   :  { %v3138_v44 = vpack.c.b16 %v1182_v42, %v1182_v42 }
 0x8bb   :  { %1184 = vrot.lane.b32.xlu2 %v3138_v44, %s2734_s4  ;;  %1186 = vrot.lane.b32.xlu0 %v3136_v43, %s2734_s4  ;;  %s2745_s4 = smov 4  }
 0x915   :  { %v1185_v53 = vpop.permute.xlu2 %1184 }
 0x925   :  { %v1159_v47 = vpop.permute.xlu0 %1158 }
 0x926   :  { %2113 = vmatmul.msk.bf16.vlgmr.msra.gmra.mxu2 %vm307_vm1, %v1159_v47 }
 0x92d   :  { %v1187_v48 = vpop.permute.xlu0 %1186 }
 0x92e   :  { %v1192_v55 = vsel %vm307_vm1, %v1187_v48, 0 }
 0x92f   :  { %1201 = vmatpush.bf16.xpose.msrb.mxu3 %v1192_v55 }
 0x932   :  { %v1050_v51 = vpop.f32.mrf.mxu2 }
 0x933   :  { %v1073_v52 = vmul.f32 0.35355338, %v1050_v51 }
 0x935   :  { %v1077_v54 = vadd.f32 %v3150_v50, %v1073_v52 }
 0x936   :  { %2114 = vmatmul.msk.bf16.vlgmr.msrb.gmra.mxu3 %vm307_vm1, %v1185_v53 }
 0x937   :  { %v1079_v56 = vsel %vm307_vm1, %v1077_v54, -inf }
 0x938   :  { %1080 = vmax.xlane.f32.xlu0 %v1079_v56 }
 0x93a   :  { %v1052_v57 = vpop.f32.mrf.mxu2  ;;  %v1069_v8 = vpop.f32.mrf.mxu3 }
 0x93b   :  { %v1074_v16 = vmul.f32 0.35355338, %v1069_v8 }
 0x93d   :  { %v1078_v20 = vadd.f32 %v3167_v14, %v1074_v16 }
 0x93f   :  { %v1082_v25 = vsel %vm307_vm1, %v1078_v20, -inf }
 0x942   :  { %v1071_v58 = vpop.f32.mrf.mxu3 }
 0x943   :  { %v1280_v58 = vld [vmem:[%s3375_s14 + $0x4] sm:$0xf] }
 0x94c   :  { %1238 = vrot.lane.b32.xlu0 %v3125_v26, %s2733_s28 }
 0x9a9   :  { %v1177_v59 = vpop.f32.mrf.mxu2 }
 0x9aa   :  { %v1207_v60 = vmul.f32 0.35355338, %v1177_v59  ;;  %v1286_v59 = vsel %vm389_vm2, %v1280_v58, 0 }
 0x9ab   :  { %v1081_v2 = vpop.xlane.xlu0 %1080  ;;  %1295 = vmatpush.bf16.msrb.mxu2 %v1286_v59 }
 0x9ac   :  { %v1209_v61 = vadd.f32 %v3150_v50, %v1207_v60  ;;  %v1085_v3 = vsub.f32 %v1077_v54, %v1081_v2 }
 0x9ae   :  { %v1211_v62 = vsel %vm307_vm1, %v1209_v61, -inf  ;;  %v1087_v4 = vmul.f32 1.442695, %v1085_v3 }
 0x9af   :  { %1212 = vmax.xlane.f32.xlu1 %v1211_v62 }
 0x9b0   :  { %2272 = vpow2.f32 %v1087_v4 }
 0x9b1   :  { %v1179_v63 = vpop.f32.mrf.mxu2 }
 0x9b6   :  { %v2273_v5 = vpop.eup %2272 }
 0x9b7   :  { %v1091_v6 = vsel %vm307_vm1, %v2273_v5, 0.0 }
 0x9b9   :  { %v1203_v0 = vpop.f32.mrf.mxu3 }
 0x9ba   :  { %v1208_v11 = vmul.f32 0.35355338, %v1203_v0 }
 0x9bc   :  { %v1210_v15 = vadd.f32 %v3167_v14, %v1208_v11 }
 0x9be   :  { %v1214_v17 = vsel %vm307_vm1, %v1210_v15, -inf  ;;  %v1239_v21 = vpop.permute.xlu0 %1238 }
 0x9bf   :  { %v1244_v24 = vsel %vm389_vm2, %v1239_v21, 0 }
 0x9c1   :  { %v1205_v1 = vpop.f32.mrf.mxu3 }
 0x9c8   :  { %1108 = vrot.lane.b32.xlu1 %v3125_v26, %s2732_s13 }
 0x9f2   :  { %1092 = vadd.xlane.f32.xlu1 %v1091_v6 }
 0xa0b   :  { %1324 = vrot.lane.b32.xlu1 %v3125_v26, %s2737_s9 }
 0xa13   :  { %1322 = vrot.lane.b32.xlu1 %v3131_v37, %s2737_s9 }
 0xa22   :  { %v1213_v7 = vpop.xlane.xlu1 %1212 }
 0xa23   :  { %v1217_v9 = vsub.f32 %v1209_v61, %v1213_v7 }
 0xa25   :  { %v1219_v10 = vmul.f32 1.442695, %v1217_v9 }
 0xa27   :  { %2274 = vpow2.f32 %v1219_v10 }
 0xa2d   :  { %v2275_v13 = vpop.eup %2274 }
 0xa2e   :  { %v1223_v12 = vsel %vm307_vm1, %v2275_v13, 0.0 }
 0xa2f   :  { %1224 = vadd.xlane.f32.xlu2 %v1223_v12 }
 0xa37   :  { %1215 = vmax.xlane.f32.xlu2 %v1214_v17 }
 0xa3a   :  { %v1109_v22 = vpop.permute.xlu1 %1108 }
 0xa3b   :  { %v1114_v23 = vsel %vm389_vm2, %v1109_v22, 0  ;;  %v1153_v22 = vld [vmem:[%s3375_s14] sm:$0xf] }
 0xa3c   :  { %1123 = vmatpush.bf16.msra.mxu0 %v1114_v23  ;;  %v1306_v23 = vsel %vm389_vm2, %v1153_v22, 0 }
 0xa3d   :  { %1083 = vmax.xlane.f32.xlu1 %v1082_v25  ;;  %1315 = vmatpush.bf16.msra.mxu3 %v1306_v23 }
 0xa40   :  { %1253 = vmatpush.bf16.msrb.mxu0 %v1244_v24 }
 0xa4f   :  { %1132 = vrot.lane.b32.xlu2 %v3136_v43, %s2732_s13 }
 0xa56   :  { %1259 = vrot.lane.b32.xlu1 %v3136_v43, %s2733_s28  ;;  %s1995_s28 = sshll.u32 %s3387_s26, 4  ;;  %s2008_s26 = sshll.u32 %s3388_s27, 4  ;;  %s1996_s28 = int_to_ptr.hbm [resolvable:$true] %s1995_s28  ;;  %s2009_s26 = int_to_ptr.hbm [resolvable:$true] %s2008_s26 }
 0xa57   :  { %s2749_s27 = smov 16  }
 0xa65   :  { %v1093_v27 = vpop.xlane.xlu1 %1092 }
 0xa66   :  { %2276 = vrcp.f32 %v1093_v27 }
 0xa6c   :  { %v2277_v28 = vpop.eup %2276 }
 0xa6d   :  { %v1099_v30 = vmul.f32 %v2277_v28, %v2273_v5 }
 0xa6f   :  { %v1101_v31 = vpack.c.bf16 %v1099_v30, %v1099_v30 }
 0xa71   :  { %1103 = vst.msk [vmem:[#allocation25] sm:$0xf] %vm381_vm3, %v1101_v31  ;;  %2111 = vmatmul.msk.bf16.vlgmr.msra.gmra.mxu0 %vm307_vm1, %v1101_v31 }
 0xa7d   :  { %v1325_v29 = vpop.permute.xlu1 %1324 }
 0xa7e   :  { %v1330_v33 = vsel %vm307_vm1, %v1325_v29, 0 }
 0xa7f   :  { %1339 = vmatpush.bf16.xpose.msra.mxu0 %v1330_v33 }
 0xa85   :  { %v1323_v35 = vpop.permute.xlu1 %1322 }
 0xaa2   :  { %v1225_v34 = vpop.xlane.xlu2 %1224 }
 0xaa3   :  { %2278 = vrcp.f32 %v1225_v34 }
 0xaa9   :  { %v2279_v36 = vpop.eup %2278 }
 0xaaa   :  { %v1231_v38 = vmul.f32 %v2279_v36, %v2275_v13  ;;  %v1216_v32 = vpop.xlane.xlu2 %1215 }
 0xaab   :  { %v1218_v40 = vsub.f32 %v1210_v15, %v1216_v32 }
 0xaac   :  { %v1233_v41 = vpack.c.bf16 %v1231_v38, %v1231_v38 }
 0xaad   :  { %v1221_v42 = vmul.f32 1.442695, %v1218_v40 }
 0xaae   :  { %1236 = vst.msk [vmem:[#allocation25 + $0x4] sm:$0xf] %vm381_vm3, %v1233_v41  ;;  %2115 = vmatmul.msk.bf16.vlgmr.msrb.gmra.mxu0 %vm307_vm1, %v1233_v41 }
 0xaaf   :  { %2280 = vpow2.f32 %v1221_v42 }
 0xab0   :  { %v1084_v45 = vpop.xlane.xlu1 %1083 }
 0xab1   :  { %v1086_v46 = vsub.f32 %v1078_v20, %v1084_v45 }
 0xab2   :  { %v1133_v47 = vpop.permute.xlu2 %1132 }
 0xab3   :  { %v1089_v48 = vmul.f32 1.442695, %v1086_v46  ;;  %v1138_v55 = vsel %vm389_vm2, %v1133_v47, 0 }
 0xab4   :  { %1147 = vmatpush.bf16.msra.mxu1 %v1138_v55 }
 0xab5   :  { %v2281_v49 = vpop.eup %2280  ;;  %2282 = vpow2.f32 %v1089_v48 }
 0xab6   :  { %v1226_v51 = vsel %vm307_vm1, %v2281_v49, 0.0 }
 0xab7   :  { %1227 = vadd.xlane.f32.xlu2 %v1226_v51 }
 0xabb   :  { %v2283_v52 = vpop.eup %2282 }
 0xabc   :  { %v1094_v53 = vsel %vm307_vm1, %v2283_v52, 0.0 }
 0xabd   :  { %1095 = vadd.xlane.f32.xlu0 %v1094_v53 }
 0xabe   :  { %2119 = vmatmul.msk.bf16.vlgmr.msra.gmra.mxu0 %vm307_vm1, %v1323_v35 }
 0xac8   :  { %v1260_v54 = vpop.permute.xlu1 %1259 }
 0xac9   :  { %v1265_v56 = vsel %vm389_vm2, %v1260_v54, 0 }
 0xaca   :  { %1274 = vmatpush.bf16.msrb.mxu1 %v1265_v56 }
 0xacf   :  { %1399 = vrot.lane.b32.xlu2 %v3125_v26, %s2736_s5 }
 0xad1   :  { %1347 = vrot.lane.b32.xlu0 %v3136_v43, %s2737_s9 }
 0xad7   :  { %1467 = vrot.lane.b32.xlu2 %v3125_v26, %s2741_s10 }
 0xad9   :  { %1345 = vrot.lane.b32.xlu0 %v3138_v44, %s2737_s9  ;;  %s2746_s9 = smov [#allocation22]  }
 0xadf   :  { %1490 = vrot.lane.b32.xlu2 %v3136_v43, %s2741_s10 }
 0xaee   :  { %v1125_v57 = vpop.f32.mrf.mxu0 }
 0xaf6   :  { %v1127_v8 = vpop.f32.mrf.mxu0 }
 0xb2a   :  { %v1228_v60 = vpop.xlane.xlu2 %1227 }
 0xb2b   :  { %2284 = vrcp.f32 %v1228_v60  ;;  %v1255_v61 = vpop.f32.mrf.mxu0 }
 0xb30   :  { %v1096_v62 = vpop.xlane.xlu0 %1095 }
 0xb31   :  { %v2285_v63 = vpop.eup %2284  ;;  %2286 = vrcp.f32 %v1096_v62 }
 0xb32   :  { %v1232_v0 = vmul.f32 %v2285_v63, %v2281_v49  ;;  %v1400_v1 = vpop.permute.xlu2 %1399 }
 0xb33   :  { %v1405_v2 = vsel %vm389_vm2, %v1400_v1, 0  ;;  %v1257_v3 = vpop.f32.mrf.mxu0 }
 0xb34   :  { %v1234_v4 = vpack.c.bf16 %v1232_v0, %v1232_v0  ;;  %1414 = vmatpush.bf16.msra.mxu2 %v1405_v2 }
 0xb36   :  { %1237 = vst.msk [vmem:[#allocation25 + $0x14] sm:$0xf] %vm381_vm3, %v1234_v4 }
 0xb37   :  { %v2287_v5 = vpop.eup %2286 }
 0xb38   :  { %v1100_v6 = vmul.f32 %v2287_v5, %v2283_v52 }
 0xb3a   :  { %v1102_v7 = vpack.c.bf16 %v1100_v6, %v1100_v6  ;;  %v1468_v17 = vpop.permute.xlu2 %1467 }
 0xb3b   :  { %v1341_v9 = vpop.f32.mrf.mxu0  ;;  %v1473_v20 = vsel %vm307_vm1, %v1468_v17, 0 }
 0xb3c   :  { %1104 = vst.msk [vmem:[#allocation25 + $0x10] sm:$0xf] %vm381_vm3, %v1102_v7  ;;  %v1368_v10 = vmul.f32 0.35355338, %v1341_v9  ;;  %2112 = vmatmul.msk.bf16.vlgmr.msra.gmra.mxu1 %vm307_vm1, %v1102_v7 }
 0xb3e   :  { %v1370_v13 = vadd.f32 %v3150_v50, %v1368_v10 }
 0xb40   :  { %v1372_v11 = vsel %vm307_vm1, %v1370_v13, -inf }
 0xb41   :  { %1373 = vmax.xlane.f32.xlu1 %v1372_v11 }
 0xb42   :  { %v1491_v33 = vpop.permute.xlu2 %1490 }
 0xb43   :  { %v1343_v12 = vpop.f32.mrf.mxu0  ;;  %v1348_v15 = vpop.permute.xlu0 %1347  ;;  %v1496_v36 = vsel %vm307_vm1, %v1491_v33, 0 }
 0xb44   :  { %v1353_v16 = vsel %vm307_vm1, %v1348_v15, 0 }
 0xb45   :  { %1362 = vmatpush.bf16.xpose.msra.mxu1 %v1353_v16 }
 0xb4b   :  { %v1346_v21 = vpop.permute.xlu0 %1345 }
 0xb4c   :  { %2116 = vmatmul.msk.bf16.vlgmr.msrb.gmra.mxu1 %vm307_vm1, %v1234_v4 }
 0xb4d   :  { %1482 = vmatpush.bf16.xpose.msrb.mxu1 %v1473_v20 }
 0xb5a   :  { %1465 = vrot.lane.b32.xlu1 %v3131_v37, %s2741_s10 }
 0xb5c   :  { %2120 = vmatmul.msk.bf16.vlgmr.msra.gmra.mxu1 %vm307_vm1, %v1346_v21 }
 0xb62   :  { %1420 = vrot.lane.b32.xlu1 %v3136_v43, %s2736_s5  ;;  %s1980_s5 = sshll.u32 %s2746_s9, 4  ;;  %s1981_s5 = int_to_ptr.vmem [resolvable:$true] %s1980_s5 }
 0xbb4   :  { %v1374_v24 = vpop.xlane.xlu1 %1373 }
 0xbb5   :  { %v1378_v25 = vsub.f32 %v1370_v13, %v1374_v24 }
 0xbb7   :  { %v1380_v27 = vmul.f32 1.442695, %v1378_v25 }
 0xbb9   :  { %2288 = vpow2.f32 %v1380_v27  ;;  %v1149_v28 = vpop.f32.mrf.mxu1 }
 0xbba   :  { %v1154_v30 = vpack.c.bf16 %v1149_v28, %v1125_v57 }
 0xbbc   :  { %2118 = vmatmul.msk.bf16.vlgmr.msra.gmra.mxu3 %vm307_vm1, %v1154_v30 }
 0xbbf   :  { %v2289_v37 = vpop.eup %2288 }
 0xbc0   :  { %v1384_v31 = vsel %vm307_vm1, %v2289_v37, 0.0 }
 0xbc1   :  { %1385 = vadd.xlane.f32.xlu0 %v1384_v31  ;;  %v1151_v29 = vpop.f32.mrf.mxu1 }
 0xbc9   :  { %v1276_v34 = vpop.f32.mrf.mxu1 }
 0xbca   :  { %v1281_v35 = vpack.c.bf16 %v1276_v34, %v1255_v61 }
 0xbcc   :  { %v1466_v38 = vpop.permute.xlu1 %1465  ;;  %2117 = vmatmul.msk.bf16.vlgmr.msrb.gmra.mxu2 %vm307_vm1, %v1281_v35 }
 0xbcd   :  { %1505 = vmatpush.bf16.xpose.msrb.mxu2 %v1496_v36  ;;  %2124 = vmatmul.msk.bf16.vlgmr.msrb.gmra.mxu1 %vm307_vm1, %v1466_v38 }
 0xbd1   :  { %v1278_v32 = vpop.f32.mrf.mxu1 }
 0xbd4   :  { %v1421_v40 = vpop.permute.xlu1 %1420 }
 0xbd5   :  { %v1426_v41 = vsel %vm389_vm2, %v1421_v40, 0  ;;  %1488 = vrot.lane.b32.xlu0 %v3138_v44, %s2741_s10 }
 0xbd6   :  { %1435 = vmatpush.bf16.msrb.mxu3 %v1426_v41 }
 0xbd9   :  { %v1364_v42 = vpop.f32.mrf.mxu1 }
 0xbda   :  { %v1369_v45 = vmul.f32 0.35355338, %v1364_v42 }
 0xbdc   :  { %v1371_v46 = vadd.f32 %v3167_v14, %v1369_v45 }
 0xbde   :  { %v1375_v47 = vsel %vm307_vm1, %v1371_v46, -inf }
 0xbdf   :  { %1376 = vmax.xlane.f32.xlu2 %v1375_v47 }
 0xbe1   :  { %v1366_v48 = vpop.f32.mrf.mxu1 }
 0xc34   :  { %v1386_v55 = vpop.xlane.xlu0 %1385 }
 0xc35   :  { %2290 = vrcp.f32 %v1386_v55 }
 0xc3b   :  { %v2291_v49 = vpop.eup %2290 }
 0xc3c   :  { %v1392_v51 = vmul.f32 %v2291_v49, %v2289_v37 }
 0xc3e   :  { %v1394_v52 = vpack.c.bf16 %v1392_v51, %v1392_v51 }
 0xc3f   :  { %v1317_v56 = vpop.f32.mrf.mxu3 }
 0xc40   :  { %1397 = vst.msk [vmem:[#allocation25 + $0x8] sm:$0xf] %vm381_vm3, %v1394_v52  ;;  %2121 = vmatmul.msk.bf16.vlgmr.msra.gmra.mxu2 %vm307_vm1, %v1394_v52 }
 0xc47   :  { %v1489_v57 = vpop.permute.xlu0 %1488  ;;  %v1319_v31 = vpop.f32.mrf.mxu3 }
 0xc4a   :  { %v1484_v53 = vpop.f32.mrf.mxu1 }
 0xc4b   :  { %v1511_v44 = vmul.f32 0.35355338, %v1484_v53 }
 0xc4d   :  { %v1513_v54 = vadd.f32 %v3150_v50, %v1511_v44 }
 0xc4f   :  { %v1297_v8 = vpop.f32.mrf.mxu2  ;;  %v1515_v58 = vsel %vm307_vm1, %v1513_v54, -inf }
 0xc50   :  { %v3235_v59 = vadd.f32 %v1317_v56, %v1297_v8  ;;  %1516 = vmax.xlane.f32.xlu1 %v1515_v58  ;;  %2125 = vmatmul.msk.bf16.vlgmr.msrb.gmra.mxu2 %vm307_vm1, %v1489_v57  ;;  %v2227_v56 = vld [vmem:[#allocation11] ss:$0 sm:$0xff] }
 0xc52   :  { %v1377_v60 = vpop.xlane.xlu2 %1376  ;;  %v1486_v61 = vpop.f32.mrf.mxu1 }
 0xc53   :  { %v1379_v62 = vsub.f32 %v1371_v46, %v1377_v60 }
 0xc55   :  { %v1382_v63 = vmul.f32 1.442695, %v1379_v62 }
 0xc57   :  { %2292 = vpow2.f32 %v1382_v63  ;;  %v3241_v50 = vpop.f32.mrf.mxu2 }
 0xc5d   :  { %v2293_v0 = vpop.eup %2292 }
 0xc5e   :  { %v1387_v1 = vsel %vm307_vm1, %v2293_v0, 0.0 }
 0xc5f   :  { %1388 = vadd.xlane.f32.xlu0 %v1387_v1 }
 0xc73   :  { %1542 = vrot.lane.b32.xlu0 %v3125_v26, %s2740_s6 }
 0xcc3   :  { %v1416_v2 = vpop.f32.mrf.mxu2  ;;  %v1517_v4 = vpop.xlane.xlu1 %1516 }
 0xcc4   :  { %v1521_v5 = vsub.f32 %v1513_v54, %v1517_v4 }
 0xcc6   :  { %v1523_v7 = vmul.f32 1.442695, %v1521_v5 }
 0xccb   :  { %v1418_v3 = vpop.f32.mrf.mxu2 }
 0xcd2   :  { %v1389_v6 = vpop.xlane.xlu0 %1388 }
 0xcd3   :  { %2294 = vrcp.f32 %v1389_v6  ;;  %v1507_v9 = vpop.f32.mrf.mxu2 }
 0xcd4   :  { %v1512_v10 = vmul.f32 0.35355338, %v1507_v9  ;;  %2296 = vpow2.f32 %v1523_v7 }
 0xcd6   :  { %v1514_v13 = vadd.f32 %v3167_v14, %v1512_v10  ;;  %v1441_v14 = vld [vmem:[%s3375_s14 + $0x8] sm:$0xf] }
 0xcd7   :  { %v1447_v23 = vsel %vm389_vm2, %v1441_v14, 0 }
 0xcd8   :  { %v1518_v11 = vsel %vm307_vm1, %v1514_v13, -inf  ;;  %1456 = vmatpush.bf16.msrb.mxu0 %v1447_v23 }
 0xcd9   :  { %v2295_v12 = vpop.eup %2294  ;;  %1519 = vmax.xlane.f32.xlu2 %v1518_v11 }
 0xcda   :  { %v1393_v15 = vmul.f32 %v2295_v12, %v2293_v0  ;;  %v2297_v17 = vpop.eup %2296 }
 0xcdb   :  { %v1509_v26 = vpop.f32.mrf.mxu2  ;;  %v1527_v20 = vsel %vm307_vm1, %v2297_v17, 0.0 }
 0xcdc   :  { %v1395_v16 = vpack.c.bf16 %v1393_v15, %v1393_v15 }
 0xcde   :  { %1398 = vst.msk [vmem:[#allocation25 + $0x18] sm:$0xf] %vm381_vm3, %v1395_v16  ;;  %2122 = vmatmul.msk.bf16.vlgmr.msrb.gmra.mxu3 %vm307_vm1, %v1395_v16  ;;  %v2174_v16 = vld [vmem:[%s3379_s18] sm:$0xff] }
 0xce1   :  { %1528 = vadd.xlane.f32.xlu2 %v1527_v20 }
 0xce5   :  { %v1543_v21 = vpop.permute.xlu0 %1542 }
 0xce6   :  { %v1548_v22 = vsel %vm389_vm2, %v1543_v21, 0 }
 0xce7   :  { %1557 = vmatpush.bf16.msra.mxu3 %v1548_v22 }
 0xd4c   :  { %v1520_v24 = vpop.xlane.xlu2 %1519 }
 0xd4d   :  { %v1522_v25 = vsub.f32 %v1514_v13, %v1520_v24 }
 0xd4f   :  { %v1525_v27 = vmul.f32 1.442695, %v1522_v25 }
 0xd51   :  { %2298 = vpow2.f32 %v1525_v27 }
 0xd54   :  { %v1529_v28 = vpop.xlane.xlu2 %1528 }
 0xd55   :  { %2300 = vrcp.f32 %v1529_v28 }
 0xd57   :  { %v2299_v30 = vpop.eup %2298 }
 0xd58   :  { %v1530_v37 = vsel %vm307_vm1, %v2299_v30, 0.0 }
 0xd59   :  { %1531 = vadd.xlane.f32.xlu2 %v1530_v37 }
 0xd5b   :  { %v2301_v29 = vpop.eup %2300 }
 0xd5c   :  { %v1535_v33 = vmul.f32 %v2301_v29, %v2297_v17 }
 0xd5e   :  { %v1537_v34 = vpack.c.bf16 %v1535_v33, %v1535_v33 }
 0xd60   :  { %1540 = vst.msk [vmem:[#allocation25 + $0xc] sm:$0xf] %vm381_vm3, %v1537_v34  ;;  %2126 = vmatmul.msk.bf16.vlgmr.msra.gmra.mxu3 %vm307_vm1, %v1537_v34  ;;  %v2228_v34 = vld [vmem:[#allocation13] ss:$0 sm:$0xff] }
 0xd61   :  { %v1437_v35 = vpop.f32.mrf.mxu3 }
 0xd62   :  { %v1442_v36 = vpack.c.bf16 %v1437_v35, %v1416_v2 }
 0xd64   :  { %2123 = vmatmul.msk.bf16.vlgmr.msrb.gmra.mxu0 %vm307_vm1, %v1442_v36 }
 0xd69   :  { %v1439_v38 = vpop.f32.mrf.mxu3 }
 0xd71   :  { %1563 = vrot.lane.b32.xlu2 %v3136_v43, %s2740_s6  ;;  %v1584_v43 = vld [vmem:[%s3375_s14 + $0xc] sm:$0xf]  ;;  %s1982_s6 = sshll.u32 %s3386_s25, 4  ;;  %s1983_s6 = int_to_ptr.hbm [resolvable:$true] %s1982_s6 }
 0xd72   :  { %v1590_v51 = vsel %vm389_vm2, %v1584_v43, 0 }
 0xd73   :  { %1599 = vmatpush.bf16.msra.mxu1 %v1590_v51 }
 0xdcc   :  { %v1532_v32 = vpop.xlane.xlu2 %1531 }
 0xdcd   :  { %2302 = vrcp.f32 %v1532_v32  ;;  %v2229_v32 = vld [vmem:[#allocation14] ss:$0 sm:$0xff] }
 0xdd3   :  { %v2303_v40 = vpop.eup %2302 }
 0xdd4   :  { %v1536_v41 = vmul.f32 %v2303_v40, %v2299_v30  ;;  %v1564_v42 = vpop.permute.xlu2 %1563 }
 0xdd5   :  { %v1569_v45 = vsel %vm389_vm2, %v1564_v42, 0 }
 0xdd6   :  { %v1538_v46 = vpack.c.bf16 %v1536_v41, %v1536_v41  ;;  %1578 = vmatpush.bf16.msra.mxu0 %v1569_v45 }
 0xdd8   :  { %1541 = vst.msk [vmem:[#allocation25 + $0x1c] sm:$0xf] %vm381_vm3, %v1538_v46 }
 0xdd9   :  { %2127 = vmatmul.msk.bf16.vlgmr.msra.gmra.mxu0 %vm307_vm1, %v1538_v46 }
 0xde1   :  { %v1458_v47 = vpop.f32.mrf.mxu0 }
 0xde2   :  { %v1463_v48 = vadd.f32 %v1458_v47, %v3235_v59  ;;  %v1320_v59 = vadd.f32 %v1319_v31, %v3241_v50 }
 0xde3   :  { %v1559_v55 = vpop.f32.mrf.mxu3 }
 0xde9   :  { %v1460_v52 = vpop.f32.mrf.mxu0 }
 0xdea   :  { %v1464_v61 = vadd.f32 %v1460_v52, %v1320_v59 }
 0xdeb   :  { %v1561_v49 = vpop.f32.mrf.mxu3 }
 0xe56   :  { %v1580_v53 = vpop.f32.mrf.mxu0 }
 0xe57   :  { %v1585_v44 = vpack.c.bf16 %v1580_v53, %v1559_v55 }
 0xe59   :  { %2128 = vmatmul.msk.bf16.vlgmr.msra.gmra.mxu1 %vm307_vm1, %v1585_v44 }
 0xe5e   :  { %v1582_v54 = vpop.f32.mrf.mxu0 }
 0xed6   :  { %v1601_v57 = vpop.f32.mrf.mxu1 }
 0xed7   :  { %v1606_v8 = vadd.f32 %v1601_v57, %v1463_v48  ;;  %v2230_v48 = vld [vmem:[#allocation16] ss:$0 sm:$0xff] }
 0xed9   :  { %v1612_v58 = vadd.f32 %v2227_v56, %v1606_v8 }
 0xedb   :  { %v1614_v60 = vadd.f32 %v1612_v58, %v3117_v18 }
 0xedd   :  { %v1618_v62 = vsel %vm280_vm0, %v1614_v60, 0.0 }
 0xede   :  { %1619 = vadd.xlane.f32.xlu1 %v1618_v62  ;;  %v1603_v63 = vpop.f32.mrf.mxu1 }
 0xedf   :  { %v1607_v0 = vadd.f32 %v1603_v63, %v1464_v61 }
 0xee1   :  { %v1613_v1 = vadd.f32 %v2227_v56, %v1607_v0 }
 0xee3   :  { %v1615_v2 = vadd.f32 %v1613_v1, %v3119_v19  ;;  %v2175_v19 = vld [vmem:[%s3379_s18 + $0x8] sm:$0xff]  ;;  %v2179_v1 = vld [vmem:[%s3381_s20 + $0x18] sm:$0xff]  ;;  %s2748_s18 = smov [#allocation26]  }
 0xee4   :  { %1702 = vmatpush.bf16.msra.mxu2 %v2175_v19  ;;  %1843 = vmatpush.bf16.msrb.mxu3 %v2179_v1  ;;  %s2019_s22 = sshll.u32 %s2748_s18, 4  ;;  %s2020_s22 = int_to_ptr.vmem [resolvable:$true] %s2019_s22 }
 0xee5   :  { %v1621_v3 = vsel %vm280_vm0, %v1615_v2, 0.0 }
 0xee6   :  { %1622 = vadd.xlane.f32.xlu1 %v1621_v3 }
 0xee8   :  { %1703 = vmatpush.bf16.msra.mxu2 %v2174_v16 }
 0xf51   :  { %v1620_v4 = vpop.xlane.xlu1 %1619 }
 0xf52   :  { %v1624_v5 = vmul.f32 %v1620_v4, %v3093_v39 }
 0xf54   :  { %v1626_v6 = vsub.f32 %v1614_v60, %v1624_v5 }
 0xf56   :  { %v1628_v7 = vmul.f32 %v1626_v6, %v1626_v6 }
 0xf58   :  { %v1630_v50 = vsel %vm280_vm0, %v1628_v7, 0.0 }
 0xf59   :  { %1631 = vadd.xlane.f32.xlu0 %v1630_v50  ;;  %v1623_v18 = vpop.xlane.xlu1 %1622 }
 0xf5a   :  { %v1625_v9 = vmul.f32 %v1623_v18, %v3093_v39  ;;  %v2178_v18 = vld [vmem:[%s3381_s20 + $0x10] sm:$0xff] }
 0xf5b   :  { %1844 = vmatpush.bf16.msrb.mxu3 %v2178_v18 }
 0xf5c   :  { %v1627_v10 = vsub.f32 %v1615_v2, %v1625_v9 }
 0xf5e   :  { %v1629_v13 = vmul.f32 %v1627_v10, %v1627_v10 }
 0xf60   :  { %v1633_v11 = vsel %vm280_vm0, %v1629_v13, 0.0 }
 0xf61   :  { %1634 = vadd.xlane.f32.xlu1 %v1633_v11 }
 0xfcc   :  { %v1632_v12 = vpop.xlane.xlu0 %1631 }
 0xfcd   :  { %v1636_v15 = vmul.f32 %v1632_v12, %v3093_v39 }
 0xfcf   :  { %v1638_v26 = vadd.f32 1e-12, %v1636_v15 }
 0xfd1   :  { %2304 = vrsqrt.f32 %v1638_v26  ;;  %vm1646_vm12 = vweird.f32 %v1638_v26 }
 0xfd4   :  { %v1635_v17 = vpop.xlane.xlu1 %1634 }
 0xfd5   :  { %v1637_v20 = vmul.f32 %v1635_v17, %v3093_v39 }
 0xfd7   :  { %v2305_v21 = vpop.eup %2304  ;;  %v1639_v22 = vadd.f32 1e-12, %v1637_v20 }
 0xfd8   :  { %v1641_v14 = vmul.f32 %v2305_v21, %v1638_v26  ;;  %vm1647_vm11 = vweird.f32 %v2305_v21  ;;  %v2177_v26 = vld [vmem:[%s3381_s20 + $0x8] sm:$0xff] }
 0xfd9   :  { %2306 = vrsqrt.f32 %v1639_v22  ;;  %vm1648_vm13 = vmor %vm1646_vm12, %vm1647_vm11  ;;  %vm1656_vm15 = vweird.f32 %v1639_v22  ;;  %1845 = vmatpush.bf16.msrb.mxu3 %v2177_v26 }
 0xfda   :  { %v1642_v23 = vmul.f32 %v2305_v21, %v1641_v14  ;;  %v2176_v14 = vld [vmem:[%s3381_s20] sm:$0xff] }
 0xfdc   :  { %v1643_v24 = vmul.f32 0.5, %v1642_v23 }
 0xfdd   :  { %1846 = vmatpush.bf16.msrb.mxu3 %v2176_v14 }
 0xfde   :  { %v1644_v25 = vsub.f32 1.5, %v1643_v24 }
 0xfdf   :  { %v2307_v27 = vpop.eup %2306 }
 0xfe0   :  { %v1645_v28 = vmul.f32 %v2305_v21, %v1644_v25  ;;  %v1651_v30 = vmul.f32 %v2307_v27, %v1639_v22  ;;  %vm1657_vm14 = vweird.f32 %v2307_v27 }
 0xfe1   :  { %vm1658_vm1 = vmor %vm1656_vm15, %vm1657_vm14 }
 0xfe2   :  { %v1652_v37 = vmul.f32 %v2307_v27, %v1651_v30  ;;  %v1649_v31 = vsel %vm1648_vm13, %v2305_v21, %v1645_v28 }
 0xfe3   :  { %v1660_v35 = vmul.f32 %v1649_v31, %v1626_v6 }
 0xfe4   :  { %v1653_v29 = vmul.f32 0.5, %v1652_v37 }
 0xfe5   :  { %v1665_v40 = vmul.f32 %v2228_v34, %v1660_v35 }
 0xfe6   :  { %v1654_v33 = vsub.f32 1.5, %v1653_v29 }
 0xfe7   :  { %v3285_v45 = vadd.f32 %v2229_v32, %v1665_v40 }
 0xfe8   :  { %v1655_v36 = vmul.f32 %v2307_v27, %v1654_v33 }
 0xfea   :  { %v1659_v38 = vsel %vm1658_vm1, %v2307_v27, %v1655_v36  ;;  %vm1913_vm1 = vcmask 257024  }
 0xfeb   :  { %v1661_v41 = vmul.f32 %v1659_v38, %v1627_v10 }
 0xfed   :  { %v1666_v42 = vmul.f32 %v2228_v34, %v1661_v41 }
 0xfef   :  { %v3287_v46 = vadd.f32 %v2229_v32, %v1666_v42 }
 0xff1   :  { %v1676_v47 = vpack.c.bf16 %v3287_v46, %v3285_v45 }
 0xff3   :  { %2137 = vmatmul.msk.bf16.vlgmr.msra.gmra.mxu2 %vm280_vm0, %v1676_v47 }
0x1076   :  { %v1705_v55 = vpop.f32.mrf.mxu2 }
0x1077   :  { %v3292_v49 = vadd.f32 %v2230_v48, %v1705_v55 }
0x1079   :  { %v3295_v43 = vmul.f32 0.70710677, %v3292_v49 }
0x107b   :  { %v1714_v51 = vmul.f32 %v3295_v43, %v3295_v43 }
0x107d   :  { %v1715_v52 = vmin.f32 %v1714_v51, 16.0 }
0x107e   :  { %v1707_v53 = vpop.f32.mrf.mxu2 }
0x107f   :  { %v1716_v44 = vmul.f32 2.1237322e-06, %v1715_v52  ;;  %v1727_v54 = vmul.f32 3.8918573e-05, %v1715_v52  ;;  %v3299_v56 = vadd.f32 %v2230_v48, %v1707_v53 }
0x1081   :  { %v1717_v57 = vadd.f32 0.00028619796, %v1716_v44  ;;  %v1728_v8 = vadd.f32 0.001143296, %v1727_v54  ;;  %v3302_v58 = vmul.f32 0.70710677, %v3299_v56 }
0x1083   :  { %v1729_v59 = vmul.f32 %v1728_v8, %v1715_v52  ;;  %v1754_v60 = vmul.f32 %v3302_v58, %v3302_v58  ;;  %v1718_v61 = vmul.f32 %v1717_v57, %v1715_v52 }
0x1085   :  { %v1730_v62 = vadd.f32 0.014752088, %v1729_v59  ;;  %v1755_v63 = vmin.f32 %v1754_v60, 16.0  ;;  %v1719_v4 = vadd.f32 0.0036580483, %v1718_v61 }
0x1087   :  { %v1731_v0 = vmul.f32 %v1730_v62, %v1715_v52  ;;  %v1756_v2 = vmul.f32 2.1237322e-06, %v1755_v63  ;;  %v1767_v3 = vmul.f32 3.8918573e-05, %v1755_v63  ;;  %v1720_v13 = vmul.f32 %v1719_v4, %v1715_v52 }
0x1089   :  { %v1732_v5 = vadd.f32 0.112945676, %v1731_v0  ;;  %v1757_v6 = vadd.f32 0.00028619796, %v1756_v2  ;;  %v1768_v7 = vadd.f32 0.001143296, %v1767_v3 }
0x108a   :  { %v1721_v17 = vadd.f32 0.05243302, %v1720_v13  ;;  %v2231_v13 = vld [vmem:[#allocation17] ss:$0 sm:$0xff] }
0x108b   :  { %v1733_v50 = vmul.f32 %v1732_v5, %v1715_v52  ;;  %v1758_v9 = vmul.f32 %v1757_v6, %v1755_v63  ;;  %v1769_v10 = vmul.f32 %v1768_v7, %v1755_v63  ;;  %v1710_v6 = vmul.f32 0.5, %v3292_v49 }
0x108c   :  { %v1722_v24 = vmul.f32 %v1721_v17, %v1715_v52  ;;  %v1711_v7 = vmul.f32 0.5, %v3299_v56 }
0x108d   :  { %v1734_v11 = vadd.f32 0.4994258, %v1733_v50  ;;  %v1759_v19 = vadd.f32 0.0036580483, %v1758_v9  ;;  %v1770_v12 = vadd.f32 0.014752088, %v1769_v10 }
0x108e   :  { %v1723_v37 = vadd.f32 0.18741608, %v1722_v24 }
0x108f   :  { %v1735_v15 = vmul.f32 %v1734_v11, %v1715_v52  ;;  %v1771_v16 = vmul.f32 %v1770_v12, %v1755_v63  ;;  %v1760_v21 = vmul.f32 %v1759_v19, %v1755_v63 }
0x1090   :  { %v1724_v35 = vmul.f32 %v1723_v37, %v1715_v52 }
0x1091   :  { %v1736_v20 = vadd.f32 1.0, %v1735_v15  ;;  %v1772_v22 = vadd.f32 0.112945676, %v1771_v16  ;;  %v1761_v25 = vadd.f32 0.05243302, %v1760_v21 }
0x1092   :  { %v1725_v42 = vadd.f32 1.1283791, %v1724_v35 }
0x1093   :  { %2308 = vrcp.f32 %v1736_v20  ;;  %v1773_v23 = vmul.f32 %v1772_v22, %v1755_v63  ;;  %v1762_v29 = vmul.f32 %v1761_v25, %v1755_v63  ;;  %v1748_v38 = vand.u32 2147483648, %v1736_v20 }
0x1094   :  { %v1746_v40 = vand.u32 2147483647, %v1736_v20  ;;  %vm1742_vm3 = vweird.f32 %v1736_v20  ;;  %v1726_v54 = vmul.f32 %v1725_v42, %v3295_v43  ;;  %v2232_v42 = vld [vmem:[#allocation19] ss:$0 sm:$0xff] }
0x1095   :  { %v1774_v27 = vadd.f32 0.4994258, %v1773_v23  ;;  %v1763_v32 = vadd.f32 0.18741608, %v1762_v29  ;;  %v1749_v55 = vor.u32 1.1754944e-38, %v1748_v38 }
0x1096   :  { %vm1747_vm5 = vcmp.eq.f32.partialorder %v1746_v40, 8.507059e+37 }
0x1097   :  { %v1775_v28 = vmul.f32 %v1774_v27, %v1755_v63  ;;  %v1764_v51 = vmul.f32 %v1763_v32, %v1755_v63 }
0x1099   :  { %v2309_v30 = vpop.eup %2308  ;;  %v1776_v33 = vadd.f32 1.0, %v1775_v28  ;;  %v1765_v52 = vadd.f32 1.1283791, %v1764_v51 }
0x109a   :  { %v1738_v31 = vmul.f32 %v2309_v30, %v1736_v20  ;;  %vm1743_vm2 = vweird.f32 %v2309_v30 }
0x109b   :  { %2310 = vrcp.f32 %v1776_v33  ;;  %vm1744_vm4 = vmor %vm1742_vm3, %vm1743_vm2  ;;  %v1788_v8 = vand.u32 2147483648, %v1776_v33  ;;  %v1786_v61 = vand.u32 2147483647, %v1776_v33  ;;  %vm1782_vm7 = vweird.f32 %v1776_v33 }
0x109c   :  { %v1739_v34 = vsub.f32 1.0, %v1738_v31  ;;  %v1766_v2 = vmul.f32 %v1765_v52, %v3302_v58  ;;  %vm1940_vm3 = vcmask 1041409  }
0x109d   :  { %v1789_v0 = vor.u32 1.1754944e-38, %v1788_v8  ;;  %vm1787_vm9 = vcmp.eq.f32.partialorder %v1786_v61, 8.507059e+37 }
0x109e   :  { %v1740_v36 = vmul.f32 %v2309_v30, %v1739_v34  ;;  %v2181_v34 = vld [vmem:[%s3385_s24 + $0x8] sm:$0xff] }
0x109f   :  { %1964 = vmatpush.bf16.msrb.mxu0 %v2181_v34 }
0x10a0   :  { %v1741_v41 = vadd.f32 %v2309_v30, %v1740_v36  ;;  %v2180_v36 = vld [vmem:[%s3385_s24] sm:$0xff]  ;;  %s2744_s24 = smov [#allocation23]  }
0x10a1   :  { %v2311_v47 = vpop.eup %2310  ;;  %s1993_s8 = sshll.u32 %s2744_s24, 4  ;;  %s1994_s8 = int_to_ptr.vmem [resolvable:$true] %s1993_s8 }
0x10a2   :  { %v1745_v48 = vsel %vm1744_vm4, %v2309_v30, %v1741_v41  ;;  %v1778_v53 = vmul.f32 %v2311_v47, %v1776_v33  ;;  %vm1783_vm6 = vweird.f32 %v2311_v47  ;;  %2001 = dma.vmem_to_hbm [thread:$0]  %s1994_s8, 512, %s1996_s28, [#allocation24], %s2738_s30, %s2738_s30, %s2745_s4  }
0x10a3   :  { %v1750_v44 = vsel %vm1747_vm5, %v1749_v55, %v1745_v48  ;;  %vm1784_vm8 = vmor %vm1782_vm7, %vm1783_vm6  ;;  %1965 = vmatpush.bf16.msrb.mxu0 %v2180_v36  ;;  %v2233_v55 = vld [vmem:[#allocation20] ss:$0 sm:$0xff]  ;;  %2014 = dma.vmem_to_hbm [thread:$0]  %s2007_s19, 512, %s2009_s26, [#allocation24], %s2738_s30, %s2738_s30, %s2745_s4  }
0x10a4   :  { %v1779_v57 = vsub.f32 1.0, %v1778_v53  ;;  %v1751_v59 = vmul.f32 %v1750_v44, %v1726_v54 }
0x10a6   :  { %v1780_v60 = vmul.f32 %v2311_v47, %v1779_v57  ;;  %v2138_v1 = vclamps-f32 %v1751_v59, 1.0 }
0x10a8   :  { %v1781_v62 = vadd.f32 %v2311_v47, %v1780_v60  ;;  %v1794_v5 = vadd.f32 1.0, %v2138_v1 }
0x10aa   :  { %v1785_v63 = vsel %vm1784_vm8, %v2311_v47, %v1781_v62  ;;  %v1796_v18 = vmul.f32 %v1794_v5, %v1710_v6 }
0x10ab   :  { %v1790_v3 = vsel %vm1787_vm9, %v1789_v0, %v1785_v63 }
0x10ac   :  { %v1791_v4 = vmul.f32 %v1790_v3, %v1766_v2 }
0x10ae   :  { %v2139_v43 = vclamps-f32 %v1791_v4, 1.0 }
0x10b0   :  { %v1795_v50 = vadd.f32 1.0, %v2139_v43 }
0x10b2   :  { %v1797_v9 = vmul.f32 %v1795_v50, %v1711_v7 }
0x10b4   :  { %v1806_v10 = vpack.c.bf16 %v1797_v9, %v1796_v18 }
0x10b6   :  { %2156 = vmatmul.msk.bf16.vlgmr.msrb.gmra.mxu3 %vm1835_vm10, %v1806_v10 }
0x1139   :  { %v1848_v11 = vpop.f32.mrf.mxu3 }
0x113a   :  { %v1849_v19 = vadd.f32 %v2231_v13, %v1848_v11 }
0x113c   :  { %v1853_v58 = vadd.f32 %v1849_v19, %v3285_v45 }
0x113e   :  { %v1857_v12 = vsel %vm280_vm0, %v1853_v58, 0.0 }
0x113f   :  { %1858 = vadd.xlane.f32.xlu2 %v1857_v12 }
0x1141   :  { %v1850_v15 = vpop.f32.mrf.mxu3 }
0x1142   :  { %v1851_v26 = vadd.f32 %v2231_v13, %v1850_v15 }
0x1144   :  { %v1854_v49 = vadd.f32 %v1851_v26, %v3287_v46 }
0x1146   :  { %v1860_v56 = vsel %vm280_vm0, %v1854_v49, 0.0 }
0x1147   :  { %1861 = vadd.xlane.f32.xlu1 %v1860_v56 }
0x11b2   :  { %v1859_v16 = vpop.xlane.xlu2 %1858 }
0x11b3   :  { %v1863_v17 = vmul.f32 %v1859_v16, %v3093_v39 }
0x11b5   :  { %v1865_v20 = vsub.f32 %v1853_v58, %v1863_v17 }
0x11b7   :  { %v1867_v21 = vmul.f32 %v1865_v20, %v1865_v20 }
0x11b9   :  { %v1869_v22 = vsel %vm280_vm0, %v1867_v21, 0.0 }
0x11ba   :  { %v1862_v14 = vpop.xlane.xlu1 %1861  ;;  %1870 = vadd.xlane.f32.xlu1 %v1869_v22 }
0x11bb   :  { %v1864_v45 = vmul.f32 %v1862_v14, %v3093_v39 }
0x11bd   :  { %v1866_v23 = vsub.f32 %v1854_v49, %v1864_v45 }
0x11bf   :  { %v1868_v24 = vmul.f32 %v1866_v23, %v1866_v23 }
0x11c1   :  { %v1872_v25 = vsel %vm280_vm0, %v1868_v24, 0.0 }
0x11c2   :  { %1873 = vadd.xlane.f32.xlu1 %v1872_v25 }
0x122d   :  { %v1871_v46 = vpop.xlane.xlu1 %1870 }
0x122e   :  { %v1875_v27 = vmul.f32 %v1871_v46, %v3093_v39 }
0x1230   :  { %v1877_v28 = vadd.f32 1e-12, %v1875_v27 }
0x1232   :  { %2312 = vrsqrt.f32 %v1877_v28  ;;  %vm1885_vm12 = vweird.f32 %v1877_v28 }
0x1235   :  { %v1874_v30 = vpop.xlane.xlu1 %1873 }
0x1236   :  { %v1876_v37 = vmul.f32 %v1874_v30, %v3093_v39 }
0x1238   :  { %v2313_v31 = vpop.eup %2312  ;;  %v1878_v29 = vadd.f32 1e-12, %v1876_v37 }
0x1239   :  { %v1880_v33 = vmul.f32 %v2313_v31, %v1877_v28  ;;  %vm1886_vm11 = vweird.f32 %v2313_v31 }
0x123a   :  { %2314 = vrsqrt.f32 %v1878_v29  ;;  %vm1887_vm13 = vmor %vm1885_vm12, %vm1886_vm11  ;;  %vm1895_vm15 = vweird.f32 %v1878_v29 }
0x123b   :  { %v1881_v35 = vmul.f32 %v2313_v31, %v1880_v33 }
0x123d   :  { %v1882_v38 = vmul.f32 0.5, %v1881_v35 }
0x123f   :  { %v1883_v32 = vsub.f32 1.5, %v1882_v38 }
0x1240   :  { %v2315_v40 = vpop.eup %2314 }
0x1241   :  { %v1884_v39 = vmul.f32 %v2313_v31, %v1883_v32  ;;  %v1890_v41 = vmul.f32 %v2315_v40, %v1878_v29  ;;  %vm1896_vm14 = vweird.f32 %v2315_v40 }
0x1242   :  { %vm1897_vm2 = vmor %vm1895_vm15, %vm1896_vm14 }
0x1243   :  { %v1888_v47 = vsel %vm1887_vm13, %v2313_v31, %v1884_v39  ;;  %v1891_v48 = vmul.f32 %v2315_v40, %v1890_v41 }
0x1244   :  { %v1899_v51 = vmul.f32 %v1888_v47, %v1865_v20 }
0x1245   :  { %v1892_v53 = vmul.f32 0.5, %v1891_v48 }
0x1246   :  { %v1904_v44 = vmul.f32 %v2232_v42, %v1899_v51 }
0x1247   :  { %v1893_v54 = vsub.f32 1.5, %v1892_v53 }
0x1248   :  { %v1909_v57 = vadd.f32 %v2233_v55, %v1904_v44 }
0x1249   :  { %v1894_v52 = vmul.f32 %v2315_v40, %v1893_v54 }
0x124a   :  { %v1911_v8 = vpack.c.bf16 %v1909_v57, %v1909_v57  ;;  %v1916_v59 = vsel %vm280_vm0, %v1909_v57, -inf }
0x124b   :  { %v1917_v60 = vrot.slane %v1916_v59, 4  ;;  %v1898_v61 = vsel %vm1897_vm2, %v2315_v40, %v1894_v52 }
0x124c   :  { %v1900_v62 = vmul.f32 %v1898_v61, %v1866_v23  ;;  %1914 = vst.msk [vmem:[#allocation22] sm:$0xf] %vm1913_vm1, %v1911_v8 }
0x124d   :  { %v1918_v0 = vmax.f32 %v1916_v59, %v1917_v60 }
0x124e   :  { %v1905_v1 = vmul.f32 %v2232_v42, %v1900_v62 }
0x124f   :  { %v1919_v2 = vrot.slane %v1918_v0, 2 }
0x1250   :  { %v1910_v63 = vadd.f32 %v2233_v55, %v1905_v1 }
0x1251   :  { %v1920_v3 = vmax.f32 %v1918_v0, %v1919_v2 }
0x1252   :  { %v1912_v4 = vpack.c.bf16 %v1910_v63, %v1910_v63  ;;  %v1923_v5 = vsel %vm280_vm0, %v1910_v63, -inf }
0x1253   :  { %v1924_v43 = vrot.slane %v1923_v5, 4  ;;  %v1921_v7 = vrot.slane %v1920_v3, 1 }
0x1254   :  { %1915 = vst.msk [vmem:[#allocation22 + $0x4] sm:$0xf] %vm1913_vm1, %v1912_v4 }
0x1255   :  { %v1925_v6 = vmax.f32 %v1923_v5, %v1924_v43  ;;  %v1922_v9 = vmax.f32 %v1920_v3, %v1921_v7  ;;  %1988 = dma.vmem_to_hbm [thread:$0]  %s1981_s5, 128, %s1983_s6, [#allocation4], %s2738_s30, %s2738_s30, %s2745_s4  }
0x1257   :  { %v1926_v50 = vrot.slane %v1925_v6, 2  ;;  %v1934_v11 = vpack.c.bf16 %v1922_v9, %v1922_v9 }
0x1259   :  { %v1927_v18 = vmax.f32 %v1925_v6, %v1926_v50  ;;  %v1938_v58 = vunpack.c.l.b16 %v1934_v11 }
0x125b   :  { %v1928_v10 = vrot.slane %v1927_v18, 1 }
0x125d   :  { %v1929_v13 = vmax.f32 %v1927_v18, %v1928_v10 }
0x125f   :  { %v1935_v19 = vpack.c.bf16 %v1929_v13, %v1929_v13 }
0x1261   :  { %v1939_v12 = vunpack.c.l.b16 %v1935_v19 }
0x1263   :  { %v1941_v15 = vsel %vm1940_vm3, %v1939_v12, %v1938_v58 }
0x1264   :  { %v1942_v26 = vpack.c.b16 %v1941_v15, %v1941_v15 }
0x1266   :  { %2165 = vmatmul.msk.bf16.vlgmr.msrb.gmra.mxu0 %vm280_vm0, %v1942_v26 }
0x12e3   :  { %v1967_v49 = vpop.f32.mrf.mxu0 }
0x12e4   :  { %v1972_v56 = vrot.slane %v1967_v49, 1  ;;  %1974 = vst [vmem:[#allocation26] sm:$0x1] %v1967_v49 }
0x12e6   :  { %1975 = vst [vmem:[#allocation26 + $0x1] sm:$0x1] %v1972_v56 }
0x12e7   :  { %2027 = dma.vmem_to_hbm [thread:$0]  %s2020_s22, 32, %s2022_s11, [#allocation27], %s2749_s27, %s2749_s27, %s2750_s15  }
0x12eb   :  { %v1969_v16 = vpop.f32.mrf.mxu0 }
0x12ec   :  { %2714 = dma.done.wait [#allocation4], 128  }
0x12ed   :  { %2715 = vsyncadd [#allocation4], 4294967168 }
0x12ee   :  { %2716 = dma.done.wait [#allocation24], 1024  }
0x12ef   :  { %2717 = vsyncadd [#allocation24], 4294966272 }
0x12f0   :  { %2718 = dma.done.wait [#allocation27], 32  }
0x12f1   :  { %2719 = vsyncadd [#allocation27], 4294967264 }
0x12f2   :  { %2044 = vsyncpa [#allocation3], 1 }
0x12f3   :  { %2045 = vsyncpa [#allocation6], 1 }
0x12f4   :  { %2046 = vsyncpa [#allocation9], 1 }
0x12f5   :  { %2047 = vsyncpa [#allocation12], 1 }
0x12f6   :  { %2048 = vsyncpa [#allocation15], 1 }
0x12f7   :  { %2049 = vsyncpa [#allocation18], 1 }
0x12f8   :  { %2050 = vsyncpa [#allocation21], 1 }
0x12f9   :  { %2051 = vsyncpa [#allocation4], 1 }
0x12fa   :  { %2052 = vsyncpa [#allocation24], 1 }
0x12fb   :  { %2053 = vsyncpa [#allocation27], 1 }

</bundles_post_ra>
